<compile_context>
chip_gen: v5e
topology: v5e:2x2
jax: 0.10.0
libtpu: 0.0.40
codegen_flags: <defaults>
</compile_context>

<pallas_src>
import jax
import jax.numpy as jnp
from jax.experimental import pallas as pl
from jax.experimental.pallas import tpu as pltpu


def _make_kernel(num_modalities, num_heads, head_dim, block_b, compute_dtype):
    M = num_modalities
    H = num_heads
    hd = head_dim
    C = H * hd

    def kernel(x_ref, wq_ref, wk_ref, wv_ref, wp_ref, b3_ref, o_ref):
        # Weights stay resident for the whole batch block.
        wq = wq_ref[...]      # [M*H, C, hd]   (softmax scale already folded in)
        wk = wk_ref[...]      # [M*H, C, hd]
        wv = wv_ref[...]      # [M*H, C, hd]
        wp = wp_ref[...]      # [M*H, hd, M*C] block-placed output projection
        bias3 = b3_ref[...]   # [1, M*C]  == 3 * concat(proj_bias_i)

        for b in range(block_b):
            # ---- QKV projections, head-batched: each entry is [H, N, hd] ----
            q, k, v = [], [], []
            for i in range(M):
                xi = x_ref[b, i]                                   # [N, C]
                xh = jnp.broadcast_to(xi[None], (H,) + xi.shape)   # [H, N, C]
                sl = slice(i * H, (i + 1) * H)
                q.append(jnp.einsum('hnc,hcd->hnd', xh, wq[sl],
                                    preferred_element_type=jnp.float32
                                    ).astype(compute_dtype))
                k.append(jnp.einsum('hnc,hcd->hnd', xh, wk[sl],
                                    preferred_element_type=jnp.float32
                                    ).astype(compute_dtype))
                v.append(jnp.einsum('hnc,hcd->hnd', xh, wv[sl],
                                    preferred_element_type=jnp.float32
                                    ).astype(compute_dtype))

            # ---- 12 cross pairs; accumulate attention outputs per query modality
            #      BEFORE the output projection (linearity of the projection). ----
            accs = []
            for i in range(M):
                acc = None
                for j in range(M):
                    if j == i:
                        continue
                    s = jnp.einsum('hqd,hkd->hqk', q[i], k[j],
                                   preferred_element_type=jnp.float32)  # [H,N,N]
                    s = s - jnp.max(s, axis=-1, keepdims=True)
                    p = jnp.exp(s)
                    l = jnp.sum(p, axis=-1, keepdims=True)
                    inv = pl.reciprocal(l, approx=True)
                    inv = inv * (2.0 - l * inv)        # one Newton step -> ~f32 exact
                    p = (p * inv).astype(compute_dtype)
                    pv = jnp.einsum('hqk,hkd->hqd', p, v[j],
                                    preferred_element_type=jnp.float32)  # [H,N,hd]
                    acc = pv if acc is None else acc + pv
                accs.append(acc)

            # ---- Output projection applied ONCE per query modality via per-head
            #      blocked weights into the lane-dense [N, 4C] output; +3*bias. ----
            acc_all = jnp.concatenate(accs, axis=0).astype(compute_dtype)  # [M*H,N,hd]
            proj = jnp.einsum('gnd,gdf->gnf', acc_all, wp,
                              preferred_element_type=jnp.float32)          # [M*H,N,M*C]
            o = jnp.sum(proj, axis=0) + bias3                              # [N, M*C]
            o_ref[b] = o.astype(o_ref.dtype)

    return kernel


def cross_attention(m1, m2, m3, m4, params, *, num_heads,
                    compute_dtype=jnp.float32, block_b=None):
    """Pallas implementation of CrossAttention.forward (dropout_rate=0)."""
    mods = (m1, m2, m3, m4)
    M = len(mods)
    B, N, C = m1.shape
    H = num_heads
    hd = C // H
    F = M * C
    G = M * H
    scale = hd ** (-0.5)

    if block_b is None:
        block_b = min(B, 8)
        while B % block_b:
            block_b -= 1

    # ---- Wrapper-side weight preparation (free; outside the kernel) ----
    wq_l, wk_l, wv_l, wp_l, b_l = [], [], [], [], []
    for i in range(M):
        w = params[f"qkv_w{i + 1}"].reshape(3, H, hd, C)        # [s, h, d, c_in]
        wq_l.append(jnp.transpose(w[0], (0, 2, 1)) * scale)     # [H, C, hd] (scale folded)
        wk_l.append(jnp.transpose(w[1], (0, 2, 1)))             # [H, C, hd]
        wv_l.append(jnp.transpose(w[2], (0, 2, 1)))             # [H, C, hd]
        wp_i = params[f"proj_w{i + 1}"].T.reshape(H, hd, C)     # [h, d, c_out]
        wp_blk = jnp.zeros((H, hd, F), jnp.float32).at[:, :, i * C:(i + 1) * C].set(wp_i)
        wp_l.append(wp_blk)                                     # block-placed into 4C cols
        b_l.append(params[f"proj_b{i + 1}"])

    WQ = jnp.concatenate(wq_l, axis=0).astype(compute_dtype)    # [G, C, hd]
    WK = jnp.concatenate(wk_l, axis=0).astype(compute_dtype)    # [G, C, hd]
    WV = jnp.concatenate(wv_l, axis=0).astype(compute_dtype)    # [G, C, hd]
    WP = jnp.concatenate(wp_l, axis=0).astype(compute_dtype)    # [G, hd, F]
    B3 = (3.0 * jnp.concatenate(b_l)).reshape(1, F).astype(jnp.float32)

    X = jnp.stack(mods, axis=1).astype(compute_dtype)           # [B, M, N, C]

    kernel = _make_kernel(M, H, hd, block_b, compute_dtype)

    out = pl.pallas_call(
        kernel,
        out_shape=jax.ShapeDtypeStruct((B, N, F), jnp.float32),
        grid=(B // block_b,),
        in_specs=[
            pl.BlockSpec((block_b, M, N, C), lambda b: (b, 0, 0, 0)),
            pl.BlockSpec((G, C, hd), lambda b: (0, 0, 0)),
            pl.BlockSpec((G, C, hd), lambda b: (0, 0, 0)),
            pl.BlockSpec((G, C, hd), lambda b: (0, 0, 0)),
            pl.BlockSpec((G, hd, F), lambda b: (0, 0, 0)),
            pl.BlockSpec((1, F), lambda b: (0, 0)),
        ],
        out_specs=pl.BlockSpec((block_b, N, F), lambda b: (b, 0, 0)),
        compiler_params=pltpu.CompilerParams(
            dimension_semantics=("parallel",),
            vmem_limit_bytes=32 * 1024 * 1024),
    )(X, WQ, WK, WV, WP, B3)

    # Split the lane-dense concatenated output back into the 4 modality outputs.
    return tuple(out[:, :, i * C:(i + 1) * C] for i in range(M))


def cross_attention_reference(m1, m2, m3, m4, params, *, num_heads):
    """Pure-JAX reference mirroring the PyTorch forward exactly."""
    B, N, C = m1.shape
    hd = C // num_heads
    scale = hd ** (-0.5)

    def split_qkv(m, w):                 # w: [3C, C] torch layout
        y = m @ w.T                      # [B, N, 3C]
        y = y.reshape(B, N, 3, num_heads, hd).transpose(2, 0, 3, 1, 4)
        return y[0], y[1], y[2]          # each [B, H, N, hd]

    q1, k1, v1 = split_qkv(m1, params["qkv_w1"])
    q2, k2, v2 = split_qkv(m2, params["qkv_w2"])
    q3, k3, v3 = split_qkv(m3, params["qkv_w3"])
    q4, k4, v4 = split_qkv(m4, params["qkv_w4"])

    def attn(q, k, v):
        s = jnp.einsum('bhqd,bhkd->bhqk', q, k) * scale
        p = jax.nn.softmax(s, axis=-1)
        o = jnp.einsum('bhqk,bhkd->bhqd', p, v)
        return o.transpose(0, 2, 1, 3).reshape(B, N, C)

    def proj(x, i):
        return x @ params[f"proj_w{i}"].T + params[f"proj_b{i}"]

    o1 = proj(attn(q1, k2, v2), 1) + proj(attn(q1, k3, v3), 1) + proj(attn(q1, k4, v4), 1)
    o2 = proj(attn(q2, k1, v1), 2) + proj(attn(q2, k3, v3), 2) + proj(attn(q2, k4, v4), 2)
    o3 = proj(attn(q3, k1, v1), 3) + proj(attn(q3, k2, v2), 3) + proj(attn(q3, k4, v4), 3)
    o4 = proj(attn(q4, k1, v1), 4) + proj(attn(q4, k2, v2), 4) + proj(attn(q4, k3, v3), 4)
    return o1, o2, o3, o4


def init_params(key, dim):
    """Deterministic synthetic parameters (shapes match the PyTorch module)."""
    params = {}
    keys = jax.random.split(key, 12)
    for i in range(4):
        params[f"qkv_w{i+1}"] = 0.05 * jax.random.normal(
            keys[3 * i + 0], (3 * dim, dim), jnp.float32)        # Linear(dim, 3*dim), no bias
        params[f"proj_w{i+1}"] = 0.05 * jax.random.normal(
            keys[3 * i + 1], (dim, dim), jnp.float32)            # Linear(dim, dim)
        params[f"proj_b{i+1}"] = 0.01 * jax.random.normal(
            keys[3 * i + 2], (dim,), jnp.float32)
    return params


if __name__ == "__main__":
    B, N, C = 2, 16, 32
    HEADS = 4

    root = jax.random.PRNGKey(0)
    kp, k1, k2, k3, k4 = jax.random.split(root, 5)
    params = init_params(kp, C)

    m1 = jax.random.normal(k1, (B, N, C), jnp.float32)
    m2 = jax.random.normal(k2, (B, N, C), jnp.float32)
    m3 = jax.random.normal(k3, (B, N, C), jnp.float32)
    m4 = jax.random.normal(k4, (B, N, C), jnp.float32)

    refs = cross_attention_reference(m1, m2, m3, m4, params, num_heads=HEADS)

    # f32 path (strict check).
    outs = cross_attention(m1, m2, m3, m4, params, num_heads=HEADS,
                           compute_dtype=jnp.float32)
    outs = jax.block_until_ready(outs)
    for o, r in zip(outs, refs):
        assert o.shape == (B, N, C)
        assert jnp.allclose(o, r, atol=1e-3, rtol=1e-3), float(jnp.abs(o - r).max())

    # bf16-input MXU path (v6e/v7x recommendation), f32 accumulation; looser tolerance.
    outs_bf16 = cross_attention(m1, m2, m3, m4, params, num_heads=HEADS,
                                compute_dtype=jnp.bfloat16)
    outs_bf16 = jax.block_until_ready(outs_bf16)
    for o, r in zip(outs_bf16, refs):
        assert o.shape == (B, N, C)
        assert jnp.allclose(o, r, atol=2e-2, rtol=2e-2), float(jnp.abs(o - r).max())

    print("KERNEL_OK")
</pallas_src>

<mosaic_0001>
module attributes {stable_mosaic.version = 11 : i64} {
  func.func @kernel(%arg0: i32, %arg1: memref<2x4x16x32xf32, #tpu.memory_space<vmem>>, %arg2: memref<16x32x8xf32, #tpu.memory_space<vmem>>, %arg3: memref<16x32x8xf32, #tpu.memory_space<vmem>>, %arg4: memref<16x32x8xf32, #tpu.memory_space<vmem>>, %arg5: memref<16x8x128xf32, #tpu.memory_space<vmem>>, %arg6: memref<1x128xf32, #tpu.memory_space<vmem>>, %arg7: memref<2x16x128xf32, #tpu.memory_space<vmem>>) attributes {dimension_semantics = [#tpu.dimension_semantics<parallel>], iteration_bounds = array<i64: 1>, scalar_prefetch = 0 : i64, scratch_operands = 0 : i64, tpu.core_type = #tpu.core_type<tc>, window_params = [{transform_indices = @transform_0, window_bounds = array<i64: 2, 4, 16, 32>}, {pipeline_mode = #tpu.pipeline_mode<synchronous>, transform_indices = @transform_1, window_bounds = array<i64: 16, 32, 8>}, {pipeline_mode = #tpu.pipeline_mode<synchronous>, transform_indices = @transform_2, window_bounds = array<i64: 16, 32, 8>}, {pipeline_mode = #tpu.pipeline_mode<synchronous>, transform_indices = @transform_3, window_bounds = array<i64: 16, 32, 8>}, {pipeline_mode = #tpu.pipeline_mode<synchronous>, transform_indices = @transform_4, window_bounds = array<i64: 16, 8, 128>}, {pipeline_mode = #tpu.pipeline_mode<synchronous>, transform_indices = @transform_5, window_bounds = array<i64: 1, 128>}, {transform_indices = @transform_6, window_bounds = array<i64: 2, 16, 128>}]} {
    %c0 = arith.constant 0 : index
    %c0_0 = arith.constant 0 : index
    %c0_1 = arith.constant 0 : index
    %0 = vector.load %arg2[%c0, %c0_0, %c0_1] : memref<16x32x8xf32, #tpu.memory_space<vmem>>, vector<16x32x8xf32>
    %c0_2 = arith.constant 0 : index
    %c0_3 = arith.constant 0 : index
    %c0_4 = arith.constant 0 : index
    %1 = vector.load %arg3[%c0_2, %c0_3, %c0_4] : memref<16x32x8xf32, #tpu.memory_space<vmem>>, vector<16x32x8xf32>
    %c0_5 = arith.constant 0 : index
    %c0_6 = arith.constant 0 : index
    %c0_7 = arith.constant 0 : index
    %2 = vector.load %arg4[%c0_5, %c0_6, %c0_7] : memref<16x32x8xf32, #tpu.memory_space<vmem>>, vector<16x32x8xf32>
    %c0_8 = arith.constant 0 : index
    %c0_9 = arith.constant 0 : index
    %c0_10 = arith.constant 0 : index
    %3 = vector.load %arg5[%c0_8, %c0_9, %c0_10] : memref<16x8x128xf32, #tpu.memory_space<vmem>>, vector<16x8x128xf32>
    %c0_11 = arith.constant 0 : index
    %c0_12 = arith.constant 0 : index
    %4 = vector.load %arg6[%c0_11, %c0_12] : memref<1x128xf32, #tpu.memory_space<vmem>>, vector<1x128xf32>
    %c0_13 = arith.constant 0 : index
    %c0_14 = arith.constant 0 : index
    %c0_15 = arith.constant 0 : index
    %c0_16 = arith.constant 0 : index
    %5 = vector.load %arg1[%c0_13, %c0_14, %c0_15, %c0_16] : memref<2x4x16x32xf32, #tpu.memory_space<vmem>>, vector<1x1x16x32xf32>
    %6 = vector.shape_cast %5 : vector<1x1x16x32xf32> to vector<16x32xf32>
    %7 = vector.shape_cast %6 : vector<16x32xf32> to vector<1x16x32xf32>
    %8 = vector.shape_cast %7 : vector<1x16x32xf32> to vector<1x16x32xf32>
    %9 = vector.broadcast %8 : vector<1x16x32xf32> to vector<4x16x32xf32>
    %10 = vector.extract_strided_slice %0 {offsets = [0, 0, 0], sizes = [4, 32, 8], strides = [1, 1, 1]} : vector<16x32x8xf32> to vector<4x32x8xf32>
    "tpu.trace_start"() <{level = 10 : i32, message = "hnc,hcd->hnd"}> : () -> ()
    %cst = arith.constant dense<0.000000e+00> : vector<4x16x8xf32>
    %11 = tpu.matmul %9, %10, %cst {dimension_numbers = #tpu.dot_dimension_numbers<[2], [1], [1], [2], [0, 0, 0, 1, 1, 2], [0], [0]>} : vector<4x16x32xf32>, vector<4x32x8xf32>, vector<4x16x8xf32> -> vector<4x16x8xf32>
    "tpu.trace_stop"() : () -> ()
    %12 = vector.extract_strided_slice %1 {offsets = [0, 0, 0], sizes = [4, 32, 8], strides = [1, 1, 1]} : vector<16x32x8xf32> to vector<4x32x8xf32>
    "tpu.trace_start"() <{level = 10 : i32, message = "hnc,hcd->hnd"}> : () -> ()
    %cst_17 = arith.constant dense<0.000000e+00> : vector<4x16x8xf32>
    %13 = tpu.matmul %9, %12, %cst_17 {dimension_numbers = #tpu.dot_dimension_numbers<[2], [1], [1], [2], [0, 0, 0, 1, 1, 2], [0], [0]>} : vector<4x16x32xf32>, vector<4x32x8xf32>, vector<4x16x8xf32> -> vector<4x16x8xf32>
    "tpu.trace_stop"() : () -> ()
    %14 = vector.extract_strided_slice %2 {offsets = [0, 0, 0], sizes = [4, 32, 8], strides = [1, 1, 1]} : vector<16x32x8xf32> to vector<4x32x8xf32>
    "tpu.trace_start"() <{level = 10 : i32, message = "hnc,hcd->hnd"}> : () -> ()
    %cst_18 = arith.constant dense<0.000000e+00> : vector<4x16x8xf32>
    %15 = tpu.matmul %9, %14, %cst_18 {dimension_numbers = #tpu.dot_dimension_numbers<[2], [1], [1], [2], [0, 0, 0, 1, 1, 2], [0], [0]>} : vector<4x16x32xf32>, vector<4x32x8xf32>, vector<4x16x8xf32> -> vector<4x16x8xf32>
    "tpu.trace_stop"() : () -> ()
    %c0_19 = arith.constant 0 : index
    %c1 = arith.constant 1 : index
    %c0_20 = arith.constant 0 : index
    %c0_21 = arith.constant 0 : index
    %16 = vector.load %arg1[%c0_19, %c1, %c0_20, %c0_21] : memref<2x4x16x32xf32, #tpu.memory_space<vmem>>, vector<1x1x16x32xf32>
    %17 = vector.shape_cast %16 : vector<1x1x16x32xf32> to vector<16x32xf32>
    %18 = vector.shape_cast %17 : vector<16x32xf32> to vector<1x16x32xf32>
    %19 = vector.shape_cast %18 : vector<1x16x32xf32> to vector<1x16x32xf32>
    %20 = vector.broadcast %19 : vector<1x16x32xf32> to vector<4x16x32xf32>
    %21 = vector.extract_strided_slice %0 {offsets = [4, 0, 0], sizes = [4, 32, 8], strides = [1, 1, 1]} : vector<16x32x8xf32> to vector<4x32x8xf32>
    "tpu.trace_start"() <{level = 10 : i32, message = "hnc,hcd->hnd"}> : () -> ()
    %cst_22 = arith.constant dense<0.000000e+00> : vector<4x16x8xf32>
    %22 = tpu.matmul %20, %21, %cst_22 {dimension_numbers = #tpu.dot_dimension_numbers<[2], [1], [1], [2], [0, 0, 0, 1, 1, 2], [0], [0]>} : vector<4x16x32xf32>, vector<4x32x8xf32>, vector<4x16x8xf32> -> vector<4x16x8xf32>
    "tpu.trace_stop"() : () -> ()
    %23 = vector.extract_strided_slice %1 {offsets = [4, 0, 0], sizes = [4, 32, 8], strides = [1, 1, 1]} : vector<16x32x8xf32> to vector<4x32x8xf32>
    "tpu.trace_start"() <{level = 10 : i32, message = "hnc,hcd->hnd"}> : () -> ()
    %cst_23 = arith.constant dense<0.000000e+00> : vector<4x16x8xf32>
    %24 = tpu.matmul %20, %23, %cst_23 {dimension_numbers = #tpu.dot_dimension_numbers<[2], [1], [1], [2], [0, 0, 0, 1, 1, 2], [0], [0]>} : vector<4x16x32xf32>, vector<4x32x8xf32>, vector<4x16x8xf32> -> vector<4x16x8xf32>
    "tpu.trace_stop"() : () -> ()
    %25 = vector.extract_strided_slice %2 {offsets = [4, 0, 0], sizes = [4, 32, 8], strides = [1, 1, 1]} : vector<16x32x8xf32> to vector<4x32x8xf32>
    "tpu.trace_start"() <{level = 10 : i32, message = "hnc,hcd->hnd"}> : () -> ()
    %cst_24 = arith.constant dense<0.000000e+00> : vector<4x16x8xf32>
    %26 = tpu.matmul %20, %25, %cst_24 {dimension_numbers = #tpu.dot_dimension_numbers<[2], [1], [1], [2], [0, 0, 0, 1, 1, 2], [0], [0]>} : vector<4x16x32xf32>, vector<4x32x8xf32>, vector<4x16x8xf32> -> vector<4x16x8xf32>
    "tpu.trace_stop"() : () -> ()
    %c0_25 = arith.constant 0 : index
    %c2 = arith.constant 2 : index
    %c0_26 = arith.constant 0 : index
    %c0_27 = arith.constant 0 : index
    %27 = vector.load %arg1[%c0_25, %c2, %c0_26, %c0_27] : memref<2x4x16x32xf32, #tpu.memory_space<vmem>>, vector<1x1x16x32xf32>
    %28 = vector.shape_cast %27 : vector<1x1x16x32xf32> to vector<16x32xf32>
    %29 = vector.shape_cast %28 : vector<16x32xf32> to vector<1x16x32xf32>
    %30 = vector.shape_cast %29 : vector<1x16x32xf32> to vector<1x16x32xf32>
    %31 = vector.broadcast %30 : vector<1x16x32xf32> to vector<4x16x32xf32>
    %32 = vector.extract_strided_slice %0 {offsets = [8, 0, 0], sizes = [4, 32, 8], strides = [1, 1, 1]} : vector<16x32x8xf32> to vector<4x32x8xf32>
    "tpu.trace_start"() <{level = 10 : i32, message = "hnc,hcd->hnd"}> : () -> ()
    %cst_28 = arith.constant dense<0.000000e+00> : vector<4x16x8xf32>
    %33 = tpu.matmul %31, %32, %cst_28 {dimension_numbers = #tpu.dot_dimension_numbers<[2], [1], [1], [2], [0, 0, 0, 1, 1, 2], [0], [0]>} : vector<4x16x32xf32>, vector<4x32x8xf32>, vector<4x16x8xf32> -> vector<4x16x8xf32>
    "tpu.trace_stop"() : () -> ()
    %34 = vector.extract_strided_slice %1 {offsets = [8, 0, 0], sizes = [4, 32, 8], strides = [1, 1, 1]} : vector<16x32x8xf32> to vector<4x32x8xf32>
    "tpu.trace_start"() <{level = 10 : i32, message = "hnc,hcd->hnd"}> : () -> ()
    %cst_29 = arith.constant dense<0.000000e+00> : vector<4x16x8xf32>
    %35 = tpu.matmul %31, %34, %cst_29 {dimension_numbers = #tpu.dot_dimension_numbers<[2], [1], [1], [2], [0, 0, 0, 1, 1, 2], [0], [0]>} : vector<4x16x32xf32>, vector<4x32x8xf32>, vector<4x16x8xf32> -> vector<4x16x8xf32>
    "tpu.trace_stop"() : () -> ()
    %36 = vector.extract_strided_slice %2 {offsets = [8, 0, 0], sizes = [4, 32, 8], strides = [1, 1, 1]} : vector<16x32x8xf32> to vector<4x32x8xf32>
    "tpu.trace_start"() <{level = 10 : i32, message = "hnc,hcd->hnd"}> : () -> ()
    %cst_30 = arith.constant dense<0.000000e+00> : vector<4x16x8xf32>
    %37 = tpu.matmul %31, %36, %cst_30 {dimension_numbers = #tpu.dot_dimension_numbers<[2], [1], [1], [2], [0, 0, 0, 1, 1, 2], [0], [0]>} : vector<4x16x32xf32>, vector<4x32x8xf32>, vector<4x16x8xf32> -> vector<4x16x8xf32>
    "tpu.trace_stop"() : () -> ()
    %c0_31 = arith.constant 0 : index
    %c3 = arith.constant 3 : index
    %c0_32 = arith.constant 0 : index
    %c0_33 = arith.constant 0 : index
    %38 = vector.load %arg1[%c0_31, %c3, %c0_32, %c0_33] : memref<2x4x16x32xf32, #tpu.memory_space<vmem>>, vector<1x1x16x32xf32>
    %39 = vector.shape_cast %38 : vector<1x1x16x32xf32> to vector<16x32xf32>
    %40 = vector.shape_cast %39 : vector<16x32xf32> to vector<1x16x32xf32>
    %41 = vector.shape_cast %40 : vector<1x16x32xf32> to vector<1x16x32xf32>
    %42 = vector.broadcast %41 : vector<1x16x32xf32> to vector<4x16x32xf32>
    %43 = vector.extract_strided_slice %0 {offsets = [12, 0, 0], sizes = [4, 32, 8], strides = [1, 1, 1]} : vector<16x32x8xf32> to vector<4x32x8xf32>
    "tpu.trace_start"() <{level = 10 : i32, message = "hnc,hcd->hnd"}> : () -> ()
    %cst_34 = arith.constant dense<0.000000e+00> : vector<4x16x8xf32>
    %44 = tpu.matmul %42, %43, %cst_34 {dimension_numbers = #tpu.dot_dimension_numbers<[2], [1], [1], [2], [0, 0, 0, 1, 1, 2], [0], [0]>} : vector<4x16x32xf32>, vector<4x32x8xf32>, vector<4x16x8xf32> -> vector<4x16x8xf32>
    "tpu.trace_stop"() : () -> ()
    %45 = vector.extract_strided_slice %1 {offsets = [12, 0, 0], sizes = [4, 32, 8], strides = [1, 1, 1]} : vector<16x32x8xf32> to vector<4x32x8xf32>
    "tpu.trace_start"() <{level = 10 : i32, message = "hnc,hcd->hnd"}> : () -> ()
    %cst_35 = arith.constant dense<0.000000e+00> : vector<4x16x8xf32>
    %46 = tpu.matmul %42, %45, %cst_35 {dimension_numbers = #tpu.dot_dimension_numbers<[2], [1], [1], [2], [0, 0, 0, 1, 1, 2], [0], [0]>} : vector<4x16x32xf32>, vector<4x32x8xf32>, vector<4x16x8xf32> -> vector<4x16x8xf32>
    "tpu.trace_stop"() : () -> ()
    %47 = vector.extract_strided_slice %2 {offsets = [12, 0, 0], sizes = [4, 32, 8], strides = [1, 1, 1]} : vector<16x32x8xf32> to vector<4x32x8xf32>
    "tpu.trace_start"() <{level = 10 : i32, message = "hnc,hcd->hnd"}> : () -> ()
    %cst_36 = arith.constant dense<0.000000e+00> : vector<4x16x8xf32>
    %48 = tpu.matmul %42, %47, %cst_36 {dimension_numbers = #tpu.dot_dimension_numbers<[2], [1], [1], [2], [0, 0, 0, 1, 1, 2], [0], [0]>} : vector<4x16x32xf32>, vector<4x32x8xf32>, vector<4x16x8xf32> -> vector<4x16x8xf32>
    "tpu.trace_stop"() : () -> ()
    "tpu.trace_start"() <{level = 10 : i32, message = "hqd,hkd->hqk"}> : () -> ()
    %cst_37 = arith.constant dense<0.000000e+00> : vector<4x16x16xf32>
    %49 = tpu.matmul %11, %24, %cst_37 {dimension_numbers = #tpu.dot_dimension_numbers<[2], [2], [1], [1], [0, 0, 0, 1, 1, 1], [0], [0]>} : vector<4x16x8xf32>, vector<4x16x8xf32>, vector<4x16x16xf32> -> vector<4x16x16xf32>
    "tpu.trace_stop"() : () -> ()
    %cst_38 = arith.constant dense<0xFF800000> : vector<4x16xf32>
    %50 = vector.multi_reduction <maximumf>, %49, %cst_38 [2] : vector<4x16x16xf32> to vector<4x16xf32>
    %51 = vector.shape_cast %50 : vector<4x16xf32> to vector<4x16x1xf32>
    %52 = vector.broadcast %51 : vector<4x16x1xf32> to vector<4x16x16xf32>
    %53 = arith.subf %49, %52 : vector<4x16x16xf32>
    %54 = math.exp %53 : vector<4x16x16xf32>
    %cst_39 = arith.constant dense<0.000000e+00> : vector<4x16xf32>
    %55 = vector.multi_reduction <add>, %54, %cst_39 [2] : vector<4x16x16xf32> to vector<4x16xf32>
    %56 = vector.shape_cast %55 : vector<4x16xf32> to vector<4x16x1xf32>
    %57 = tpu.reciprocal %56 {approx = true} : vector<4x16x1xf32> -> vector<4x16x1xf32>
    %58 = arith.mulf %56, %57 : vector<4x16x1xf32>
    %cst_40 = arith.constant 2.000000e+00 : f32
    %59 = vector.broadcast %cst_40 : f32 to vector<4x16x1xf32>
    %60 = arith.subf %59, %58 : vector<4x16x1xf32>
    %61 = arith.mulf %57, %60 : vector<4x16x1xf32>
    %62 = vector.broadcast %61 : vector<4x16x1xf32> to vector<4x16x16xf32>
    %63 = arith.mulf %54, %62 : vector<4x16x16xf32>
    "tpu.trace_start"() <{level = 10 : i32, message = "hqk,hkd->hqd"}> : () -> ()
    %cst_41 = arith.constant dense<0.000000e+00> : vector<4x16x8xf32>
    %64 = tpu.matmul %63, %26, %cst_41 {dimension_numbers = #tpu.dot_dimension_numbers<[2], [1], [1], [2], [0, 0, 0, 1, 1, 2], [0], [0]>} : vector<4x16x16xf32>, vector<4x16x8xf32>, vector<4x16x8xf32> -> vector<4x16x8xf32>
    "tpu.trace_stop"() : () -> ()
    "tpu.trace_start"() <{level = 10 : i32, message = "hqd,hkd->hqk"}> : () -> ()
    %cst_42 = arith.constant dense<0.000000e+00> : vector<4x16x16xf32>
    %65 = tpu.matmul %11, %35, %cst_42 {dimension_numbers = #tpu.dot_dimension_numbers<[2], [2], [1], [1], [0, 0, 0, 1, 1, 1], [0], [0]>} : vector<4x16x8xf32>, vector<4x16x8xf32>, vector<4x16x16xf32> -> vector<4x16x16xf32>
    "tpu.trace_stop"() : () -> ()
    %cst_43 = arith.constant dense<0xFF800000> : vector<4x16xf32>
    %66 = vector.multi_reduction <maximumf>, %65, %cst_43 [2] : vector<4x16x16xf32> to vector<4x16xf32>
    %67 = vector.shape_cast %66 : vector<4x16xf32> to vector<4x16x1xf32>
    %68 = vector.broadcast %67 : vector<4x16x1xf32> to vector<4x16x16xf32>
    %69 = arith.subf %65, %68 : vector<4x16x16xf32>
    %70 = math.exp %69 : vector<4x16x16xf32>
    %cst_44 = arith.constant dense<0.000000e+00> : vector<4x16xf32>
    %71 = vector.multi_reduction <add>, %70, %cst_44 [2] : vector<4x16x16xf32> to vector<4x16xf32>
    %72 = vector.shape_cast %71 : vector<4x16xf32> to vector<4x16x1xf32>
    %73 = tpu.reciprocal %72 {approx = true} : vector<4x16x1xf32> -> vector<4x16x1xf32>
    %74 = arith.mulf %72, %73 : vector<4x16x1xf32>
    %cst_45 = arith.constant 2.000000e+00 : f32
    %75 = vector.broadcast %cst_45 : f32 to vector<4x16x1xf32>
    %76 = arith.subf %75, %74 : vector<4x16x1xf32>
    %77 = arith.mulf %73, %76 : vector<4x16x1xf32>
    %78 = vector.broadcast %77 : vector<4x16x1xf32> to vector<4x16x16xf32>
    %79 = arith.mulf %70, %78 : vector<4x16x16xf32>
    "tpu.trace_start"() <{level = 10 : i32, message = "hqk,hkd->hqd"}> : () -> ()
    %cst_46 = arith.constant dense<0.000000e+00> : vector<4x16x8xf32>
    %80 = tpu.matmul %79, %37, %cst_46 {dimension_numbers = #tpu.dot_dimension_numbers<[2], [1], [1], [2], [0, 0, 0, 1, 1, 2], [0], [0]>} : vector<4x16x16xf32>, vector<4x16x8xf32>, vector<4x16x8xf32> -> vector<4x16x8xf32>
    "tpu.trace_stop"() : () -> ()
    %81 = arith.addf %64, %80 : vector<4x16x8xf32>
    "tpu.trace_start"() <{level = 10 : i32, message = "hqd,hkd->hqk"}> : () -> ()
    %cst_47 = arith.constant dense<0.000000e+00> : vector<4x16x16xf32>
    %82 = tpu.matmul %11, %46, %cst_47 {dimension_numbers = #tpu.dot_dimension_numbers<[2], [2], [1], [1], [0, 0, 0, 1, 1, 1], [0], [0]>} : vector<4x16x8xf32>, vector<4x16x8xf32>, vector<4x16x16xf32> -> vector<4x16x16xf32>
    "tpu.trace_stop"() : () -> ()
    %cst_48 = arith.constant dense<0xFF800000> : vector<4x16xf32>
    %83 = vector.multi_reduction <maximumf>, %82, %cst_48 [2] : vector<4x16x16xf32> to vector<4x16xf32>
    %84 = vector.shape_cast %83 : vector<4x16xf32> to vector<4x16x1xf32>
    %85 = vector.broadcast %84 : vector<4x16x1xf32> to vector<4x16x16xf32>
    %86 = arith.subf %82, %85 : vector<4x16x16xf32>
    %87 = math.exp %86 : vector<4x16x16xf32>
    %cst_49 = arith.constant dense<0.000000e+00> : vector<4x16xf32>
    %88 = vector.multi_reduction <add>, %87, %cst_49 [2] : vector<4x16x16xf32> to vector<4x16xf32>
    %89 = vector.shape_cast %88 : vector<4x16xf32> to vector<4x16x1xf32>
    %90 = tpu.reciprocal %89 {approx = true} : vector<4x16x1xf32> -> vector<4x16x1xf32>
    %91 = arith.mulf %89, %90 : vector<4x16x1xf32>
    %cst_50 = arith.constant 2.000000e+00 : f32
    %92 = vector.broadcast %cst_50 : f32 to vector<4x16x1xf32>
    %93 = arith.subf %92, %91 : vector<4x16x1xf32>
    %94 = arith.mulf %90, %93 : vector<4x16x1xf32>
    %95 = vector.broadcast %94 : vector<4x16x1xf32> to vector<4x16x16xf32>
    %96 = arith.mulf %87, %95 : vector<4x16x16xf32>
    "tpu.trace_start"() <{level = 10 : i32, message = "hqk,hkd->hqd"}> : () -> ()
    %cst_51 = arith.constant dense<0.000000e+00> : vector<4x16x8xf32>
    %97 = tpu.matmul %96, %48, %cst_51 {dimension_numbers = #tpu.dot_dimension_numbers<[2], [1], [1], [2], [0, 0, 0, 1, 1, 2], [0], [0]>} : vector<4x16x16xf32>, vector<4x16x8xf32>, vector<4x16x8xf32> -> vector<4x16x8xf32>
    "tpu.trace_stop"() : () -> ()
    %98 = arith.addf %81, %97 : vector<4x16x8xf32>
    "tpu.trace_start"() <{level = 10 : i32, message = "hqd,hkd->hqk"}> : () -> ()
    %cst_52 = arith.constant dense<0.000000e+00> : vector<4x16x16xf32>
    %99 = tpu.matmul %22, %13, %cst_52 {dimension_numbers = #tpu.dot_dimension_numbers<[2], [2], [1], [1], [0, 0, 0, 1, 1, 1], [0], [0]>} : vector<4x16x8xf32>, vector<4x16x8xf32>, vector<4x16x16xf32> -> vector<4x16x16xf32>
    "tpu.trace_stop"() : () -> ()
    %cst_53 = arith.constant dense<0xFF800000> : vector<4x16xf32>
    %100 = vector.multi_reduction <maximumf>, %99, %cst_53 [2] : vector<4x16x16xf32> to vector<4x16xf32>
    %101 = vector.shape_cast %100 : vector<4x16xf32> to vector<4x16x1xf32>
    %102 = vector.broadcast %101 : vector<4x16x1xf32> to vector<4x16x16xf32>
    %103 = arith.subf %99, %102 : vector<4x16x16xf32>
    %104 = math.exp %103 : vector<4x16x16xf32>
    %cst_54 = arith.constant dense<0.000000e+00> : vector<4x16xf32>
    %105 = vector.multi_reduction <add>, %104, %cst_54 [2] : vector<4x16x16xf32> to vector<4x16xf32>
    %106 = vector.shape_cast %105 : vector<4x16xf32> to vector<4x16x1xf32>
    %107 = tpu.reciprocal %106 {approx = true} : vector<4x16x1xf32> -> vector<4x16x1xf32>
    %108 = arith.mulf %106, %107 : vector<4x16x1xf32>
    %cst_55 = arith.constant 2.000000e+00 : f32
    %109 = vector.broadcast %cst_55 : f32 to vector<4x16x1xf32>
    %110 = arith.subf %109, %108 : vector<4x16x1xf32>
    %111 = arith.mulf %107, %110 : vector<4x16x1xf32>
    %112 = vector.broadcast %111 : vector<4x16x1xf32> to vector<4x16x16xf32>
    %113 = arith.mulf %104, %112 : vector<4x16x16xf32>
    "tpu.trace_start"() <{level = 10 : i32, message = "hqk,hkd->hqd"}> : () -> ()
    %cst_56 = arith.constant dense<0.000000e+00> : vector<4x16x8xf32>
    %114 = tpu.matmul %113, %15, %cst_56 {dimension_numbers = #tpu.dot_dimension_numbers<[2], [1], [1], [2], [0, 0, 0, 1, 1, 2], [0], [0]>} : vector<4x16x16xf32>, vector<4x16x8xf32>, vector<4x16x8xf32> -> vector<4x16x8xf32>
    "tpu.trace_stop"() : () -> ()
    "tpu.trace_start"() <{level = 10 : i32, message = "hqd,hkd->hqk"}> : () -> ()
    %cst_57 = arith.constant dense<0.000000e+00> : vector<4x16x16xf32>
    %115 = tpu.matmul %22, %35, %cst_57 {dimension_numbers = #tpu.dot_dimension_numbers<[2], [2], [1], [1], [0, 0, 0, 1, 1, 1], [0], [0]>} : vector<4x16x8xf32>, vector<4x16x8xf32>, vector<4x16x16xf32> -> vector<4x16x16xf32>
    "tpu.trace_stop"() : () -> ()
    %cst_58 = arith.constant dense<0xFF800000> : vector<4x16xf32>
    %116 = vector.multi_reduction <maximumf>, %115, %cst_58 [2] : vector<4x16x16xf32> to vector<4x16xf32>
    %117 = vector.shape_cast %116 : vector<4x16xf32> to vector<4x16x1xf32>
    %118 = vector.broadcast %117 : vector<4x16x1xf32> to vector<4x16x16xf32>
    %119 = arith.subf %115, %118 : vector<4x16x16xf32>
    %120 = math.exp %119 : vector<4x16x16xf32>
    %cst_59 = arith.constant dense<0.000000e+00> : vector<4x16xf32>
    %121 = vector.multi_reduction <add>, %120, %cst_59 [2] : vector<4x16x16xf32> to vector<4x16xf32>
    %122 = vector.shape_cast %121 : vector<4x16xf32> to vector<4x16x1xf32>
    %123 = tpu.reciprocal %122 {approx = true} : vector<4x16x1xf32> -> vector<4x16x1xf32>
    %124 = arith.mulf %122, %123 : vector<4x16x1xf32>
    %cst_60 = arith.constant 2.000000e+00 : f32
    %125 = vector.broadcast %cst_60 : f32 to vector<4x16x1xf32>
    %126 = arith.subf %125, %124 : vector<4x16x1xf32>
    %127 = arith.mulf %123, %126 : vector<4x16x1xf32>
    %128 = vector.broadcast %127 : vector<4x16x1xf32> to vector<4x16x16xf32>
    %129 = arith.mulf %120, %128 : vector<4x16x16xf32>
    "tpu.trace_start"() <{level = 10 : i32, message = "hqk,hkd->hqd"}> : () -> ()
    %cst_61 = arith.constant dense<0.000000e+00> : vector<4x16x8xf32>
    %130 = tpu.matmul %129, %37, %cst_61 {dimension_numbers = #tpu.dot_dimension_numbers<[2], [1], [1], [2], [0, 0, 0, 1, 1, 2], [0], [0]>} : vector<4x16x16xf32>, vector<4x16x8xf32>, vector<4x16x8xf32> -> vector<4x16x8xf32>
    "tpu.trace_stop"() : () -> ()
    %131 = arith.addf %114, %130 : vector<4x16x8xf32>
    "tpu.trace_start"() <{level = 10 : i32, message = "hqd,hkd->hqk"}> : () -> ()
    %cst_62 = arith.constant dense<0.000000e+00> : vector<4x16x16xf32>
    %132 = tpu.matmul %22, %46, %cst_62 {dimension_numbers = #tpu.dot_dimension_numbers<[2], [2], [1], [1], [0, 0, 0, 1, 1, 1], [0], [0]>} : vector<4x16x8xf32>, vector<4x16x8xf32>, vector<4x16x16xf32> -> vector<4x16x16xf32>
    "tpu.trace_stop"() : () -> ()
    %cst_63 = arith.constant dense<0xFF800000> : vector<4x16xf32>
    %133 = vector.multi_reduction <maximumf>, %132, %cst_63 [2] : vector<4x16x16xf32> to vector<4x16xf32>
    %134 = vector.shape_cast %133 : vector<4x16xf32> to vector<4x16x1xf32>
    %135 = vector.broadcast %134 : vector<4x16x1xf32> to vector<4x16x16xf32>
    %136 = arith.subf %132, %135 : vector<4x16x16xf32>
    %137 = math.exp %136 : vector<4x16x16xf32>
    %cst_64 = arith.constant dense<0.000000e+00> : vector<4x16xf32>
    %138 = vector.multi_reduction <add>, %137, %cst_64 [2] : vector<4x16x16xf32> to vector<4x16xf32>
    %139 = vector.shape_cast %138 : vector<4x16xf32> to vector<4x16x1xf32>
    %140 = tpu.reciprocal %139 {approx = true} : vector<4x16x1xf32> -> vector<4x16x1xf32>
    %141 = arith.mulf %139, %140 : vector<4x16x1xf32>
    %cst_65 = arith.constant 2.000000e+00 : f32
    %142 = vector.broadcast %cst_65 : f32 to vector<4x16x1xf32>
    %143 = arith.subf %142, %141 : vector<4x16x1xf32>
    %144 = arith.mulf %140, %143 : vector<4x16x1xf32>
    %145 = vector.broadcast %144 : vector<4x16x1xf32> to vector<4x16x16xf32>
    %146 = arith.mulf %137, %145 : vector<4x16x16xf32>
    "tpu.trace_start"() <{level = 10 : i32, message = "hqk,hkd->hqd"}> : () -> ()
    %cst_66 = arith.constant dense<0.000000e+00> : vector<4x16x8xf32>
    %147 = tpu.matmul %146, %48, %cst_66 {dimension_numbers = #tpu.dot_dimension_numbers<[2], [1], [1], [2], [0, 0, 0, 1, 1, 2], [0], [0]>} : vector<4x16x16xf32>, vector<4x16x8xf32>, vector<4x16x8xf32> -> vector<4x16x8xf32>
    "tpu.trace_stop"() : () -> ()
    %148 = arith.addf %131, %147 : vector<4x16x8xf32>
    "tpu.trace_start"() <{level = 10 : i32, message = "hqd,hkd->hqk"}> : () -> ()
    %cst_67 = arith.constant dense<0.000000e+00> : vector<4x16x16xf32>
    %149 = tpu.matmul %33, %13, %cst_67 {dimension_numbers = #tpu.dot_dimension_numbers<[2], [2], [1], [1], [0, 0, 0, 1, 1, 1], [0], [0]>} : vector<4x16x8xf32>, vector<4x16x8xf32>, vector<4x16x16xf32> -> vector<4x16x16xf32>
    "tpu.trace_stop"() : () -> ()
    %cst_68 = arith.constant dense<0xFF800000> : vector<4x16xf32>
    %150 = vector.multi_reduction <maximumf>, %149, %cst_68 [2] : vector<4x16x16xf32> to vector<4x16xf32>
    %151 = vector.shape_cast %150 : vector<4x16xf32> to vector<4x16x1xf32>
    %152 = vector.broadcast %151 : vector<4x16x1xf32> to vector<4x16x16xf32>
    %153 = arith.subf %149, %152 : vector<4x16x16xf32>
    %154 = math.exp %153 : vector<4x16x16xf32>
    %cst_69 = arith.constant dense<0.000000e+00> : vector<4x16xf32>
    %155 = vector.multi_reduction <add>, %154, %cst_69 [2] : vector<4x16x16xf32> to vector<4x16xf32>
    %156 = vector.shape_cast %155 : vector<4x16xf32> to vector<4x16x1xf32>
    %157 = tpu.reciprocal %156 {approx = true} : vector<4x16x1xf32> -> vector<4x16x1xf32>
    %158 = arith.mulf %156, %157 : vector<4x16x1xf32>
    %cst_70 = arith.constant 2.000000e+00 : f32
    %159 = vector.broadcast %cst_70 : f32 to vector<4x16x1xf32>
    %160 = arith.subf %159, %158 : vector<4x16x1xf32>
    %161 = arith.mulf %157, %160 : vector<4x16x1xf32>
    %162 = vector.broadcast %161 : vector<4x16x1xf32> to vector<4x16x16xf32>
    %163 = arith.mulf %154, %162 : vector<4x16x16xf32>
    "tpu.trace_start"() <{level = 10 : i32, message = "hqk,hkd->hqd"}> : () -> ()
    %cst_71 = arith.constant dense<0.000000e+00> : vector<4x16x8xf32>
    %164 = tpu.matmul %163, %15, %cst_71 {dimension_numbers = #tpu.dot_dimension_numbers<[2], [1], [1], [2], [0, 0, 0, 1, 1, 2], [0], [0]>} : vector<4x16x16xf32>, vector<4x16x8xf32>, vector<4x16x8xf32> -> vector<4x16x8xf32>
    "tpu.trace_stop"() : () -> ()
    "tpu.trace_start"() <{level = 10 : i32, message = "hqd,hkd->hqk"}> : () -> ()
    %cst_72 = arith.constant dense<0.000000e+00> : vector<4x16x16xf32>
    %165 = tpu.matmul %33, %24, %cst_72 {dimension_numbers = #tpu.dot_dimension_numbers<[2], [2], [1], [1], [0, 0, 0, 1, 1, 1], [0], [0]>} : vector<4x16x8xf32>, vector<4x16x8xf32>, vector<4x16x16xf32> -> vector<4x16x16xf32>
    "tpu.trace_stop"() : () -> ()
    %cst_73 = arith.constant dense<0xFF800000> : vector<4x16xf32>
    %166 = vector.multi_reduction <maximumf>, %165, %cst_73 [2] : vector<4x16x16xf32> to vector<4x16xf32>
    %167 = vector.shape_cast %166 : vector<4x16xf32> to vector<4x16x1xf32>
    %168 = vector.broadcast %167 : vector<4x16x1xf32> to vector<4x16x16xf32>
    %169 = arith.subf %165, %168 : vector<4x16x16xf32>
    %170 = math.exp %169 : vector<4x16x16xf32>
    %cst_74 = arith.constant dense<0.000000e+00> : vector<4x16xf32>
    %171 = vector.multi_reduction <add>, %170, %cst_74 [2] : vector<4x16x16xf32> to vector<4x16xf32>
    %172 = vector.shape_cast %171 : vector<4x16xf32> to vector<4x16x1xf32>
    %173 = tpu.reciprocal %172 {approx = true} : vector<4x16x1xf32> -> vector<4x16x1xf32>
    %174 = arith.mulf %172, %173 : vector<4x16x1xf32>
    %cst_75 = arith.constant 2.000000e+00 : f32
    %175 = vector.broadcast %cst_75 : f32 to vector<4x16x1xf32>
    %176 = arith.subf %175, %174 : vector<4x16x1xf32>
    %177 = arith.mulf %173, %176 : vector<4x16x1xf32>
    %178 = vector.broadcast %177 : vector<4x16x1xf32> to vector<4x16x16xf32>
    %179 = arith.mulf %170, %178 : vector<4x16x16xf32>
    "tpu.trace_start"() <{level = 10 : i32, message = "hqk,hkd->hqd"}> : () -> ()
    %cst_76 = arith.constant dense<0.000000e+00> : vector<4x16x8xf32>
    %180 = tpu.matmul %179, %26, %cst_76 {dimension_numbers = #tpu.dot_dimension_numbers<[2], [1], [1], [2], [0, 0, 0, 1, 1, 2], [0], [0]>} : vector<4x16x16xf32>, vector<4x16x8xf32>, vector<4x16x8xf32> -> vector<4x16x8xf32>
    "tpu.trace_stop"() : () -> ()
    %181 = arith.addf %164, %180 : vector<4x16x8xf32>
    "tpu.trace_start"() <{level = 10 : i32, message = "hqd,hkd->hqk"}> : () -> ()
    %cst_77 = arith.constant dense<0.000000e+00> : vector<4x16x16xf32>
    %182 = tpu.matmul %33, %46, %cst_77 {dimension_numbers = #tpu.dot_dimension_numbers<[2], [2], [1], [1], [0, 0, 0, 1, 1, 1], [0], [0]>} : vector<4x16x8xf32>, vector<4x16x8xf32>, vector<4x16x16xf32> -> vector<4x16x16xf32>
    "tpu.trace_stop"() : () -> ()
    %cst_78 = arith.constant dense<0xFF800000> : vector<4x16xf32>
    %183 = vector.multi_reduction <maximumf>, %182, %cst_78 [2] : vector<4x16x16xf32> to vector<4x16xf32>
    %184 = vector.shape_cast %183 : vector<4x16xf32> to vector<4x16x1xf32>
    %185 = vector.broadcast %184 : vector<4x16x1xf32> to vector<4x16x16xf32>
    %186 = arith.subf %182, %185 : vector<4x16x16xf32>
    %187 = math.exp %186 : vector<4x16x16xf32>
    %cst_79 = arith.constant dense<0.000000e+00> : vector<4x16xf32>
    %188 = vector.multi_reduction <add>, %187, %cst_79 [2] : vector<4x16x16xf32> to vector<4x16xf32>
    %189 = vector.shape_cast %188 : vector<4x16xf32> to vector<4x16x1xf32>
    %190 = tpu.reciprocal %189 {approx = true} : vector<4x16x1xf32> -> vector<4x16x1xf32>
    %191 = arith.mulf %189, %190 : vector<4x16x1xf32>
    %cst_80 = arith.constant 2.000000e+00 : f32
    %192 = vector.broadcast %cst_80 : f32 to vector<4x16x1xf32>
    %193 = arith.subf %192, %191 : vector<4x16x1xf32>
    %194 = arith.mulf %190, %193 : vector<4x16x1xf32>
    %195 = vector.broadcast %194 : vector<4x16x1xf32> to vector<4x16x16xf32>
    %196 = arith.mulf %187, %195 : vector<4x16x16xf32>
    "tpu.trace_start"() <{level = 10 : i32, message = "hqk,hkd->hqd"}> : () -> ()
    %cst_81 = arith.constant dense<0.000000e+00> : vector<4x16x8xf32>
    %197 = tpu.matmul %196, %48, %cst_81 {dimension_numbers = #tpu.dot_dimension_numbers<[2], [1], [1], [2], [0, 0, 0, 1, 1, 2], [0], [0]>} : vector<4x16x16xf32>, vector<4x16x8xf32>, vector<4x16x8xf32> -> vector<4x16x8xf32>
    "tpu.trace_stop"() : () -> ()
    %198 = arith.addf %181, %197 : vector<4x16x8xf32>
    "tpu.trace_start"() <{level = 10 : i32, message = "hqd,hkd->hqk"}> : () -> ()
    %cst_82 = arith.constant dense<0.000000e+00> : vector<4x16x16xf32>
    %199 = tpu.matmul %44, %13, %cst_82 {dimension_numbers = #tpu.dot_dimension_numbers<[2], [2], [1], [1], [0, 0, 0, 1, 1, 1], [0], [0]>} : vector<4x16x8xf32>, vector<4x16x8xf32>, vector<4x16x16xf32> -> vector<4x16x16xf32>
    "tpu.trace_stop"() : () -> ()
    %cst_83 = arith.constant dense<0xFF800000> : vector<4x16xf32>
    %200 = vector.multi_reduction <maximumf>, %199, %cst_83 [2] : vector<4x16x16xf32> to vector<4x16xf32>
    %201 = vector.shape_cast %200 : vector<4x16xf32> to vector<4x16x1xf32>
    %202 = vector.broadcast %201 : vector<4x16x1xf32> to vector<4x16x16xf32>
    %203 = arith.subf %199, %202 : vector<4x16x16xf32>
    %204 = math.exp %203 : vector<4x16x16xf32>
    %cst_84 = arith.constant dense<0.000000e+00> : vector<4x16xf32>
    %205 = vector.multi_reduction <add>, %204, %cst_84 [2] : vector<4x16x16xf32> to vector<4x16xf32>
    %206 = vector.shape_cast %205 : vector<4x16xf32> to vector<4x16x1xf32>
    %207 = tpu.reciprocal %206 {approx = true} : vector<4x16x1xf32> -> vector<4x16x1xf32>
    %208 = arith.mulf %206, %207 : vector<4x16x1xf32>
    %cst_85 = arith.constant 2.000000e+00 : f32
    %209 = vector.broadcast %cst_85 : f32 to vector<4x16x1xf32>
    %210 = arith.subf %209, %208 : vector<4x16x1xf32>
    %211 = arith.mulf %207, %210 : vector<4x16x1xf32>
    %212 = vector.broadcast %211 : vector<4x16x1xf32> to vector<4x16x16xf32>
    %213 = arith.mulf %204, %212 : vector<4x16x16xf32>
    "tpu.trace_start"() <{level = 10 : i32, message = "hqk,hkd->hqd"}> : () -> ()
    %cst_86 = arith.constant dense<0.000000e+00> : vector<4x16x8xf32>
    %214 = tpu.matmul %213, %15, %cst_86 {dimension_numbers = #tpu.dot_dimension_numbers<[2], [1], [1], [2], [0, 0, 0, 1, 1, 2], [0], [0]>} : vector<4x16x16xf32>, vector<4x16x8xf32>, vector<4x16x8xf32> -> vector<4x16x8xf32>
    "tpu.trace_stop"() : () -> ()
    "tpu.trace_start"() <{level = 10 : i32, message = "hqd,hkd->hqk"}> : () -> ()
    %cst_87 = arith.constant dense<0.000000e+00> : vector<4x16x16xf32>
    %215 = tpu.matmul %44, %24, %cst_87 {dimension_numbers = #tpu.dot_dimension_numbers<[2], [2], [1], [1], [0, 0, 0, 1, 1, 1], [0], [0]>} : vector<4x16x8xf32>, vector<4x16x8xf32>, vector<4x16x16xf32> -> vector<4x16x16xf32>
    "tpu.trace_stop"() : () -> ()
    %cst_88 = arith.constant dense<0xFF800000> : vector<4x16xf32>
    %216 = vector.multi_reduction <maximumf>, %215, %cst_88 [2] : vector<4x16x16xf32> to vector<4x16xf32>
    %217 = vector.shape_cast %216 : vector<4x16xf32> to vector<4x16x1xf32>
    %218 = vector.broadcast %217 : vector<4x16x1xf32> to vector<4x16x16xf32>
    %219 = arith.subf %215, %218 : vector<4x16x16xf32>
    %220 = math.exp %219 : vector<4x16x16xf32>
    %cst_89 = arith.constant dense<0.000000e+00> : vector<4x16xf32>
    %221 = vector.multi_reduction <add>, %220, %cst_89 [2] : vector<4x16x16xf32> to vector<4x16xf32>
    %222 = vector.shape_cast %221 : vector<4x16xf32> to vector<4x16x1xf32>
    %223 = tpu.reciprocal %222 {approx = true} : vector<4x16x1xf32> -> vector<4x16x1xf32>
    %224 = arith.mulf %222, %223 : vector<4x16x1xf32>
    %cst_90 = arith.constant 2.000000e+00 : f32
    %225 = vector.broadcast %cst_90 : f32 to vector<4x16x1xf32>
    %226 = arith.subf %225, %224 : vector<4x16x1xf32>
    %227 = arith.mulf %223, %226 : vector<4x16x1xf32>
    %228 = vector.broadcast %227 : vector<4x16x1xf32> to vector<4x16x16xf32>
    %229 = arith.mulf %220, %228 : vector<4x16x16xf32>
    "tpu.trace_start"() <{level = 10 : i32, message = "hqk,hkd->hqd"}> : () -> ()
    %cst_91 = arith.constant dense<0.000000e+00> : vector<4x16x8xf32>
    %230 = tpu.matmul %229, %26, %cst_91 {dimension_numbers = #tpu.dot_dimension_numbers<[2], [1], [1], [2], [0, 0, 0, 1, 1, 2], [0], [0]>} : vector<4x16x16xf32>, vector<4x16x8xf32>, vector<4x16x8xf32> -> vector<4x16x8xf32>
    "tpu.trace_stop"() : () -> ()
    %231 = arith.addf %214, %230 : vector<4x16x8xf32>
    "tpu.trace_start"() <{level = 10 : i32, message = "hqd,hkd->hqk"}> : () -> ()
    %cst_92 = arith.constant dense<0.000000e+00> : vector<4x16x16xf32>
    %232 = tpu.matmul %44, %35, %cst_92 {dimension_numbers = #tpu.dot_dimension_numbers<[2], [2], [1], [1], [0, 0, 0, 1, 1, 1], [0], [0]>} : vector<4x16x8xf32>, vector<4x16x8xf32>, vector<4x16x16xf32> -> vector<4x16x16xf32>
    "tpu.trace_stop"() : () -> ()
    %cst_93 = arith.constant dense<0xFF800000> : vector<4x16xf32>
    %233 = vector.multi_reduction <maximumf>, %232, %cst_93 [2] : vector<4x16x16xf32> to vector<4x16xf32>
    %234 = vector.shape_cast %233 : vector<4x16xf32> to vector<4x16x1xf32>
    %235 = vector.broadcast %234 : vector<4x16x1xf32> to vector<4x16x16xf32>
    %236 = arith.subf %232, %235 : vector<4x16x16xf32>
    %237 = math.exp %236 : vector<4x16x16xf32>
    %cst_94 = arith.constant dense<0.000000e+00> : vector<4x16xf32>
    %238 = vector.multi_reduction <add>, %237, %cst_94 [2] : vector<4x16x16xf32> to vector<4x16xf32>
    %239 = vector.shape_cast %238 : vector<4x16xf32> to vector<4x16x1xf32>
    %240 = tpu.reciprocal %239 {approx = true} : vector<4x16x1xf32> -> vector<4x16x1xf32>
    %241 = arith.mulf %239, %240 : vector<4x16x1xf32>
    %cst_95 = arith.constant 2.000000e+00 : f32
    %242 = vector.broadcast %cst_95 : f32 to vector<4x16x1xf32>
    %243 = arith.subf %242, %241 : vector<4x16x1xf32>
    %244 = arith.mulf %240, %243 : vector<4x16x1xf32>
    %245 = vector.broadcast %244 : vector<4x16x1xf32> to vector<4x16x16xf32>
    %246 = arith.mulf %237, %245 : vector<4x16x16xf32>
    "tpu.trace_start"() <{level = 10 : i32, message = "hqk,hkd->hqd"}> : () -> ()
    %cst_96 = arith.constant dense<0.000000e+00> : vector<4x16x8xf32>
    %247 = tpu.matmul %246, %37, %cst_96 {dimension_numbers = #tpu.dot_dimension_numbers<[2], [1], [1], [2], [0, 0, 0, 1, 1, 2], [0], [0]>} : vector<4x16x16xf32>, vector<4x16x8xf32>, vector<4x16x8xf32> -> vector<4x16x8xf32>
    "tpu.trace_stop"() : () -> ()
    %248 = arith.addf %231, %247 : vector<4x16x8xf32>
    %249 = tpu.concatenate %98, %148, %198, %248 in 0 : vector<4x16x8xf32>, vector<4x16x8xf32>, vector<4x16x8xf32>, vector<4x16x8xf32> -> vector<16x16x8xf32>
    "tpu.trace_start"() <{level = 10 : i32, message = "gnd,gdf->gnf"}> : () -> ()
    %cst_97 = arith.constant dense<0.000000e+00> : vector<16x16x128xf32>
    %250 = tpu.matmul %249, %3, %cst_97 {dimension_numbers = #tpu.dot_dimension_numbers<[2], [1], [1], [2], [0, 0, 0, 1, 1, 2], [0], [0]>} : vector<16x16x8xf32>, vector<16x8x128xf32>, vector<16x16x128xf32> -> vector<16x16x128xf32>
    "tpu.trace_stop"() : () -> ()
    %cst_98 = arith.constant dense<0.000000e+00> : vector<16x128xf32>
    %251 = vector.multi_reduction <add>, %250, %cst_98 [0] : vector<16x16x128xf32> to vector<16x128xf32>
    %252 = vector.broadcast %4 : vector<1x128xf32> to vector<16x128xf32>
    %253 = arith.addf %251, %252 : vector<16x128xf32>
    %c0_99 = arith.constant 0 : index
    %c0_100 = arith.constant 0 : index
    %c0_101 = arith.constant 0 : index
    %254 = vector.load %arg7[%c0_99, %c0_100, %c0_101] : memref<2x16x128xf32, #tpu.memory_space<vmem>>, vector<1x16x128xf32>
    %255 = vector.shape_cast %254 : vector<1x16x128xf32> to vector<16x128xf32>
    %256 = vector.shape_cast %253 : vector<16x128xf32> to vector<1x16x128xf32>
    tpu.vector_store %arg7[%c0_99, %c0_100, %c0_101], %256 {strides = array<i32>} : memref<2x16x128xf32, #tpu.memory_space<vmem>>, vector<1x16x128xf32>,
    %c1_102 = arith.constant 1 : index
    %c0_103 = arith.constant 0 : index
    %c0_104 = arith.constant 0 : index
    %c0_105 = arith.constant 0 : index
    %257 = vector.load %arg1[%c1_102, %c0_103, %c0_104, %c0_105] : memref<2x4x16x32xf32, #tpu.memory_space<vmem>>, vector<1x1x16x32xf32>
    %258 = vector.shape_cast %257 : vector<1x1x16x32xf32> to vector<16x32xf32>
    %259 = vector.shape_cast %258 : vector<16x32xf32> to vector<1x16x32xf32>
    %260 = vector.shape_cast %259 : vector<1x16x32xf32> to vector<1x16x32xf32>
    %261 = vector.broadcast %260 : vector<1x16x32xf32> to vector<4x16x32xf32>
    %262 = vector.extract_strided_slice %0 {offsets = [0, 0, 0], sizes = [4, 32, 8], strides = [1, 1, 1]} : vector<16x32x8xf32> to vector<4x32x8xf32>
    "tpu.trace_start"() <{level = 10 : i32, message = "hnc,hcd->hnd"}> : () -> ()
    %cst_106 = arith.constant dense<0.000000e+00> : vector<4x16x8xf32>
    %263 = tpu.matmul %261, %262, %cst_106 {dimension_numbers = #tpu.dot_dimension_numbers<[2], [1], [1], [2], [0, 0, 0, 1, 1, 2], [0], [0]>} : vector<4x16x32xf32>, vector<4x32x8xf32>, vector<4x16x8xf32> -> vector<4x16x8xf32>
    "tpu.trace_stop"() : () -> ()
    %264 = vector.extract_strided_slice %1 {offsets = [0, 0, 0], sizes = [4, 32, 8], strides = [1, 1, 1]} : vector<16x32x8xf32> to vector<4x32x8xf32>
    "tpu.trace_start"() <{level = 10 : i32, message = "hnc,hcd->hnd"}> : () -> ()
    %cst_107 = arith.constant dense<0.000000e+00> : vector<4x16x8xf32>
    %265 = tpu.matmul %261, %264, %cst_107 {dimension_numbers = #tpu.dot_dimension_numbers<[2], [1], [1], [2], [0, 0, 0, 1, 1, 2], [0], [0]>} : vector<4x16x32xf32>, vector<4x32x8xf32>, vector<4x16x8xf32> -> vector<4x16x8xf32>
    "tpu.trace_stop"() : () -> ()
    %266 = vector.extract_strided_slice %2 {offsets = [0, 0, 0], sizes = [4, 32, 8], strides = [1, 1, 1]} : vector<16x32x8xf32> to vector<4x32x8xf32>
    "tpu.trace_start"() <{level = 10 : i32, message = "hnc,hcd->hnd"}> : () -> ()
    %cst_108 = arith.constant dense<0.000000e+00> : vector<4x16x8xf32>
    %267 = tpu.matmul %261, %266, %cst_108 {dimension_numbers = #tpu.dot_dimension_numbers<[2], [1], [1], [2], [0, 0, 0, 1, 1, 2], [0], [0]>} : vector<4x16x32xf32>, vector<4x32x8xf32>, vector<4x16x8xf32> -> vector<4x16x8xf32>
    "tpu.trace_stop"() : () -> ()
    %c1_109 = arith.constant 1 : index
    %c1_110 = arith.constant 1 : index
    %c0_111 = arith.constant 0 : index
    %c0_112 = arith.constant 0 : index
    %268 = vector.load %arg1[%c1_109, %c1_110, %c0_111, %c0_112] : memref<2x4x16x32xf32, #tpu.memory_space<vmem>>, vector<1x1x16x32xf32>
    %269 = vector.shape_cast %268 : vector<1x1x16x32xf32> to vector<16x32xf32>
    %270 = vector.shape_cast %269 : vector<16x32xf32> to vector<1x16x32xf32>
    %271 = vector.shape_cast %270 : vector<1x16x32xf32> to vector<1x16x32xf32>
    %272 = vector.broadcast %271 : vector<1x16x32xf32> to vector<4x16x32xf32>
    %273 = vector.extract_strided_slice %0 {offsets = [4, 0, 0], sizes = [4, 32, 8], strides = [1, 1, 1]} : vector<16x32x8xf32> to vector<4x32x8xf32>
    "tpu.trace_start"() <{level = 10 : i32, message = "hnc,hcd->hnd"}> : () -> ()
    %cst_113 = arith.constant dense<0.000000e+00> : vector<4x16x8xf32>
    %274 = tpu.matmul %272, %273, %cst_113 {dimension_numbers = #tpu.dot_dimension_numbers<[2], [1], [1], [2], [0, 0, 0, 1, 1, 2], [0], [0]>} : vector<4x16x32xf32>, vector<4x32x8xf32>, vector<4x16x8xf32> -> vector<4x16x8xf32>
    "tpu.trace_stop"() : () -> ()
    %275 = vector.extract_strided_slice %1 {offsets = [4, 0, 0], sizes = [4, 32, 8], strides = [1, 1, 1]} : vector<16x32x8xf32> to vector<4x32x8xf32>
    "tpu.trace_start"() <{level = 10 : i32, message = "hnc,hcd->hnd"}> : () -> ()
    %cst_114 = arith.constant dense<0.000000e+00> : vector<4x16x8xf32>
    %276 = tpu.matmul %272, %275, %cst_114 {dimension_numbers = #tpu.dot_dimension_numbers<[2], [1], [1], [2], [0, 0, 0, 1, 1, 2], [0], [0]>} : vector<4x16x32xf32>, vector<4x32x8xf32>, vector<4x16x8xf32> -> vector<4x16x8xf32>
    "tpu.trace_stop"() : () -> ()
    %277 = vector.extract_strided_slice %2 {offsets = [4, 0, 0], sizes = [4, 32, 8], strides = [1, 1, 1]} : vector<16x32x8xf32> to vector<4x32x8xf32>
    "tpu.trace_start"() <{level = 10 : i32, message = "hnc,hcd->hnd"}> : () -> ()
    %cst_115 = arith.constant dense<0.000000e+00> : vector<4x16x8xf32>
    %278 = tpu.matmul %272, %277, %cst_115 {dimension_numbers = #tpu.dot_dimension_numbers<[2], [1], [1], [2], [0, 0, 0, 1, 1, 2], [0], [0]>} : vector<4x16x32xf32>, vector<4x32x8xf32>, vector<4x16x8xf32> -> vector<4x16x8xf32>
    "tpu.trace_stop"() : () -> ()
    %c1_116 = arith.constant 1 : index
    %c2_117 = arith.constant 2 : index
    %c0_118 = arith.constant 0 : index
    %c0_119 = arith.constant 0 : index
    %279 = vector.load %arg1[%c1_116, %c2_117, %c0_118, %c0_119] : memref<2x4x16x32xf32, #tpu.memory_space<vmem>>, vector<1x1x16x32xf32>
    %280 = vector.shape_cast %279 : vector<1x1x16x32xf32> to vector<16x32xf32>
    %281 = vector.shape_cast %280 : vector<16x32xf32> to vector<1x16x32xf32>
    %282 = vector.shape_cast %281 : vector<1x16x32xf32> to vector<1x16x32xf32>
    %283 = vector.broadcast %282 : vector<1x16x32xf32> to vector<4x16x32xf32>
    %284 = vector.extract_strided_slice %0 {offsets = [8, 0, 0], sizes = [4, 32, 8], strides = [1, 1, 1]} : vector<16x32x8xf32> to vector<4x32x8xf32>
    "tpu.trace_start"() <{level = 10 : i32, message = "hnc,hcd->hnd"}> : () -> ()
    %cst_120 = arith.constant dense<0.000000e+00> : vector<4x16x8xf32>
    %285 = tpu.matmul %283, %284, %cst_120 {dimension_numbers = #tpu.dot_dimension_numbers<[2], [1], [1], [2], [0, 0, 0, 1, 1, 2], [0], [0]>} : vector<4x16x32xf32>, vector<4x32x8xf32>, vector<4x16x8xf32> -> vector<4x16x8xf32>
    "tpu.trace_stop"() : () -> ()
    %286 = vector.extract_strided_slice %1 {offsets = [8, 0, 0], sizes = [4, 32, 8], strides = [1, 1, 1]} : vector<16x32x8xf32> to vector<4x32x8xf32>
    "tpu.trace_start"() <{level = 10 : i32, message = "hnc,hcd->hnd"}> : () -> ()
    %cst_121 = arith.constant dense<0.000000e+00> : vector<4x16x8xf32>
    %287 = tpu.matmul %283, %286, %cst_121 {dimension_numbers = #tpu.dot_dimension_numbers<[2], [1], [1], [2], [0, 0, 0, 1, 1, 2], [0], [0]>} : vector<4x16x32xf32>, vector<4x32x8xf32>, vector<4x16x8xf32> -> vector<4x16x8xf32>
    "tpu.trace_stop"() : () -> ()
    %288 = vector.extract_strided_slice %2 {offsets = [8, 0, 0], sizes = [4, 32, 8], strides = [1, 1, 1]} : vector<16x32x8xf32> to vector<4x32x8xf32>
    "tpu.trace_start"() <{level = 10 : i32, message = "hnc,hcd->hnd"}> : () -> ()
    %cst_122 = arith.constant dense<0.000000e+00> : vector<4x16x8xf32>
    %289 = tpu.matmul %283, %288, %cst_122 {dimension_numbers = #tpu.dot_dimension_numbers<[2], [1], [1], [2], [0, 0, 0, 1, 1, 2], [0], [0]>} : vector<4x16x32xf32>, vector<4x32x8xf32>, vector<4x16x8xf32> -> vector<4x16x8xf32>
    "tpu.trace_stop"() : () -> ()
    %c1_123 = arith.constant 1 : index
    %c3_124 = arith.constant 3 : index
    %c0_125 = arith.constant 0 : index
    %c0_126 = arith.constant 0 : index
    %290 = vector.load %arg1[%c1_123, %c3_124, %c0_125, %c0_126] : memref<2x4x16x32xf32, #tpu.memory_space<vmem>>, vector<1x1x16x32xf32>
    %291 = vector.shape_cast %290 : vector<1x1x16x32xf32> to vector<16x32xf32>
    %292 = vector.shape_cast %291 : vector<16x32xf32> to vector<1x16x32xf32>
    %293 = vector.shape_cast %292 : vector<1x16x32xf32> to vector<1x16x32xf32>
    %294 = vector.broadcast %293 : vector<1x16x32xf32> to vector<4x16x32xf32>
    %295 = vector.extract_strided_slice %0 {offsets = [12, 0, 0], sizes = [4, 32, 8], strides = [1, 1, 1]} : vector<16x32x8xf32> to vector<4x32x8xf32>
    "tpu.trace_start"() <{level = 10 : i32, message = "hnc,hcd->hnd"}> : () -> ()
    %cst_127 = arith.constant dense<0.000000e+00> : vector<4x16x8xf32>
    %296 = tpu.matmul %294, %295, %cst_127 {dimension_numbers = #tpu.dot_dimension_numbers<[2], [1], [1], [2], [0, 0, 0, 1, 1, 2], [0], [0]>} : vector<4x16x32xf32>, vector<4x32x8xf32>, vector<4x16x8xf32> -> vector<4x16x8xf32>
    "tpu.trace_stop"() : () -> ()
    %297 = vector.extract_strided_slice %1 {offsets = [12, 0, 0], sizes = [4, 32, 8], strides = [1, 1, 1]} : vector<16x32x8xf32> to vector<4x32x8xf32>
    "tpu.trace_start"() <{level = 10 : i32, message = "hnc,hcd->hnd"}> : () -> ()
    %cst_128 = arith.constant dense<0.000000e+00> : vector<4x16x8xf32>
    %298 = tpu.matmul %294, %297, %cst_128 {dimension_numbers = #tpu.dot_dimension_numbers<[2], [1], [1], [2], [0, 0, 0, 1, 1, 2], [0], [0]>} : vector<4x16x32xf32>, vector<4x32x8xf32>, vector<4x16x8xf32> -> vector<4x16x8xf32>
    "tpu.trace_stop"() : () -> ()
    %299 = vector.extract_strided_slice %2 {offsets = [12, 0, 0], sizes = [4, 32, 8], strides = [1, 1, 1]} : vector<16x32x8xf32> to vector<4x32x8xf32>
    "tpu.trace_start"() <{level = 10 : i32, message = "hnc,hcd->hnd"}> : () -> ()
    %cst_129 = arith.constant dense<0.000000e+00> : vector<4x16x8xf32>
    %300 = tpu.matmul %294, %299, %cst_129 {dimension_numbers = #tpu.dot_dimension_numbers<[2], [1], [1], [2], [0, 0, 0, 1, 1, 2], [0], [0]>} : vector<4x16x32xf32>, vector<4x32x8xf32>, vector<4x16x8xf32> -> vector<4x16x8xf32>
    "tpu.trace_stop"() : () -> ()
    "tpu.trace_start"() <{level = 10 : i32, message = "hqd,hkd->hqk"}> : () -> ()
    %cst_130 = arith.constant dense<0.000000e+00> : vector<4x16x16xf32>
    %301 = tpu.matmul %263, %276, %cst_130 {dimension_numbers = #tpu.dot_dimension_numbers<[2], [2], [1], [1], [0, 0, 0, 1, 1, 1], [0], [0]>} : vector<4x16x8xf32>, vector<4x16x8xf32>, vector<4x16x16xf32> -> vector<4x16x16xf32>
    "tpu.trace_stop"() : () -> ()
    %cst_131 = arith.constant dense<0xFF800000> : vector<4x16xf32>
    %302 = vector.multi_reduction <maximumf>, %301, %cst_131 [2] : vector<4x16x16xf32> to vector<4x16xf32>
    %303 = vector.shape_cast %302 : vector<4x16xf32> to vector<4x16x1xf32>
    %304 = vector.broadcast %303 : vector<4x16x1xf32> to vector<4x16x16xf32>
    %305 = arith.subf %301, %304 : vector<4x16x16xf32>
    %306 = math.exp %305 : vector<4x16x16xf32>
    %cst_132 = arith.constant dense<0.000000e+00> : vector<4x16xf32>
    %307 = vector.multi_reduction <add>, %306, %cst_132 [2] : vector<4x16x16xf32> to vector<4x16xf32>
    %308 = vector.shape_cast %307 : vector<4x16xf32> to vector<4x16x1xf32>
    %309 = tpu.reciprocal %308 {approx = true} : vector<4x16x1xf32> -> vector<4x16x1xf32>
    %310 = arith.mulf %308, %309 : vector<4x16x1xf32>
    %cst_133 = arith.constant 2.000000e+00 : f32
    %311 = vector.broadcast %cst_133 : f32 to vector<4x16x1xf32>
    %312 = arith.subf %311, %310 : vector<4x16x1xf32>
    %313 = arith.mulf %309, %312 : vector<4x16x1xf32>
    %314 = vector.broadcast %313 : vector<4x16x1xf32> to vector<4x16x16xf32>
    %315 = arith.mulf %306, %314 : vector<4x16x16xf32>
    "tpu.trace_start"() <{level = 10 : i32, message = "hqk,hkd->hqd"}> : () -> ()
    %cst_134 = arith.constant dense<0.000000e+00> : vector<4x16x8xf32>
    %316 = tpu.matmul %315, %278, %cst_134 {dimension_numbers = #tpu.dot_dimension_numbers<[2], [1], [1], [2], [0, 0, 0, 1, 1, 2], [0], [0]>} : vector<4x16x16xf32>, vector<4x16x8xf32>, vector<4x16x8xf32> -> vector<4x16x8xf32>
    "tpu.trace_stop"() : () -> ()
    "tpu.trace_start"() <{level = 10 : i32, message = "hqd,hkd->hqk"}> : () -> ()
    %cst_135 = arith.constant dense<0.000000e+00> : vector<4x16x16xf32>
    %317 = tpu.matmul %263, %287, %cst_135 {dimension_numbers = #tpu.dot_dimension_numbers<[2], [2], [1], [1], [0, 0, 0, 1, 1, 1], [0], [0]>} : vector<4x16x8xf32>, vector<4x16x8xf32>, vector<4x16x16xf32> -> vector<4x16x16xf32>
    "tpu.trace_stop"() : () -> ()
    %cst_136 = arith.constant dense<0xFF800000> : vector<4x16xf32>
    %318 = vector.multi_reduction <maximumf>, %317, %cst_136 [2] : vector<4x16x16xf32> to vector<4x16xf32>
    %319 = vector.shape_cast %318 : vector<4x16xf32> to vector<4x16x1xf32>
    %320 = vector.broadcast %319 : vector<4x16x1xf32> to vector<4x16x16xf32>
    %321 = arith.subf %317, %320 : vector<4x16x16xf32>
    %322 = math.exp %321 : vector<4x16x16xf32>
    %cst_137 = arith.constant dense<0.000000e+00> : vector<4x16xf32>
    %323 = vector.multi_reduction <add>, %322, %cst_137 [2] : vector<4x16x16xf32> to vector<4x16xf32>
    %324 = vector.shape_cast %323 : vector<4x16xf32> to vector<4x16x1xf32>
    %325 = tpu.reciprocal %324 {approx = true} : vector<4x16x1xf32> -> vector<4x16x1xf32>
    %326 = arith.mulf %324, %325 : vector<4x16x1xf32>
    %cst_138 = arith.constant 2.000000e+00 : f32
    %327 = vector.broadcast %cst_138 : f32 to vector<4x16x1xf32>
    %328 = arith.subf %327, %326 : vector<4x16x1xf32>
    %329 = arith.mulf %325, %328 : vector<4x16x1xf32>
    %330 = vector.broadcast %329 : vector<4x16x1xf32> to vector<4x16x16xf32>
    %331 = arith.mulf %322, %330 : vector<4x16x16xf32>
    "tpu.trace_start"() <{level = 10 : i32, message = "hqk,hkd->hqd"}> : () -> ()
    %cst_139 = arith.constant dense<0.000000e+00> : vector<4x16x8xf32>
    %332 = tpu.matmul %331, %289, %cst_139 {dimension_numbers = #tpu.dot_dimension_numbers<[2], [1], [1], [2], [0, 0, 0, 1, 1, 2], [0], [0]>} : vector<4x16x16xf32>, vector<4x16x8xf32>, vector<4x16x8xf32> -> vector<4x16x8xf32>
    "tpu.trace_stop"() : () -> ()
    %333 = arith.addf %316, %332 : vector<4x16x8xf32>
    "tpu.trace_start"() <{level = 10 : i32, message = "hqd,hkd->hqk"}> : () -> ()
    %cst_140 = arith.constant dense<0.000000e+00> : vector<4x16x16xf32>
    %334 = tpu.matmul %263, %298, %cst_140 {dimension_numbers = #tpu.dot_dimension_numbers<[2], [2], [1], [1], [0, 0, 0, 1, 1, 1], [0], [0]>} : vector<4x16x8xf32>, vector<4x16x8xf32>, vector<4x16x16xf32> -> vector<4x16x16xf32>
    "tpu.trace_stop"() : () -> ()
    %cst_141 = arith.constant dense<0xFF800000> : vector<4x16xf32>
    %335 = vector.multi_reduction <maximumf>, %334, %cst_141 [2] : vector<4x16x16xf32> to vector<4x16xf32>
    %336 = vector.shape_cast %335 : vector<4x16xf32> to vector<4x16x1xf32>
    %337 = vector.broadcast %336 : vector<4x16x1xf32> to vector<4x16x16xf32>
    %338 = arith.subf %334, %337 : vector<4x16x16xf32>
    %339 = math.exp %338 : vector<4x16x16xf32>
    %cst_142 = arith.constant dense<0.000000e+00> : vector<4x16xf32>
    %340 = vector.multi_reduction <add>, %339, %cst_142 [2] : vector<4x16x16xf32> to vector<4x16xf32>
    %341 = vector.shape_cast %340 : vector<4x16xf32> to vector<4x16x1xf32>
    %342 = tpu.reciprocal %341 {approx = true} : vector<4x16x1xf32> -> vector<4x16x1xf32>
    %343 = arith.mulf %341, %342 : vector<4x16x1xf32>
    %cst_143 = arith.constant 2.000000e+00 : f32
    %344 = vector.broadcast %cst_143 : f32 to vector<4x16x1xf32>
    %345 = arith.subf %344, %343 : vector<4x16x1xf32>
    %346 = arith.mulf %342, %345 : vector<4x16x1xf32>
    %347 = vector.broadcast %346 : vector<4x16x1xf32> to vector<4x16x16xf32>
    %348 = arith.mulf %339, %347 : vector<4x16x16xf32>
    "tpu.trace_start"() <{level = 10 : i32, message = "hqk,hkd->hqd"}> : () -> ()
    %cst_144 = arith.constant dense<0.000000e+00> : vector<4x16x8xf32>
    %349 = tpu.matmul %348, %300, %cst_144 {dimension_numbers = #tpu.dot_dimension_numbers<[2], [1], [1], [2], [0, 0, 0, 1, 1, 2], [0], [0]>} : vector<4x16x16xf32>, vector<4x16x8xf32>, vector<4x16x8xf32> -> vector<4x16x8xf32>
    "tpu.trace_stop"() : () -> ()
    %350 = arith.addf %333, %349 : vector<4x16x8xf32>
    "tpu.trace_start"() <{level = 10 : i32, message = "hqd,hkd->hqk"}> : () -> ()
    %cst_145 = arith.constant dense<0.000000e+00> : vector<4x16x16xf32>
    %351 = tpu.matmul %274, %265, %cst_145 {dimension_numbers = #tpu.dot_dimension_numbers<[2], [2], [1], [1], [0, 0, 0, 1, 1, 1], [0], [0]>} : vector<4x16x8xf32>, vector<4x16x8xf32>, vector<4x16x16xf32> -> vector<4x16x16xf32>
    "tpu.trace_stop"() : () -> ()
    %cst_146 = arith.constant dense<0xFF800000> : vector<4x16xf32>
    %352 = vector.multi_reduction <maximumf>, %351, %cst_146 [2] : vector<4x16x16xf32> to vector<4x16xf32>
    %353 = vector.shape_cast %352 : vector<4x16xf32> to vector<4x16x1xf32>
    %354 = vector.broadcast %353 : vector<4x16x1xf32> to vector<4x16x16xf32>
    %355 = arith.subf %351, %354 : vector<4x16x16xf32>
    %356 = math.exp %355 : vector<4x16x16xf32>
    %cst_147 = arith.constant dense<0.000000e+00> : vector<4x16xf32>
    %357 = vector.multi_reduction <add>, %356, %cst_147 [2] : vector<4x16x16xf32> to vector<4x16xf32>
    %358 = vector.shape_cast %357 : vector<4x16xf32> to vector<4x16x1xf32>
    %359 = tpu.reciprocal %358 {approx = true} : vector<4x16x1xf32> -> vector<4x16x1xf32>
    %360 = arith.mulf %358, %359 : vector<4x16x1xf32>
    %cst_148 = arith.constant 2.000000e+00 : f32
    %361 = vector.broadcast %cst_148 : f32 to vector<4x16x1xf32>
    %362 = arith.subf %361, %360 : vector<4x16x1xf32>
    %363 = arith.mulf %359, %362 : vector<4x16x1xf32>
    %364 = vector.broadcast %363 : vector<4x16x1xf32> to vector<4x16x16xf32>
    %365 = arith.mulf %356, %364 : vector<4x16x16xf32>
    "tpu.trace_start"() <{level = 10 : i32, message = "hqk,hkd->hqd"}> : () -> ()
    %cst_149 = arith.constant dense<0.000000e+00> : vector<4x16x8xf32>
    %366 = tpu.matmul %365, %267, %cst_149 {dimension_numbers = #tpu.dot_dimension_numbers<[2], [1], [1], [2], [0, 0, 0, 1, 1, 2], [0], [0]>} : vector<4x16x16xf32>, vector<4x16x8xf32>, vector<4x16x8xf32> -> vector<4x16x8xf32>
    "tpu.trace_stop"() : () -> ()
    "tpu.trace_start"() <{level = 10 : i32, message = "hqd,hkd->hqk"}> : () -> ()
    %cst_150 = arith.constant dense<0.000000e+00> : vector<4x16x16xf32>
    %367 = tpu.matmul %274, %287, %cst_150 {dimension_numbers = #tpu.dot_dimension_numbers<[2], [2], [1], [1], [0, 0, 0, 1, 1, 1], [0], [0]>} : vector<4x16x8xf32>, vector<4x16x8xf32>, vector<4x16x16xf32> -> vector<4x16x16xf32>
    "tpu.trace_stop"() : () -> ()
    %cst_151 = arith.constant dense<0xFF800000> : vector<4x16xf32>
    %368 = vector.multi_reduction <maximumf>, %367, %cst_151 [2] : vector<4x16x16xf32> to vector<4x16xf32>
    %369 = vector.shape_cast %368 : vector<4x16xf32> to vector<4x16x1xf32>
    %370 = vector.broadcast %369 : vector<4x16x1xf32> to vector<4x16x16xf32>
    %371 = arith.subf %367, %370 : vector<4x16x16xf32>
    %372 = math.exp %371 : vector<4x16x16xf32>
    %cst_152 = arith.constant dense<0.000000e+00> : vector<4x16xf32>
    %373 = vector.multi_reduction <add>, %372, %cst_152 [2] : vector<4x16x16xf32> to vector<4x16xf32>
    %374 = vector.shape_cast %373 : vector<4x16xf32> to vector<4x16x1xf32>
    %375 = tpu.reciprocal %374 {approx = true} : vector<4x16x1xf32> -> vector<4x16x1xf32>
    %376 = arith.mulf %374, %375 : vector<4x16x1xf32>
    %cst_153 = arith.constant 2.000000e+00 : f32
    %377 = vector.broadcast %cst_153 : f32 to vector<4x16x1xf32>
    %378 = arith.subf %377, %376 : vector<4x16x1xf32>
    %379 = arith.mulf %375, %378 : vector<4x16x1xf32>
    %380 = vector.broadcast %379 : vector<4x16x1xf32> to vector<4x16x16xf32>
    %381 = arith.mulf %372, %380 : vector<4x16x16xf32>
    "tpu.trace_start"() <{level = 10 : i32, message = "hqk,hkd->hqd"}> : () -> ()
    %cst_154 = arith.constant dense<0.000000e+00> : vector<4x16x8xf32>
    %382 = tpu.matmul %381, %289, %cst_154 {dimension_numbers = #tpu.dot_dimension_numbers<[2], [1], [1], [2], [0, 0, 0, 1, 1, 2], [0], [0]>} : vector<4x16x16xf32>, vector<4x16x8xf32>, vector<4x16x8xf32> -> vector<4x16x8xf32>
    "tpu.trace_stop"() : () -> ()
    %383 = arith.addf %366, %382 : vector<4x16x8xf32>
    "tpu.trace_start"() <{level = 10 : i32, message = "hqd,hkd->hqk"}> : () -> ()
    %cst_155 = arith.constant dense<0.000000e+00> : vector<4x16x16xf32>
    %384 = tpu.matmul %274, %298, %cst_155 {dimension_numbers = #tpu.dot_dimension_numbers<[2], [2], [1], [1], [0, 0, 0, 1, 1, 1], [0], [0]>} : vector<4x16x8xf32>, vector<4x16x8xf32>, vector<4x16x16xf32> -> vector<4x16x16xf32>
    "tpu.trace_stop"() : () -> ()
    %cst_156 = arith.constant dense<0xFF800000> : vector<4x16xf32>
    %385 = vector.multi_reduction <maximumf>, %384, %cst_156 [2] : vector<4x16x16xf32> to vector<4x16xf32>
    %386 = vector.shape_cast %385 : vector<4x16xf32> to vector<4x16x1xf32>
    %387 = vector.broadcast %386 : vector<4x16x1xf32> to vector<4x16x16xf32>
    %388 = arith.subf %384, %387 : vector<4x16x16xf32>
    %389 = math.exp %388 : vector<4x16x16xf32>
    %cst_157 = arith.constant dense<0.000000e+00> : vector<4x16xf32>
    %390 = vector.multi_reduction <add>, %389, %cst_157 [2] : vector<4x16x16xf32> to vector<4x16xf32>
    %391 = vector.shape_cast %390 : vector<4x16xf32> to vector<4x16x1xf32>
    %392 = tpu.reciprocal %391 {approx = true} : vector<4x16x1xf32> -> vector<4x16x1xf32>
    %393 = arith.mulf %391, %392 : vector<4x16x1xf32>
    %cst_158 = arith.constant 2.000000e+00 : f32
    %394 = vector.broadcast %cst_158 : f32 to vector<4x16x1xf32>
    %395 = arith.subf %394, %393 : vector<4x16x1xf32>
    %396 = arith.mulf %392, %395 : vector<4x16x1xf32>
    %397 = vector.broadcast %396 : vector<4x16x1xf32> to vector<4x16x16xf32>
    %398 = arith.mulf %389, %397 : vector<4x16x16xf32>
    "tpu.trace_start"() <{level = 10 : i32, message = "hqk,hkd->hqd"}> : () -> ()
    %cst_159 = arith.constant dense<0.000000e+00> : vector<4x16x8xf32>
    %399 = tpu.matmul %398, %300, %cst_159 {dimension_numbers = #tpu.dot_dimension_numbers<[2], [1], [1], [2], [0, 0, 0, 1, 1, 2], [0], [0]>} : vector<4x16x16xf32>, vector<4x16x8xf32>, vector<4x16x8xf32> -> vector<4x16x8xf32>
    "tpu.trace_stop"() : () -> ()
    %400 = arith.addf %383, %399 : vector<4x16x8xf32>
    "tpu.trace_start"() <{level = 10 : i32, message = "hqd,hkd->hqk"}> : () -> ()
    %cst_160 = arith.constant dense<0.000000e+00> : vector<4x16x16xf32>
    %401 = tpu.matmul %285, %265, %cst_160 {dimension_numbers = #tpu.dot_dimension_numbers<[2], [2], [1], [1], [0, 0, 0, 1, 1, 1], [0], [0]>} : vector<4x16x8xf32>, vector<4x16x8xf32>, vector<4x16x16xf32> -> vector<4x16x16xf32>
    "tpu.trace_stop"() : () -> ()
    %cst_161 = arith.constant dense<0xFF800000> : vector<4x16xf32>
    %402 = vector.multi_reduction <maximumf>, %401, %cst_161 [2] : vector<4x16x16xf32> to vector<4x16xf32>
    %403 = vector.shape_cast %402 : vector<4x16xf32> to vector<4x16x1xf32>
    %404 = vector.broadcast %403 : vector<4x16x1xf32> to vector<4x16x16xf32>
    %405 = arith.subf %401, %404 : vector<4x16x16xf32>
    %406 = math.exp %405 : vector<4x16x16xf32>
    %cst_162 = arith.constant dense<0.000000e+00> : vector<4x16xf32>
    %407 = vector.multi_reduction <add>, %406, %cst_162 [2] : vector<4x16x16xf32> to vector<4x16xf32>
    %408 = vector.shape_cast %407 : vector<4x16xf32> to vector<4x16x1xf32>
    %409 = tpu.reciprocal %408 {approx = true} : vector<4x16x1xf32> -> vector<4x16x1xf32>
    %410 = arith.mulf %408, %409 : vector<4x16x1xf32>
    %cst_163 = arith.constant 2.000000e+00 : f32
    %411 = vector.broadcast %cst_163 : f32 to vector<4x16x1xf32>
    %412 = arith.subf %411, %410 : vector<4x16x1xf32>
    %413 = arith.mulf %409, %412 : vector<4x16x1xf32>
    %414 = vector.broadcast %413 : vector<4x16x1xf32> to vector<4x16x16xf32>
    %415 = arith.mulf %406, %414 : vector<4x16x16xf32>
    "tpu.trace_start"() <{level = 10 : i32, message = "hqk,hkd->hqd"}> : () -> ()
    %cst_164 = arith.constant dense<0.000000e+00> : vector<4x16x8xf32>
    %416 = tpu.matmul %415, %267, %cst_164 {dimension_numbers = #tpu.dot_dimension_numbers<[2], [1], [1], [2], [0, 0, 0, 1, 1, 2], [0], [0]>} : vector<4x16x16xf32>, vector<4x16x8xf32>, vector<4x16x8xf32> -> vector<4x16x8xf32>
    "tpu.trace_stop"() : () -> ()
    "tpu.trace_start"() <{level = 10 : i32, message = "hqd,hkd->hqk"}> : () -> ()
    %cst_165 = arith.constant dense<0.000000e+00> : vector<4x16x16xf32>
    %417 = tpu.matmul %285, %276, %cst_165 {dimension_numbers = #tpu.dot_dimension_numbers<[2], [2], [1], [1], [0, 0, 0, 1, 1, 1], [0], [0]>} : vector<4x16x8xf32>, vector<4x16x8xf32>, vector<4x16x16xf32> -> vector<4x16x16xf32>
    "tpu.trace_stop"() : () -> ()
    %cst_166 = arith.constant dense<0xFF800000> : vector<4x16xf32>
    %418 = vector.multi_reduction <maximumf>, %417, %cst_166 [2] : vector<4x16x16xf32> to vector<4x16xf32>
    %419 = vector.shape_cast %418 : vector<4x16xf32> to vector<4x16x1xf32>
    %420 = vector.broadcast %419 : vector<4x16x1xf32> to vector<4x16x16xf32>
    %421 = arith.subf %417, %420 : vector<4x16x16xf32>
    %422 = math.exp %421 : vector<4x16x16xf32>
    %cst_167 = arith.constant dense<0.000000e+00> : vector<4x16xf32>
    %423 = vector.multi_reduction <add>, %422, %cst_167 [2] : vector<4x16x16xf32> to vector<4x16xf32>
    %424 = vector.shape_cast %423 : vector<4x16xf32> to vector<4x16x1xf32>
    %425 = tpu.reciprocal %424 {approx = true} : vector<4x16x1xf32> -> vector<4x16x1xf32>
    %426 = arith.mulf %424, %425 : vector<4x16x1xf32>
    %cst_168 = arith.constant 2.000000e+00 : f32
    %427 = vector.broadcast %cst_168 : f32 to vector<4x16x1xf32>
    %428 = arith.subf %427, %426 : vector<4x16x1xf32>
    %429 = arith.mulf %425, %428 : vector<4x16x1xf32>
    %430 = vector.broadcast %429 : vector<4x16x1xf32> to vector<4x16x16xf32>
    %431 = arith.mulf %422, %430 : vector<4x16x16xf32>
    "tpu.trace_start"() <{level = 10 : i32, message = "hqk,hkd->hqd"}> : () -> ()
    %cst_169 = arith.constant dense<0.000000e+00> : vector<4x16x8xf32>
    %432 = tpu.matmul %431, %278, %cst_169 {dimension_numbers = #tpu.dot_dimension_numbers<[2], [1], [1], [2], [0, 0, 0, 1, 1, 2], [0], [0]>} : vector<4x16x16xf32>, vector<4x16x8xf32>, vector<4x16x8xf32> -> vector<4x16x8xf32>
    "tpu.trace_stop"() : () -> ()
    %433 = arith.addf %416, %432 : vector<4x16x8xf32>
    "tpu.trace_start"() <{level = 10 : i32, message = "hqd,hkd->hqk"}> : () -> ()
    %cst_170 = arith.constant dense<0.000000e+00> : vector<4x16x16xf32>
    %434 = tpu.matmul %285, %298, %cst_170 {dimension_numbers = #tpu.dot_dimension_numbers<[2], [2], [1], [1], [0, 0, 0, 1, 1, 1], [0], [0]>} : vector<4x16x8xf32>, vector<4x16x8xf32>, vector<4x16x16xf32> -> vector<4x16x16xf32>
    "tpu.trace_stop"() : () -> ()
    %cst_171 = arith.constant dense<0xFF800000> : vector<4x16xf32>
    %435 = vector.multi_reduction <maximumf>, %434, %cst_171 [2] : vector<4x16x16xf32> to vector<4x16xf32>
    %436 = vector.shape_cast %435 : vector<4x16xf32> to vector<4x16x1xf32>
    %437 = vector.broadcast %436 : vector<4x16x1xf32> to vector<4x16x16xf32>
    %438 = arith.subf %434, %437 : vector<4x16x16xf32>
    %439 = math.exp %438 : vector<4x16x16xf32>
    %cst_172 = arith.constant dense<0.000000e+00> : vector<4x16xf32>
    %440 = vector.multi_reduction <add>, %439, %cst_172 [2] : vector<4x16x16xf32> to vector<4x16xf32>
    %441 = vector.shape_cast %440 : vector<4x16xf32> to vector<4x16x1xf32>
    %442 = tpu.reciprocal %441 {approx = true} : vector<4x16x1xf32> -> vector<4x16x1xf32>
    %443 = arith.mulf %441, %442 : vector<4x16x1xf32>
    %cst_173 = arith.constant 2.000000e+00 : f32
    %444 = vector.broadcast %cst_173 : f32 to vector<4x16x1xf32>
    %445 = arith.subf %444, %443 : vector<4x16x1xf32>
    %446 = arith.mulf %442, %445 : vector<4x16x1xf32>
    %447 = vector.broadcast %446 : vector<4x16x1xf32> to vector<4x16x16xf32>
    %448 = arith.mulf %439, %447 : vector<4x16x16xf32>
    "tpu.trace_start"() <{level = 10 : i32, message = "hqk,hkd->hqd"}> : () -> ()
    %cst_174 = arith.constant dense<0.000000e+00> : vector<4x16x8xf32>
    %449 = tpu.matmul %448, %300, %cst_174 {dimension_numbers = #tpu.dot_dimension_numbers<[2], [1], [1], [2], [0, 0, 0, 1, 1, 2], [0], [0]>} : vector<4x16x16xf32>, vector<4x16x8xf32>, vector<4x16x8xf32> -> vector<4x16x8xf32>
    "tpu.trace_stop"() : () -> ()
    %450 = arith.addf %433, %449 : vector<4x16x8xf32>
    "tpu.trace_start"() <{level = 10 : i32, message = "hqd,hkd->hqk"}> : () -> ()
    %cst_175 = arith.constant dense<0.000000e+00> : vector<4x16x16xf32>
    %451 = tpu.matmul %296, %265, %cst_175 {dimension_numbers = #tpu.dot_dimension_numbers<[2], [2], [1], [1], [0, 0, 0, 1, 1, 1], [0], [0]>} : vector<4x16x8xf32>, vector<4x16x8xf32>, vector<4x16x16xf32> -> vector<4x16x16xf32>
    "tpu.trace_stop"() : () -> ()
    %cst_176 = arith.constant dense<0xFF800000> : vector<4x16xf32>
    %452 = vector.multi_reduction <maximumf>, %451, %cst_176 [2] : vector<4x16x16xf32> to vector<4x16xf32>
    %453 = vector.shape_cast %452 : vector<4x16xf32> to vector<4x16x1xf32>
    %454 = vector.broadcast %453 : vector<4x16x1xf32> to vector<4x16x16xf32>
    %455 = arith.subf %451, %454 : vector<4x16x16xf32>
    %456 = math.exp %455 : vector<4x16x16xf32>
    %cst_177 = arith.constant dense<0.000000e+00> : vector<4x16xf32>
    %457 = vector.multi_reduction <add>, %456, %cst_177 [2] : vector<4x16x16xf32> to vector<4x16xf32>
    %458 = vector.shape_cast %457 : vector<4x16xf32> to vector<4x16x1xf32>
    %459 = tpu.reciprocal %458 {approx = true} : vector<4x16x1xf32> -> vector<4x16x1xf32>
    %460 = arith.mulf %458, %459 : vector<4x16x1xf32>
    %cst_178 = arith.constant 2.000000e+00 : f32
    %461 = vector.broadcast %cst_178 : f32 to vector<4x16x1xf32>
    %462 = arith.subf %461, %460 : vector<4x16x1xf32>
    %463 = arith.mulf %459, %462 : vector<4x16x1xf32>
    %464 = vector.broadcast %463 : vector<4x16x1xf32> to vector<4x16x16xf32>
    %465 = arith.mulf %456, %464 : vector<4x16x16xf32>
    "tpu.trace_start"() <{level = 10 : i32, message = "hqk,hkd->hqd"}> : () -> ()
    %cst_179 = arith.constant dense<0.000000e+00> : vector<4x16x8xf32>
    %466 = tpu.matmul %465, %267, %cst_179 {dimension_numbers = #tpu.dot_dimension_numbers<[2], [1], [1], [2], [0, 0, 0, 1, 1, 2], [0], [0]>} : vector<4x16x16xf32>, vector<4x16x8xf32>, vector<4x16x8xf32> -> vector<4x16x8xf32>
    "tpu.trace_stop"() : () -> ()
    "tpu.trace_start"() <{level = 10 : i32, message = "hqd,hkd->hqk"}> : () -> ()
    %cst_180 = arith.constant dense<0.000000e+00> : vector<4x16x16xf32>
    %467 = tpu.matmul %296, %276, %cst_180 {dimension_numbers = #tpu.dot_dimension_numbers<[2], [2], [1], [1], [0, 0, 0, 1, 1, 1], [0], [0]>} : vector<4x16x8xf32>, vector<4x16x8xf32>, vector<4x16x16xf32> -> vector<4x16x16xf32>
    "tpu.trace_stop"() : () -> ()
    %cst_181 = arith.constant dense<0xFF800000> : vector<4x16xf32>
    %468 = vector.multi_reduction <maximumf>, %467, %cst_181 [2] : vector<4x16x16xf32> to vector<4x16xf32>
    %469 = vector.shape_cast %468 : vector<4x16xf32> to vector<4x16x1xf32>
    %470 = vector.broadcast %469 : vector<4x16x1xf32> to vector<4x16x16xf32>
    %471 = arith.subf %467, %470 : vector<4x16x16xf32>
    %472 = math.exp %471 : vector<4x16x16xf32>
    %cst_182 = arith.constant dense<0.000000e+00> : vector<4x16xf32>
    %473 = vector.multi_reduction <add>, %472, %cst_182 [2] : vector<4x16x16xf32> to vector<4x16xf32>
    %474 = vector.shape_cast %473 : vector<4x16xf32> to vector<4x16x1xf32>
    %475 = tpu.reciprocal %474 {approx = true} : vector<4x16x1xf32> -> vector<4x16x1xf32>
    %476 = arith.mulf %474, %475 : vector<4x16x1xf32>
    %cst_183 = arith.constant 2.000000e+00 : f32
    %477 = vector.broadcast %cst_183 : f32 to vector<4x16x1xf32>
    %478 = arith.subf %477, %476 : vector<4x16x1xf32>
    %479 = arith.mulf %475, %478 : vector<4x16x1xf32>
    %480 = vector.broadcast %479 : vector<4x16x1xf32> to vector<4x16x16xf32>
    %481 = arith.mulf %472, %480 : vector<4x16x16xf32>
    "tpu.trace_start"() <{level = 10 : i32, message = "hqk,hkd->hqd"}> : () -> ()
    %cst_184 = arith.constant dense<0.000000e+00> : vector<4x16x8xf32>
    %482 = tpu.matmul %481, %278, %cst_184 {dimension_numbers = #tpu.dot_dimension_numbers<[2], [1], [1], [2], [0, 0, 0, 1, 1, 2], [0], [0]>} : vector<4x16x16xf32>, vector<4x16x8xf32>, vector<4x16x8xf32> -> vector<4x16x8xf32>
    "tpu.trace_stop"() : () -> ()
    %483 = arith.addf %466, %482 : vector<4x16x8xf32>
    "tpu.trace_start"() <{level = 10 : i32, message = "hqd,hkd->hqk"}> : () -> ()
    %cst_185 = arith.constant dense<0.000000e+00> : vector<4x16x16xf32>
    %484 = tpu.matmul %296, %287, %cst_185 {dimension_numbers = #tpu.dot_dimension_numbers<[2], [2], [1], [1], [0, 0, 0, 1, 1, 1], [0], [0]>} : vector<4x16x8xf32>, vector<4x16x8xf32>, vector<4x16x16xf32> -> vector<4x16x16xf32>
    "tpu.trace_stop"() : () -> ()
    %cst_186 = arith.constant dense<0xFF800000> : vector<4x16xf32>
    %485 = vector.multi_reduction <maximumf>, %484, %cst_186 [2] : vector<4x16x16xf32> to vector<4x16xf32>
    %486 = vector.shape_cast %485 : vector<4x16xf32> to vector<4x16x1xf32>
    %487 = vector.broadcast %486 : vector<4x16x1xf32> to vector<4x16x16xf32>
    %488 = arith.subf %484, %487 : vector<4x16x16xf32>
    %489 = math.exp %488 : vector<4x16x16xf32>
    %cst_187 = arith.constant dense<0.000000e+00> : vector<4x16xf32>
    %490 = vector.multi_reduction <add>, %489, %cst_187 [2] : vector<4x16x16xf32> to vector<4x16xf32>
    %491 = vector.shape_cast %490 : vector<4x16xf32> to vector<4x16x1xf32>
    %492 = tpu.reciprocal %491 {approx = true} : vector<4x16x1xf32> -> vector<4x16x1xf32>
    %493 = arith.mulf %491, %492 : vector<4x16x1xf32>
    %cst_188 = arith.constant 2.000000e+00 : f32
    %494 = vector.broadcast %cst_188 : f32 to vector<4x16x1xf32>
    %495 = arith.subf %494, %493 : vector<4x16x1xf32>
    %496 = arith.mulf %492, %495 : vector<4x16x1xf32>
    %497 = vector.broadcast %496 : vector<4x16x1xf32> to vector<4x16x16xf32>
    %498 = arith.mulf %489, %497 : vector<4x16x16xf32>
    "tpu.trace_start"() <{level = 10 : i32, message = "hqk,hkd->hqd"}> : () -> ()
    %cst_189 = arith.constant dense<0.000000e+00> : vector<4x16x8xf32>
    %499 = tpu.matmul %498, %289, %cst_189 {dimension_numbers = #tpu.dot_dimension_numbers<[2], [1], [1], [2], [0, 0, 0, 1, 1, 2], [0], [0]>} : vector<4x16x16xf32>, vector<4x16x8xf32>, vector<4x16x8xf32> -> vector<4x16x8xf32>
    "tpu.trace_stop"() : () -> ()
    %500 = arith.addf %483, %499 : vector<4x16x8xf32>
    %501 = tpu.concatenate %350, %400, %450, %500 in 0 : vector<4x16x8xf32>, vector<4x16x8xf32>, vector<4x16x8xf32>, vector<4x16x8xf32> -> vector<16x16x8xf32>
    "tpu.trace_start"() <{level = 10 : i32, message = "gnd,gdf->gnf"}> : () -> ()
    %cst_190 = arith.constant dense<0.000000e+00> : vector<16x16x128xf32>
    %502 = tpu.matmul %501, %3, %cst_190 {dimension_numbers = #tpu.dot_dimension_numbers<[2], [1], [1], [2], [0, 0, 0, 1, 1, 2], [0], [0]>} : vector<16x16x8xf32>, vector<16x8x128xf32>, vector<16x16x128xf32> -> vector<16x16x128xf32>
    "tpu.trace_stop"() : () -> ()
    %cst_191 = arith.constant dense<0.000000e+00> : vector<16x128xf32>
    %503 = vector.multi_reduction <add>, %502, %cst_191 [0] : vector<16x16x128xf32> to vector<16x128xf32>
    %504 = vector.broadcast %4 : vector<1x128xf32> to vector<16x128xf32>
    %505 = arith.addf %503, %504 : vector<16x128xf32>
    %c1_192 = arith.constant 1 : index
    %c0_193 = arith.constant 0 : index
    %c0_194 = arith.constant 0 : index
    %506 = vector.load %arg7[%c1_192, %c0_193, %c0_194] : memref<2x16x128xf32, #tpu.memory_space<vmem>>, vector<1x16x128xf32>
    %507 = vector.shape_cast %506 : vector<1x16x128xf32> to vector<16x128xf32>
    %508 = vector.shape_cast %505 : vector<16x128xf32> to vector<1x16x128xf32>
    tpu.vector_store %arg7[%c1_192, %c0_193, %c0_194], %508 {strides = array<i32>} : memref<2x16x128xf32, #tpu.memory_space<vmem>>, vector<1x16x128xf32>,
    return
  }
  func.func @transform_0(%arg0: i32) -> (i32, i32, i32, i32) {
    %c0_i32 = arith.constant 0 : i32
    %c0_i32_0 = arith.constant 0 : i32
    %c0_i32_1 = arith.constant 0 : i32
    %c0_i32_2 = arith.constant 0 : i32
    return %arg0, %c0_i32, %c0_i32_0, %c0_i32_1 : i32, i32, i32, i32
  }
  func.func @transform_1(%arg0: i32) -> (i32, i32, i32) {
    %c0_i32 = arith.constant 0 : i32
    %c0_i32_0 = arith.constant 0 : i32
    %c0_i32_1 = arith.constant 0 : i32
    %c0_i32_2 = arith.constant 0 : i32
    return %c0_i32, %c0_i32_0, %c0_i32_1 : i32, i32, i32
  }
  func.func @transform_2(%arg0: i32) -> (i32, i32, i32) {
    %c0_i32 = arith.constant 0 : i32
    %c0_i32_0 = arith.constant 0 : i32
    %c0_i32_1 = arith.constant 0 : i32
    %c0_i32_2 = arith.constant 0 : i32
    return %c0_i32, %c0_i32_0, %c0_i32_1 : i32, i32, i32
  }
  func.func @transform_3(%arg0: i32) -> (i32, i32, i32) {
    %c0_i32 = arith.constant 0 : i32
    %c0_i32_0 = arith.constant 0 : i32
    %c0_i32_1 = arith.constant 0 : i32
    %c0_i32_2 = arith.constant 0 : i32
    return %c0_i32, %c0_i32_0, %c0_i32_1 : i32, i32, i32
  }
  func.func @transform_4(%arg0: i32) -> (i32, i32, i32) {
    %c0_i32 = arith.constant 0 : i32
    %c0_i32_0 = arith.constant 0 : i32
    %c0_i32_1 = arith.constant 0 : i32
    %c0_i32_2 = arith.constant 0 : i32
    return %c0_i32, %c0_i32_0, %c0_i32_1 : i32, i32, i32
  }
  func.func @transform_5(%arg0: i32) -> (i32, i32) {
    %c0_i32 = arith.constant 0 : i32
    %c0_i32_0 = arith.constant 0 : i32
    %c0_i32_1 = arith.constant 0 : i32
    return %c0_i32, %c0_i32_0 : i32, i32
  }
  func.func @transform_6(%arg0: i32) -> (i32, i32, i32) {
    %c0_i32 = arith.constant 0 : i32
    %c0_i32_0 = arith.constant 0 : i32
    %c0_i32_1 = arith.constant 0 : i32
    return %arg0, %c0_i32, %c0_i32_0 : i32, i32, i32
  }
}

</mosaic_0001>

<bundles_post_ra>
// kernel: tpu_custom_call.1
= control target key start
LH: loop header
LB: loop body
LE: loop exit
PB: predicated region body
PF: predicated region fallthrough
CT: control target
= control target key end

     0   :  { %vm235_vm0 = vcmask 261120   ;;  %s18830_s0 = inlined_call_operand.vmem [shape: f32[2,4,16,32], index: 0, kind: input, shape index: {}]   ;;  %s18831_s1 = inlined_call_operand.vmem [shape: f32[16,32,8], index: 1, kind: input, shape index: {}]   ;;  %s18832_s2 = inlined_call_operand.vmem [shape: f32[16,32,8], index: 2, kind: input, shape index: {}]   ;;  %s18833_s3 = inlined_call_operand.vmem [shape: f32[16,32,8], index: 3, kind: input, shape index: {}]   ;;  %s18834_s4 = inlined_call_operand.vmem [shape: f32[16,8,128], index: 4, kind: input, shape index: {}]   ;;  %s18835_s5 = inlined_call_operand.vmem [shape: f32[1,128], index: 5, kind: input, shape index: {}]   ;;  %s18836_s6 = inlined_call_operand.hbm [shape: f32[2,16,128], index: 6, kind: output, shape index: {}]  }
   0x1   :  { %v35_v0 = vld [vmem:[%s18831_s1 + $0x58] sm:$0xff]  ;;  %v34_v2 = vld [vmem:[%s18831_s1 + $0x50] sm:$0xff]  ;;  %v33_v4 = vld [vmem:[%s18831_s1 + $0x48] sm:$0xff] }
   0x2   :  { %v39_v1 = vld [vmem:[%s18831_s1 + $0x78] sm:$0xff]  ;;  %300 = vmatpush.msra.mxu2 %v35_v0  ;;  %v38_v3 = vld [vmem:[%s18831_s1 + $0x70] sm:$0xff]  ;;  %v37_v5 = vld [vmem:[%s18831_s1 + $0x68] sm:$0xff] }
   0x3   :  { %323 = vmatpush.msra.mxu3 %v39_v1  ;;  %v32_v6 = vld [vmem:[%s18831_s1 + $0x40] sm:$0xff]  ;;  %v99_v9 = vld [vmem:[%s18832_s2 + $0x58] sm:$0xff]  ;;  %v98_v11 = vld [vmem:[%s18832_s2 + $0x50] sm:$0xff] }
   0x4   :  { %301 = vmatpush.msra.mxu2 %v34_v2  ;;  %v36_v7 = vld [vmem:[%s18831_s1 + $0x60] sm:$0xff]  ;;  %v103_v10 = vld [vmem:[%s18832_s2 + $0x78] sm:$0xff]  ;;  %v102_v12 = vld [vmem:[%s18832_s2 + $0x70] sm:$0xff] }
   0x5   :  { %324 = vmatpush.msra.mxu3 %v38_v3  ;;  %v13579_v8 = vld [vmem:[%s18830_s0] sm:$0xff] }
   0x6   :  { %302 = vmatpush.msra.mxu2 %v33_v4 }
   0x7   :  { %325 = vmatpush.msra.mxu3 %v37_v5 }
   0x8   :  { %303 = vmatpush.msra.mxu2 %v32_v6 }
   0x9   :  { %326 = vmatpush.msra.mxu3 %v36_v7  ;;  %11665 = vmatmul.msk.f32.vlgmr.msra.gmra.mxu2 %vm235_vm0, %v13579_v8 }
   0xa   :  { %11667 = vmatmul.msk.f32.vlgmr.msra.gmra.mxu3 %vm235_vm0, %v13579_v8  ;;  %392 = vmatpush.msrb.mxu2 %v99_v9 }
   0xb   :  { %415 = vmatpush.msrb.mxu3 %v103_v10 }
   0xc   :  { %11 = vsyncpa [#allocation3], 0  ;;  %v97_v13 = vld [vmem:[%s18832_s2 + $0x48] sm:$0xff]  ;;  %393 = vmatpush.msrb.mxu2 %v98_v11  ;;  %v96_v15 = vld [vmem:[%s18832_s2 + $0x40] sm:$0xff]  ;;  %vm1373_vm1 = vcmask 64512   ;;  %vm1514_vm2 = vcmask 130048  }
   0xd   :  { %v101_v14 = vld [vmem:[%s18832_s2 + $0x68] sm:$0xff]  ;;  %416 = vmatpush.msrb.mxu3 %v102_v12  ;;  %v100_v16 = vld [vmem:[%s18832_s2 + $0x60] sm:$0xff]  ;;  %v163_v18 = vld [vmem:[%s18833_s3 + $0x58] sm:$0xff]  ;;  %s13514_s9 = smov [#allocation2]   ;;  %s11649_s13 = sshll.u32 %s18836_s6, 4  ;;  %s11650_s13 = int_to_ptr.hbm [resolvable:$true] %s11649_s13 }
   0xe   :  { %v13612_v17 = vld [vmem:[%s18830_s0 + $0x8] sm:$0xff]  ;;  %394 = vmatpush.msrb.mxu2 %v97_v13  ;;  %v167_v19 = vld [vmem:[%s18833_s3 + $0x78] sm:$0xff]  ;;  %v162_v20 = vld [vmem:[%s18833_s3 + $0x50] sm:$0xff]  ;;  %s11647_s10 = sshll.u32 %s13514_s9, 4  ;;  %s13516_s14 = smov 8   ;;  %s11648_s10 = int_to_ptr.vmem [resolvable:$true] %s11647_s10 }
   0xf   :  { %417 = vmatpush.msrb.mxu3 %v101_v14  ;;  %v166_v21 = vld [vmem:[%s18833_s3 + $0x70] sm:$0xff]  ;;  %v161_v22 = vld [vmem:[%s18833_s3 + $0x48] sm:$0xff]  ;;  %v160_v24 = vld [vmem:[%s18833_s3 + $0x40] sm:$0xff] }
  0x10   :  { %395 = vmatpush.msrb.mxu2 %v96_v15  ;;  %v165_v23 = vld [vmem:[%s18833_s3 + $0x68] sm:$0xff]  ;;  %v164_v25 = vld [vmem:[%s18833_s3 + $0x60] sm:$0xff]  ;;  %v51_v26 = vld [vmem:[%s18831_s1 + $0xd8] sm:$0xff] }
  0x11   :  { %418 = vmatpush.msrb.mxu3 %v100_v16  ;;  %11666 = vmatmul.msk.f32.gmra.mxu2 %vm235_vm0, %v13612_v17  ;;  %v55_v27 = vld [vmem:[%s18831_s1 + $0xf8] sm:$0xff]  ;;  %v50_v28 = vld [vmem:[%s18831_s1 + $0xd0] sm:$0xff]  ;;  %v49_v30 = vld [vmem:[%s18831_s1 + $0xc8] sm:$0xff] }
  0x12   :  { %11668 = vmatmul.msk.f32.gmra.mxu3 %vm235_vm0, %v13612_v17  ;;  %484 = vmatpush.msra.mxu2 %v163_v18  ;;  %v54_v29 = vld [vmem:[%s18831_s1 + $0xf0] sm:$0xff]  ;;  %v53_v31 = vld [vmem:[%s18831_s1 + $0xe8] sm:$0xff]  ;;  %v48_v32 = vld [vmem:[%s18831_s1 + $0xc0] sm:$0xff] }
  0x13   :  { %507 = vmatpush.msra.mxu3 %v167_v19  ;;  %v52_v33 = vld [vmem:[%s18831_s1 + $0xe0] sm:$0xff]  ;;  %v115_v34 = vld [vmem:[%s18832_s2 + $0xd8] sm:$0xff]  ;;  %v114_v36 = vld [vmem:[%s18832_s2 + $0xd0] sm:$0xff] }
  0x14   :  { %485 = vmatpush.msra.mxu2 %v162_v20  ;;  %v119_v35 = vld [vmem:[%s18832_s2 + $0xf8] sm:$0xff]  ;;  %v118_v37 = vld [vmem:[%s18832_s2 + $0xf0] sm:$0xff]  ;;  %v113_v42 = vld [vmem:[%s18832_s2 + $0xc8] sm:$0xff] }
  0x15   :  { %508 = vmatpush.msra.mxu3 %v166_v21  ;;  %v27_v38 = vld [vmem:[%s18831_s1 + $0x18] sm:$0xff]  ;;  %v26_v40 = vld [vmem:[%s18831_s1 + $0x10] sm:$0xff]  ;;  %v117_v43 = vld [vmem:[%s18832_s2 + $0xe8] sm:$0xff] }
  0x16   :  { %486 = vmatpush.msra.mxu2 %v161_v22  ;;  %v31_v39 = vld [vmem:[%s18831_s1 + $0x38] sm:$0xff]  ;;  %v30_v41 = vld [vmem:[%s18831_s1 + $0x30] sm:$0xff]  ;;  %254 = vmatpush.msra.mxu0 %v27_v38  ;;  %v25_v44 = vld [vmem:[%s18831_s1 + $0x8] sm:$0xff] }
  0x17   :  { %509 = vmatpush.msra.mxu3 %v165_v23  ;;  %277 = vmatpush.msra.mxu1 %v31_v39  ;;  %v29_v45 = vld [vmem:[%s18831_s1 + $0x28] sm:$0xff]  ;;  %v112_v46 = vld [vmem:[%s18832_s2 + $0xc0] sm:$0xff]  ;;  %v13737_v50 = vld [vmem:[%s18830_s0 + $0x10] sm:$0xff] }
  0x18   :  { %487 = vmatpush.msra.mxu2 %v160_v24  ;;  %v116_v47 = vld [vmem:[%s18832_s2 + $0xe0] sm:$0xff]  ;;  %255 = vmatpush.msra.mxu0 %v26_v40  ;;  %v179_v51 = vld [vmem:[%s18833_s3 + $0xd8] sm:$0xff]  ;;  %v178_v53 = vld [vmem:[%s18833_s3 + $0xd0] sm:$0xff] }
  0x19   :  { %510 = vmatpush.msra.mxu3 %v164_v25  ;;  %11673 = vmatmul.msk.f32.vlgmr.msrb.gmra.mxu2 %vm235_vm0, %v13579_v8  ;;  %v24_v48 = vld [vmem:[%s18831_s1] sm:$0xff]  ;;  %v183_v52 = vld [vmem:[%s18833_s3 + $0xf8] sm:$0xff]  ;;  %v182_v54 = vld [vmem:[%s18833_s3 + $0xf0] sm:$0xff] }
  0x1a   :  { %11675 = vmatmul.msk.f32.vlgmr.msrb.gmra.mxu3 %vm235_vm0, %v13579_v8  ;;  %585 = vmatpush.msrb.mxu2 %v51_v26  ;;  %v28_v49 = vld [vmem:[%s18831_s1 + $0x20] sm:$0xff]  ;;  %v91_v55 = vld [vmem:[%s18832_s2 + $0x18] sm:$0xff]  ;;  %v177_v57 = vld [vmem:[%s18833_s3 + $0xc8] sm:$0xff] }
  0x1b   :  { %608 = vmatpush.msrb.mxu3 %v55_v27  ;;  %278 = vmatpush.msra.mxu1 %v30_v41  ;;  %v95_v56 = vld [vmem:[%s18832_s2 + $0x38] sm:$0xff]  ;;  %v181_v58 = vld [vmem:[%s18833_s3 + $0xe8] sm:$0xff]  ;;  %v90_v59 = vld [vmem:[%s18832_s2 + $0x10] sm:$0xff] }
  0x1c   :  { %586 = vmatpush.msrb.mxu2 %v50_v28  ;;  %256 = vmatpush.msra.mxu0 %v25_v44  ;;  %v94_v60 = vld [vmem:[%s18832_s2 + $0x30] sm:$0xff]  ;;  %v176_v61 = vld [vmem:[%s18833_s3 + $0xc0] sm:$0xff]  ;;  %v13786_v63 = vld [vmem:[%s18830_s0 + $0x18] sm:$0xff] }
  0x1d   :  { %609 = vmatpush.msrb.mxu3 %v54_v29  ;;  %279 = vmatpush.msra.mxu1 %v29_v45  ;;  %v180_v62 = vld [vmem:[%s18833_s3 + $0xe0] sm:$0xff]  ;;  %v89_v0 = vld [vmem:[%s18832_s2 + $0x8] sm:$0xff]  ;;  %v67_v4 = vld [vmem:[%s18831_s1 + $0x158] sm:$0xff] }
  0x1e   :  { %587 = vmatpush.msrb.mxu2 %v49_v30  ;;  %257 = vmatpush.msra.mxu0 %v24_v48  ;;  %v93_v1 = vld [vmem:[%s18832_s2 + $0x28] sm:$0xff]  ;;  %v88_v2 = vld [vmem:[%s18832_s2] sm:$0xff]  ;;  %v71_v5 = vld [vmem:[%s18831_s1 + $0x178] sm:$0xff] }
  0x1f   :  { %610 = vmatpush.msrb.mxu3 %v53_v31  ;;  %280 = vmatpush.msra.mxu1 %v28_v49  ;;  %v92_v3 = vld [vmem:[%s18832_s2 + $0x20] sm:$0xff]  ;;  %v66_v6 = vld [vmem:[%s18831_s1 + $0x150] sm:$0xff]  ;;  %v155_v9 = vld [vmem:[%s18833_s3 + $0x18] sm:$0xff] }
  0x20   :  { %588 = vmatpush.msrb.mxu2 %v48_v32  ;;  %11661 = vmatmul.msk.f32.vlgmr.msra.gmra.mxu0 %vm235_vm0, %v13579_v8  ;;  %v70_v7 = vld [vmem:[%s18831_s1 + $0x170] sm:$0xff]  ;;  %v159_v10 = vld [vmem:[%s18833_s3 + $0x38] sm:$0xff]  ;;  %v65_v11 = vld [vmem:[%s18831_s1 + $0x148] sm:$0xff] }
  0x21   :  { %611 = vmatpush.msrb.mxu3 %v52_v33  ;;  %11674 = vmatmul.msk.f32.gmra.mxu2 %vm235_vm0, %v13612_v17  ;;  %v69_v12 = vld [vmem:[%s18831_s1 + $0x168] sm:$0xff]  ;;  %v154_v13 = vld [vmem:[%s18833_s3 + $0x10] sm:$0xff]  ;;  %v64_v15 = vld [vmem:[%s18831_s1 + $0x140] sm:$0xff] }
  0x22   :  { %11676 = vmatmul.msk.f32.gmra.mxu3 %vm235_vm0, %v13612_v17  ;;  %11663 = vmatmul.msk.f32.vlgmr.msra.gmra.mxu1 %vm235_vm0, %v13579_v8  ;;  %v158_v14 = vld [vmem:[%s18833_s3 + $0x30] sm:$0xff]  ;;  %v68_v16 = vld [vmem:[%s18831_s1 + $0x160] sm:$0xff]  ;;  %v153_v18 = vld [vmem:[%s18833_s3 + $0x8] sm:$0xff] }
  0x23   :  { %346 = vmatpush.msrb.mxu0 %v91_v55  ;;  %369 = vmatpush.msrb.mxu1 %v95_v56  ;;  %v157_v19 = vld [vmem:[%s18833_s3 + $0x28] sm:$0xff]  ;;  %v152_v20 = vld [vmem:[%s18833_s3] sm:$0xff]  ;;  %v131_v22 = vld [vmem:[%s18832_s2 + $0x158] sm:$0xff] }
  0x24   :  { %v156_v21 = vld [vmem:[%s18833_s3 + $0x20] sm:$0xff]  ;;  %v135_v23 = vld [vmem:[%s18832_s2 + $0x178] sm:$0xff]  ;;  %v130_v24 = vld [vmem:[%s18832_s2 + $0x150] sm:$0xff] }
  0x25   :  { %347 = vmatpush.msrb.mxu0 %v90_v59  ;;  %370 = vmatpush.msrb.mxu1 %v94_v60  ;;  %v43_v25 = vld [vmem:[%s18831_s1 + $0x98] sm:$0xff]  ;;  %v129_v27 = vld [vmem:[%s18832_s2 + $0x148] sm:$0xff]  ;;  %v42_v29 = vld [vmem:[%s18831_s1 + $0x90] sm:$0xff] }
  0x26   :  { %v47_v26 = vld [vmem:[%s18831_s1 + $0xb8] sm:$0xff]  ;;  %v133_v28 = vld [vmem:[%s18832_s2 + $0x168] sm:$0xff]  ;;  %v46_v30 = vld [vmem:[%s18831_s1 + $0xb0] sm:$0xff] }
  0x27   :  { %348 = vmatpush.msrb.mxu0 %v89_v0  ;;  %371 = vmatpush.msrb.mxu1 %v93_v1  ;;  %v128_v31 = vld [vmem:[%s18832_s2 + $0x140] sm:$0xff]  ;;  %v41_v33 = vld [vmem:[%s18831_s1 + $0x88] sm:$0xff]  ;;  %v199_v38 = vld [vmem:[%s18833_s3 + $0x178] sm:$0xff] }
  0x28   :  { %11662 = vmatmul.msk.f32.gmra.mxu0 %vm235_vm0, %v13612_v17  ;;  %v132_v32 = vld [vmem:[%s18832_s2 + $0x160] sm:$0xff]  ;;  %v194_v39 = vld [vmem:[%s18833_s3 + $0x150] sm:$0xff]  ;;  %v107_v41 = vld [vmem:[%s18832_s2 + $0x98] sm:$0xff] }
  0x29   :  { %11681 = vmatmul.msk.f32.vlgmr.msra.gmra.mxu2 %vm235_vm0, %v13579_v8  ;;  %349 = vmatpush.msrb.mxu0 %v88_v2  ;;  %v198_v40 = vld [vmem:[%s18833_s3 + $0x170] sm:$0xff]  ;;  %v197_v44 = vld [vmem:[%s18833_s3 + $0x168] sm:$0xff]  ;;  %v196_v48 = vld [vmem:[%s18833_s3 + $0x160] sm:$0xff] }
  0x2a   :  { %11683 = vmatmul.msk.f32.vlgmr.msra.gmra.mxu3 %vm235_vm0, %v13579_v8  ;;  %677 = vmatpush.msra.mxu2 %v115_v34  ;;  %v45_v34 = vld [vmem:[%s18831_s1 + $0xa8] sm:$0xff]  ;;  %v106_v45 = vld [vmem:[%s18832_s2 + $0x90] sm:$0xff]  ;;  %v171_v55 = vld [vmem:[%s18833_s3 + $0x98] sm:$0xff] }
  0x2b   :  { %700 = vmatpush.msra.mxu3 %v119_v35  ;;  %11664 = vmatmul.msk.f32.gmra.mxu1 %vm235_vm0, %v13612_v17  ;;  %v44_v35 = vld [vmem:[%s18831_s1 + $0xa0] sm:$0xff]  ;;  %v13988_v49 = vld [vmem:[%s18830_s0 + $0x28] sm:$0xff]  ;;  %v175_v56 = vld [vmem:[%s18833_s3 + $0xb8] sm:$0xff] }
  0x2c   :  { %678 = vmatpush.msra.mxu2 %v114_v36  ;;  %372 = vmatpush.msrb.mxu1 %v92_v3  ;;  %v13939_v36 = vld [vmem:[%s18830_s0 + $0x20] sm:$0xff]  ;;  %v169_v59 = vld [vmem:[%s18833_s3 + $0x88] sm:$0xff]  ;;  %v83_v0 = vld [vmem:[%s18831_s1 + $0x1d8] sm:$0xff] }
  0x2d   :  { %701 = vmatpush.msra.mxu3 %v118_v37  ;;  %438 = vmatpush.msra.mxu0 %v155_v9  ;;  %v195_v37 = vld [vmem:[%s18833_s3 + $0x158] sm:$0xff]  ;;  %v173_v60 = vld [vmem:[%s18833_s3 + $0xa8] sm:$0xff]  ;;  %v82_v2 = vld [vmem:[%s18831_s1 + $0x1d0] sm:$0xff] }
  0x2e   :  { %679 = vmatpush.msra.mxu2 %v113_v42  ;;  %461 = vmatpush.msra.mxu1 %v159_v10  ;;  %v111_v42 = vld [vmem:[%s18832_s2 + $0xb8] sm:$0xff]  ;;  %v86_v3 = vld [vmem:[%s18831_s1 + $0x1f0] sm:$0xff]  ;;  %v84_v9 = vld [vmem:[%s18831_s1 + $0x1e0] sm:$0xff] }
  0x2f   :  { %702 = vmatpush.msra.mxu3 %v117_v43  ;;  %439 = vmatpush.msra.mxu0 %v154_v13  ;;  %v193_v43 = vld [vmem:[%s18833_s3 + $0x148] sm:$0xff]  ;;  %v87_v1 = vld [vmem:[%s18831_s1 + $0x1f8] sm:$0xff]  ;;  %v62_v13 = vld [vmem:[%s18831_s1 + $0x130] sm:$0xff] }
  0x30   :  { %680 = vmatpush.msra.mxu2 %v112_v46  ;;  %11669 = vmatmul.msk.f32.vlgmr.msrb.gmra.mxu0 %vm235_vm0, %v13579_v8  ;;  %v110_v46 = vld [vmem:[%s18832_s2 + $0xb0] sm:$0xff] }
  0x31   :  { %703 = vmatpush.msra.mxu3 %v116_v47  ;;  %11682 = vmatmul.msk.f32.gmra.mxu2 %vm235_vm0, %v13612_v17  ;;  %v192_v47 = vld [vmem:[%s18833_s3 + $0x140] sm:$0xff] }
  0x32   :  { %11684 = vmatmul.msk.f32.gmra.mxu3 %vm235_vm0, %v13612_v17  ;;  %462 = vmatpush.msra.mxu1 %v158_v14  ;;  %v57_v14 = vld [vmem:[%s18831_s1 + $0x108] sm:$0xff] }
  0x33   :  { %11671 = vmatmul.msk.f32.vlgmr.msrb.gmra.mxu1 %vm235_vm0, %v13579_v8  ;;  %440 = vmatpush.msra.mxu0 %v153_v18  ;;  %v60_v18 = vld [vmem:[%s18831_s1 + $0x120] sm:$0xff] }
  0x34   :  { %463 = vmatpush.msra.mxu1 %v157_v19 }
  0x35   :  { %441 = vmatpush.msra.mxu0 %v152_v20  ;;  %v147_v20 = vld [vmem:[%s18832_s2 + $0x1d8] sm:$0xff] }
  0x36   :  { %464 = vmatpush.msra.mxu1 %v156_v21  ;;  %v151_v21 = vld [vmem:[%s18832_s2 + $0x1f8] sm:$0xff] }
  0x37   :  { %539 = vmatpush.msrb.mxu0 %v43_v25  ;;  %v127_v25 = vld [vmem:[%s18832_s2 + $0x138] sm:$0xff] }
  0x38   :  { %11670 = vmatmul.msk.f32.gmra.mxu0 %vm235_vm0, %v13612_v17  ;;  %562 = vmatpush.msrb.mxu1 %v47_v26  ;;  %v145_v26 = vld [vmem:[%s18832_s2 + $0x1c8] sm:$0xff] }
  0x39   :  { %11691 = vmatmul.msk.f32.vlgmr.msrb.gmra.mxu2 %vm235_vm0, %v13737_v50  ;;  %540 = vmatpush.msrb.mxu0 %v42_v29  ;;  %v148_v29 = vld [vmem:[%s18832_s2 + $0x1e0] sm:$0xff] }
  0x3a   :  { %11693 = vmatmul.msk.f32.vlgmr.msrb.gmra.mxu3 %vm235_vm0, %v13737_v50  ;;  %769 = vmatpush.msrb.mxu2 %v179_v51  ;;  %v105_v51 = vld [vmem:[%s18832_s2 + $0x88] sm:$0xff] }
  0x3b   :  { %792 = vmatpush.msrb.mxu3 %v183_v52  ;;  %11672 = vmatmul.msk.f32.gmra.mxu1 %vm235_vm0, %v13612_v17  ;;  %v109_v52 = vld [vmem:[%s18832_s2 + $0xa8] sm:$0xff] }
  0x3c   :  { %770 = vmatpush.msrb.mxu2 %v178_v53  ;;  %563 = vmatpush.msrb.mxu1 %v46_v30  ;;  %v104_v53 = vld [vmem:[%s18832_s2 + $0x80] sm:$0xff] }
  0x3d   :  { %793 = vmatpush.msrb.mxu3 %v182_v54  ;;  %541 = vmatpush.msrb.mxu0 %v41_v33  ;;  %v108_v54 = vld [vmem:[%s18832_s2 + $0xa0] sm:$0xff]  ;;  %v126_v33 = vld [vmem:[%s18832_s2 + $0x130] sm:$0xff] }
  0x3e   :  { %771 = vmatpush.msrb.mxu2 %v177_v57  ;;  %564 = vmatpush.msrb.mxu1 %v45_v34  ;;  %v170_v57 = vld [vmem:[%s18833_s3 + $0x90] sm:$0xff]  ;;  %v121_v34 = vld [vmem:[%s18832_s2 + $0x108] sm:$0xff] }
  0x3f   :  { %794 = vmatpush.msrb.mxu3 %v181_v58  ;;  %v174_v58 = vld [vmem:[%s18833_s3 + $0xb0] sm:$0xff] }
  0x40   :  { %772 = vmatpush.msrb.mxu2 %v176_v61  ;;  %11677 = vmatmul.msk.f32.vlgmr.msra.gmra.mxu0 %vm235_vm0, %v13579_v8  ;;  %v168_v61 = vld [vmem:[%s18833_s3 + $0x80] sm:$0xff] }
  0x41   :  { %795 = vmatpush.msrb.mxu3 %v180_v62  ;;  %11692 = vmatmul.msk.f32.gmra.mxu2 %vm235_vm0, %v13786_v63  ;;  %v172_v62 = vld [vmem:[%s18833_s3 + $0xa0] sm:$0xff] }
  0x42   :  { %11694 = vmatmul.msk.f32.gmra.mxu3 %vm235_vm0, %v13786_v63  ;;  %565 = vmatpush.msrb.mxu1 %v44_v35  ;;  %v14184_v35 = vld [vmem:[%s18830_s0 + $0x38] sm:$0xff] }
  0x43   :  { %11679 = vmatmul.msk.f32.vlgmr.msra.gmra.mxu1 %vm235_vm0, %v13579_v8  ;;  %v134_v8 = vld [vmem:[%s18832_s2 + $0x170] sm:$0xff] }
  0x44   :  { %654 = vmatpush.msra.mxu1 %v111_v42  ;;  %v215_v42 = vld [vmem:[%s18833_s3 + $0x1f8] sm:$0xff] }
  0x46   :  { %655 = vmatpush.msra.mxu1 %v110_v46  ;;  %v213_v46 = vld [vmem:[%s18833_s3 + $0x1e8] sm:$0xff] }
  0x48   :  { %11678 = vmatmul.msk.f32.gmra.mxu0 %vm235_vm0, %v13612_v17  ;;  %656 = vmatpush.msra.mxu1 %v109_v52 }
  0x49   :  { %11699 = vmatmul.msk.f32.vlgmr.msra.gmra.mxu2 %vm235_vm0, %v13737_v50 }
  0x4a   :  { %11701 = vmatmul.msk.f32.vlgmr.msra.gmra.mxu3 %vm235_vm0, %v13737_v50  ;;  %870 = vmatpush.msra.mxu2 %v67_v4  ;;  %v59_v4 = vld [vmem:[%s18831_s1 + $0x118] sm:$0xff] }
  0x4b   :  { %893 = vmatpush.msra.mxu3 %v71_v5  ;;  %11680 = vmatmul.msk.f32.gmra.mxu1 %vm235_vm0, %v13612_v17  ;;  %v40_v17 = vld [vmem:[%s18831_s1 + $0x80] sm:$0xff]  ;;  %v63_v5 = vld [vmem:[%s18831_s1 + $0x138] sm:$0xff] }
  0x4c   :  { %871 = vmatpush.msra.mxu2 %v66_v6  ;;  %542 = vmatpush.msrb.mxu0 %v40_v17  ;;  %v85_v6 = vld [vmem:[%s18831_s1 + $0x1e8] sm:$0xff] }
  0x4d   :  { %894 = vmatpush.msra.mxu3 %v70_v7  ;;  %657 = vmatpush.msra.mxu1 %v108_v54  ;;  %v80_v7 = vld [vmem:[%s18831_s1 + $0x1c0] sm:$0xff]  ;;  %v125_v17 = vld [vmem:[%s18832_s2 + $0x128] sm:$0xff] }
  0x4e   :  { %872 = vmatpush.msra.mxu2 %v65_v11  ;;  %631 = vmatpush.msra.mxu0 %v107_v41  ;;  %v211_v41 = vld [vmem:[%s18833_s3 + $0x1d8] sm:$0xff] }
  0x4f   :  { %895 = vmatpush.msra.mxu3 %v69_v12  ;;  %v58_v12 = vld [vmem:[%s18831_s1 + $0x110] sm:$0xff] }
  0x50   :  { %873 = vmatpush.msra.mxu2 %v64_v15  ;;  %11687 = vmatmul.msk.f32.vlgmr.msrb.gmra.mxu0 %vm235_vm0, %v13737_v50  ;;  %v61_v15 = vld [vmem:[%s18831_s1 + $0x128] sm:$0xff] }
  0x51   :  { %896 = vmatpush.msra.mxu3 %v68_v16  ;;  %11700 = vmatmul.msk.f32.gmra.mxu2 %vm235_vm0, %v13786_v63  ;;  %v56_v16 = vld [vmem:[%s18831_s1 + $0x100] sm:$0xff] }
  0x52   :  { %11702 = vmatmul.msk.f32.gmra.mxu3 %vm235_vm0, %v13786_v63  ;;  %632 = vmatpush.msra.mxu0 %v106_v45  ;;  %v209_v45 = vld [vmem:[%s18833_s3 + $0x1c8] sm:$0xff] }
  0x53   :  { %11689 = vmatmul.msk.f32.vlgmr.msrb.gmra.mxu1 %vm235_vm0, %v13737_v50 }
  0x54   :  { %633 = vmatpush.msra.mxu0 %v105_v51  ;;  %746 = vmatpush.msrb.mxu1 %v175_v56 }
  0x56   :  { %634 = vmatpush.msra.mxu0 %v104_v53  ;;  %747 = vmatpush.msrb.mxu1 %v174_v58 }
  0x58   :  { %11688 = vmatmul.msk.f32.gmra.mxu0 %vm235_vm0, %v13786_v63  ;;  %748 = vmatpush.msrb.mxu1 %v173_v60 }
  0x59   :  { %11707 = vmatmul.msk.f32.vlgmr.msrb.gmra.mxu2 %vm235_vm0, %v13737_v50  ;;  %723 = vmatpush.msrb.mxu0 %v171_v55 }
  0x5a   :  { %11709 = vmatmul.msk.f32.vlgmr.msrb.gmra.mxu3 %vm235_vm0, %v13737_v50  ;;  %962 = vmatpush.msrb.mxu2 %v131_v22  ;;  %v146_v22 = vld [vmem:[%s18832_s2 + $0x1d0] sm:$0xff] }
  0x5b   :  { %985 = vmatpush.msrb.mxu3 %v135_v23  ;;  %11690 = vmatmul.msk.f32.gmra.mxu1 %vm235_vm0, %v13786_v63  ;;  %v150_v23 = vld [vmem:[%s18832_s2 + $0x1f0] sm:$0xff] }
  0x5c   :  { %963 = vmatpush.msrb.mxu2 %v130_v24  ;;  %724 = vmatpush.msrb.mxu0 %v170_v57  ;;  %v14137_v24 = vld [vmem:[%s18830_s0 + $0x30] sm:$0xff] }
  0x5d   :  { %986 = vmatpush.msrb.mxu3 %v134_v8  ;;  %749 = vmatpush.msrb.mxu1 %v172_v62  ;;  %v123_v8 = vld [vmem:[%s18832_s2 + $0x118] sm:$0xff] }
  0x5e   :  { %964 = vmatpush.msrb.mxu2 %v129_v27  ;;  %725 = vmatpush.msrb.mxu0 %v169_v59  ;;  %v149_v27 = vld [vmem:[%s18832_s2 + $0x1e8] sm:$0xff] }
  0x5f   :  { %987 = vmatpush.msrb.mxu3 %v133_v28  ;;  %v144_v28 = vld [vmem:[%s18832_s2 + $0x1c0] sm:$0xff] }
  0x60   :  { %965 = vmatpush.msrb.mxu2 %v128_v31  ;;  %11695 = vmatmul.msk.f32.vlgmr.msra.gmra.mxu0 %vm235_vm0, %v13737_v50 }
  0x61   :  { %988 = vmatpush.msrb.mxu3 %v132_v32  ;;  %11708 = vmatmul.msk.f32.gmra.mxu2 %vm235_vm0, %v13786_v63  ;;  %v122_v32 = vld [vmem:[%s18832_s2 + $0x110] sm:$0xff] }
  0x62   :  { %11710 = vmatmul.msk.f32.gmra.mxu3 %vm235_vm0, %v13786_v63  ;;  %726 = vmatpush.msrb.mxu0 %v168_v61 }
  0x63   :  { %11697 = vmatmul.msk.f32.vlgmr.msra.gmra.mxu1 %vm235_vm0, %v13737_v50 }
  0x64   :  { %824 = vmatpush.msra.mxu0 %v59_v4  ;;  %847 = vmatpush.msra.mxu1 %v63_v5 }
  0x66   :  { %825 = vmatpush.msra.mxu0 %v58_v12  ;;  %848 = vmatpush.msra.mxu1 %v62_v13  ;;  %v187_v12 = vld [vmem:[%s18833_s3 + $0x118] sm:$0xff] }
  0x67   :  { %v191_v13 = vld [vmem:[%s18833_s3 + $0x138] sm:$0xff] }
  0x68   :  { %11696 = vmatmul.msk.f32.gmra.mxu0 %vm235_vm0, %v13786_v63  ;;  %849 = vmatpush.msra.mxu1 %v61_v15  ;;  %v190_v15 = vld [vmem:[%s18833_s3 + $0x130] sm:$0xff] }
  0x69   :  { %11717 = vmatmul.msk.f32.vlgmr.msra.gmra.mxu2 %vm235_vm0, %v13939_v36  ;;  %826 = vmatpush.msra.mxu0 %v57_v14  ;;  %v186_v14 = vld [vmem:[%s18833_s3 + $0x110] sm:$0xff] }
  0x6a   :  { %11719 = vmatmul.msk.f32.vlgmr.msra.gmra.mxu3 %vm235_vm0, %v13939_v36  ;;  %1054 = vmatpush.msra.mxu2 %v195_v37  ;;  %v120_v37 = vld [vmem:[%s18832_s2 + $0x100] sm:$0xff] }
  0x6b   :  { %1077 = vmatpush.msra.mxu3 %v199_v38  ;;  %11698 = vmatmul.msk.f32.gmra.mxu1 %vm235_vm0, %v13786_v63  ;;  %v124_v38 = vld [vmem:[%s18832_s2 + $0x120] sm:$0xff] }
  0x6c   :  { %1055 = vmatpush.msra.mxu2 %v194_v39  ;;  %827 = vmatpush.msra.mxu0 %v56_v16 }
  0x6d   :  { %1078 = vmatpush.msra.mxu3 %v198_v40  ;;  %850 = vmatpush.msra.mxu1 %v60_v18 }
  0x6e   :  { %1056 = vmatpush.msra.mxu2 %v193_v43  ;;  %v210_v43 = vld [vmem:[%s18833_s3 + $0x1d0] sm:$0xff] }
  0x6f   :  { %1079 = vmatpush.msra.mxu3 %v197_v44  ;;  %v214_v44 = vld [vmem:[%s18833_s3 + $0x1f0] sm:$0xff] }
  0x70   :  { %1057 = vmatpush.msra.mxu2 %v192_v47  ;;  %11703 = vmatmul.msk.f32.vlgmr.msrb.gmra.mxu0 %vm235_vm0, %v13737_v50  ;;  %v208_v47 = vld [vmem:[%s18833_s3 + $0x1c0] sm:$0xff] }
  0x71   :  { %1080 = vmatpush.msra.mxu3 %v196_v48  ;;  %11718 = vmatmul.msk.f32.gmra.mxu2 %vm235_vm0, %v13988_v49  ;;  %v212_v48 = vld [vmem:[%s18833_s3 + $0x1e0] sm:$0xff] }
  0x72   :  { %11720 = vmatmul.msk.f32.gmra.mxu3 %vm235_vm0, %v13988_v49  ;;  %916 = vmatpush.msrb.mxu0 %v123_v8  ;;  %v184_v8 = vld [vmem:[%s18833_s3 + $0x100] sm:$0xff] }
  0x73   :  { %11705 = vmatmul.msk.f32.vlgmr.msrb.gmra.mxu1 %vm235_vm0, %v13737_v50  ;;  %v81_v50 = vld [vmem:[%s18831_s1 + $0x1c8] sm:$0xff] }
  0x74   :  { %939 = vmatpush.msrb.mxu1 %v127_v25  ;;  %917 = vmatpush.msrb.mxu0 %v122_v32  ;;  %v188_v25 = vld [vmem:[%s18833_s3 + $0x120] sm:$0xff]  ;;  %v75_v32 = vld [vmem:[%s18831_s1 + $0x198] sm:$0xff] }
  0x76   :  { %940 = vmatpush.msrb.mxu1 %v126_v33  ;;  %918 = vmatpush.msrb.mxu0 %v121_v34  ;;  %v74_v33 = vld [vmem:[%s18831_s1 + $0x190] sm:$0xff] }
  0x77   :  { %v78_v34 = vld [vmem:[%s18831_s1 + $0x1b0] sm:$0xff] }
  0x78   :  { %11704 = vmatmul.msk.f32.gmra.mxu0 %vm235_vm0, %v13786_v63  ;;  %941 = vmatpush.msrb.mxu1 %v125_v17 }
  0x79   :  { %11725 = vmatmul.msk.f32.vlgmr.msrb.gmra.mxu2 %vm235_vm0, %v13939_v36  ;;  %919 = vmatpush.msrb.mxu0 %v120_v37 }
  0x7a   :  { %11727 = vmatmul.msk.f32.vlgmr.msrb.gmra.mxu3 %vm235_vm0, %v13939_v36  ;;  %1155 = vmatpush.msrb.mxu2 %v83_v0 }
  0x7b   :  { %1178 = vmatpush.msrb.mxu3 %v87_v1  ;;  %11706 = vmatmul.msk.f32.gmra.mxu1 %vm235_vm0, %v13786_v63 }
  0x7c   :  { %1156 = vmatpush.msrb.mxu2 %v82_v2  ;;  %942 = vmatpush.msrb.mxu1 %v124_v38  ;;  %v73_v38 = vld [vmem:[%s18831_s1 + $0x188] sm:$0xff] }
  0x7d   :  { %1179 = vmatpush.msrb.mxu3 %v86_v3 }
  0x7e   :  { %1157 = vmatpush.msrb.mxu2 %v81_v50 }
  0x7f   :  { %1180 = vmatpush.msrb.mxu3 %v85_v6 }
  0x80   :  { %1158 = vmatpush.msrb.mxu2 %v80_v7  ;;  %11713 = vmatmul.msk.f32.vlgmr.msra.gmra.mxu0 %vm235_vm0, %v13939_v36 }
  0x81   :  { %11726 = vmatmul.msk.f32.gmra.mxu2 %vm235_vm0, %v13988_v49  ;;  %1181 = vmatpush.msrb.mxu3 %v84_v9 }
  0x82   :  { %11728 = vmatmul.msk.f32.gmra.mxu3 %vm235_vm0, %v13988_v49  ;;  %1008 = vmatpush.msra.mxu0 %v187_v12  ;;  %v139_v12 = vld [vmem:[%s18832_s2 + $0x198] sm:$0xff] }
  0x83   :  { %11715 = vmatmul.msk.f32.vlgmr.msra.gmra.mxu1 %vm235_vm0, %v13939_v36 }
  0x84   :  { %1031 = vmatpush.msra.mxu1 %v191_v13  ;;  %1009 = vmatpush.msra.mxu0 %v186_v14  ;;  %v143_v13 = vld [vmem:[%s18832_s2 + $0x1b8] sm:$0xff]  ;;  %v138_v14 = vld [vmem:[%s18832_s2 + $0x190] sm:$0xff] }
  0x86   :  { %1032 = vmatpush.msra.mxu1 %v190_v15  ;;  %v142_v15 = vld [vmem:[%s18832_s2 + $0x1b0] sm:$0xff] }
  0x88   :  { %11714 = vmatmul.msk.f32.gmra.mxu0 %vm235_vm0, %v13988_v49 }
  0x89   :  { %11733 = vmatmul.msk.f32.vlgmr.msra.gmra.mxu2 %vm235_vm0, %v13939_v36 }
  0x8a   :  { %11735 = vmatmul.msk.f32.vlgmr.msra.gmra.mxu3 %vm235_vm0, %v13939_v36  ;;  %1247 = vmatpush.msra.mxu2 %v147_v20  ;;  %v185_v20 = vld [vmem:[%s18833_s3 + $0x108] sm:$0xff] }
  0x8b   :  { %1270 = vmatpush.msra.mxu3 %v151_v21  ;;  %11716 = vmatmul.msk.f32.gmra.mxu1 %vm235_vm0, %v13988_v49  ;;  %v189_v21 = vld [vmem:[%s18833_s3 + $0x128] sm:$0xff] }
  0x8c   :  { %v14084_v10 = vpop.f32.mrf.mxu2  ;;  %1248 = vmatpush.msra.mxu2 %v146_v22  ;;  %1010 = vmatpush.msra.mxu0 %v185_v20 }
  0x8d   :  { %v14086_v11 = vpop.f32.mrf.mxu3  ;;  %1271 = vmatpush.msra.mxu3 %v150_v23  ;;  %1033 = vmatpush.msra.mxu1 %v189_v21 }
  0x8e   :  { %1249 = vmatpush.msra.mxu2 %v145_v26  ;;  %1011 = vmatpush.msra.mxu0 %v184_v8  ;;  %v137_v8 = vld [vmem:[%s18832_s2 + $0x188] sm:$0xff] }
  0x8f   :  { %1272 = vmatpush.msra.mxu3 %v149_v27  ;;  %1034 = vmatpush.msra.mxu1 %v188_v25  ;;  %v141_v25 = vld [vmem:[%s18832_s2 + $0x1a8] sm:$0xff] }
  0x90   :  { %1250 = vmatpush.msra.mxu2 %v144_v28  ;;  %11721 = vmatmul.msk.f32.vlgmr.msrb.gmra.mxu0 %vm235_vm0, %v13939_v36 }
  0x91   :  { %11734 = vmatmul.msk.f32.gmra.mxu2 %vm235_vm0, %v13988_v49  ;;  %1273 = vmatpush.msra.mxu3 %v148_v29 }
  0x92   :  { %11736 = vmatmul.msk.f32.gmra.mxu3 %vm235_vm0, %v13988_v49  ;;  %1109 = vmatpush.msrb.mxu0 %v75_v32 }
  0x93   :  { %11723 = vmatmul.msk.f32.vlgmr.msrb.gmra.mxu1 %vm235_vm0, %v13939_v36 }
  0x94   :  { %v14114_v63 = vpop.f32.mrf.mxu2  ;;  %1110 = vmatpush.msrb.mxu0 %v74_v33  ;;  %v136_v33 = vld [vmem:[%s18832_s2 + $0x180] sm:$0xff] }
  0x95   :  { %v14116_v19 = vpop.f32.mrf.mxu3 }
  0x96   :  { %1111 = vmatpush.msrb.mxu0 %v73_v38  ;;  %v203_v38 = vld [vmem:[%s18833_s3 + $0x198] sm:$0xff] }
  0x98   :  { %11722 = vmatmul.msk.f32.gmra.mxu0 %vm235_vm0, %v13988_v49 }
  0x99   :  { %11743 = vmatmul.msk.f32.vlgmr.msrb.gmra.mxu2 %vm235_vm0, %v14137_v24 }
  0x9a   :  { %11745 = vmatmul.msk.f32.vlgmr.msrb.gmra.mxu3 %vm235_vm0, %v14137_v24  ;;  %1339 = vmatpush.msrb.mxu2 %v211_v41 }
  0x9b   :  { %1362 = vmatpush.msrb.mxu3 %v215_v42  ;;  %11724 = vmatmul.msk.f32.gmra.mxu1 %vm235_vm0, %v13988_v49 }
  0x9c   :  { %v14161_v30 = vpop.f32.mrf.mxu2  ;;  %1340 = vmatpush.msrb.mxu2 %v210_v43  ;;  %v72_v43 = vld [vmem:[%s18831_s1 + $0x180] sm:$0xff] }
  0x9d   :  { %v14163_v31 = vpop.f32.mrf.mxu3  ;;  %1363 = vmatpush.msrb.mxu3 %v214_v44  ;;  %v14240_v53 = vpop.f32.mrf.mxu0  ;;  %v76_v44 = vld [vmem:[%s18831_s1 + $0x1a0] sm:$0xff]  ;;  %1112 = vmatpush.msrb.mxu0 %v72_v43  ;;  %v202_v43 = vld [vmem:[%s18833_s3 + $0x190] sm:$0xff] }
  0x9e   :  { %1341 = vmatpush.msrb.mxu2 %v209_v45 }
  0x9f   :  { %1364 = vmatpush.msrb.mxu3 %v213_v46  ;;  %v14242_v54 = vpop.f32.mrf.mxu1 }
  0xa0   :  { %1342 = vmatpush.msrb.mxu2 %v208_v47  ;;  %11729 = vmatmul.msk.f32.vlgmr.msra.gmra.mxu0 %vm235_vm0, %v13939_v36 }
  0xa1   :  { %11744 = vmatmul.msk.f32.gmra.mxu2 %vm235_vm0, %v14184_v35  ;;  %1365 = vmatpush.msrb.mxu3 %v212_v48 }
  0xa2   :  { %11746 = vmatmul.msk.f32.gmra.mxu3 %vm235_vm0, %v14184_v35  ;;  %1201 = vmatpush.msra.mxu0 %v139_v12 }
  0xa3   :  { %11731 = vmatmul.msk.f32.vlgmr.msra.gmra.mxu1 %vm235_vm0, %v13939_v36  ;;  %v79_v36 = vld [vmem:[%s18831_s1 + $0x1b8] sm:$0xff] }
  0xa4   :  { %v14196_v39 = vpop.f32.mrf.mxu2  ;;  %1132 = vmatpush.msrb.mxu1 %v79_v36  ;;  %1202 = vmatpush.msra.mxu0 %v138_v14  ;;  %v201_v14 = vld [vmem:[%s18833_s3 + $0x188] sm:$0xff] }
  0xa5   :  { %v14198_v40 = vpop.f32.mrf.mxu3  ;;  %v14252_v57 = vpop.f32.mrf.mxu0 }
  0xa6   :  { %1133 = vmatpush.msrb.mxu1 %v78_v34  ;;  %v140_v34 = vld [vmem:[%s18832_s2 + $0x1a0] sm:$0xff]  ;;  %1203 = vmatpush.msra.mxu0 %v137_v8 }
  0xa8   :  { %v14254_v58 = vpop.f32.mrf.mxu1  ;;  %11730 = vmatmul.msk.f32.gmra.mxu0 %vm235_vm0, %v13988_v49 }
  0xa9   :  { %11751 = vmatmul.msk.f32.vlgmr.msra.gmra.mxu2 %vm235_vm0, %v14137_v24  ;;  %19044 = vst [vmem:[#allocation9_spill] sm:$0xff] %v14254_v58  ;;  %1204 = vmatpush.msra.mxu0 %v136_v33  ;;  %v200_v33 = vld [vmem:[%s18833_s3 + $0x180] sm:$0xff] }
  0xaa   :  { %11753 = vmatmul.msk.f32.vlgmr.msra.gmra.mxu3 %vm235_vm0, %v14137_v24 }
  0xab   :  { %11732 = vmatmul.msk.f32.gmra.mxu1 %vm235_vm0, %v13988_v49  ;;  %v77_v49 = vld [vmem:[%s18831_s1 + $0x1a8] sm:$0xff] }
  0xac   :  { %v14232_v51 = vpop.f32.mrf.mxu2  ;;  %1134 = vmatpush.msrb.mxu1 %v77_v49  ;;  %v207_v49 = vld [vmem:[%s18833_s3 + $0x1b8] sm:$0xff] }
  0xad   :  { %19040 = vst [vmem:[#allocation5_spill] sm:$0xff] %v14232_v51  ;;  %v14234_v52 = vpop.f32.mrf.mxu3  ;;  %v14268_v61 = vpop.f32.mrf.mxu0 }
  0xae   :  { %19041 = vst [vmem:[#allocation6_spill] sm:$0xff] %v14234_v52  ;;  %1135 = vmatpush.msrb.mxu1 %v76_v44  ;;  %v206_v44 = vld [vmem:[%s18833_s3 + $0x1b0] sm:$0xff] }
  0xb0   :  { %v14270_v62 = vpop.f32.mrf.mxu1  ;;  %11739 = vmatmul.msk.f32.vlgmr.msrb.gmra.mxu0 %vm235_vm0, %v14137_v24  ;;  %1224 = vmatpush.msra.mxu1 %v143_v13 }
  0xb1   :  { %11752 = vmatmul.msk.f32.gmra.mxu2 %vm235_vm0, %v14184_v35  ;;  %1293 = vmatpush.msrb.mxu0 %v203_v38 }
  0xb2   :  { %11754 = vmatmul.msk.f32.gmra.mxu3 %vm235_vm0, %v14184_v35  ;;  %1225 = vmatpush.msra.mxu1 %v142_v15  ;;  %v205_v15 = vld [vmem:[%s18833_s3 + $0x1a8] sm:$0xff] }
  0xb3   :  { %11741 = vmatmul.msk.f32.vlgmr.msrb.gmra.mxu1 %vm235_vm0, %v14137_v24  ;;  %1294 = vmatpush.msrb.mxu0 %v202_v43 }
  0xb4   :  { %v14248_v55 = vpop.f32.mrf.mxu2  ;;  %1226 = vmatpush.msra.mxu1 %v141_v25 }
  0xb5   :  { %19042 = vst [vmem:[#allocation7_spill] sm:$0xff] %v14248_v55  ;;  %v14250_v56 = vpop.f32.mrf.mxu3  ;;  %v14276_v2 = vpop.f32.mrf.mxu0  ;;  %1295 = vmatpush.msrb.mxu0 %v201_v14 }
  0xb6   :  { %19043 = vst [vmem:[#allocation8_spill] sm:$0xff] %v14250_v56  ;;  %1227 = vmatpush.msra.mxu1 %v140_v34  ;;  %v204_v34 = vld [vmem:[%s18833_s3 + $0x1a0] sm:$0xff] }
  0xb7   :  { %1296 = vmatpush.msrb.mxu0 %v200_v33 }
  0xb8   :  { %v14278_v3 = vpop.f32.mrf.mxu1  ;;  %11740 = vmatmul.msk.f32.gmra.mxu0 %vm235_vm0, %v14184_v35  ;;  %1316 = vmatpush.msrb.mxu1 %v207_v49 }
  0xb9   :  { %11759 = vmatmul.msk.f32.vlgmr.msrb.gmra.mxu2 %vm235_vm0, %v14137_v24 }
  0xba   :  { %11761 = vmatmul.msk.f32.vlgmr.msrb.gmra.mxu3 %vm235_vm0, %v14137_v24  ;;  %1317 = vmatpush.msrb.mxu1 %v206_v44 }
  0xbb   :  { %11742 = vmatmul.msk.f32.gmra.mxu1 %vm235_vm0, %v14184_v35 }
  0xbc   :  { %v14260_v59 = vpop.f32.mrf.mxu2  ;;  %1318 = vmatpush.msrb.mxu1 %v205_v15 }
  0xbd   :  { %19045 = vst [vmem:[#allocation10_spill] sm:$0xff] %v14260_v59  ;;  %v14262_v60 = vpop.f32.mrf.mxu3  ;;  %v14284_v50 = vpop.f32.mrf.mxu0 }
  0xbe   :  { %19046 = vst [vmem:[#allocation11_spill] sm:$0xff] %v14262_v60  ;;  %1319 = vmatpush.msrb.mxu1 %v204_v34 }
  0xbf   :  { %19051 = vst [vmem:[#allocation16_spill] sm:$0xff] %v14284_v50 }
  0xc0   :  { %v14286_v6 = vpop.f32.mrf.mxu1  ;;  %11747 = vmatmul.msk.f32.vlgmr.msra.gmra.mxu0 %vm235_vm0, %v14137_v24 }
  0xc1   :  { %11760 = vmatmul.msk.f32.gmra.mxu2 %vm235_vm0, %v14184_v35  ;;  %19052 = vst [vmem:[#allocation17_spill] sm:$0xff] %v14286_v6 }
  0xc2   :  { %11762 = vmatmul.msk.f32.gmra.mxu3 %vm235_vm0, %v14184_v35 }
  0xc3   :  { %11749 = vmatmul.msk.f32.vlgmr.msra.gmra.mxu1 %vm235_vm0, %v14137_v24 }
  0xc4   :  { %v14272_v0 = vpop.f32.mrf.mxu2 }
  0xc5   :  { %19047 = vst [vmem:[#allocation12_spill] sm:$0xff] %v14272_v0  ;;  %v14274_v1 = vpop.f32.mrf.mxu3  ;;  %v14312_v16 = vpop.f32.mrf.mxu0 }
  0xc6   :  { %19048 = vst [vmem:[#allocation13_spill] sm:$0xff] %v14274_v1 }
  0xc7   :  { %19055 = vst [vmem:[#allocation20_spill] sm:$0xff] %v14312_v16 }
  0xc8   :  { %v14314_v18 = vpop.f32.mrf.mxu1  ;;  %11748 = vmatmul.msk.f32.gmra.mxu0 %vm235_vm0, %v14184_v35 }
  0xc9   :  { %19056 = vst [vmem:[#allocation21_spill] sm:$0xff] %v14314_v18 }
  0xcb   :  { %11750 = vmatmul.msk.f32.gmra.mxu1 %vm235_vm0, %v14184_v35 }
  0xcc   :  { %v14280_v4 = vpop.f32.mrf.mxu2 }
  0xcd   :  { %19049 = vst [vmem:[#allocation14_spill] sm:$0xff] %v14280_v4  ;;  %v14282_v5 = vpop.f32.mrf.mxu3  ;;  %v14340_v26 = vpop.f32.mrf.mxu0 }
  0xce   :  { %19050 = vst [vmem:[#allocation15_spill] sm:$0xff] %v14282_v5 }
  0xcf   :  { %19059 = vst [vmem:[#allocation24_spill] sm:$0xff] %v14340_v26 }
  0xd0   :  { %v14342_v27 = vpop.f32.mrf.mxu1  ;;  %11755 = vmatmul.msk.f32.vlgmr.msrb.gmra.mxu0 %vm235_vm0, %v14137_v24 }
  0xd1   :  { %19060 = vst [vmem:[#allocation25_spill] sm:$0xff] %v14342_v27 }
  0xd3   :  { %11757 = vmatmul.msk.f32.vlgmr.msrb.gmra.mxu1 %vm235_vm0, %v14137_v24 }
  0xd4   :  { %v14288_v7 = vpop.f32.mrf.mxu2 }
  0xd5   :  { %19053 = vst [vmem:[#allocation18_spill] sm:$0xff] %v14288_v7  ;;  %v14290_v9 = vpop.f32.mrf.mxu3  ;;  %11771 = vmatpush.xpose.msk.msra.mxu2 %vm1373_vm1, %v14288_v7  ;;  %v14368_v17 = vpop.f32.mrf.mxu0 }
  0xd6   :  { %19054 = vst [vmem:[#allocation19_spill] sm:$0xff] %v14290_v9  ;;  %11775 = vmatpush.xpose.msk.msra.mxu3 %vm1373_vm1, %v14290_v9 }
  0xd7   :  { %19063 = vst [vmem:[#allocation28_spill] sm:$0xff] %v14368_v17 }
  0xd8   :  { %v14370_v37 = vpop.f32.mrf.mxu1  ;;  %11756 = vmatmul.msk.f32.gmra.mxu0 %vm235_vm0, %v14184_v35 }
  0xd9   :  { %11772 = vmatpush.xpose.msk.msra.mxu2 %vm1373_vm1, %v14280_v4  ;;  %19064 = vst [vmem:[#allocation29_spill] sm:$0xff] %v14370_v37 }
  0xda   :  { %11776 = vmatpush.xpose.msk.msra.mxu3 %vm1373_vm1, %v14282_v5 }
  0xdb   :  { %11758 = vmatmul.msk.f32.gmra.mxu1 %vm235_vm0, %v14184_v35 }
  0xdc   :  { %v14322_v22 = vpop.f32.mrf.mxu2  ;;  %11773 = vmatmul.msk.f32.vlgmr.msra.gmra.mxu2 %vm1373_vm1, %v14084_v10 }
  0xdd   :  { %19057 = vst [vmem:[#allocation22_spill] sm:$0xff] %v14322_v22  ;;  %v14324_v23 = vpop.f32.mrf.mxu3  ;;  %11777 = vmatmul.msk.f32.vlgmr.msra.gmra.mxu3 %vm1373_vm1, %v14086_v11  ;;  %v14392_v45 = vpop.f32.mrf.mxu0 }
  0xde   :  { %19058 = vst [vmem:[#allocation23_spill] sm:$0xff] %v14324_v23 }
  0xdf   :  { %19067 = vst [vmem:[#allocation32_spill] sm:$0xff] %v14392_v45 }
  0xe0   :  { %v14394_v46 = vpop.f32.mrf.mxu1 }
  0xe1   :  { %19068 = vst [vmem:[#allocation33_spill] sm:$0xff] %v14394_v46 }
  0xe4   :  { %v14344_v28 = vpop.f32.mrf.mxu2  ;;  %11774 = vmatmul.msk.f32.gmra.mxu2 %vm1373_vm1, %v14114_v63 }
  0xe5   :  { %19061 = vst [vmem:[#allocation26_spill] sm:$0xff] %v14344_v28  ;;  %v14346_v29 = vpop.f32.mrf.mxu3  ;;  %11778 = vmatmul.msk.f32.gmra.mxu3 %vm1373_vm1, %v14116_v19  ;;  %v14416_v20 = vpop.f32.mrf.mxu0 }
  0xe6   :  { %19062 = vst [vmem:[#allocation27_spill] sm:$0xff] %v14346_v29  ;;  %11763 = vmatpush.xpose.msk.msra.mxu0 %vm1373_vm1, %v14416_v20 }
  0xe7   :  { %19071 = vst [vmem:[#allocation36_spill] sm:$0xff] %v14416_v20 }
  0xe8   :  { %v14418_v21 = vpop.f32.mrf.mxu1 }
  0xe9   :  { %19072 = vst [vmem:[#allocation37_spill] sm:$0xff] %v14418_v21  ;;  %11767 = vmatpush.xpose.msk.msra.mxu1 %vm1373_vm1, %v14418_v21 }
  0xea   :  { %11764 = vmatpush.xpose.msk.msra.mxu0 %vm1373_vm1, %v14392_v45 }
  0xec   :  { %v14378_v41 = vpop.f32.mrf.mxu2 }
  0xed   :  { %19065 = vst [vmem:[#allocation30_spill] sm:$0xff] %v14378_v41  ;;  %v14380_v42 = vpop.f32.mrf.mxu3  ;;  %v14452_v12 = vpop.f32.mrf.mxu0  ;;  %11768 = vmatpush.xpose.msk.msra.mxu1 %vm1373_vm1, %v14394_v46  ;;  %11765 = vmatmul.msk.f32.vlgmr.msra.gmra.mxu0 %vm1373_vm1, %v14240_v53 }
  0xee   :  { %19066 = vst [vmem:[#allocation31_spill] sm:$0xff] %v14380_v42 }
  0xef   :  { %19075 = vst [vmem:[#allocation40_spill] sm:$0xff] %v14452_v12 }
  0xf0   :  { %v14454_v13 = vpop.f32.mrf.mxu1  ;;  %11769 = vmatmul.msk.f32.vlgmr.msra.gmra.mxu1 %vm1373_vm1, %v14242_v54 }
  0xf1   :  { %19076 = vst [vmem:[#allocation41_spill] sm:$0xff] %v14454_v13 }
  0xf4   :  { %v14396_v47 = vpop.f32.mrf.mxu2 }
  0xf5   :  { %19069 = vst [vmem:[#allocation34_spill] sm:$0xff] %v14396_v47  ;;  %v14398_v48 = vpop.f32.mrf.mxu3  ;;  %v14484_v38 = vpop.f32.mrf.mxu0  ;;  %11766 = vmatmul.msk.f32.gmra.mxu0 %vm1373_vm1, %v14252_v57 }
  0xf6   :  { %19070 = vst [vmem:[#allocation35_spill] sm:$0xff] %v14398_v48 }
  0xf7   :  { %19079 = vst [vmem:[#allocation44_spill] sm:$0xff] %v14484_v38 }
  0xf8   :  { %v14486_v49 = vpop.f32.mrf.mxu1  ;;  %11770 = vmatmul.msk.f32.gmra.mxu1 %vm1373_vm1, %v14254_v58 }
  0xf9   :  { %19080 = vst [vmem:[#allocation45_spill] sm:$0xff] %v14486_v49 }
  0xfc   :  { %v14426_v32 = vpop.f32.mrf.mxu2 }
  0xfd   :  { %19073 = vst [vmem:[#allocation38_spill] sm:$0xff] %v14426_v32  ;;  %v14428_v36 = vpop.f32.mrf.mxu3  ;;  %v14508_v14 = vpop.f32.mrf.mxu0 }
  0xfe   :  { %19074 = vst [vmem:[#allocation39_spill] sm:$0xff] %v14428_v36 }
  0xff   :  { %19083 = vst [vmem:[#allocation48_spill] sm:$0xff] %v14508_v14 }
 0x100   :  { %v14510_v15 = vpop.f32.mrf.mxu1 }
 0x101   :  { %19084 = vst [vmem:[#allocation49_spill] sm:$0xff] %v14510_v15 }
 0x104   :  { %v14462_v8 = vpop.f32.mrf.mxu2 }
 0x105   :  { %19077 = vst [vmem:[#allocation42_spill] sm:$0xff] %v14462_v8  ;;  %v14464_v25 = vpop.f32.mrf.mxu3  ;;  %11787 = vmatpush.xpose.msk.msrb.mxu2 %vm1373_vm1, %v14462_v8  ;;  %v14532_v24 = vpop.f32.mrf.mxu0 }
 0x106   :  { %19078 = vst [vmem:[#allocation43_spill] sm:$0xff] %v14464_v25  ;;  %11791 = vmatpush.xpose.msk.msrb.mxu3 %vm1373_vm1, %v14464_v25 }
 0x107   :  { %19087 = vst [vmem:[#allocation52_spill] sm:$0xff] %v14532_v24 }
 0x108   :  { %v14534_v15 = vpop.f32.mrf.mxu1 }
 0x109   :  { %11788 = vmatpush.xpose.msk.msrb.mxu2 %vm1373_vm1, %v14426_v32  ;;  %19088 = vst [vmem:[#allocation53_spill] sm:$0xff] %v14534_v15 }
 0x10a   :  { %11792 = vmatpush.xpose.msk.msrb.mxu3 %vm1373_vm1, %v14428_v36 }
 0x10c   :  { %v14492_v43 = vpop.f32.mrf.mxu2  ;;  %11789 = vmatmul.msk.f32.vlgmr.msrb.gmra.mxu2 %vm1373_vm1, %v14084_v10 }
 0x10d   :  { %19081 = vst [vmem:[#allocation46_spill] sm:$0xff] %v14492_v43  ;;  %v14494_v44 = vpop.f32.mrf.mxu3  ;;  %11793 = vmatmul.msk.f32.vlgmr.msrb.gmra.mxu3 %vm1373_vm1, %v14086_v11  ;;  %v14540_v14 = vpop.f32.mrf.mxu0 }
 0x10e   :  { %19082 = vst [vmem:[#allocation47_spill] sm:$0xff] %v14494_v44 }
 0x10f   :  { %19089 = vst [vmem:[#allocation54_spill] sm:$0xff] %v14540_v14 }
 0x110   :  { %v14542_v46 = vpop.f32.mrf.mxu1 }
 0x111   :  { %19090 = vst [vmem:[#allocation55_spill] sm:$0xff] %v14542_v46 }
 0x114   :  { %v14512_v33 = vpop.f32.mrf.mxu2  ;;  %11790 = vmatmul.msk.f32.gmra.mxu2 %vm1373_vm1, %v14114_v63 }
 0x115   :  { %19085 = vst [vmem:[#allocation50_spill] sm:$0xff] %v14512_v33  ;;  %v14514_v34 = vpop.f32.mrf.mxu3  ;;  %11794 = vmatmul.msk.f32.gmra.mxu3 %vm1373_vm1, %v14116_v19  ;;  %1933 = vmatpush.msra.mxu2 %v14512_v33  ;;  %v14552_v15 = vpop.f32.mrf.mxu0 }
 0x116   :  { %19086 = vst [vmem:[#allocation51_spill] sm:$0xff] %v14514_v34  ;;  %1962 = vmatpush.msra.mxu3 %v14514_v34  ;;  %11779 = vmatpush.xpose.msk.msrb.mxu0 %vm1373_vm1, %v14552_v15 }
 0x117   :  { %1934 = vmatpush.msra.mxu2 %v14492_v43  ;;  %19093 = vst [vmem:[#allocation58_spill] sm:$0xff] %v14552_v15 }
 0x118   :  { %1963 = vmatpush.msra.mxu3 %v14494_v44  ;;  %v14554_v24 = vpop.f32.mrf.mxu1 }
 0x119   :  { %2049 = vmatpush.msrb.mxu2 %v14344_v28  ;;  %19094 = vst [vmem:[#allocation59_spill] sm:$0xff] %v14554_v24  ;;  %11783 = vmatpush.xpose.msk.msrb.mxu1 %vm1373_vm1, %v14554_v24 }
 0x11a   :  { %2078 = vmatpush.msrb.mxu3 %v14346_v29  ;;  %11780 = vmatpush.xpose.msk.msrb.mxu0 %vm1373_vm1, %v14540_v14 }
 0x11b   :  { %2050 = vmatpush.msrb.mxu2 %v14322_v22 }
 0x11c   :  { %2079 = vmatpush.msrb.mxu3 %v14324_v23  ;;  %v14544_v21 = vpop.f32.mrf.mxu2 }
 0x11d   :  { %19091 = vst [vmem:[#allocation56_spill] sm:$0xff] %v14544_v21  ;;  %v14546_v35 = vpop.f32.mrf.mxu3  ;;  %11784 = vmatpush.xpose.msk.msrb.mxu1 %vm1373_vm1, %v14542_v46  ;;  %11781 = vmatmul.msk.f32.vlgmr.msrb.gmra.mxu0 %vm1373_vm1, %v14240_v53  ;;  %v14592_v42 = vpop.f32.mrf.mxu0 }
 0x11e   :  { %19092 = vst [vmem:[#allocation57_spill] sm:$0xff] %v14546_v35 }
 0x11f   :  { %19099 = vst [vmem:[#allocation64_spill] sm:$0xff] %v14592_v42 }
 0x120   :  { %11785 = vmatmul.msk.f32.vlgmr.msrb.gmra.mxu1 %vm1373_vm1, %v14242_v54  ;;  %v14594_v22 = vpop.f32.mrf.mxu1 }
 0x121   :  { %19100 = vst [vmem:[#allocation65_spill] sm:$0xff] %v14594_v22 }
 0x124   :  { %v14560_v45 = vpop.f32.mrf.mxu2 }
 0x125   :  { %19095 = vst [vmem:[#allocation60_spill] sm:$0xff] %v14560_v45  ;;  %v14566_v35 = vpop.f32.mrf.mxu3  ;;  %11782 = vmatmul.msk.f32.gmra.mxu0 %vm1373_vm1, %v14252_v57  ;;  %v14602_v9 = vpop.f32.mrf.mxu0 }
 0x126   :  { %19096 = vst [vmem:[#allocation61_spill] sm:$0xff] %v14566_v35  ;;  %1875 = vmatpush.msra.mxu0 %v14602_v9 }
 0x127   :  { %19101 = vst [vmem:[#allocation66_spill] sm:$0xff] %v14602_v9 }
 0x128   :  { %11786 = vmatmul.msk.f32.gmra.mxu1 %vm1373_vm1, %v14254_v58  ;;  %v14604_v4 = vpop.f32.mrf.mxu1  ;;  %1876 = vmatpush.msra.mxu0 %v14592_v42 }
 0x129   :  { %19102 = vst [vmem:[#allocation67_spill] sm:$0xff] %v14604_v4  ;;  %1904 = vmatpush.msra.mxu1 %v14604_v4 }
 0x12a   :  { %1991 = vmatpush.msrb.mxu0 %v14484_v38 }
 0x12b   :  { %1905 = vmatpush.msra.mxu1 %v14594_v22 }
 0x12c   :  { %v14572_v21 = vpop.f32.mrf.mxu2  ;;  %1992 = vmatpush.msrb.mxu0 %v14452_v12 }
 0x12d   :  { %v14578_v45 = vpop.f32.mrf.mxu3  ;;  %2020 = vmatpush.msrb.mxu1 %v14486_v49 }
 0x12f   :  { %2021 = vmatpush.msrb.mxu1 %v14454_v13 }
 0x130   :  { %v14630_v17 = vpop.f32.mrf.mxu1 }
 0x131   :  { %19104 = vst [vmem:[#allocation69_spill] sm:$0xff] %v14630_v17 }
 0x134   :  { %v14580_v20 = vpop.f32.mrf.mxu2 }
 0x135   :  { %19097 = vst [vmem:[#allocation62_spill] sm:$0xff] %v14580_v20  ;;  %v14582_v48 = vpop.f32.mrf.mxu3 }
 0x136   :  { %19098 = vst [vmem:[#allocation63_spill] sm:$0xff] %v14582_v48 }
 0x13c   :  { %v14584_v35 = vpop.f32.mrf.mxu2 }
 0x13d   :  { %v14586_v23 = vpop.f32.mrf.mxu3 }
 0x144   :  { %v14588_v29 = vpop.f32.mrf.mxu2 }
 0x145   :  { %v14590_v47 = vpop.f32.mrf.mxu3 }
 0x15f   :  { %v14596_v28 = vpop.f32.mrf.mxu2 }
 0x160   :  { %v1527_v41 = vsel %vm1514_vm2, %v14596_v28, -inf  ;;  %v14600_v5 = vpop.f32.mrf.mxu3 }
 0x161   :  { %1528 = vmax.xlane.f32.xlu2 %v1527_v41  ;;  %v1533_v7 = vsel %vm1514_vm2, %v14600_v5, -inf }
 0x167   :  { %v14616_v41 = vpop.f32.mrf.mxu2 }
 0x168   :  { %v14618_v6 = vpop.f32.mrf.mxu3  ;;  %v1530_v13 = vsel %vm1514_vm2, %v14616_v41, -inf }
 0x169   :  { %1534 = vmax.xlane.f32.xlu2 %v1533_v7  ;;  %v1536_v22 = vsel %vm1514_vm2, %v14618_v6, -inf }
 0x18f   :  { %v1708_v18 = vpop.f32.mrf.mxu2 }
 0x190   :  { %v1755_v50 = vsel %vm1514_vm2, %v1708_v18, -inf  ;;  %v1737_v16 = vpop.f32.mrf.mxu3 }
 0x191   :  { %1756 = vmax.xlane.f32.xlu0 %v1755_v50  ;;  %v1761_v7 = vsel %vm1514_vm2, %v1737_v16, -inf  ;;  %v14628_v50 = vpop.f32.mrf.mxu0 }
 0x192   :  { %19103 = vst [vmem:[#allocation68_spill] sm:$0xff] %v14628_v50 }
 0x197   :  { %v1711_v37 = vpop.f32.mrf.mxu2 }
 0x198   :  { %v1758_v38 = vsel %vm1514_vm2, %v1711_v37, -inf  ;;  %v1740_v49 = vpop.f32.mrf.mxu3 }
 0x199   :  { %1762 = vmax.xlane.f32.xlu0 %v1761_v7  ;;  %1759 = vmax.xlane.f32.xlu1 %v1758_v38  ;;  %v1764_v12 = vsel %vm1514_vm2, %v1740_v49, -inf  ;;  %v14632_v4 = vpop.f32.mrf.mxu0  ;;  %v14634_v7 = vpop.f32.mrf.mxu1 }
 0x19a   :  { %19105 = vst [vmem:[#allocation70_spill] sm:$0xff] %v14632_v4 }
 0x19b   :  { %19106 = vst [vmem:[#allocation71_spill] sm:$0xff] %v14634_v7 }
 0x1a1   :  { %1765 = vmax.xlane.f32.xlu1 %v1764_v12  ;;  %1531 = vmax.xlane.f32.xlu0 %v1530_v13  ;;  %v14636_v38 = vpop.f32.mrf.mxu0  ;;  %v14638_v27 = vpop.f32.mrf.mxu1 }
 0x1a9   :  { %1537 = vmax.xlane.f32.xlu1 %v1536_v22  ;;  %v14640_v42 = vpop.f32.mrf.mxu0  ;;  %v14642_v12 = vpop.f32.mrf.mxu1 }
 0x1b1   :  { %v14644_v13 = vpop.f32.mrf.mxu0  ;;  %v14646_v9 = vpop.f32.mrf.mxu1 }
 0x1b9   :  { %v14648_v26 = vpop.f32.mrf.mxu0  ;;  %v14650_v4 = vpop.f32.mrf.mxu1 }
 0x1c1   :  { %v14654_v51 = vpop.f32.mrf.mxu0  ;;  %v14657_v0 = vpop.f32.mrf.mxu1 }
 0x1d4   :  { %v1529_v22 = vpop.xlane.xlu2 %1528 }
 0x1d5   :  { %v1543_v55 = vsub.f32 %v14596_v28, %v1529_v22 }
 0x1dc   :  { %v1535_v14 = vpop.xlane.xlu2 %1534 }
 0x204   :  { %v1757_v50 = vpop.xlane.xlu0 %1756 }
 0x205   :  { %v1771_v17 = vsub.f32 %v1708_v18, %v1757_v50  ;;  %v1545_v18 = vsub.f32 %v14600_v5, %v1535_v14 }
 0x207   :  { %v1783_v7 = vmul.f32 1.442695, %v1771_v17 }
 0x209   :  { %12511 = vpow2.f32 %v1783_v7 }
 0x20c   :  { %v1763_v46 = vpop.xlane.xlu0 %1762  ;;  %v1760_v24 = vpop.xlane.xlu1 %1759 }
 0x20d   :  { %v1773_v15 = vsub.f32 %v1737_v16, %v1763_v46  ;;  %v1772_v52 = vsub.f32 %v1711_v37, %v1760_v24  ;;  %v1555_v16 = vmul.f32 1.442695, %v1543_v55  ;;  %v1559_v37 = vmul.f32 1.442695, %v1545_v18 }
 0x20f   :  { %v14652_v56 = vpop.eup %12511  ;;  %v1787_v1 = vmul.f32 1.442695, %v1773_v15  ;;  %v1785_v44 = vmul.f32 1.442695, %v1772_v52 }
 0x210   :  { %v1803_v17 = vsel %vm1514_vm2, %v14652_v56, 0.0 }
 0x211   :  { %12513 = vpow2.f32 %v1787_v1  ;;  %1804 = vadd.xlane.f32.xlu2 %v1803_v17  ;;  %v14669_v1 = vpop.f32.mrf.mxu0 }
 0x212   :  { %12515 = vpow2.f32 %v1785_v44 }
 0x213   :  { %12517 = vpow2.f32 %v1555_v16 }
 0x214   :  { %v1766_v46 = vpop.xlane.xlu1 %1765  ;;  %v1532_v24 = vpop.xlane.xlu0 %1531  ;;  %12519 = vpow2.f32 %v1559_v37 }
 0x215   :  { %v1774_v50 = vsub.f32 %v1740_v49, %v1766_v46  ;;  %v1544_v52 = vsub.f32 %v14616_v41, %v1532_v24  ;;  %v14673_v49 = vpop.f32.mrf.mxu1 }
 0x217   :  { %v14662_v7 = vpop.eup %12513  ;;  %v1789_v28 = vmul.f32 1.442695, %v1774_v50  ;;  %v1557_v44 = vmul.f32 1.442695, %v1544_v52 }
 0x218   :  { %v14665_v15 = vpop.eup %12515  ;;  %v1809_v5 = vsel %vm1514_vm2, %v14662_v7, 0.0 }
 0x219   :  { %12521 = vpow2.f32 %v1789_v28  ;;  %v1806_v55 = vsel %vm1514_vm2, %v14665_v15, 0.0  ;;  %1810 = vadd.xlane.f32.xlu0 %v1809_v5  ;;  %v14675_v22 = vpop.eup %12517 }
 0x21a   :  { %1807 = vadd.xlane.f32.xlu1 %v1806_v55  ;;  %v14678_v18 = vpop.eup %12519  ;;  %12523 = vpow2.f32 %v1557_v44  ;;  %v1575_v46 = vsel %vm1514_vm2, %v14675_v22, 0.0 }
 0x21b   :  { %v1581_v24 = vsel %vm1514_vm2, %v14678_v18, 0.0 }
 0x21c   :  { %v1538_v14 = vpop.xlane.xlu1 %1537 }
 0x21d   :  { %v1546_v41 = vsub.f32 %v14618_v6, %v1538_v14  ;;  %v14688_v6 = vpop.f32.mrf.mxu0  ;;  %v14690_v50 = vpop.f32.mrf.mxu1 }
 0x21e   :  { %v1743_v44 = vsel %vm1514_vm2, %v14688_v6, -inf }
 0x21f   :  { %v14680_v17 = vpop.eup %12521  ;;  %v1561_v16 = vmul.f32 1.442695, %v1546_v41 }
 0x220   :  { %v1812_v37 = vsel %vm1514_vm2, %v14680_v17, 0.0  ;;  %v14692_v28 = vpop.eup %12523 }
 0x221   :  { %12525 = vpow2.f32 %v1561_v16  ;;  %1813 = vadd.xlane.f32.xlu2 %v1812_v37  ;;  %1576 = vadd.xlane.f32.xlu0 %v1575_v46  ;;  %v1578_v55 = vsel %vm1514_vm2, %v14692_v28, 0.0  ;;  %v1749_v16 = vsel %vm1514_vm2, %v14690_v50, -inf }
 0x222   :  { %1582 = vadd.xlane.f32.xlu1 %v1581_v24  ;;  %v1515_v24 = vsel %vm1514_vm2, %v14654_v51, -inf }
 0x225   :  { %v14702_v14 = vpop.f32.mrf.mxu0  ;;  %v14704_v41 = vpop.f32.mrf.mxu1 }
 0x226   :  { %v1746_v37 = vsel %vm1514_vm2, %v14702_v14, -inf  ;;  %v1752_v46 = vsel %vm1514_vm2, %v14704_v41, -inf }
 0x227   :  { %v14694_v52 = vpop.eup %12525 }
 0x228   :  { %v1584_v5 = vsel %vm1514_vm2, %v14694_v52, 0.0 }
 0x229   :  { %1585 = vadd.xlane.f32.xlu0 %v1584_v5  ;;  %1579 = vadd.xlane.f32.xlu2 %v1578_v55  ;;  %v1521_v5 = vsel %vm1514_vm2, %v14657_v0, -inf  ;;  %v1518_v55 = vsel %vm1514_vm2, %v14669_v1, -inf }
 0x22a   :  { %1744 = vmax.xlane.f32.xlu1 %v1743_v44  ;;  %v1524_v44 = vsel %vm1514_vm2, %v14673_v49, -inf }
 0x231   :  { %1750 = vmax.xlane.f32.xlu2 %v1749_v16  ;;  %1747 = vmax.xlane.f32.xlu0 %v1746_v37 }
 0x232   :  { %1753 = vmax.xlane.f32.xlu1 %v1752_v46 }
 0x239   :  { %1516 = vmax.xlane.f32.xlu2 %v1515_v24  ;;  %1522 = vmax.xlane.f32.xlu0 %v1521_v5 }
 0x23a   :  { %1519 = vmax.xlane.f32.xlu1 %v1518_v55 }
 0x241   :  { %1525 = vmax.xlane.f32.xlu2 %v1524_v44 }
 0x284   :  { %v1805_v16 = vpop.xlane.xlu2 %1804 }
 0x285   :  { %12527 = vrcp.f32 %v1805_v16 }
 0x28b   :  { %v12528_v37 = vpop.eup %12527 }
 0x28c   :  { %v1827_v46 = vmul.f32 %v12528_v37, %v1805_v16  ;;  %v1811_v34 = vpop.xlane.xlu0 %1810 }
 0x28d   :  { %v1808_v60 = vpop.xlane.xlu1 %1807  ;;  %12529 = vrcp.f32 %v1811_v34 }
 0x28e   :  { %v1835_v43 = vsub.f32 2.0, %v1827_v46  ;;  %12531 = vrcp.f32 %v1808_v60 }
 0x290   :  { %v1843_v33 = vmul.f32 %v12528_v37, %v1835_v43 }
 0x292   :  { %v1851_v24 = vmul.f32 %v14652_v56, %v1843_v33 }
 0x293   :  { %v12530_v5 = vpop.eup %12529 }
 0x294   :  { %v12532_v59 = vpop.eup %12531  ;;  %v1829_v36 = vmul.f32 %v12530_v5, %v1811_v34  ;;  %11799 = vmatmul.msk.f32.vlgmr.msra.gmra.mxu2 %vm1514_vm2, %v1851_v24  ;;  %v1814_v55 = vpop.xlane.xlu2 %1813 }
 0x295   :  { %v1577_v25 = vpop.xlane.xlu0 %1576  ;;  %v1828_v44 = vmul.f32 %v12532_v59, %v1808_v60  ;;  %11819 = vmatpush.xpose.msk.msra.mxu2 %vm1373_vm1, %v14580_v20  ;;  %12533 = vrcp.f32 %v1814_v55  ;;  %v1583_v16 = vpop.xlane.xlu1 %1582 }
 0x296   :  { %v1837_v32 = vsub.f32 2.0, %v1829_v36  ;;  %12535 = vrcp.f32 %v1583_v16 }
 0x297   :  { %v1836_v46 = vsub.f32 2.0, %v1828_v44  ;;  %12537 = vrcp.f32 %v1577_v25 }
 0x298   :  { %v1845_v43 = vmul.f32 %v12530_v5, %v1837_v32 }
 0x299   :  { %v1844_v37 = vmul.f32 %v12532_v59, %v1836_v46  ;;  %11820 = vmatpush.xpose.msk.msra.mxu2 %vm1373_vm1, %v14572_v21 }
 0x29a   :  { %v1853_v56 = vmul.f32 %v14662_v7, %v1845_v43 }
 0x29b   :  { %v12534_v33 = vpop.eup %12533  ;;  %v1852_v34 = vmul.f32 %v14665_v15, %v1844_v37 }
 0x29c   :  { %v12536_v60 = vpop.eup %12535  ;;  %v1830_v24 = vmul.f32 %v12534_v33, %v1814_v55  ;;  %v1580_v8 = vpop.xlane.xlu2 %1579  ;;  %11801 = vmatmul.msk.f32.vlgmr.msra.gmra.mxu3 %vm1514_vm2, %v1853_v56 }
 0x29d   :  { %v1586_v20 = vpop.xlane.xlu0 %1585  ;;  %v12538_v36 = vpop.eup %12537  ;;  %v1601_v58 = vmul.f32 %v12536_v60, %v1583_v16  ;;  %11800 = vmatmul.msk.f32.gmra.mxu2 %vm1514_vm2, %v1852_v34  ;;  %12539 = vrcp.f32 %v1580_v8  ;;  %11823 = vmatpush.xpose.msk.msra.mxu3 %vm1373_vm1, %v14582_v48 }
 0x29e   :  { %v1745_v59 = vpop.xlane.xlu1 %1744  ;;  %v1838_v32 = vsub.f32 2.0, %v1830_v24  ;;  %v1599_v7 = vmul.f32 %v12538_v36, %v1577_v25  ;;  %12541 = vrcp.f32 %v1586_v20 }
 0x29f   :  { %v1767_v15 = vsub.f32 %v14688_v6, %v1745_v59  ;;  %v1609_v46 = vsub.f32 2.0, %v1601_v58 }
 0x2a0   :  { %v1846_v5 = vmul.f32 %v12534_v33, %v1838_v32  ;;  %v1607_v55 = vsub.f32 2.0, %v1599_v7 }
 0x2a1   :  { %v1775_v44 = vmul.f32 1.442695, %v1767_v15  ;;  %11824 = vmatpush.xpose.msk.msra.mxu3 %vm1373_vm1, %v14578_v45  ;;  %v1617_v7 = vmul.f32 %v12536_v60, %v1609_v46 }
 0x2a2   :  { %v1615_v16 = vmul.f32 %v12538_v36, %v1607_v55  ;;  %v1854_v43 = vmul.f32 %v14680_v17, %v1846_v5 }
 0x2a3   :  { %12543 = vpow2.f32 %v1775_v44  ;;  %v12540_v37 = vpop.eup %12539 }
 0x2a4   :  { %v12542_v56 = vpop.eup %12541  ;;  %v1623_v34 = vmul.f32 %v14675_v22, %v1615_v16  ;;  %v1600_v24 = vmul.f32 %v12540_v37, %v1580_v8  ;;  %11802 = vmatmul.msk.f32.gmra.mxu3 %vm1514_vm2, %v1854_v43  ;;  %v1751_v25 = vpop.xlane.xlu2 %1750 }
 0x2a5   :  { %v1748_v6 = vpop.xlane.xlu0 %1747  ;;  %v1769_v33 = vsub.f32 %v14690_v50, %v1751_v25  ;;  %v1602_v36 = vmul.f32 %v12542_v56, %v1586_v20  ;;  %v1625_v20 = vmul.f32 %v14678_v18, %v1617_v7 }
 0x2a6   :  { %v1754_v59 = vpop.xlane.xlu1 %1753  ;;  %v1768_v32 = vsub.f32 %v14702_v14, %v1748_v6  ;;  %v1608_v58 = vsub.f32 2.0, %v1600_v24  ;;  %11807 = vmatmul.msk.f32.vlgmr.msrb.gmra.mxu2 %vm1514_vm2, %v1623_v34 }
 0x2a7   :  { %v1770_v17 = vsub.f32 %v14704_v41, %v1754_v59  ;;  %2393 = vmatpush.msrb.mxu2 %v14588_v29  ;;  %v1779_v22 = vmul.f32 1.442695, %v1769_v33  ;;  %v1610_v14 = vsub.f32 2.0, %v1602_v36 }
 0x2a8   :  { %v1777_v8 = vmul.f32 1.442695, %v1768_v32  ;;  %v1616_v5 = vmul.f32 %v12540_v37, %v1608_v58 }
 0x2a9   :  { %v14743_v15 = vpop.eup %12543  ;;  %v1781_v55 = vmul.f32 1.442695, %v1770_v17  ;;  %12545 = vpow2.f32 %v1779_v22  ;;  %2394 = vmatpush.msrb.mxu2 %v14584_v35  ;;  %v1618_v37 = vmul.f32 %v12542_v56, %v1610_v14 }
 0x2aa   :  { %v1791_v50 = vsel %vm1514_vm2, %v14743_v15, 0.0  ;;  %v1624_v41 = vmul.f32 %v14692_v28, %v1616_v5 }
 0x2ab   :  { %12547 = vpow2.f32 %v1781_v55  ;;  %1792 = vadd.xlane.f32.xlu0 %v1791_v50  ;;  %v1626_v56 = vmul.f32 %v14694_v52, %v1618_v37 }
 0x2ac   :  { %12549 = vpow2.f32 %v1777_v8  ;;  %11809 = vmatmul.msk.f32.vlgmr.msrb.gmra.mxu3 %vm1514_vm2, %v1625_v20  ;;  %v1517_v60 = vpop.xlane.xlu2 %1516 }
 0x2ad   :  { %v1523_v44 = vpop.xlane.xlu0 %1522  ;;  %2422 = vmatpush.msrb.mxu3 %v14590_v47  ;;  %v1539_v46 = vsub.f32 %v14654_v51, %v1517_v60 }
 0x2ae   :  { %v1541_v16 = vsub.f32 %v14657_v0, %v1523_v44  ;;  %v1520_v43 = vpop.xlane.xlu1 %1519  ;;  %11808 = vmatmul.msk.f32.gmra.mxu2 %vm1514_vm2, %v1624_v41 }
 0x2af   :  { %v1540_v18 = vsub.f32 %v14669_v1, %v1520_v43  ;;  %v14756_v34 = vpop.eup %12545  ;;  %v1547_v28 = vmul.f32 1.442695, %v1539_v46  ;;  %2423 = vmatpush.msrb.mxu3 %v14586_v23 }
 0x2b0   :  { %v1551_v24 = vmul.f32 1.442695, %v1541_v16  ;;  %v1797_v51 = vsel %vm1514_vm2, %v14756_v34, 0.0 }
 0x2b1   :  { %v14759_v25 = vpop.eup %12547  ;;  %v1549_v6 = vmul.f32 1.442695, %v1540_v18  ;;  %12551 = vpow2.f32 %v1547_v28  ;;  %1798 = vadd.xlane.f32.xlu1 %v1797_v51 }
 0x2b2   :  { %v14763_v33 = vpop.eup %12549  ;;  %v1800_v0 = vsel %vm1514_vm2, %v14759_v25, 0.0  ;;  %12553 = vpow2.f32 %v1551_v24 }
 0x2b3   :  { %1801 = vadd.xlane.f32.xlu0 %v1800_v0  ;;  %v1794_v1 = vsel %vm1514_vm2, %v14763_v33, 0.0  ;;  %12555 = vpow2.f32 %v1549_v6 }
 0x2b4   :  { %1795 = vadd.xlane.f32.xlu2 %v1794_v1  ;;  %11810 = vmatmul.msk.f32.gmra.mxu3 %vm1514_vm2, %v1626_v56  ;;  %v1526_v59 = vpop.xlane.xlu2 %1525 }
 0x2b5   :  { %v1542_v32 = vsub.f32 %v14673_v49, %v1526_v59 }
 0x2b6   :  { %11821 = vmatmul.msk.f32.vlgmr.msra.gmra.mxu2 %vm1373_vm1, %v14084_v10 }
 0x2b7   :  { %v14774_v7 = vpop.eup %12551  ;;  %11843 = vmatpush.xpose.msk.msra.mxu2 %vm1373_vm1, %v14196_v39  ;;  %v1553_v58 = vmul.f32 1.442695, %v1542_v32 }
 0x2b8   :  { %v14778_v36 = vpop.eup %12553  ;;  %v1563_v52 = vsel %vm1514_vm2, %v14774_v7, 0.0 }
 0x2b9   :  { %v14782_v17 = vpop.eup %12555  ;;  %12557 = vpow2.f32 %v1553_v58  ;;  %v1569_v49 = vsel %vm1514_vm2, %v14778_v36, 0.0  ;;  %1564 = vadd.xlane.f32.xlu1 %v1563_v52 }
 0x2ba   :  { %v1566_v10 = vsel %vm1514_vm2, %v14782_v17, 0.0 }
 0x2bb   :  { %11844 = vmatpush.xpose.msk.msra.mxu2 %vm1373_vm1, %v14161_v30  ;;  %1567 = vadd.xlane.f32.xlu0 %v1566_v10 }
 0x2bc   :  { %1570 = vadd.xlane.f32.xlu2 %v1569_v49  ;;  %11825 = vmatmul.msk.f32.vlgmr.msra.gmra.mxu3 %vm1373_vm1, %v14086_v11 }
 0x2bd   :  { %11847 = vmatpush.xpose.msk.msra.mxu3 %vm1373_vm1, %v14198_v40 }
 0x2be   :  { %11822 = vmatmul.msk.f32.gmra.mxu2 %vm1373_vm1, %v14114_v63 }
 0x2bf   :  { %v14796_v22 = vpop.eup %12557 }
 0x2c0   :  { %v1572_v8 = vsel %vm1514_vm2, %v14796_v22, 0.0 }
 0x2c1   :  { %11848 = vmatpush.xpose.msk.msra.mxu3 %vm1373_vm1, %v14163_v31  ;;  %1573 = vadd.xlane.f32.xlu1 %v1572_v8 }
 0x2c4   :  { %11826 = vmatmul.msk.f32.gmra.mxu3 %vm1373_vm1, %v14116_v19 }
 0x317   :  { %v14804_v5 = vpop.f32.mrf.mxu2 }
 0x318   :  { %19107 = vst [vmem:[#allocation72_spill] sm:$0xff] %v14804_v5  ;;  %v19156_v5 = vld [vmem:[#allocation20_spill] sm:$0xff] }
 0x31e   :  { %v1793_v11 = vpop.xlane.xlu0 %1792 }
 0x31f   :  { %12559 = vrcp.f32 %v1793_v11  ;;  %v14806_v55 = vpop.f32.mrf.mxu3 }
 0x320   :  { %19108 = vst [vmem:[#allocation73_spill] sm:$0xff] %v14806_v55  ;;  %v14808_v50 = vpop.f32.mrf.mxu2 }
 0x321   :  { %19109 = vst [vmem:[#allocation74_spill] sm:$0xff] %v14808_v50 }
 0x324   :  { %v1799_v20 = vpop.xlane.xlu1 %1798 }
 0x325   :  { %v12560_v63 = vpop.eup %12559  ;;  %12561 = vrcp.f32 %v1799_v20 }
 0x326   :  { %v1823_v14 = vmul.f32 %v12560_v63, %v1793_v11  ;;  %v1802_v41 = vpop.xlane.xlu0 %1801 }
 0x327   :  { %v1796_v60 = vpop.xlane.xlu2 %1795  ;;  %12563 = vrcp.f32 %v1802_v41  ;;  %v14810_v46 = vpop.f32.mrf.mxu3 }
 0x328   :  { %v1831_v44 = vsub.f32 2.0, %v1823_v14  ;;  %12565 = vrcp.f32 %v1796_v60  ;;  %19110 = vst [vmem:[#allocation75_spill] sm:$0xff] %v14810_v46 }
 0x329   :  { %v14812_v16 = vpop.f32.mrf.mxu2 }
 0x32a   :  { %v1839_v19 = vmul.f32 %v12560_v63, %v1831_v44  ;;  %19111 = vst [vmem:[#allocation76_spill] sm:$0xff] %v14812_v16 }
 0x32b   :  { %v12562_v43 = vpop.eup %12561 }
 0x32c   :  { %v1847_v37 = vmul.f32 %v14743_v15, %v1839_v19  ;;  %v1825_v28 = vmul.f32 %v12562_v43, %v1799_v20  ;;  %v1565_v24 = vpop.xlane.xlu1 %1564 }
 0x32d   :  { %v12564_v18 = vpop.eup %12563  ;;  %12567 = vrcp.f32 %v1565_v24 }
 0x32e   :  { %v12566_v6 = vpop.eup %12565  ;;  %11795 = vmatmul.msk.f32.vlgmr.msra.gmra.mxu0 %vm1514_vm2, %v1847_v37  ;;  %v1826_v0 = vmul.f32 %v12564_v18, %v1802_v41  ;;  %v1833_v1 = vsub.f32 2.0, %v1825_v28  ;;  %v1568_v59 = vpop.xlane.xlu0 %1567 }
 0x32f   :  { %v1824_v51 = vmul.f32 %v12566_v6, %v1796_v60  ;;  %v1571_v56 = vpop.xlane.xlu2 %1570  ;;  %11811 = vmatpush.xpose.msk.msra.mxu0 %vm1373_vm1, %v14640_v42  ;;  %v14818_v32 = vpop.f32.mrf.mxu3 }
 0x330   :  { %12569 = vrcp.f32 %v1571_v56  ;;  %19112 = vst [vmem:[#allocation77_spill] sm:$0xff] %v14818_v32  ;;  %v1841_v15 = vmul.f32 %v12562_v43, %v1833_v1  ;;  %v1834_v10 = vsub.f32 2.0, %v1826_v0 }
 0x331   :  { %v1832_v58 = vsub.f32 2.0, %v1824_v51  ;;  %12571 = vrcp.f32 %v1568_v59  ;;  %v14820_v52 = vpop.f32.mrf.mxu2 }
 0x332   :  { %19113 = vst [vmem:[#allocation78_spill] sm:$0xff] %v14820_v52  ;;  %v1849_v8 = vmul.f32 %v14756_v34, %v1841_v15  ;;  %v1842_v44 = vmul.f32 %v12564_v18, %v1834_v10 }
 0x333   :  { %v1840_v49 = vmul.f32 %v12566_v6, %v1832_v58  ;;  %11812 = vmatpush.xpose.msk.msra.mxu0 %vm1373_vm1, %v14636_v38  ;;  %v12568_v11 = vpop.eup %12567 }
 0x334   :  { %v1595_v63 = vmul.f32 %v12568_v11, %v1565_v24  ;;  %11797 = vmatmul.msk.f32.vlgmr.msra.gmra.mxu1 %vm1514_vm2, %v1849_v8  ;;  %v1574_v14 = vpop.xlane.xlu1 %1573  ;;  %v1850_v0 = vmul.f32 %v14759_v25, %v1842_v44 }
 0x335   :  { %v1848_v20 = vmul.f32 %v14763_v33, %v1840_v49  ;;  %11815 = vmatpush.xpose.msk.msra.mxu1 %vm1373_vm1, %v14642_v12  ;;  %12573 = vrcp.f32 %v1574_v14 }
 0x336   :  { %v12570_v41 = vpop.eup %12569  ;;  %v1603_v43 = vsub.f32 2.0, %v1595_v63 }
 0x337   :  { %v12572_v60 = vpop.eup %12571  ;;  %v1597_v19 = vmul.f32 %v12570_v41, %v1571_v56  ;;  %11796 = vmatmul.msk.f32.gmra.mxu0 %vm1514_vm2, %v1848_v20  ;;  %v14830_v34 = vpop.f32.mrf.mxu3 }
 0x338   :  { %19114 = vst [vmem:[#allocation79_spill] sm:$0xff] %v14830_v34  ;;  %v1596_v37 = vmul.f32 %v12572_v60, %v1568_v59  ;;  %v1611_v28 = vmul.f32 %v12568_v11, %v1603_v43 }
 0x339   :  { %v2168_v24 = vpop.f32.mrf.mxu2  ;;  %11816 = vmatpush.xpose.msk.msra.mxu1 %vm1373_vm1, %v14638_v27  ;;  %v1605_v33 = vsub.f32 2.0, %v1597_v19 }
 0x33a   :  { %v1619_v6 = vmul.f32 %v14774_v7, %v1611_v28  ;;  %v2215_v51 = vsel %vm1514_vm2, %v2168_v24, -inf  ;;  %v1604_v1 = vsub.f32 2.0, %v1596_v37 }
 0x33b   :  { %v12574_v18 = vpop.eup %12573  ;;  %2216 = vmax.xlane.f32.xlu2 %v2215_v51  ;;  %v1613_v56 = vmul.f32 %v12570_v41, %v1605_v33 }
 0x33c   :  { %11798 = vmatmul.msk.f32.gmra.mxu1 %vm1514_vm2, %v1850_v0  ;;  %v1598_v58 = vmul.f32 %v12574_v18, %v1574_v14  ;;  %v1612_v15 = vmul.f32 %v12572_v60, %v1604_v1 }
 0x33d   :  { %v1621_v25 = vmul.f32 %v14778_v36, %v1613_v56 }
 0x33e   :  { %v1606_v10 = vsub.f32 2.0, %v1598_v58  ;;  %v1620_v11 = vmul.f32 %v14782_v17, %v1612_v15  ;;  %v19115_v17 = vld [vmem:[#allocation9_spill] sm:$0xff] }
 0x33f   :  { %11803 = vmatmul.msk.f32.vlgmr.msrb.gmra.mxu0 %vm1514_vm2, %v1619_v6  ;;  %v2197_v59 = vpop.f32.mrf.mxu3 }
 0x340   :  { %2335 = vmatpush.msrb.mxu0 %v14648_v26  ;;  %v2221_v49 = vsel %vm1514_vm2, %v2197_v59, -inf  ;;  %v1614_v63 = vmul.f32 %v12574_v18, %v1606_v10 }
 0x341   :  { %v2171_v7 = vpop.f32.mrf.mxu2  ;;  %2222 = vmax.xlane.f32.xlu0 %v2221_v49 }
 0x342   :  { %2336 = vmatpush.msrb.mxu0 %v14644_v13  ;;  %v2218_v8 = vsel %vm1514_vm2, %v2171_v7, -inf  ;;  %v1622_v36 = vmul.f32 %v14796_v22, %v1614_v63 }
 0x343   :  { %2219 = vmax.xlane.f32.xlu1 %v2218_v8 }
 0x344   :  { %11805 = vmatmul.msk.f32.vlgmr.msrb.gmra.mxu1 %vm1514_vm2, %v1621_v25 }
 0x345   :  { %2364 = vmatpush.msrb.mxu1 %v14650_v4 }
 0x347   :  { %11804 = vmatmul.msk.f32.gmra.mxu0 %vm1514_vm2, %v1620_v11  ;;  %2365 = vmatpush.msrb.mxu1 %v14646_v9  ;;  %v2200_v20 = vpop.f32.mrf.mxu3 }
 0x348   :  { %v2224_v14 = vsel %vm1514_vm2, %v2200_v20, -inf }
 0x349   :  { %2225 = vmax.xlane.f32.xlu2 %v2224_v14 }
 0x34c   :  { %11806 = vmatmul.msk.f32.gmra.mxu1 %vm1514_vm2, %v1622_v36 }
 0x34f   :  { %11813 = vmatmul.msk.f32.vlgmr.msra.gmra.mxu0 %vm1373_vm1, %v14240_v53 }
 0x350   :  { %11835 = vmatpush.xpose.msk.msra.mxu0 %vm1373_vm1, %v14276_v2 }
 0x354   :  { %11836 = vmatpush.xpose.msk.msra.mxu0 %vm1373_vm1, %v14268_v61  ;;  %11817 = vmatmul.msk.f32.vlgmr.msra.gmra.mxu1 %vm1373_vm1, %v14242_v54 }
 0x355   :  { %11839 = vmatpush.xpose.msk.msra.mxu1 %vm1373_vm1, %v14278_v3 }
 0x357   :  { %11814 = vmatmul.msk.f32.gmra.mxu0 %vm1373_vm1, %v14252_v57 }
 0x359   :  { %11840 = vmatpush.xpose.msk.msra.mxu1 %vm1373_vm1, %v14270_v62 }
 0x35c   :  { %11818 = vmatmul.msk.f32.gmra.mxu1 %vm1373_vm1, %v19115_v17 }
 0x3ab   :  { %v14868_v53 = vpop.f32.mrf.mxu0 }
 0x3ac   :  { %19116 = vst [vmem:[#allocation9_spill] sm:$0xff] %v14868_v53 }
 0x3ae   :  { %v2217_v22 = vpop.xlane.xlu2 %2216 }
 0x3af   :  { %v2231_v41 = vsub.f32 %v2168_v24, %v2217_v22 }
 0x3b1   :  { %v2243_v60 = vmul.f32 1.442695, %v2231_v41  ;;  %v14870_v44 = vpop.f32.mrf.mxu1 }
 0x3b2   :  { %19117 = vst [vmem:[#allocation80_spill] sm:$0xff] %v14870_v44 }
 0x3b3   :  { %12575 = vpow2.f32 %v2243_v60 }
 0x3b4   :  { %v14872_v54 = vpop.f32.mrf.mxu0  ;;  %v2223_v19 = vpop.xlane.xlu0 %2222 }
 0x3b5   :  { %19118 = vst [vmem:[#allocation81_spill] sm:$0xff] %v14872_v54  ;;  %v2233_v43 = vsub.f32 %v2197_v59, %v2223_v19 }
 0x3b6   :  { %v2220_v37 = vpop.xlane.xlu1 %2219 }
 0x3b7   :  { %v2247_v57 = vmul.f32 1.442695, %v2233_v43  ;;  %v2232_v28 = vsub.f32 %v2171_v7, %v2220_v37 }
 0x3b9   :  { %v12576_v33 = vpop.eup %12575  ;;  %12577 = vpow2.f32 %v2247_v57  ;;  %v2245_v6 = vmul.f32 1.442695, %v2232_v28  ;;  %v14874_v51 = vpop.f32.mrf.mxu1 }
 0x3ba   :  { %19119 = vst [vmem:[#allocation82_spill] sm:$0xff] %v14874_v51  ;;  %v2263_v0 = vsel %vm1514_vm2, %v12576_v33, 0.0 }
 0x3bb   :  { %12579 = vpow2.f32 %v2245_v6  ;;  %2264 = vadd.xlane.f32.xlu0 %v2263_v0 }
 0x3bc   :  { %v14877_v24 = vpop.f32.mrf.mxu0  ;;  %v2226_v18 = vpop.xlane.xlu2 %2225 }
 0x3bd   :  { %19120 = vst [vmem:[#allocation83_spill] sm:$0xff] %v14877_v24  ;;  %v2234_v1 = vsub.f32 %v2200_v20, %v2226_v18 }
 0x3bf   :  { %v12578_v56 = vpop.eup %12577  ;;  %v2249_v58 = vmul.f32 1.442695, %v2234_v1 }
 0x3c0   :  { %v2269_v59 = vsel %vm1514_vm2, %v12578_v56, 0.0 }
 0x3c1   :  { %v12580_v15 = vpop.eup %12579  ;;  %12581 = vpow2.f32 %v2249_v58  ;;  %2270 = vadd.xlane.f32.xlu1 %v2269_v59  ;;  %v14880_v49 = vpop.f32.mrf.mxu1 }
 0x3c2   :  { %19121 = vst [vmem:[#allocation84_spill] sm:$0xff] %v14880_v49  ;;  %v2266_v7 = vsel %vm1514_vm2, %v12580_v15, 0.0 }
 0x3c3   :  { %2267 = vadd.xlane.f32.xlu2 %v2266_v7 }
 0x3c4   :  { %v14883_v25 = vpop.f32.mrf.mxu0 }
 0x3c5   :  { %19122 = vst [vmem:[#allocation85_spill] sm:$0xff] %v14883_v25 }
 0x3c7   :  { %v12582_v10 = vpop.eup %12581 }
 0x3c8   :  { %v2272_v8 = vsel %vm1514_vm2, %v12582_v10, 0.0 }
 0x3c9   :  { %2273 = vadd.xlane.f32.xlu0 %v2272_v8  ;;  %v14886_v11 = vpop.f32.mrf.mxu1 }
 0x3ca   :  { %19123 = vst [vmem:[#allocation86_spill] sm:$0xff] %v14886_v11 }
 0x3cc   :  { %v2110_v63 = vpop.f32.mrf.mxu0 }
 0x3cd   :  { %v2203_v20 = vsel %vm1514_vm2, %v2110_v63, -inf }
 0x3ce   :  { %2204 = vmax.xlane.f32.xlu1 %v2203_v20 }
 0x3d1   :  { %v2139_v14 = vpop.f32.mrf.mxu1 }
 0x3d2   :  { %v2209_v36 = vsel %vm1514_vm2, %v2139_v14, -inf }
 0x3d3   :  { %2210 = vmax.xlane.f32.xlu2 %v2209_v36  ;;  %v19124_v36 = vld [vmem:[#allocation42_spill] sm:$0xff] }
 0x3d4   :  { %v2113_v17 = vpop.f32.mrf.mxu0 }
 0x3d5   :  { %v2206_v22 = vsel %vm1514_vm2, %v2113_v17, -inf }
 0x3d6   :  { %2207 = vmax.xlane.f32.xlu0 %v2206_v22 }
 0x3d9   :  { %v2142_v41 = vpop.f32.mrf.mxu1 }
 0x3da   :  { %v2212_v60 = vsel %vm1514_vm2, %v2142_v41, -inf }
 0x3db   :  { %2213 = vmax.xlane.f32.xlu1 %v2212_v60 }
 0x42e   :  { %v2265_v19 = vpop.xlane.xlu0 %2264 }
 0x42f   :  { %12583 = vrcp.f32 %v2265_v19 }
 0x434   :  { %v2271_v43 = vpop.xlane.xlu1 %2270 }
 0x435   :  { %v12584_v37 = vpop.eup %12583  ;;  %12585 = vrcp.f32 %v2271_v43 }
 0x436   :  { %v2287_v57 = vmul.f32 %v12584_v37, %v2265_v19  ;;  %v2268_v28 = vpop.xlane.xlu2 %2267 }
 0x437   :  { %12587 = vrcp.f32 %v2268_v28 }
 0x438   :  { %v2295_v6 = vsub.f32 2.0, %v2287_v57 }
 0x43a   :  { %v2303_v0 = vmul.f32 %v12584_v37, %v2295_v6 }
 0x43b   :  { %v12586_v18 = vpop.eup %12585 }
 0x43c   :  { %v2311_v1 = vmul.f32 %v12576_v33, %v2303_v0  ;;  %v2289_v58 = vmul.f32 %v12586_v18, %v2271_v43  ;;  %v2274_v59 = vpop.xlane.xlu0 %2273  ;;  %v19125_v33 = vld [vmem:[#allocation38_spill] sm:$0xff] }
 0x43d   :  { %v12588_v7 = vpop.eup %12587  ;;  %12589 = vrcp.f32 %v2274_v59 }
 0x43e   :  { %v2288_v8 = vmul.f32 %v12588_v7, %v2268_v28  ;;  %v2297_v20 = vsub.f32 2.0, %v2289_v58  ;;  %11831 = vmatmul.msk.f32.vlgmr.msrb.gmra.mxu2 %vm1514_vm2, %v2311_v1  ;;  %v19126_v28 = vld [vmem:[#allocation43_spill] sm:$0xff] }
 0x43f   :  { %11859 = vmatpush.xpose.msk.msrb.mxu2 %vm1373_vm1, %v19124_v36 }
 0x440   :  { %v2296_v22 = vsub.f32 2.0, %v2288_v8  ;;  %v2305_v60 = vmul.f32 %v12586_v18, %v2297_v20  ;;  %v19127_v8 = vld [vmem:[#allocation39_spill] sm:$0xff] }
 0x441   :  { %v2205_v19 = vpop.xlane.xlu1 %2204 }
 0x442   :  { %v2227_v11 = vsub.f32 %v2110_v63, %v2205_v19  ;;  %v2304_v51 = vmul.f32 %v12588_v7, %v2296_v22  ;;  %v2313_v57 = vmul.f32 %v12578_v56, %v2305_v60  ;;  %v19128_v22 = vld [vmem:[#allocation10_spill] sm:$0xff] }
 0x443   :  { %v12590_v37 = vpop.eup %12589  ;;  %11860 = vmatpush.xpose.msk.msrb.mxu2 %vm1373_vm1, %v19125_v33  ;;  %v19129_v60 = vld [vmem:[#allocation50_spill] sm:$0xff] }
 0x444   :  { %v2235_v6 = vmul.f32 1.442695, %v2227_v11  ;;  %v2290_v43 = vmul.f32 %v12590_v37, %v2274_v59  ;;  %v2312_v0 = vmul.f32 %v12580_v15, %v2304_v51  ;;  %11833 = vmatmul.msk.f32.vlgmr.msrb.gmra.mxu3 %vm1514_vm2, %v2313_v57  ;;  %v19130_v57 = vld [vmem:[#allocation46_spill] sm:$0xff] }
 0x445   :  { %11863 = vmatpush.xpose.msk.msrb.mxu3 %vm1373_vm1, %v19126_v28 }
 0x446   :  { %12591 = vpow2.f32 %v2235_v6  ;;  %v2298_v1 = vsub.f32 2.0, %v2290_v43  ;;  %11832 = vmatmul.msk.f32.gmra.mxu2 %vm1514_vm2, %v2312_v0  ;;  %v2211_v18 = vpop.xlane.xlu2 %2210  ;;  %v19131_v0 = vld [vmem:[#allocation11_spill] sm:$0xff] }
 0x447   :  { %v2229_v63 = vsub.f32 %v2139_v14, %v2211_v18  ;;  %v19133_v18 = vld [vmem:[#allocation12_spill] sm:$0xff] }
 0x448   :  { %v2306_v58 = vmul.f32 %v12590_v37, %v2298_v1  ;;  %v19132_v1 = vld [vmem:[#allocation51_spill] sm:$0xff] }
 0x449   :  { %v2208_v56 = vpop.xlane.xlu0 %2207  ;;  %v2239_v11 = vmul.f32 1.442695, %v2229_v63  ;;  %11864 = vmatpush.xpose.msk.msrb.mxu3 %vm1373_vm1, %v19127_v8 }
 0x44a   :  { %v2228_v7 = vsub.f32 %v2113_v17, %v2208_v56  ;;  %v2314_v59 = vmul.f32 %v12582_v10, %v2306_v58  ;;  %v19135_v56 = vld [vmem:[#allocation13_spill] sm:$0xff] }
 0x44b   :  { %12593 = vpow2.f32 %v2239_v11  ;;  %v19137_v11 = vld [vmem:[#allocation5_spill] sm:$0xff] }
 0x44c   :  { %v12592_v51 = vpop.eup %12591  ;;  %v2237_v15 = vmul.f32 1.442695, %v2228_v7  ;;  %11834 = vmatmul.msk.f32.gmra.mxu3 %vm1514_vm2, %v2314_v59  ;;  %v19136_v7 = vld [vmem:[#allocation7_spill] sm:$0xff]  ;;  %v19138_v59 = vld [vmem:[#allocation8_spill] sm:$0xff] }
 0x44d   :  { %v2251_v20 = vsel %vm1514_vm2, %v12592_v51, 0.0 }
 0x44e   :  { %12595 = vpow2.f32 %v2237_v15  ;;  %2252 = vadd.xlane.f32.xlu2 %v2251_v20  ;;  %11845 = vmatmul.msk.f32.vlgmr.msra.gmra.mxu2 %vm1373_vm1, %v19128_v22  ;;  %v2214_v14 = vpop.xlane.xlu1 %2213  ;;  %v19139_v15 = vld [vmem:[#allocation6_spill] sm:$0xff] }
 0x44f   :  { %2973 = vmatpush.msra.mxu2 %v19129_v60  ;;  %v2230_v17 = vsub.f32 %v2142_v41, %v2214_v14  ;;  %v19134_v41 = vld [vmem:[#allocation47_spill] sm:$0xff] }
 0x451   :  { %v12594_v19 = vpop.eup %12593  ;;  %2974 = vmatpush.msra.mxu2 %v19130_v57  ;;  %v2241_v10 = vmul.f32 1.442695, %v2230_v17 }
 0x452   :  { %v2257_v37 = vsel %vm1514_vm2, %v12594_v19, 0.0 }
 0x453   :  { %12597 = vpow2.f32 %v2241_v10  ;;  %2258 = vadd.xlane.f32.xlu0 %v2257_v37 }
 0x454   :  { %v12596_v6 = vpop.eup %12595  ;;  %11849 = vmatmul.msk.f32.vlgmr.msra.gmra.mxu3 %vm1373_vm1, %v19131_v0 }
 0x455   :  { %v2254_v43 = vsel %vm1514_vm2, %v12596_v6, 0.0  ;;  %3002 = vmatpush.msra.mxu3 %v19132_v1 }
 0x456   :  { %2255 = vadd.xlane.f32.xlu1 %v2254_v43  ;;  %11846 = vmatmul.msk.f32.gmra.mxu2 %vm1373_vm1, %v19133_v18 }
 0x457   :  { %3003 = vmatpush.msra.mxu3 %v19134_v41 }
 0x459   :  { %v12598_v63 = vpop.eup %12597 }
 0x45a   :  { %v2260_v58 = vsel %vm1514_vm2, %v12598_v63, 0.0 }
 0x45b   :  { %2261 = vadd.xlane.f32.xlu2 %v2260_v58 }
 0x45c   :  { %11850 = vmatmul.msk.f32.gmra.mxu3 %vm1373_vm1, %v19135_v56 }
 0x45e   :  { %11861 = vmatmul.msk.f32.vlgmr.msrb.gmra.mxu2 %vm1373_vm1, %v19128_v22 }
 0x45f   :  { %3089 = vmatpush.msrb.mxu2 %v19136_v7  ;;  %v19164_v7 = vld [vmem:[#allocation62_spill] sm:$0xff] }
 0x461   :  { %3090 = vmatpush.msrb.mxu2 %v19137_v11 }
 0x464   :  { %11865 = vmatmul.msk.f32.vlgmr.msrb.gmra.mxu3 %vm1373_vm1, %v19131_v0 }
 0x465   :  { %3118 = vmatpush.msrb.mxu3 %v19138_v59 }
 0x466   :  { %11862 = vmatmul.msk.f32.gmra.mxu2 %vm1373_vm1, %v19133_v18 }
 0x467   :  { %3119 = vmatpush.msrb.mxu3 %v19139_v15 }
 0x46c   :  { %11866 = vmatmul.msk.f32.gmra.mxu3 %vm1373_vm1, %v19135_v56 }
 0x4c1   :  { %v2253_v20 = vpop.xlane.xlu2 %2252  ;;  %v14932_v14 = vpop.f32.mrf.mxu2 }
 0x4c2   :  { %12599 = vrcp.f32 %v2253_v20  ;;  %19140 = vst [vmem:[#allocation10_spill] sm:$0xff] %v14932_v14 }
 0x4c6   :  { %v2259_v17 = vpop.xlane.xlu0 %2258 }
 0x4c7   :  { %12601 = vrcp.f32 %v2259_v17  ;;  %v14934_v37 = vpop.f32.mrf.mxu3 }
 0x4c8   :  { %v12600_v10 = vpop.eup %12599  ;;  %19141 = vst [vmem:[#allocation11_spill] sm:$0xff] %v14934_v37  ;;  %v19144_v37 = vld [vmem:[#allocation58_spill] sm:$0xff] }
 0x4c9   :  { %v2283_v43 = vmul.f32 %v12600_v10, %v2253_v20  ;;  %v2256_v58 = vpop.xlane.xlu1 %2255  ;;  %v14936_v25 = vpop.f32.mrf.mxu2 }
 0x4ca   :  { %12603 = vrcp.f32 %v2256_v58  ;;  %19142 = vst [vmem:[#allocation12_spill] sm:$0xff] %v14936_v25 }
 0x4cb   :  { %v2291_v54 = vsub.f32 2.0, %v2283_v43 }
 0x4cd   :  { %v2299_v49 = vmul.f32 %v12600_v10, %v2291_v54  ;;  %v12602_v44 = vpop.eup %12601 }
 0x4ce   :  { %v2285_v53 = vmul.f32 %v12602_v44, %v2259_v17  ;;  %v2262_v34 = vpop.xlane.xlu2 %2261 }
 0x4cf   :  { %v2307_v24 = vmul.f32 %v12592_v51, %v2299_v49  ;;  %12605 = vrcp.f32 %v2262_v34  ;;  %v14938_v52 = vpop.f32.mrf.mxu3  ;;  %v19145_v51 = vld [vmem:[#allocation54_spill] sm:$0xff] }
 0x4d0   :  { %v12604_v46 = vpop.eup %12603  ;;  %19143 = vst [vmem:[#allocation13_spill] sm:$0xff] %v14938_v52  ;;  %v2293_v50 = vsub.f32 2.0, %v2285_v53  ;;  %v19146_v53 = vld [vmem:[#allocation59_spill] sm:$0xff]  ;;  %v19155_v52 = vld [vmem:[#allocation29_spill] sm:$0xff] }
 0x4d1   :  { %v2284_v32 = vmul.f32 %v12604_v46, %v2256_v58  ;;  %11827 = vmatmul.msk.f32.vlgmr.msrb.gmra.mxu0 %vm1514_vm2, %v2307_v24  ;;  %v14943_v20 = vpop.f32.mrf.mxu2 }
 0x4d2   :  { %11851 = vmatpush.xpose.msk.msrb.mxu0 %vm1373_vm1, %v19144_v37  ;;  %v2301_v25 = vmul.f32 %v12602_v44, %v2293_v50  ;;  %v2591_v14 = vsel %vm1514_vm2, %v14943_v20, -inf }
 0x4d3   :  { %v2292_v43 = vsub.f32 2.0, %v2284_v32 }
 0x4d4   :  { %v2309_v54 = vmul.f32 %v12594_v19, %v2301_v25  ;;  %v19148_v25 = vld [vmem:[#allocation24_spill] sm:$0xff]  ;;  %v19149_v19 = vld [vmem:[#allocation66_spill] sm:$0xff] }
 0x4d5   :  { %v2300_v10 = vmul.f32 %v12604_v46, %v2292_v43  ;;  %v12606_v49 = vpop.eup %12605  ;;  %v19147_v46 = vld [vmem:[#allocation55_spill] sm:$0xff] }
 0x4d6   :  { %11852 = vmatpush.xpose.msk.msrb.mxu0 %vm1373_vm1, %v19145_v51  ;;  %v2286_v17 = vmul.f32 %v12606_v49, %v2262_v34  ;;  %11829 = vmatmul.msk.f32.vlgmr.msrb.gmra.mxu1 %vm1514_vm2, %v2309_v54  ;;  %v19151_v54 = vld [vmem:[#allocation25_spill] sm:$0xff] }
 0x4d7   :  { %v2308_v55 = vmul.f32 %v12596_v6, %v2300_v10  ;;  %11855 = vmatpush.xpose.msk.msrb.mxu1 %vm1373_vm1, %v19146_v53  ;;  %v14950_v24 = vpop.f32.mrf.mxu3  ;;  %v19152_v10 = vld [vmem:[#allocation67_spill] sm:$0xff] }
 0x4d8   :  { %v2294_v58 = vsub.f32 2.0, %v2286_v17 }
 0x4d9   :  { %11828 = vmatmul.msk.f32.gmra.mxu0 %vm1514_vm2, %v2308_v55  ;;  %v14953_v50 = vpop.f32.mrf.mxu2  ;;  %v19150_v55 = vld [vmem:[#allocation64_spill] sm:$0xff] }
 0x4da   :  { %v2302_v32 = vmul.f32 %v12606_v49, %v2294_v58  ;;  %v19153_v49 = vld [vmem:[#allocation28_spill] sm:$0xff] }
 0x4db   :  { %11856 = vmatpush.xpose.msk.msrb.mxu1 %vm1373_vm1, %v19147_v46 }
 0x4dc   :  { %v2310_v44 = vmul.f32 %v12598_v63, %v2302_v32  ;;  %v19154_v32 = vld [vmem:[#allocation65_spill] sm:$0xff] }
 0x4de   :  { %11830 = vmatmul.msk.f32.gmra.mxu1 %vm1514_vm2, %v2310_v44 }
 0x4df   :  { %v14958_v34 = vpop.f32.mrf.mxu3 }
 0x4e1   :  { %11837 = vmatmul.msk.f32.vlgmr.msra.gmra.mxu0 %vm1373_vm1, %v19148_v25  ;;  %v2754_v6 = vpop.f32.mrf.mxu2 }
 0x4e2   :  { %2915 = vmatpush.msra.mxu0 %v19149_v19  ;;  %v2795_v43 = vsel %vm1514_vm2, %v2754_v6, -inf }
 0x4e3   :  { %2796 = vmax.xlane.f32.xlu0 %v2795_v43 }
 0x4e4   :  { %2916 = vmatpush.msra.mxu0 %v19150_v55  ;;  %v2600_v55 = vsel %vm1514_vm2, %v14958_v34, -inf }
 0x4e6   :  { %11841 = vmatmul.msk.f32.vlgmr.msra.gmra.mxu1 %vm1373_vm1, %v19151_v54 }
 0x4e7   :  { %2944 = vmatpush.msra.mxu1 %v19152_v10  ;;  %v2777_v63 = vpop.f32.mrf.mxu3  ;;  %v19159_v10 = vld [vmem:[#allocation17_spill] sm:$0xff] }
 0x4e8   :  { %v2801_v17 = vsel %vm1514_vm2, %v2777_v63, -inf }
 0x4e9   :  { %11838 = vmatmul.msk.f32.gmra.mxu0 %vm1373_vm1, %v19153_v49  ;;  %v2757_v58 = vpop.f32.mrf.mxu2  ;;  %2945 = vmatpush.msra.mxu1 %v19154_v32  ;;  %v19158_v32 = vld [vmem:[#allocation21_spill] sm:$0xff] }
 0x4ea   :  { %2802 = vmax.xlane.f32.xlu1 %v2801_v17  ;;  %v2798_v44 = vsel %vm1514_vm2, %v2757_v58, -inf  ;;  %v2597_v17 = vsel %vm1514_vm2, %v14950_v24, -inf }
 0x4eb   :  { %2799 = vmax.xlane.f32.xlu2 %v2798_v44  ;;  %v19157_v44 = vld [vmem:[#allocation16_spill] sm:$0xff] }
 0x4ee   :  { %11842 = vmatmul.msk.f32.gmra.mxu1 %vm1373_vm1, %v19155_v52 }
 0x4ef   :  { %v2780_v43 = vpop.f32.mrf.mxu3 }
 0x4f0   :  { %v2804_v16 = vsel %vm1514_vm2, %v2780_v43, -inf }
 0x4f1   :  { %11853 = vmatmul.msk.f32.vlgmr.msrb.gmra.mxu0 %vm1373_vm1, %v19148_v25  ;;  %2805 = vmax.xlane.f32.xlu0 %v2804_v16  ;;  %v2594_v16 = vsel %vm1514_vm2, %v14953_v50, -inf }
 0x4f2   :  { %3031 = vmatpush.msrb.mxu0 %v19156_v5  ;;  %2592 = vmax.xlane.f32.xlu1 %v2591_v14 }
 0x4f3   :  { %2598 = vmax.xlane.f32.xlu2 %v2597_v17 }
 0x4f4   :  { %3032 = vmatpush.msrb.mxu0 %v19157_v44 }
 0x4f6   :  { %11857 = vmatmul.msk.f32.vlgmr.msrb.gmra.mxu1 %vm1373_vm1, %v19151_v54 }
 0x4f7   :  { %3060 = vmatpush.msrb.mxu1 %v19158_v32 }
 0x4f9   :  { %11854 = vmatmul.msk.f32.gmra.mxu0 %vm1373_vm1, %v19153_v49  ;;  %3061 = vmatpush.msrb.mxu1 %v19159_v10 }
 0x4fa   :  { %2601 = vmax.xlane.f32.xlu1 %v2600_v55  ;;  %2595 = vmax.xlane.f32.xlu0 %v2594_v16 }
 0x4fe   :  { %11858 = vmatmul.msk.f32.gmra.mxu1 %vm1373_vm1, %v19155_v52 }
 0x54e   :  { %v14996_v14 = vpop.f32.mrf.mxu0 }
 0x54f   :  { %19160 = vst [vmem:[#allocation24_spill] sm:$0xff] %v14996_v14 }
 0x553   :  { %v14998_v17 = vpop.f32.mrf.mxu1 }
 0x554   :  { %19161 = vst [vmem:[#allocation25_spill] sm:$0xff] %v14998_v17 }
 0x556   :  { %v15000_v19 = vpop.f32.mrf.mxu0  ;;  %v2797_v46 = vpop.xlane.xlu0 %2796 }
 0x557   :  { %19162 = vst [vmem:[#allocation28_spill] sm:$0xff] %v15000_v19  ;;  %v2811_v51 = vsub.f32 %v2754_v6, %v2797_v46 }
 0x559   :  { %v2823_v53 = vmul.f32 1.442695, %v2811_v51 }
 0x55b   :  { %12607 = vpow2.f32 %v2823_v53  ;;  %v15002_v37 = vpop.f32.mrf.mxu1 }
 0x55c   :  { %19163 = vst [vmem:[#allocation87_spill] sm:$0xff] %v15002_v37 }
 0x55d   :  { %v2803_v41 = vpop.xlane.xlu1 %2802 }
 0x55e   :  { %v2813_v1 = vsub.f32 %v2777_v63, %v2803_v41  ;;  %v2800_v57 = vpop.xlane.xlu2 %2799  ;;  %v15004_v55 = vpop.f32.mrf.mxu0 }
 0x55f   :  { %v2812_v16 = vsub.f32 %v2757_v58, %v2800_v57 }
 0x560   :  { %v2827_v60 = vmul.f32 1.442695, %v2813_v1 }
 0x561   :  { %v15006_v8 = vpop.eup %12607  ;;  %v2825_v14 = vmul.f32 1.442695, %v2812_v16 }
 0x562   :  { %12609 = vpow2.f32 %v2827_v60  ;;  %v2843_v19 = vsel %vm1514_vm2, %v15006_v8, 0.0 }
 0x563   :  { %12611 = vpow2.f32 %v2825_v14  ;;  %2844 = vadd.xlane.f32.xlu2 %v2843_v19  ;;  %v15010_v51 = vpop.f32.mrf.mxu1 }
 0x564   :  { %v2806_v46 = vpop.xlane.xlu0 %2805 }
 0x565   :  { %v2593_v53 = vpop.xlane.xlu1 %2592  ;;  %v2814_v6 = vsub.f32 %v2780_v43, %v2806_v46 }
 0x566   :  { %v2607_v41 = vsub.f32 %v14943_v20, %v2593_v53  ;;  %v2599_v63 = vpop.xlane.xlu2 %2598  ;;  %v15020_v19 = vpop.f32.mrf.mxu0 }
 0x567   :  { %v2609_v57 = vsub.f32 %v14950_v24, %v2599_v63  ;;  %v2829_v58 = vmul.f32 1.442695, %v2814_v6  ;;  %v2582_v17 = vsel %vm1514_vm2, %v15020_v19, -inf }
 0x568   :  { %v15013_v37 = vpop.eup %12609  ;;  %v2619_v1 = vmul.f32 1.442695, %v2607_v41 }
 0x569   :  { %v2849_v60 = vsel %vm1514_vm2, %v15013_v37, 0.0  ;;  %v15018_v16 = vpop.eup %12611  ;;  %v2623_v14 = vmul.f32 1.442695, %v2609_v57 }
 0x56a   :  { %12613 = vpow2.f32 %v2619_v1  ;;  %2850 = vadd.xlane.f32.xlu0 %v2849_v60  ;;  %v2846_v20 = vsel %vm1514_vm2, %v15018_v16, 0.0 }
 0x56b   :  { %12615 = vpow2.f32 %v2829_v58  ;;  %2847 = vadd.xlane.f32.xlu1 %v2846_v20  ;;  %v15024_v43 = vpop.f32.mrf.mxu1 }
 0x56c   :  { %12617 = vpow2.f32 %v2623_v14 }
 0x56d   :  { %v2602_v24 = vpop.xlane.xlu1 %2601  ;;  %v2596_v53 = vpop.xlane.xlu0 %2595 }
 0x56e   :  { %v2610_v46 = vsub.f32 %v14958_v34, %v2602_v24  ;;  %v2608_v41 = vsub.f32 %v14953_v50, %v2596_v53  ;;  %v15040_v34 = vpop.f32.mrf.mxu0 }
 0x570   :  { %v15028_v6 = vpop.eup %12613  ;;  %v2625_v63 = vmul.f32 1.442695, %v2610_v46  ;;  %v2621_v1 = vmul.f32 1.442695, %v2608_v41 }
 0x571   :  { %v15030_v57 = vpop.eup %12615  ;;  %v2639_v58 = vsel %vm1514_vm2, %v15028_v6, 0.0 }
 0x572   :  { %v15034_v60 = vpop.eup %12617  ;;  %12619 = vpow2.f32 %v2625_v63  ;;  %v2852_v14 = vsel %vm1514_vm2, %v15030_v57, 0.0  ;;  %2640 = vadd.xlane.f32.xlu0 %v2639_v58  ;;  %v2783_v63 = vsel %vm1514_vm2, %v15040_v34, -inf }
 0x573   :  { %12621 = vpow2.f32 %v2621_v1  ;;  %2853 = vadd.xlane.f32.xlu2 %v2852_v14  ;;  %v2645_v50 = vsel %vm1514_vm2, %v15034_v60, 0.0  ;;  %v15042_v20 = vpop.f32.mrf.mxu1 }
 0x574   :  { %2646 = vadd.xlane.f32.xlu1 %v2645_v50  ;;  %v2789_v50 = vsel %vm1514_vm2, %v15042_v20, -inf }
 0x576   :  { %v15054_v1 = vpop.f32.mrf.mxu0 }
 0x577   :  { %v2786_v14 = vsel %vm1514_vm2, %v15054_v1, -inf }
 0x578   :  { %v15044_v24 = vpop.eup %12619 }
 0x579   :  { %v15046_v53 = vpop.eup %12621  ;;  %v2648_v46 = vsel %vm1514_vm2, %v15044_v24, 0.0 }
 0x57a   :  { %v2642_v41 = vsel %vm1514_vm2, %v15046_v53, 0.0  ;;  %2649 = vadd.xlane.f32.xlu0 %v2648_v46 }
 0x57b   :  { %2643 = vadd.xlane.f32.xlu2 %v2642_v41  ;;  %v15056_v58 = vpop.f32.mrf.mxu1  ;;  %v2585_v41 = vsel %vm1514_vm2, %v15010_v51, -inf }
 0x57c   :  { %2784 = vmax.xlane.f32.xlu1 %v2783_v63  ;;  %v2792_v46 = vsel %vm1514_vm2, %v15056_v58, -inf  ;;  %v2579_v63 = vsel %vm1514_vm2, %v15004_v55, -inf }
 0x582   :  { %2787 = vmax.xlane.f32.xlu0 %v2786_v14  ;;  %v2588_v14 = vsel %vm1514_vm2, %v15024_v43, -inf }
 0x583   :  { %2790 = vmax.xlane.f32.xlu2 %v2789_v50 }
 0x584   :  { %2793 = vmax.xlane.f32.xlu1 %v2792_v46 }
 0x58a   :  { %2586 = vmax.xlane.f32.xlu0 %v2585_v41 }
 0x58b   :  { %2580 = vmax.xlane.f32.xlu2 %v2579_v63 }
 0x58c   :  { %2583 = vmax.xlane.f32.xlu1 %v2582_v17 }
 0x593   :  { %2589 = vmax.xlane.f32.xlu2 %v2588_v14 }
 0x5d6   :  { %v2845_v50 = vpop.xlane.xlu2 %2844 }
 0x5d7   :  { %12623 = vrcp.f32 %v2845_v50 }
 0x5dd   :  { %v2851_v28 = vpop.xlane.xlu0 %2850  ;;  %v12624_v46 = vpop.eup %12623 }
 0x5de   :  { %12625 = vrcp.f32 %v2851_v28  ;;  %v2867_v33 = vmul.f32 %v12624_v46, %v2845_v50  ;;  %v2848_v36 = vpop.xlane.xlu1 %2847 }
 0x5df   :  { %12627 = vrcp.f32 %v2848_v36 }
 0x5e0   :  { %v2875_v10 = vsub.f32 2.0, %v2867_v33 }
 0x5e2   :  { %v2883_v32 = vmul.f32 %v12624_v46, %v2875_v10 }
 0x5e4   :  { %v12626_v41 = vpop.eup %12625  ;;  %v2891_v63 = vmul.f32 %v15006_v8, %v2883_v32 }
 0x5e5   :  { %v2869_v44 = vmul.f32 %v12626_v41, %v2851_v28  ;;  %v2641_v5 = vpop.xlane.xlu0 %2640  ;;  %v12628_v17 = vpop.eup %12627 }
 0x5e6   :  { %v2854_v15 = vpop.xlane.xlu2 %2853  ;;  %12629 = vrcp.f32 %v2641_v5  ;;  %v2868_v14 = vmul.f32 %v12628_v17, %v2848_v36  ;;  %11871 = vmatmul.msk.f32.vlgmr.msra.gmra.mxu2 %vm1514_vm2, %v2891_v63 }
 0x5e7   :  { %v2877_v59 = vsub.f32 2.0, %v2869_v44  ;;  %12631 = vrcp.f32 %v2854_v15  ;;  %v2647_v11 = vpop.xlane.xlu1 %2646  ;;  %11891 = vmatpush.xpose.msk.msra.mxu2 %vm1373_vm1, %v19164_v7 }
 0x5e8   :  { %12633 = vrcp.f32 %v2647_v11  ;;  %v2876_v10 = vsub.f32 2.0, %v2868_v14 }
 0x5e9   :  { %v2885_v33 = vmul.f32 %v12626_v41, %v2877_v59 }
 0x5ea   :  { %v2884_v8 = vmul.f32 %v12628_v17, %v2876_v10 }
 0x5eb   :  { %v2893_v50 = vmul.f32 %v15013_v37, %v2885_v33  ;;  %11892 = vmatpush.xpose.msk.msra.mxu2 %vm1373_vm1, %v14572_v21 }
 0x5ec   :  { %v12630_v28 = vpop.eup %12629  ;;  %v2892_v46 = vmul.f32 %v15018_v16, %v2884_v8 }
 0x5ed   :  { %v12632_v32 = vpop.eup %12631  ;;  %v2663_v44 = vmul.f32 %v12630_v28, %v2641_v5  ;;  %11873 = vmatmul.msk.f32.vlgmr.msra.gmra.mxu3 %vm1514_vm2, %v2893_v50  ;;  %v2650_v36 = vpop.xlane.xlu0 %2649 }
 0x5ee   :  { %v12634_v63 = vpop.eup %12633  ;;  %v2870_v52 = vmul.f32 %v12632_v32, %v2854_v15  ;;  %v2644_v7 = vpop.xlane.xlu2 %2643  ;;  %11895 = vmatpush.xpose.msk.msra.mxu3 %vm1373_vm1, %v14582_v48  ;;  %12635 = vrcp.f32 %v2650_v36  ;;  %11872 = vmatmul.msk.f32.gmra.mxu2 %vm1514_vm2, %v2892_v46 }
 0x5ef   :  { %v2671_v59 = vsub.f32 2.0, %v2663_v44  ;;  %v2665_v37 = vmul.f32 %v12634_v63, %v2647_v11  ;;  %12637 = vrcp.f32 %v2644_v7  ;;  %v2785_v41 = vpop.xlane.xlu1 %2784 }
 0x5f0   :  { %v2878_v17 = vsub.f32 2.0, %v2870_v52  ;;  %v2807_v5 = vsub.f32 %v15040_v34, %v2785_v41 }
 0x5f1   :  { %v2679_v14 = vmul.f32 %v12630_v28, %v2671_v59  ;;  %v2673_v16 = vsub.f32 2.0, %v2665_v37 }
 0x5f2   :  { %v2886_v33 = vmul.f32 %v12632_v32, %v2878_v17  ;;  %v2815_v10 = vmul.f32 1.442695, %v2807_v5  ;;  %11896 = vmatpush.xpose.msk.msra.mxu3 %vm1373_vm1, %v14578_v45 }
 0x5f3   :  { %v2687_v15 = vmul.f32 %v15028_v6, %v2679_v14  ;;  %v2681_v34 = vmul.f32 %v12634_v63, %v2673_v16 }
 0x5f4   :  { %v12636_v50 = vpop.eup %12635  ;;  %12639 = vpow2.f32 %v2815_v10  ;;  %v2894_v11 = vmul.f32 %v15030_v57, %v2886_v33 }
 0x5f5   :  { %v12638_v8 = vpop.eup %12637  ;;  %v2788_v44 = vpop.xlane.xlu0 %2787  ;;  %v2666_v59 = vmul.f32 %v12636_v50, %v2650_v36 }
 0x5f6   :  { %v2664_v46 = vmul.f32 %v12638_v8, %v2644_v7  ;;  %v2791_v48 = vpop.xlane.xlu2 %2790  ;;  %11874 = vmatmul.msk.f32.gmra.mxu3 %vm1514_vm2, %v2894_v11  ;;  %v2808_v52 = vsub.f32 %v15054_v1, %v2788_v44  ;;  %11879 = vmatmul.msk.f32.vlgmr.msrb.gmra.mxu2 %vm1514_vm2, %v2687_v15 }
 0x5f7   :  { %v2809_v28 = vsub.f32 %v15042_v20, %v2791_v48  ;;  %v2794_v32 = vpop.xlane.xlu1 %2793  ;;  %3409 = vmatpush.msrb.mxu2 %v14588_v29  ;;  %v2689_v20 = vmul.f32 %v15034_v60, %v2681_v34  ;;  %v2674_v1 = vsub.f32 2.0, %v2666_v59 }
 0x5f8   :  { %v2672_v6 = vsub.f32 2.0, %v2664_v46  ;;  %v2817_v37 = vmul.f32 1.442695, %v2808_v52  ;;  %v2810_v57 = vsub.f32 %v15056_v58, %v2794_v32 }
 0x5f9   :  { %v2819_v41 = vmul.f32 1.442695, %v2809_v28  ;;  %3410 = vmatpush.msrb.mxu2 %v14584_v35  ;;  %v2682_v60 = vmul.f32 %v12636_v50, %v2674_v1 }
 0x5fa   :  { %v15095_v7 = vpop.eup %12639  ;;  %v2680_v17 = vmul.f32 %v12638_v8, %v2672_v6  ;;  %12641 = vpow2.f32 %v2817_v37  ;;  %v2821_v5 = vmul.f32 1.442695, %v2810_v57 }
 0x5fb   :  { %12643 = vpow2.f32 %v2819_v41  ;;  %v2831_v48 = vsel %vm1514_vm2, %v15095_v7, 0.0  ;;  %v2690_v50 = vmul.f32 %v15044_v24, %v2682_v60 }
 0x5fc   :  { %12645 = vpow2.f32 %v2821_v5  ;;  %2832 = vadd.xlane.f32.xlu0 %v2831_v48  ;;  %v2688_v36 = vmul.f32 %v15046_v53, %v2680_v17 }
 0x5fd   :  { %v2587_v58 = vpop.xlane.xlu0 %2586 }
 0x5fe   :  { %v2581_v63 = vpop.xlane.xlu2 %2580  ;;  %v2605_v14 = vsub.f32 %v15010_v51, %v2587_v58  ;;  %11881 = vmatmul.msk.f32.vlgmr.msrb.gmra.mxu3 %vm1514_vm2, %v2689_v20  ;;  %11880 = vmatmul.msk.f32.gmra.mxu2 %vm1514_vm2, %v2688_v36 }
 0x5ff   :  { %v2603_v33 = vsub.f32 %v15004_v55, %v2581_v63  ;;  %3438 = vmatpush.msrb.mxu3 %v14590_v47  ;;  %v2584_v10 = vpop.xlane.xlu1 %2583 }
 0x600   :  { %v15107_v15 = vpop.eup %12641  ;;  %v2615_v16 = vmul.f32 1.442695, %v2605_v14  ;;  %v2604_v11 = vsub.f32 %v15020_v19, %v2584_v10 }
 0x601   :  { %v15110_v53 = vpop.eup %12643  ;;  %v2611_v8 = vmul.f32 1.442695, %v2603_v33  ;;  %3439 = vmatpush.msrb.mxu3 %v14586_v23  ;;  %v2834_v51 = vsel %vm1514_vm2, %v15107_v15, 0.0 }
 0x602   :  { %v15115_v55 = vpop.eup %12645  ;;  %12647 = vpow2.f32 %v2615_v16  ;;  %v2613_v44 = vmul.f32 1.442695, %v2604_v11  ;;  %v2837_v46 = vsel %vm1514_vm2, %v15110_v53, 0.0  ;;  %2835 = vadd.xlane.f32.xlu2 %v2834_v51 }
 0x603   :  { %12649 = vpow2.f32 %v2611_v8  ;;  %2838 = vadd.xlane.f32.xlu1 %v2837_v46  ;;  %v2840_v19 = vsel %vm1514_vm2, %v15115_v55, 0.0 }
 0x604   :  { %12651 = vpow2.f32 %v2613_v44  ;;  %2841 = vadd.xlane.f32.xlu0 %v2840_v19 }
 0x606   :  { %v2590_v52 = vpop.xlane.xlu2 %2589  ;;  %11882 = vmatmul.msk.f32.gmra.mxu3 %vm1514_vm2, %v2690_v50  ;;  %11893 = vmatmul.msk.f32.vlgmr.msra.gmra.mxu2 %vm1373_vm1, %v19128_v22 }
 0x607   :  { %v2606_v34 = vsub.f32 %v15024_v43, %v2590_v52  ;;  %11915 = vmatpush.xpose.msk.msra.mxu2 %vm1373_vm1, %v14196_v39 }
 0x608   :  { %v15126_v28 = vpop.eup %12647 }
 0x609   :  { %v15130_v32 = vpop.eup %12649  ;;  %v2617_v6 = vmul.f32 1.442695, %v2606_v34  ;;  %v2633_v59 = vsel %vm1514_vm2, %v15126_v28, 0.0 }
 0x60a   :  { %v15134_v24 = vpop.eup %12651  ;;  %v2627_v37 = vsel %vm1514_vm2, %v15130_v32, 0.0  ;;  %2634 = vadd.xlane.f32.xlu2 %v2633_v59 }
 0x60b   :  { %12653 = vpow2.f32 %v2617_v6  ;;  %2628 = vadd.xlane.f32.xlu1 %v2627_v37  ;;  %v2630_v22 = vsel %vm1514_vm2, %v15134_v24, 0.0  ;;  %11916 = vmatpush.xpose.msk.msra.mxu2 %vm1373_vm1, %v14161_v30 }
 0x60c   :  { %2631 = vadd.xlane.f32.xlu0 %v2630_v22 }
 0x60e   :  { %11897 = vmatmul.msk.f32.vlgmr.msra.gmra.mxu3 %vm1373_vm1, %v19131_v0  ;;  %11894 = vmatmul.msk.f32.gmra.mxu2 %vm1373_vm1, %v19133_v18 }
 0x60f   :  { %11919 = vmatpush.xpose.msk.msra.mxu3 %vm1373_vm1, %v14198_v40 }
 0x611   :  { %v15148_v43 = vpop.eup %12653 }
 0x612   :  { %v2636_v57 = vsel %vm1514_vm2, %v15148_v43, 0.0 }
 0x613   :  { %11920 = vmatpush.xpose.msk.msra.mxu3 %vm1373_vm1, %v14163_v31  ;;  %2637 = vadd.xlane.f32.xlu1 %v2636_v57 }
 0x616   :  { %11898 = vmatmul.msk.f32.gmra.mxu3 %vm1373_vm1, %v19135_v56 }
 0x669   :  { %v15156_v41 = vpop.f32.mrf.mxu2 }
 0x66a   :  { %19165 = vst [vmem:[#allocation88_spill] sm:$0xff] %v15156_v41  ;;  %v19216_v41 = vld [vmem:[#allocation21_spill] sm:$0xff] }
 0x66f   :  { %v2833_v0 = vpop.xlane.xlu0 %2832 }
 0x670   :  { %12655 = vrcp.f32 %v2833_v0  ;;  %v15158_v18 = vpop.f32.mrf.mxu3 }
 0x671   :  { %19166 = vst [vmem:[#allocation89_spill] sm:$0xff] %v15158_v18  ;;  %v15160_v17 = vpop.f32.mrf.mxu2  ;;  %v19214_v18 = vld [vmem:[#allocation20_spill] sm:$0xff] }
 0x672   :  { %19167 = vst [vmem:[#allocation90_spill] sm:$0xff] %v15160_v17  ;;  %v19202_v17 = vld [vmem:[#allocation36_spill] sm:$0xff] }
 0x675   :  { %v2836_v5 = vpop.xlane.xlu2 %2835 }
 0x676   :  { %v12656_v48 = vpop.eup %12655  ;;  %12657 = vrcp.f32 %v2836_v5  ;;  %v2839_v20 = vpop.xlane.xlu1 %2838 }
 0x677   :  { %v2863_v1 = vmul.f32 %v12656_v48, %v2833_v0  ;;  %v2842_v36 = vpop.xlane.xlu0 %2841  ;;  %12659 = vrcp.f32 %v2839_v20 }
 0x678   :  { %12661 = vrcp.f32 %v2842_v36 }
 0x679   :  { %v2871_v58 = vsub.f32 2.0, %v2863_v1  ;;  %v15162_v63 = vpop.f32.mrf.mxu3  ;;  %v15164_v56 = vpop.f32.mrf.mxu2 }
 0x67a   :  { %19168 = vst [vmem:[#allocation91_spill] sm:$0xff] %v15162_v63 }
 0x67b   :  { %19169 = vst [vmem:[#allocation92_spill] sm:$0xff] %v15164_v56  ;;  %v2879_v14 = vmul.f32 %v12656_v48, %v2871_v58 }
 0x67c   :  { %v12658_v33 = vpop.eup %12657 }
 0x67d   :  { %v12660_v10 = vpop.eup %12659  ;;  %v2887_v60 = vmul.f32 %v15095_v7, %v2879_v14  ;;  %v2864_v16 = vmul.f32 %v12658_v33, %v2836_v5  ;;  %v2635_v11 = vpop.xlane.xlu2 %2634 }
 0x67e   :  { %v12662_v8 = vpop.eup %12661  ;;  %v2865_v51 = vmul.f32 %v12660_v10, %v2839_v20  ;;  %12663 = vrcp.f32 %v2635_v11  ;;  %v2629_v44 = vpop.xlane.xlu1 %2628 }
 0x67f   :  { %v2872_v46 = vsub.f32 2.0, %v2864_v16  ;;  %11867 = vmatmul.msk.f32.vlgmr.msra.gmra.mxu0 %vm1514_vm2, %v2887_v60  ;;  %v2632_v19 = vpop.xlane.xlu0 %2631  ;;  %12665 = vrcp.f32 %v2629_v44  ;;  %v2866_v50 = vmul.f32 %v12662_v8, %v2842_v36 }
 0x680   :  { %v2873_v52 = vsub.f32 2.0, %v2865_v51  ;;  %11883 = vmatpush.xpose.msk.msra.mxu0 %vm1373_vm1, %v14640_v42  ;;  %12667 = vrcp.f32 %v2632_v19 }
 0x681   :  { %v2880_v34 = vmul.f32 %v12658_v33, %v2872_v46  ;;  %v15170_v6 = vpop.f32.mrf.mxu3  ;;  %v15172_v59 = vpop.f32.mrf.mxu2  ;;  %v2874_v57 = vsub.f32 2.0, %v2866_v50 }
 0x682   :  { %19170 = vst [vmem:[#allocation93_spill] sm:$0xff] %v15170_v6  ;;  %v2881_v7 = vmul.f32 %v12660_v10, %v2873_v52  ;;  %v19213_v6 = vld [vmem:[#allocation53_spill] sm:$0xff] }
 0x683   :  { %19171 = vst [vmem:[#allocation94_spill] sm:$0xff] %v15172_v59  ;;  %v2888_v37 = vmul.f32 %v15107_v15, %v2880_v34  ;;  %v2882_v15 = vmul.f32 %v12662_v8, %v2874_v57 }
 0x684   :  { %v12664_v22 = vpop.eup %12663  ;;  %v2889_v0 = vmul.f32 %v15110_v53, %v2881_v7  ;;  %11884 = vmatpush.xpose.msk.msra.mxu0 %vm1373_vm1, %v14636_v38 }
 0x685   :  { %v12666_v5 = vpop.eup %12665  ;;  %v2661_v36 = vmul.f32 %v12664_v22, %v2635_v11 }
 0x686   :  { %v12668_v48 = vpop.eup %12667  ;;  %v2659_v20 = vmul.f32 %v12666_v5, %v2629_v44  ;;  %11869 = vmatmul.msk.f32.vlgmr.msra.gmra.mxu1 %vm1514_vm2, %v2889_v0  ;;  %v2638_v1 = vpop.xlane.xlu1 %2637  ;;  %v2890_v44 = vmul.f32 %v15115_v55, %v2882_v15 }
 0x687   :  { %11868 = vmatmul.msk.f32.gmra.mxu0 %vm1514_vm2, %v2888_v37  ;;  %11887 = vmatpush.xpose.msk.msra.mxu1 %vm1373_vm1, %v14642_v12  ;;  %12669 = vrcp.f32 %v2638_v1  ;;  %v2660_v14 = vmul.f32 %v12668_v48, %v2632_v19  ;;  %v2669_v16 = vsub.f32 2.0, %v2661_v36 }
 0x688   :  { %v2667_v58 = vsub.f32 2.0, %v2659_v20 }
 0x689   :  { %v15182_v53 = vpop.f32.mrf.mxu3  ;;  %v3190_v10 = vpop.f32.mrf.mxu2  ;;  %v2668_v8 = vsub.f32 2.0, %v2660_v14  ;;  %v2677_v11 = vmul.f32 %v12664_v22, %v2669_v16 }
 0x68a   :  { %19172 = vst [vmem:[#allocation95_spill] sm:$0xff] %v15182_v53  ;;  %v2675_v33 = vmul.f32 %v12666_v5, %v2667_v58  ;;  %v3231_v60 = vsel %vm1514_vm2, %v3190_v10, -inf }
 0x68b   :  { %11888 = vmatpush.xpose.msk.msra.mxu1 %vm1373_vm1, %v14638_v27  ;;  %3232 = vmax.xlane.f32.xlu2 %v3231_v60  ;;  %v2676_v50 = vmul.f32 %v12668_v48, %v2668_v8  ;;  %v2685_v55 = vmul.f32 %v15126_v28, %v2677_v11  ;;  %v19173_v28 = vld [vmem:[#allocation29_spill] sm:$0xff] }
 0x68c   :  { %v2683_v51 = vmul.f32 %v15130_v32, %v2675_v33 }
 0x68d   :  { %v12670_v46 = vpop.eup %12669  ;;  %v2684_v57 = vmul.f32 %v15134_v24, %v2676_v50 }
 0x68e   :  { %11870 = vmatmul.msk.f32.gmra.mxu1 %vm1514_vm2, %v2890_v44  ;;  %v2662_v19 = vmul.f32 %v12670_v46, %v2638_v1 }
 0x68f   :  { %11875 = vmatmul.msk.f32.vlgmr.msrb.gmra.mxu0 %vm1514_vm2, %v2683_v51 }
 0x690   :  { %3351 = vmatpush.msrb.mxu0 %v14648_v26  ;;  %v2670_v37 = vsub.f32 2.0, %v2662_v19 }
 0x691   :  { %v3213_v52 = vpop.f32.mrf.mxu3  ;;  %v3193_v34 = vpop.f32.mrf.mxu2 }
 0x692   :  { %3352 = vmatpush.msrb.mxu0 %v14644_v13  ;;  %v3237_v32 = vsel %vm1514_vm2, %v3213_v52, -inf  ;;  %v3234_v7 = vsel %vm1514_vm2, %v3193_v34, -inf  ;;  %v2678_v22 = vmul.f32 %v12670_v46, %v2670_v37 }
 0x693   :  { %3238 = vmax.xlane.f32.xlu0 %v3237_v32  ;;  %3235 = vmax.xlane.f32.xlu1 %v3234_v7 }
 0x694   :  { %v2686_v48 = vmul.f32 %v15148_v43, %v2678_v22 }
 0x696   :  { %11877 = vmatmul.msk.f32.vlgmr.msrb.gmra.mxu1 %vm1514_vm2, %v2685_v55 }
 0x697   :  { %11876 = vmatmul.msk.f32.gmra.mxu0 %vm1514_vm2, %v2684_v57  ;;  %3380 = vmatpush.msrb.mxu1 %v14650_v4 }
 0x699   :  { %3381 = vmatpush.msrb.mxu1 %v14646_v9  ;;  %v3216_v0 = vpop.f32.mrf.mxu3 }
 0x69a   :  { %v3240_v5 = vsel %vm1514_vm2, %v3216_v0, -inf }
 0x69b   :  { %3241 = vmax.xlane.f32.xlu2 %v3240_v5 }
 0x69e   :  { %11878 = vmatmul.msk.f32.gmra.mxu1 %vm1514_vm2, %v2686_v48 }
 0x69f   :  { %11885 = vmatmul.msk.f32.vlgmr.msra.gmra.mxu0 %vm1373_vm1, %v19148_v25 }
 0x6a0   :  { %11907 = vmatpush.xpose.msk.msra.mxu0 %vm1373_vm1, %v14276_v2 }
 0x6a4   :  { %11908 = vmatpush.xpose.msk.msra.mxu0 %vm1373_vm1, %v14268_v61 }
 0x6a6   :  { %11889 = vmatmul.msk.f32.vlgmr.msra.gmra.mxu1 %vm1373_vm1, %v19151_v54 }
 0x6a7   :  { %11886 = vmatmul.msk.f32.gmra.mxu0 %vm1373_vm1, %v19153_v49  ;;  %11911 = vmatpush.xpose.msk.msra.mxu1 %vm1373_vm1, %v14278_v3 }
 0x6ab   :  { %11912 = vmatpush.xpose.msk.msra.mxu1 %vm1373_vm1, %v14270_v62 }
 0x6ae   :  { %11890 = vmatmul.msk.f32.gmra.mxu1 %vm1373_vm1, %v19173_v28 }
 0x6fc   :  { %v15220_v25 = vpop.f32.mrf.mxu0 }
 0x6fd   :  { %19174 = vst [vmem:[#allocation29_spill] sm:$0xff] %v15220_v25 }
 0x6fe   :  { %v3233_v24 = vpop.xlane.xlu2 %3232 }
 0x6ff   :  { %v3247_v43 = vsub.f32 %v3190_v10, %v3233_v24 }
 0x701   :  { %v3259_v20 = vmul.f32 1.442695, %v3247_v43 }
 0x703   :  { %v15222_v1 = vpop.f32.mrf.mxu1  ;;  %12671 = vpow2.f32 %v3259_v20 }
 0x704   :  { %19175 = vst [vmem:[#allocation96_spill] sm:$0xff] %v15222_v1  ;;  %v15224_v54 = vpop.f32.mrf.mxu0 }
 0x705   :  { %19176 = vst [vmem:[#allocation97_spill] sm:$0xff] %v15224_v54 }
 0x706   :  { %v3239_v49 = vpop.xlane.xlu0 %3238  ;;  %v3236_v36 = vpop.xlane.xlu1 %3235 }
 0x707   :  { %v3249_v15 = vsub.f32 %v3213_v52, %v3239_v49  ;;  %v3248_v58 = vsub.f32 %v3193_v34, %v3236_v36 }
 0x709   :  { %v3263_v14 = vmul.f32 1.442695, %v3249_v15  ;;  %v12672_v33 = vpop.eup %12671  ;;  %v3261_v60 = vmul.f32 1.442695, %v3248_v58 }
 0x70a   :  { %v3279_v16 = vsel %vm1514_vm2, %v12672_v33, 0.0 }
 0x70b   :  { %12673 = vpow2.f32 %v3263_v14  ;;  %v15227_v51 = vpop.f32.mrf.mxu1  ;;  %3280 = vadd.xlane.f32.xlu0 %v3279_v16 }
 0x70c   :  { %19177 = vst [vmem:[#allocation98_spill] sm:$0xff] %v15227_v51  ;;  %12675 = vpow2.f32 %v3261_v60  ;;  %v15229_v10 = vpop.f32.mrf.mxu0 }
 0x70d   :  { %19178 = vst [vmem:[#allocation99_spill] sm:$0xff] %v15229_v10 }
 0x70e   :  { %v3242_v44 = vpop.xlane.xlu2 %3241 }
 0x70f   :  { %v3250_v46 = vsub.f32 %v3216_v0, %v3242_v44 }
 0x711   :  { %v12674_v8 = vpop.eup %12673  ;;  %v3265_v11 = vmul.f32 1.442695, %v3250_v46 }
 0x712   :  { %v12676_v19 = vpop.eup %12675  ;;  %v3285_v50 = vsel %vm1514_vm2, %v12674_v8, 0.0 }
 0x713   :  { %12677 = vpow2.f32 %v3265_v11  ;;  %3286 = vadd.xlane.f32.xlu1 %v3285_v50  ;;  %v15232_v52 = vpop.f32.mrf.mxu1  ;;  %v3282_v34 = vsel %vm1514_vm2, %v12676_v19, 0.0 }
 0x714   :  { %19179 = vst [vmem:[#allocation100_spill] sm:$0xff] %v15232_v52  ;;  %v15235_v32 = vpop.f32.mrf.mxu0  ;;  %3283 = vadd.xlane.f32.xlu2 %v3282_v34 }
 0x715   :  { %19180 = vst [vmem:[#allocation101_spill] sm:$0xff] %v15235_v32 }
 0x719   :  { %v12678_v7 = vpop.eup %12677 }
 0x71a   :  { %v3288_v55 = vsel %vm1514_vm2, %v12678_v7, 0.0 }
 0x71b   :  { %3289 = vadd.xlane.f32.xlu0 %v3288_v55  ;;  %v15238_v37 = vpop.f32.mrf.mxu1 }
 0x71c   :  { %19181 = vst [vmem:[#allocation102_spill] sm:$0xff] %v15238_v37  ;;  %v3144_v57 = vpop.f32.mrf.mxu0 }
 0x71d   :  { %v3219_v22 = vsel %vm1514_vm2, %v3144_v57, -inf }
 0x71e   :  { %3220 = vmax.xlane.f32.xlu1 %v3219_v22  ;;  %v19182_v22 = vld [vmem:[#allocation18_spill] sm:$0xff] }
 0x723   :  { %v3167_v0 = vpop.f32.mrf.mxu1 }
 0x724   :  { %v3147_v5 = vpop.f32.mrf.mxu0  ;;  %v3225_v48 = vsel %vm1514_vm2, %v3167_v0, -inf }
 0x725   :  { %v3222_v28 = vsel %vm1514_vm2, %v3147_v5, -inf  ;;  %3226 = vmax.xlane.f32.xlu2 %v3225_v48 }
 0x726   :  { %3223 = vmax.xlane.f32.xlu0 %v3222_v28 }
 0x72b   :  { %v3170_v24 = vpop.f32.mrf.mxu1 }
 0x72c   :  { %v3228_v43 = vsel %vm1514_vm2, %v3170_v24, -inf }
 0x72d   :  { %3229 = vmax.xlane.f32.xlu1 %v3228_v43 }
 0x77e   :  { %v3281_v20 = vpop.xlane.xlu0 %3280 }
 0x77f   :  { %12679 = vrcp.f32 %v3281_v20 }
 0x785   :  { %v12680_v49 = vpop.eup %12679 }
 0x786   :  { %v3287_v15 = vpop.xlane.xlu1 %3286  ;;  %v3303_v36 = vmul.f32 %v12680_v49, %v3281_v20 }
 0x787   :  { %v3284_v58 = vpop.xlane.xlu2 %3283  ;;  %12681 = vrcp.f32 %v3287_v15 }
 0x788   :  { %12683 = vrcp.f32 %v3284_v58  ;;  %v3311_v14 = vsub.f32 2.0, %v3303_v36 }
 0x78a   :  { %v3319_v60 = vmul.f32 %v12680_v49, %v3311_v14  ;;  %v19183_v14 = vld [vmem:[#allocation14_spill] sm:$0xff] }
 0x78c   :  { %v3327_v44 = vmul.f32 %v12672_v33, %v3319_v60  ;;  %v19184_v60 = vld [vmem:[#allocation19_spill] sm:$0xff] }
 0x78d   :  { %v12682_v16 = vpop.eup %12681 }
 0x78e   :  { %v12684_v46 = vpop.eup %12683  ;;  %v3305_v11 = vmul.f32 %v12682_v16, %v3287_v15  ;;  %v3290_v50 = vpop.xlane.xlu0 %3289  ;;  %11903 = vmatmul.msk.f32.vlgmr.msrb.gmra.mxu2 %vm1514_vm2, %v3327_v44 }
 0x78f   :  { %v3304_v34 = vmul.f32 %v12684_v46, %v3284_v58  ;;  %12685 = vrcp.f32 %v3290_v50  ;;  %11931 = vmatpush.xpose.msk.msrb.mxu2 %vm1373_vm1, %v19182_v22 }
 0x790   :  { %v3313_v55 = vsub.f32 2.0, %v3305_v11 }
 0x791   :  { %v3312_v48 = vsub.f32 2.0, %v3304_v34  ;;  %v3221_v28 = vpop.xlane.xlu1 %3220 }
 0x792   :  { %v3321_v43 = vmul.f32 %v12682_v16, %v3313_v55  ;;  %v3243_v20 = vsub.f32 %v3144_v57, %v3221_v28  ;;  %v19185_v55 = vld [vmem:[#allocation15_spill] sm:$0xff]  ;;  %v19186_v28 = vld [vmem:[#allocation30_spill] sm:$0xff] }
 0x793   :  { %v3320_v37 = vmul.f32 %v12684_v46, %v3312_v48  ;;  %11932 = vmatpush.xpose.msk.msrb.mxu2 %vm1373_vm1, %v19183_v14 }
 0x794   :  { %v3329_v36 = vmul.f32 %v12674_v8, %v3321_v43  ;;  %v3251_v49 = vmul.f32 1.442695, %v3243_v20  ;;  %v19188_v20 = vld [vmem:[#allocation22_spill] sm:$0xff] }
 0x795   :  { %v12686_v33 = vpop.eup %12685  ;;  %v3328_v15 = vmul.f32 %v12676_v19, %v3320_v37 }
 0x796   :  { %v3306_v58 = vmul.f32 %v12686_v33, %v3290_v50  ;;  %12687 = vpow2.f32 %v3251_v49  ;;  %11905 = vmatmul.msk.f32.vlgmr.msrb.gmra.mxu3 %vm1514_vm2, %v3329_v36 }
 0x797   :  { %11904 = vmatmul.msk.f32.gmra.mxu2 %vm1514_vm2, %v3328_v15  ;;  %11935 = vmatpush.xpose.msk.msrb.mxu3 %vm1373_vm1, %v19184_v60  ;;  %v19222_v60 = vld [vmem:[#allocation62_spill] sm:$0xff] }
 0x798   :  { %v3314_v44 = vsub.f32 2.0, %v3306_v58  ;;  %v3227_v16 = vpop.xlane.xlu2 %3226  ;;  %v19189_v58 = vld [vmem:[#allocation31_spill] sm:$0xff] }
 0x799   :  { %v3224_v57 = vpop.xlane.xlu0 %3223  ;;  %v3245_v46 = vsub.f32 %v3167_v0, %v3227_v16  ;;  %v19187_v0 = vld [vmem:[#allocation26_spill] sm:$0xff]  ;;  %v19191_v16 = vld [vmem:[#allocation27_spill] sm:$0xff] }
 0x79a   :  { %v3322_v8 = vmul.f32 %v12686_v33, %v3314_v44  ;;  %v3244_v11 = vsub.f32 %v3147_v5, %v3224_v57  ;;  %v19190_v44 = vld [vmem:[#allocation34_spill] sm:$0xff] }
 0x79b   :  { %v3255_v34 = vmul.f32 1.442695, %v3245_v46  ;;  %11936 = vmatpush.xpose.msk.msrb.mxu3 %vm1373_vm1, %v19185_v55 }
 0x79c   :  { %v12688_v19 = vpop.eup %12687  ;;  %v3253_v37 = vmul.f32 1.442695, %v3244_v11  ;;  %v3330_v50 = vmul.f32 %v12678_v7, %v3322_v8  ;;  %v19193_v8 = vld [vmem:[#allocation35_spill] sm:$0xff] }
 0x79d   :  { %12689 = vpow2.f32 %v3255_v34  ;;  %v3267_v48 = vsel %vm1514_vm2, %v12688_v19, 0.0  ;;  %v19194_v11 = vld [vmem:[#allocation7_spill] sm:$0xff]  ;;  %v19195_v34 = vld [vmem:[#allocation5_spill] sm:$0xff] }
 0x79e   :  { %12691 = vpow2.f32 %v3253_v37  ;;  %3268 = vadd.xlane.f32.xlu2 %v3267_v48  ;;  %11906 = vmatmul.msk.f32.gmra.mxu3 %vm1514_vm2, %v3330_v50  ;;  %v19196_v37 = vld [vmem:[#allocation8_spill] sm:$0xff]  ;;  %v19197_v50 = vld [vmem:[#allocation6_spill] sm:$0xff] }
 0x79f   :  { %11917 = vmatmul.msk.f32.vlgmr.msra.gmra.mxu2 %vm1373_vm1, %v19186_v28 }
 0x7a0   :  { %3965 = vmatpush.msra.mxu2 %v19187_v0  ;;  %v3230_v5 = vpop.xlane.xlu1 %3229 }
 0x7a1   :  { %v3246_v43 = vsub.f32 %v3170_v24, %v3230_v5  ;;  %v19192_v24 = vld [vmem:[#allocation23_spill] sm:$0xff] }
 0x7a2   :  { %3966 = vmatpush.msra.mxu2 %v19188_v20 }
 0x7a3   :  { %v12690_v36 = vpop.eup %12689  ;;  %v3257_v49 = vmul.f32 1.442695, %v3246_v43 }
 0x7a4   :  { %v12692_v33 = vpop.eup %12691  ;;  %v3273_v7 = vsel %vm1514_vm2, %v12690_v36, 0.0 }
 0x7a5   :  { %12693 = vpow2.f32 %v3257_v49  ;;  %v3270_v15 = vsel %vm1514_vm2, %v12692_v33, 0.0  ;;  %3274 = vadd.xlane.f32.xlu0 %v3273_v7 }
 0x7a6   :  { %3271 = vadd.xlane.f32.xlu1 %v3270_v15  ;;  %11921 = vmatmul.msk.f32.vlgmr.msra.gmra.mxu3 %vm1373_vm1, %v19189_v58 }
 0x7a7   :  { %11918 = vmatmul.msk.f32.gmra.mxu2 %vm1373_vm1, %v19190_v44  ;;  %3994 = vmatpush.msra.mxu3 %v19191_v16 }
 0x7a9   :  { %3995 = vmatpush.msra.mxu3 %v19192_v24 }
 0x7ab   :  { %v12694_v57 = vpop.eup %12693 }
 0x7ac   :  { %v3276_v46 = vsel %vm1514_vm2, %v12694_v57, 0.0 }
 0x7ad   :  { %3277 = vadd.xlane.f32.xlu2 %v3276_v46 }
 0x7ae   :  { %11922 = vmatmul.msk.f32.gmra.mxu3 %vm1373_vm1, %v19193_v8 }
 0x7af   :  { %11933 = vmatmul.msk.f32.vlgmr.msrb.gmra.mxu2 %vm1373_vm1, %v19186_v28 }
 0x7b0   :  { %4081 = vmatpush.msrb.mxu2 %v19194_v11 }
 0x7b2   :  { %4082 = vmatpush.msrb.mxu2 %v19195_v34 }
 0x7b6   :  { %11937 = vmatmul.msk.f32.vlgmr.msrb.gmra.mxu3 %vm1373_vm1, %v19189_v58 }
 0x7b7   :  { %11934 = vmatmul.msk.f32.gmra.mxu2 %vm1373_vm1, %v19190_v44  ;;  %4110 = vmatpush.msrb.mxu3 %v19196_v37 }
 0x7b9   :  { %4111 = vmatpush.msrb.mxu3 %v19197_v50 }
 0x7be   :  { %11938 = vmatmul.msk.f32.gmra.mxu3 %vm1373_vm1, %v19193_v8 }
 0x811   :  { %v3269_v48 = vpop.xlane.xlu2 %3268  ;;  %v15284_v5 = vpop.f32.mrf.mxu2 }
 0x812   :  { %12695 = vrcp.f32 %v3269_v48  ;;  %19198 = vst [vmem:[#allocation18_spill] sm:$0xff] %v15284_v5 }
 0x818   :  { %v12696_v43 = vpop.eup %12695  ;;  %v3275_v49 = vpop.xlane.xlu0 %3274 }
 0x819   :  { %v3299_v7 = vmul.f32 %v12696_v43, %v3269_v48  ;;  %12697 = vrcp.f32 %v3275_v49  ;;  %v3272_v15 = vpop.xlane.xlu1 %3271  ;;  %v15286_v46 = vpop.f32.mrf.mxu3 }
 0x81a   :  { %19199 = vst [vmem:[#allocation30_spill] sm:$0xff] %v15286_v46  ;;  %12699 = vrcp.f32 %v3272_v15  ;;  %v15288_v51 = vpop.f32.mrf.mxu2 }
 0x81b   :  { %19200 = vst [vmem:[#allocation31_spill] sm:$0xff] %v15288_v51  ;;  %v3307_v32 = vsub.f32 2.0, %v3299_v7 }
 0x81d   :  { %v3315_v54 = vmul.f32 %v12696_v43, %v3307_v32 }
 0x81f   :  { %v12698_v52 = vpop.eup %12697  ;;  %v3323_v1 = vmul.f32 %v12688_v19, %v3315_v54  ;;  %v19203_v54 = vld [vmem:[#allocation32_spill] sm:$0xff] }
 0x820   :  { %v12700_v10 = vpop.eup %12699  ;;  %v3301_v25 = vmul.f32 %v12698_v52, %v3275_v49  ;;  %v3278_v53 = vpop.xlane.xlu2 %3277 }
 0x821   :  { %v3300_v63 = vmul.f32 %v12700_v10, %v3272_v15  ;;  %11899 = vmatmul.msk.f32.vlgmr.msrb.gmra.mxu0 %vm1514_vm2, %v3323_v1  ;;  %12701 = vrcp.f32 %v3278_v53  ;;  %v15291_v59 = vpop.f32.mrf.mxu3 }
 0x822   :  { %19201 = vst [vmem:[#allocation34_spill] sm:$0xff] %v15291_v59  ;;  %v3309_v48 = vsub.f32 2.0, %v3301_v25  ;;  %11923 = vmatpush.xpose.msk.msrb.mxu0 %vm1373_vm1, %v19202_v17  ;;  %v15295_v46 = vpop.f32.mrf.mxu2  ;;  %v19204_v25 = vld [vmem:[#allocation37_spill] sm:$0xff] }
 0x823   :  { %v3308_v51 = vsub.f32 2.0, %v3300_v63  ;;  %v3583_v5 = vsel %vm1514_vm2, %v15295_v46, -inf }
 0x824   :  { %v3317_v7 = vmul.f32 %v12698_v52, %v3309_v48 }
 0x825   :  { %v3316_v32 = vmul.f32 %v12700_v10, %v3308_v51  ;;  %v19205_v10 = vld [vmem:[#allocation33_spill] sm:$0xff] }
 0x826   :  { %v3325_v43 = vmul.f32 %v12690_v36, %v3317_v7  ;;  %11924 = vmatpush.xpose.msk.msrb.mxu0 %vm1373_vm1, %v19203_v54 }
 0x827   :  { %v12702_v19 = vpop.eup %12701  ;;  %v3324_v49 = vmul.f32 %v12692_v33, %v3316_v32  ;;  %v19207_v33 = vld [vmem:[#allocation44_spill] sm:$0xff] }
 0x828   :  { %v3302_v15 = vmul.f32 %v12702_v19, %v3278_v53  ;;  %11901 = vmatmul.msk.f32.vlgmr.msrb.gmra.mxu1 %vm1514_vm2, %v3325_v43  ;;  %v19206_v53 = vld [vmem:[#allocation48_spill] sm:$0xff] }
 0x829   :  { %11900 = vmatmul.msk.f32.gmra.mxu0 %vm1514_vm2, %v3324_v49  ;;  %11927 = vmatpush.xpose.msk.msrb.mxu1 %vm1373_vm1, %v19204_v25  ;;  %v15303_v1 = vpop.f32.mrf.mxu3  ;;  %v19208_v32 = vld [vmem:[#allocation40_spill] sm:$0xff] }
 0x82a   :  { %v3310_v59 = vsub.f32 2.0, %v3302_v15  ;;  %v15305_v63 = vpop.f32.mrf.mxu2  ;;  %v19210_v43 = vld [vmem:[#allocation52_spill] sm:$0xff] }
 0x82c   :  { %v3318_v51 = vmul.f32 %v12702_v19, %v3310_v59  ;;  %v19209_v59 = vld [vmem:[#allocation49_spill] sm:$0xff] }
 0x82d   :  { %11928 = vmatpush.xpose.msk.msrb.mxu1 %vm1373_vm1, %v19205_v10 }
 0x82e   :  { %v3326_v52 = vmul.f32 %v12694_v57, %v3318_v51  ;;  %v19211_v57 = vld [vmem:[#allocation45_spill] sm:$0xff] }
 0x82f   :  { %v19212_v51 = vld [vmem:[#allocation41_spill] sm:$0xff] }
 0x830   :  { %11902 = vmatmul.msk.f32.gmra.mxu1 %vm1514_vm2, %v3326_v52 }
 0x831   :  { %11909 = vmatmul.msk.f32.vlgmr.msra.gmra.mxu0 %vm1373_vm1, %v19206_v53  ;;  %v15312_v36 = vpop.f32.mrf.mxu3 }
 0x832   :  { %3907 = vmatpush.msra.mxu0 %v19207_v33  ;;  %v3746_v48 = vpop.f32.mrf.mxu2 }
 0x833   :  { %v3787_v7 = vsel %vm1514_vm2, %v3746_v48, -inf }
 0x834   :  { %3908 = vmatpush.msra.mxu0 %v19208_v32  ;;  %3788 = vmax.xlane.f32.xlu0 %v3787_v7 }
 0x838   :  { %11913 = vmatmul.msk.f32.vlgmr.msra.gmra.mxu1 %vm1373_vm1, %v19209_v59 }
 0x839   :  { %11910 = vmatmul.msk.f32.gmra.mxu0 %vm1373_vm1, %v19210_v43  ;;  %3936 = vmatpush.msra.mxu1 %v19211_v57  ;;  %v3769_v19 = vpop.f32.mrf.mxu3 }
 0x83a   :  { %v3749_v49 = vpop.f32.mrf.mxu2  ;;  %v3793_v15 = vsel %vm1514_vm2, %v3769_v19, -inf }
 0x83b   :  { %3937 = vmatpush.msra.mxu1 %v19212_v51  ;;  %3794 = vmax.xlane.f32.xlu1 %v3793_v15  ;;  %v3790_v52 = vsel %vm1514_vm2, %v3749_v49, -inf  ;;  %v3589_v15 = vsel %vm1514_vm2, %v15303_v1, -inf  ;;  %v19217_v51 = vld [vmem:[#allocation17_spill] sm:$0xff] }
 0x83c   :  { %3791 = vmax.xlane.f32.xlu2 %v3790_v52  ;;  %v19215_v52 = vld [vmem:[#allocation16_spill] sm:$0xff] }
 0x840   :  { %11914 = vmatmul.msk.f32.gmra.mxu1 %vm1373_vm1, %v19213_v6 }
 0x841   :  { %11925 = vmatmul.msk.f32.vlgmr.msrb.gmra.mxu0 %vm1373_vm1, %v19206_v53  ;;  %v3772_v7 = vpop.f32.mrf.mxu3 }
 0x842   :  { %4023 = vmatpush.msrb.mxu0 %v19214_v18  ;;  %v3796_v56 = vsel %vm1514_vm2, %v3772_v7, -inf  ;;  %v3586_v18 = vsel %vm1514_vm2, %v15305_v63, -inf }
 0x843   :  { %3584 = vmax.xlane.f32.xlu1 %v3583_v5  ;;  %3797 = vmax.xlane.f32.xlu0 %v3796_v56  ;;  %v3592_v56 = vsel %vm1514_vm2, %v15312_v36, -inf }
 0x844   :  { %4024 = vmatpush.msrb.mxu0 %v19215_v52  ;;  %3590 = vmax.xlane.f32.xlu2 %v3589_v15 }
 0x848   :  { %11929 = vmatmul.msk.f32.vlgmr.msrb.gmra.mxu1 %vm1373_vm1, %v19209_v59 }
 0x849   :  { %11926 = vmatmul.msk.f32.gmra.mxu0 %vm1373_vm1, %v19210_v43  ;;  %4052 = vmatpush.msrb.mxu1 %v19216_v41 }
 0x84b   :  { %4053 = vmatpush.msrb.mxu1 %v19217_v51  ;;  %3587 = vmax.xlane.f32.xlu0 %v3586_v18 }
 0x84c   :  { %3593 = vmax.xlane.f32.xlu1 %v3592_v56 }
 0x850   :  { %11930 = vmatmul.msk.f32.gmra.mxu1 %vm1373_vm1, %v19213_v6 }
 0x89e   :  { %v15348_v5 = vpop.f32.mrf.mxu0 }
 0x89f   :  { %19218 = vst [vmem:[#allocation35_spill] sm:$0xff] %v15348_v5 }
 0x8a5   :  { %v15350_v15 = vpop.f32.mrf.mxu1 }
 0x8a6   :  { %19219 = vst [vmem:[#allocation48_spill] sm:$0xff] %v15350_v15  ;;  %v15352_v41 = vpop.f32.mrf.mxu0 }
 0x8a7   :  { %v3789_v52 = vpop.xlane.xlu0 %3788  ;;  %19220 = vst [vmem:[#allocation49_spill] sm:$0xff] %v15352_v41 }
 0x8a8   :  { %v3803_v57 = vsub.f32 %v3746_v48, %v3789_v52 }
 0x8aa   :  { %v3815_v32 = vmul.f32 1.442695, %v3803_v57 }
 0x8ac   :  { %12703 = vpow2.f32 %v3815_v32 }
 0x8ad   :  { %v15354_v33 = vpop.f32.mrf.mxu1 }
 0x8ae   :  { %19221 = vst [vmem:[#allocation52_spill] sm:$0xff] %v15354_v33  ;;  %v3795_v18 = vpop.xlane.xlu1 %3794  ;;  %v15358_v50 = vpop.f32.mrf.mxu0 }
 0x8af   :  { %v3792_v51 = vpop.xlane.xlu2 %3791  ;;  %v3805_v10 = vsub.f32 %v3769_v19, %v3795_v18 }
 0x8b0   :  { %v3804_v25 = vsub.f32 %v3749_v49, %v3792_v51 }
 0x8b1   :  { %v3819_v56 = vmul.f32 1.442695, %v3805_v10 }
 0x8b2   :  { %v15356_v54 = vpop.eup %12703  ;;  %v3817_v17 = vmul.f32 1.442695, %v3804_v25 }
 0x8b3   :  { %12705 = vpow2.f32 %v3819_v56  ;;  %v3835_v48 = vsel %vm1514_vm2, %v15356_v54, 0.0 }
 0x8b4   :  { %12707 = vpow2.f32 %v3817_v17  ;;  %3836 = vadd.xlane.f32.xlu2 %v3835_v48 }
 0x8b5   :  { %v15362_v57 = vpop.f32.mrf.mxu1 }
 0x8b6   :  { %v3798_v32 = vpop.xlane.xlu0 %3797  ;;  %v3585_v41 = vpop.xlane.xlu1 %3584  ;;  %v3577_v15 = vsel %vm1514_vm2, %v15362_v57, -inf }
 0x8b7   :  { %v3806_v52 = vsub.f32 %v3772_v7, %v3798_v32  ;;  %v3591_v33 = vpop.xlane.xlu2 %3590  ;;  %v3599_v10 = vsub.f32 %v15295_v46, %v3585_v41 }
 0x8b8   :  { %v3601_v19 = vsub.f32 %v15303_v1, %v3591_v33  ;;  %v15374_v1 = vpop.f32.mrf.mxu0 }
 0x8b9   :  { %v15366_v49 = vpop.eup %12705  ;;  %v3821_v25 = vmul.f32 1.442695, %v3806_v52  ;;  %v3611_v56 = vmul.f32 1.442695, %v3599_v10 }
 0x8ba   :  { %v15368_v51 = vpop.eup %12707  ;;  %v3615_v18 = vmul.f32 1.442695, %v3601_v19  ;;  %v3841_v17 = vsel %vm1514_vm2, %v15366_v49, 0.0 }
 0x8bb   :  { %12709 = vpow2.f32 %v3821_v25  ;;  %v3838_v7 = vsel %vm1514_vm2, %v15368_v51, 0.0  ;;  %3842 = vadd.xlane.f32.xlu0 %v3841_v17 }
 0x8bc   :  { %12711 = vpow2.f32 %v3615_v18  ;;  %3839 = vadd.xlane.f32.xlu1 %v3838_v7 }
 0x8bd   :  { %12713 = vpow2.f32 %v3611_v56  ;;  %v15376_v41 = vpop.f32.mrf.mxu1 }
 0x8be   :  { %v3588_v46 = vpop.xlane.xlu0 %3587 }
 0x8bf   :  { %v3600_v33 = vsub.f32 %v15305_v63, %v3588_v46  ;;  %v3594_v48 = vpop.xlane.xlu1 %3593 }
 0x8c0   :  { %v3602_v32 = vsub.f32 %v15312_v36, %v3594_v48  ;;  %v15394_v7 = vpop.f32.mrf.mxu0 }
 0x8c1   :  { %v15380_v52 = vpop.eup %12709  ;;  %v3613_v19 = vmul.f32 1.442695, %v3600_v33 }
 0x8c2   :  { %v15382_v10 = vpop.eup %12711  ;;  %v3617_v25 = vmul.f32 1.442695, %v3602_v32  ;;  %v3844_v18 = vsel %vm1514_vm2, %v15380_v52, 0.0  ;;  %v3775_v32 = vsel %vm1514_vm2, %v15394_v7, -inf }
 0x8c3   :  { %v15386_v17 = vpop.eup %12713  ;;  %12715 = vpow2.f32 %v3613_v19  ;;  %3845 = vadd.xlane.f32.xlu2 %v3844_v18  ;;  %v3637_v56 = vsel %vm1514_vm2, %v15382_v10, 0.0 }
 0x8c4   :  { %12717 = vpow2.f32 %v3617_v25  ;;  %3638 = vadd.xlane.f32.xlu1 %v3637_v56  ;;  %v3631_v63 = vsel %vm1514_vm2, %v15386_v17, 0.0 }
 0x8c5   :  { %3632 = vadd.xlane.f32.xlu0 %v3631_v63  ;;  %v15392_v36 = vpop.f32.mrf.mxu1 }
 0x8c6   :  { %v3781_v56 = vsel %vm1514_vm2, %v15392_v36, -inf }
 0x8c8   :  { %v15408_v18 = vpop.f32.mrf.mxu0 }
 0x8c9   :  { %v15396_v46 = vpop.eup %12715 }
 0x8ca   :  { %v15398_v33 = vpop.eup %12717  ;;  %v3634_v48 = vsel %vm1514_vm2, %v15396_v46, 0.0 }
 0x8cb   :  { %3635 = vadd.xlane.f32.xlu2 %v3634_v48  ;;  %v3640_v19 = vsel %vm1514_vm2, %v15398_v33, 0.0  ;;  %v3778_v48 = vsel %vm1514_vm2, %v15408_v18, -inf }
 0x8cc   :  { %3776 = vmax.xlane.f32.xlu1 %v3775_v32  ;;  %v3571_v32 = vsel %vm1514_vm2, %v15358_v50, -inf }
 0x8cd   :  { %3641 = vadd.xlane.f32.xlu0 %v3640_v19  ;;  %v15406_v25 = vpop.f32.mrf.mxu1  ;;  %v3574_v19 = vsel %vm1514_vm2, %v15374_v1, -inf }
 0x8ce   :  { %v3784_v63 = vsel %vm1514_vm2, %v15406_v25, -inf }
 0x8d3   :  { %3782 = vmax.xlane.f32.xlu2 %v3781_v56  ;;  %v3580_v56 = vsel %vm1514_vm2, %v15376_v41, -inf }
 0x8d4   :  { %3785 = vmax.xlane.f32.xlu1 %v3784_v63 }
 0x8d5   :  { %3779 = vmax.xlane.f32.xlu0 %v3778_v48 }
 0x8db   :  { %3572 = vmax.xlane.f32.xlu2 %v3571_v32 }
 0x8dc   :  { %3575 = vmax.xlane.f32.xlu1 %v3574_v19 }
 0x8dd   :  { %3578 = vmax.xlane.f32.xlu0 %v3577_v15 }
 0x8e3   :  { %3581 = vmax.xlane.f32.xlu2 %v3580_v56 }
 0x927   :  { %v3837_v63 = vpop.xlane.xlu2 %3836 }
 0x928   :  { %12719 = vrcp.f32 %v3837_v63 }
 0x92e   :  { %v12720_v5 = vpop.eup %12719  ;;  %v3843_v48 = vpop.xlane.xlu0 %3842 }
 0x92f   :  { %v3859_v37 = vmul.f32 %v12720_v5, %v3837_v63  ;;  %12721 = vrcp.f32 %v3843_v48  ;;  %v3840_v34 = vpop.xlane.xlu1 %3839 }
 0x930   :  { %12723 = vrcp.f32 %v3840_v34 }
 0x931   :  { %v3867_v32 = vsub.f32 2.0, %v3859_v37 }
 0x933   :  { %v3875_v11 = vmul.f32 %v12720_v5, %v3867_v32 }
 0x935   :  { %v12722_v24 = vpop.eup %12721  ;;  %v3883_v19 = vmul.f32 %v15356_v54, %v3875_v11 }
 0x936   :  { %v12724_v16 = vpop.eup %12723  ;;  %v3861_v20 = vmul.f32 %v12722_v24, %v3843_v48  ;;  %v3846_v15 = vpop.xlane.xlu2 %3845 }
 0x937   :  { %v3860_v0 = vmul.f32 %v12724_v16, %v3840_v34  ;;  %11943 = vmatmul.msk.f32.vlgmr.msra.gmra.mxu2 %vm1514_vm2, %v3883_v19  ;;  %12725 = vrcp.f32 %v3846_v15  ;;  %v3639_v56 = vpop.xlane.xlu1 %3638  ;;  %v19223_v19 = vld [vmem:[#allocation63_spill] sm:$0xff] }
 0x938   :  { %v3869_v55 = vsub.f32 2.0, %v3861_v20  ;;  %11963 = vmatpush.xpose.msk.msra.mxu2 %vm1373_vm1, %v19222_v60  ;;  %v3633_v63 = vpop.xlane.xlu0 %3632  ;;  %12727 = vrcp.f32 %v3639_v56 }
 0x939   :  { %v3868_v14 = vsub.f32 2.0, %v3860_v0  ;;  %12729 = vrcp.f32 %v3633_v63 }
 0x93a   :  { %v3877_v37 = vmul.f32 %v12722_v24, %v3869_v55 }
 0x93b   :  { %v3876_v5 = vmul.f32 %v12724_v16, %v3868_v14 }
 0x93c   :  { %v3885_v11 = vmul.f32 %v15366_v49, %v3877_v37  ;;  %11964 = vmatpush.xpose.msk.msra.mxu2 %vm1373_vm1, %v14572_v21 }
 0x93d   :  { %v12726_v34 = vpop.eup %12725  ;;  %v3884_v54 = vmul.f32 %v15368_v51, %v3876_v5 }
 0x93e   :  { %v12728_v48 = vpop.eup %12727  ;;  %v3862_v32 = vmul.f32 %v12726_v34, %v3846_v15  ;;  %v3636_v20 = vpop.xlane.xlu2 %3635  ;;  %11945 = vmatmul.msk.f32.vlgmr.msra.gmra.mxu3 %vm1514_vm2, %v3885_v11 }
 0x93f   :  { %v12730_v60 = vpop.eup %12729  ;;  %12731 = vrcp.f32 %v3636_v20  ;;  %11967 = vmatpush.xpose.msk.msra.mxu3 %vm1373_vm1, %v19223_v19  ;;  %11944 = vmatmul.msk.f32.gmra.mxu2 %vm1514_vm2, %v3884_v54  ;;  %v3777_v14 = vpop.xlane.xlu1 %3776  ;;  %v3657_v16 = vmul.f32 %v12728_v48, %v3639_v56 }
 0x940   :  { %v3870_v55 = vsub.f32 2.0, %v3862_v32  ;;  %v3655_v0 = vmul.f32 %v12730_v60, %v3633_v63  ;;  %v3642_v21 = vpop.xlane.xlu0 %3641  ;;  %v3799_v24 = vsub.f32 %v15394_v7, %v3777_v14 }
 0x941   :  { %12733 = vrcp.f32 %v3642_v21  ;;  %v3665_v5 = vsub.f32 2.0, %v3657_v16 }
 0x942   :  { %v3878_v49 = vmul.f32 %v12726_v34, %v3870_v55  ;;  %v3663_v51 = vsub.f32 2.0, %v3655_v0  ;;  %v3807_v15 = vmul.f32 1.442695, %v3799_v24 }
 0x943   :  { %11968 = vmatpush.xpose.msk.msra.mxu3 %vm1373_vm1, %v14578_v45  ;;  %v3673_v14 = vmul.f32 %v12728_v48, %v3665_v5 }
 0x944   :  { %v3671_v37 = vmul.f32 %v12730_v60, %v3663_v51  ;;  %12735 = vpow2.f32 %v3807_v15  ;;  %v3886_v11 = vmul.f32 %v15380_v52, %v3878_v49 }
 0x945   :  { %v12732_v54 = vpop.eup %12731 }
 0x946   :  { %v3679_v32 = vmul.f32 %v15386_v17, %v3671_v37  ;;  %v3656_v63 = vmul.f32 %v12732_v54, %v3636_v20  ;;  %v3783_v56 = vpop.xlane.xlu2 %3782  ;;  %11946 = vmatmul.msk.f32.gmra.mxu3 %vm1514_vm2, %v3886_v11 }
 0x947   :  { %v12734_v7 = vpop.eup %12733  ;;  %v3801_v34 = vsub.f32 %v15392_v36, %v3783_v56  ;;  %v3786_v19 = vpop.xlane.xlu1 %3785 }
 0x948   :  { %v3664_v55 = vsub.f32 2.0, %v3656_v63  ;;  %v3658_v0 = vmul.f32 %v12734_v7, %v3642_v21  ;;  %v3780_v45 = vpop.xlane.xlu0 %3779  ;;  %11951 = vmatmul.msk.f32.vlgmr.msrb.gmra.mxu2 %vm1514_vm2, %v3679_v32  ;;  %v3802_v60 = vsub.f32 %v15406_v25, %v3786_v19  ;;  %v3681_v21 = vmul.f32 %v15382_v10, %v3673_v14 }
 0x949   :  { %v3811_v52 = vmul.f32 1.442695, %v3801_v34  ;;  %v3800_v16 = vsub.f32 %v15408_v18, %v3780_v45  ;;  %4401 = vmatpush.msrb.mxu2 %v14588_v29 }
 0x94a   :  { %v15447_v17 = vpop.eup %12735  ;;  %v3672_v20 = vmul.f32 %v12732_v54, %v3664_v55  ;;  %v3813_v24 = vmul.f32 1.442695, %v3802_v60  ;;  %v3666_v49 = vsub.f32 2.0, %v3658_v0 }
 0x94b   :  { %12737 = vpow2.f32 %v3811_v52  ;;  %v3809_v36 = vmul.f32 1.442695, %v3800_v16  ;;  %4402 = vmatpush.msrb.mxu2 %v14584_v35  ;;  %v3823_v48 = vsel %vm1514_vm2, %v15447_v17, 0.0 }
 0x94c   :  { %12739 = vpow2.f32 %v3813_v24  ;;  %3824 = vadd.xlane.f32.xlu0 %v3823_v48  ;;  %v3680_v25 = vmul.f32 %v15396_v46, %v3672_v20  ;;  %v3674_v35 = vmul.f32 %v12734_v7, %v3666_v49 }
 0x94d   :  { %12741 = vpow2.f32 %v3809_v36 }
 0x94e   :  { %v3573_v29 = vpop.xlane.xlu2 %3572  ;;  %11953 = vmatmul.msk.f32.vlgmr.msrb.gmra.mxu3 %vm1514_vm2, %v3681_v21 }
 0x94f   :  { %v3595_v18 = vsub.f32 %v15358_v50, %v3573_v29  ;;  %4430 = vmatpush.msrb.mxu3 %v14590_v47  ;;  %v3576_v51 = vpop.xlane.xlu1 %3575 }
 0x950   :  { %v3579_v15 = vpop.xlane.xlu0 %3578  ;;  %11952 = vmatmul.msk.f32.gmra.mxu2 %vm1514_vm2, %v3680_v25  ;;  %v3596_v10 = vsub.f32 %v15374_v1, %v3576_v51 }
 0x951   :  { %v15459_v37 = vpop.eup %12737  ;;  %v3603_v5 = vmul.f32 1.442695, %v3595_v18  ;;  %v3597_v46 = vsub.f32 %v15362_v57, %v3579_v15  ;;  %4431 = vmatpush.msrb.mxu3 %v14586_v23  ;;  %v3682_v23 = vmul.f32 %v15398_v33, %v3674_v35 }
 0x952   :  { %v15463_v11 = vpop.eup %12739  ;;  %v3605_v54 = vmul.f32 1.442695, %v3596_v10  ;;  %v3829_v47 = vsel %vm1514_vm2, %v15459_v37, 0.0 }
 0x953   :  { %v15467_v50 = vpop.eup %12741  ;;  %12743 = vpow2.f32 %v3603_v5  ;;  %v3607_v32 = vmul.f32 1.442695, %v3597_v46  ;;  %3830 = vadd.xlane.f32.xlu1 %v3829_v47  ;;  %v3832_v1 = vsel %vm1514_vm2, %v15463_v11, 0.0 }
 0x954   :  { %12745 = vpow2.f32 %v3605_v54  ;;  %v3826_v57 = vsel %vm1514_vm2, %v15467_v50, 0.0  ;;  %3833 = vadd.xlane.f32.xlu0 %v3832_v1 }
 0x955   :  { %12747 = vpow2.f32 %v3607_v32  ;;  %3827 = vadd.xlane.f32.xlu2 %v3826_v57 }
 0x956   :  { %v3582_v63 = vpop.xlane.xlu2 %3581  ;;  %11954 = vmatmul.msk.f32.gmra.mxu3 %vm1514_vm2, %v3682_v23 }
 0x957   :  { %v3598_v56 = vsub.f32 %v15376_v41, %v3582_v63 }
 0x958   :  { %11965 = vmatmul.msk.f32.vlgmr.msra.gmra.mxu2 %vm1373_vm1, %v19186_v28 }
 0x959   :  { %v15478_v7 = vpop.eup %12743  ;;  %v3609_v34 = vmul.f32 1.442695, %v3598_v56  ;;  %11987 = vmatpush.xpose.msk.msra.mxu2 %vm1373_vm1, %v14196_v39 }
 0x95a   :  { %v15482_v19 = vpop.eup %12745  ;;  %v3619_v33 = vsel %vm1514_vm2, %v15478_v7, 0.0 }
 0x95b   :  { %v15486_v14 = vpop.eup %12747  ;;  %12749 = vpow2.f32 %v3609_v34  ;;  %3620 = vadd.xlane.f32.xlu1 %v3619_v33  ;;  %v3622_v41 = vsel %vm1514_vm2, %v15482_v19, 0.0 }
 0x95c   :  { %v3625_v28 = vsel %vm1514_vm2, %v15486_v14, 0.0  ;;  %3623 = vadd.xlane.f32.xlu0 %v3622_v41 }
 0x95d   :  { %11988 = vmatpush.xpose.msk.msra.mxu2 %vm1373_vm1, %v14161_v30  ;;  %3626 = vadd.xlane.f32.xlu2 %v3625_v28 }
 0x95e   :  { %11969 = vmatmul.msk.f32.vlgmr.msra.gmra.mxu3 %vm1373_vm1, %v19189_v58 }
 0x95f   :  { %11991 = vmatpush.xpose.msk.msra.mxu3 %vm1373_vm1, %v14198_v40 }
 0x960   :  { %11966 = vmatmul.msk.f32.gmra.mxu2 %vm1373_vm1, %v19190_v44 }
 0x961   :  { %v15500_v39 = vpop.eup %12749 }
 0x962   :  { %v3628_v55 = vsel %vm1514_vm2, %v15500_v39, 0.0 }
 0x963   :  { %11992 = vmatpush.xpose.msk.msra.mxu3 %vm1373_vm1, %v14163_v31  ;;  %3629 = vadd.xlane.f32.xlu1 %v3628_v55 }
 0x966   :  { %11970 = vmatmul.msk.f32.gmra.mxu3 %vm1373_vm1, %v19193_v8 }
 0x9ba   :  { %v15508_v30 = vpop.f32.mrf.mxu2 }
 0x9bf   :  { %v3825_v58 = vpop.xlane.xlu0 %3824 }
 0x9c0   :  { %12751 = vrcp.f32 %v3825_v58 }
 0x9c1   :  { %v15510_v40 = vpop.f32.mrf.mxu3 }
 0x9c2   :  { %v15512_v0 = vpop.f32.mrf.mxu2 }
 0x9c6   :  { %v12752_v44 = vpop.eup %12751  ;;  %v3831_v45 = vpop.xlane.xlu1 %3830 }
 0x9c7   :  { %v3855_v60 = vmul.f32 %v12752_v44, %v3825_v58  ;;  %v3834_v52 = vpop.xlane.xlu0 %3833  ;;  %12753 = vrcp.f32 %v3831_v45 }
 0x9c8   :  { %v3828_v16 = vpop.xlane.xlu2 %3827  ;;  %12755 = vrcp.f32 %v3834_v52 }
 0x9c9   :  { %v3863_v31 = vsub.f32 2.0, %v3855_v60  ;;  %12757 = vrcp.f32 %v3828_v16  ;;  %v15514_v20 = vpop.f32.mrf.mxu3 }
 0x9cb   :  { %v3871_v8 = vmul.f32 %v12752_v44, %v3863_v31  ;;  %v15516_v24 = vpop.f32.mrf.mxu2 }
 0x9cd   :  { %v12754_v36 = vpop.eup %12753  ;;  %v3879_v48 = vmul.f32 %v15447_v17, %v3871_v8 }
 0x9ce   :  { %v12756_v21 = vpop.eup %12755  ;;  %v3857_v49 = vmul.f32 %v12754_v36, %v3831_v45  ;;  %v3621_v25 = vpop.xlane.xlu1 %3620 }
 0x9cf   :  { %v12758_v29 = vpop.eup %12757  ;;  %11939 = vmatmul.msk.f32.vlgmr.msra.gmra.mxu0 %vm1514_vm2, %v3879_v48  ;;  %v3624_v18 = vpop.xlane.xlu0 %3623  ;;  %12759 = vrcp.f32 %v3621_v25  ;;  %v3858_v35 = vmul.f32 %v12756_v21, %v3834_v52 }
 0x9d0   :  { %v3856_v51 = vmul.f32 %v12758_v29, %v3828_v16  ;;  %v3865_v15 = vsub.f32 2.0, %v3857_v49  ;;  %v3627_v10 = vpop.xlane.xlu2 %3626  ;;  %11955 = vmatpush.xpose.msk.msra.mxu0 %vm1373_vm1, %v14640_v42  ;;  %12761 = vrcp.f32 %v3624_v18 }
 0x9d1   :  { %12763 = vrcp.f32 %v3627_v10  ;;  %v15522_v5 = vpop.f32.mrf.mxu3  ;;  %v3866_v32 = vsub.f32 2.0, %v3858_v35 }
 0x9d2   :  { %v3864_v17 = vsub.f32 2.0, %v3856_v51  ;;  %v3873_v46 = vmul.f32 %v12754_v36, %v3865_v15 }
 0x9d3   :  { %v15524_v54 = vpop.f32.mrf.mxu2  ;;  %v3874_v33 = vmul.f32 %v12756_v21, %v3866_v32 }
 0x9d4   :  { %v3872_v47 = vmul.f32 %v12758_v29, %v3864_v17  ;;  %v3881_v1 = vmul.f32 %v15459_v37, %v3873_v46  ;;  %11956 = vmatpush.xpose.msk.msra.mxu0 %vm1373_vm1, %v14636_v38 }
 0x9d5   :  { %v12760_v57 = vpop.eup %12759 }
 0x9d6   :  { %v12762_v23 = vpop.eup %12761  ;;  %v3651_v63 = vmul.f32 %v12760_v57, %v3621_v25  ;;  %v3880_v42 = vmul.f32 %v15467_v50, %v3872_v47  ;;  %11941 = vmatmul.msk.f32.vlgmr.msra.gmra.mxu1 %vm1514_vm2, %v3881_v1  ;;  %v3630_v56 = vpop.xlane.xlu1 %3629 }
 0x9d7   :  { %v12764_v34 = vpop.eup %12763  ;;  %11959 = vmatpush.xpose.msk.msra.mxu1 %vm1373_vm1, %v14642_v12  ;;  %12765 = vrcp.f32 %v3630_v56  ;;  %v3652_v38 = vmul.f32 %v12762_v23, %v3624_v18  ;;  %v3882_v12 = vmul.f32 %v15463_v11, %v3874_v33 }
 0x9d8   :  { %v3653_v41 = vmul.f32 %v12764_v34, %v3627_v10  ;;  %v3659_v28 = vsub.f32 2.0, %v3651_v63  ;;  %11940 = vmatmul.msk.f32.gmra.mxu0 %vm1514_vm2, %v3880_v42 }
 0x9d9   :  { %v15534_v37 = vpop.f32.mrf.mxu3  ;;  %v3660_v52 = vsub.f32 2.0, %v3652_v38 }
 0x9da   :  { %v3667_v55 = vmul.f32 %v12760_v57, %v3659_v28  ;;  %v3661_v50 = vsub.f32 2.0, %v3653_v41 }
 0x9db   :  { %v4182_v58 = vpop.f32.mrf.mxu2  ;;  %11960 = vmatpush.xpose.msk.msra.mxu1 %vm1373_vm1, %v14638_v27  ;;  %v3668_v27 = vmul.f32 %v12762_v23, %v3660_v52 }
 0x9dc   :  { %v3675_v44 = vmul.f32 %v15478_v7, %v3667_v55  ;;  %v4223_v45 = vsel %vm1514_vm2, %v4182_v58, -inf  ;;  %v3669_v16 = vmul.f32 %v12764_v34, %v3661_v50 }
 0x9dd   :  { %v12766_v60 = vpop.eup %12765  ;;  %4224 = vmax.xlane.f32.xlu2 %v4223_v45  ;;  %v3676_v49 = vmul.f32 %v15482_v19, %v3668_v27 }
 0x9de   :  { %11942 = vmatmul.msk.f32.gmra.mxu1 %vm1514_vm2, %v3882_v12  ;;  %v3654_v31 = vmul.f32 %v12766_v60, %v3630_v56  ;;  %v3677_v11 = vmul.f32 %v15486_v14, %v3669_v16 }
 0x9e0   :  { %11947 = vmatmul.msk.f32.vlgmr.msrb.gmra.mxu0 %vm1514_vm2, %v3675_v44  ;;  %v3662_v48 = vsub.f32 2.0, %v3654_v31 }
 0x9e1   :  { %4343 = vmatpush.msrb.mxu0 %v14648_v26  ;;  %v4205_v8 = vpop.f32.mrf.mxu3 }
 0x9e2   :  { %v4229_v36 = vsel %vm1514_vm2, %v4205_v8, -inf  ;;  %v3670_v26 = vmul.f32 %v12766_v60, %v3662_v48 }
 0x9e3   :  { %4344 = vmatpush.msrb.mxu0 %v14644_v13  ;;  %v4185_v7 = vpop.f32.mrf.mxu2  ;;  %4230 = vmax.xlane.f32.xlu0 %v4229_v36 }
 0x9e4   :  { %v4226_v21 = vsel %vm1514_vm2, %v4185_v7, -inf  ;;  %v3678_v14 = vmul.f32 %v15500_v39, %v3670_v26 }
 0x9e5   :  { %4227 = vmax.xlane.f32.xlu1 %v4226_v21 }
 0x9e6   :  { %11949 = vmatmul.msk.f32.vlgmr.msrb.gmra.mxu1 %vm1514_vm2, %v3677_v11 }
 0x9e7   :  { %4372 = vmatpush.msrb.mxu1 %v14650_v4 }
 0x9e8   :  { %11948 = vmatmul.msk.f32.gmra.mxu0 %vm1514_vm2, %v3676_v49 }
 0x9e9   :  { %4373 = vmatpush.msrb.mxu1 %v14646_v9  ;;  %v4208_v13 = vpop.f32.mrf.mxu3 }
 0x9ea   :  { %v4232_v25 = vsel %vm1514_vm2, %v4208_v13, -inf }
 0x9eb   :  { %4233 = vmax.xlane.f32.xlu2 %v4232_v25 }
 0x9ee   :  { %11950 = vmatmul.msk.f32.gmra.mxu1 %vm1514_vm2, %v3678_v14 }
 0x9f0   :  { %11957 = vmatmul.msk.f32.vlgmr.msra.gmra.mxu0 %vm1373_vm1, %v19206_v53 }
 0x9f1   :  { %11979 = vmatpush.xpose.msk.msra.mxu0 %vm1373_vm1, %v14276_v2 }
 0x9f5   :  { %11980 = vmatpush.xpose.msk.msra.mxu0 %vm1373_vm1, %v14268_v61 }
 0x9f6   :  { %11961 = vmatmul.msk.f32.vlgmr.msra.gmra.mxu1 %vm1373_vm1, %v19209_v59 }
 0x9f7   :  { %11983 = vmatpush.xpose.msk.msra.mxu1 %vm1373_vm1, %v14278_v3 }
 0x9f8   :  { %11958 = vmatmul.msk.f32.gmra.mxu0 %vm1373_vm1, %v19210_v43 }
 0x9fb   :  { %11984 = vmatpush.xpose.msk.msra.mxu1 %vm1373_vm1, %v14270_v62 }
 0x9fe   :  { %11962 = vmatmul.msk.f32.gmra.mxu1 %vm1373_vm1, %v19213_v6 }
 0xa4c   :  { %v15572_v4 = vpop.f32.mrf.mxu0 }
 0xa50   :  { %v4225_v2 = vpop.xlane.xlu2 %4224 }
 0xa51   :  { %v4239_v9 = vsub.f32 %v4182_v58, %v4225_v2 }
 0xa53   :  { %v4251_v61 = vmul.f32 1.442695, %v4239_v9  ;;  %v15574_v53 = vpop.f32.mrf.mxu1 }
 0xa55   :  { %12767 = vpow2.f32 %v4251_v61  ;;  %v15576_v59 = vpop.f32.mrf.mxu0 }
 0xa56   :  { %v4231_v3 = vpop.xlane.xlu0 %4230 }
 0xa57   :  { %v4241_v19 = vsub.f32 %v4205_v8, %v4231_v3  ;;  %v19225_v3 = vld [vmem:[#allocation14_spill] sm:$0xff] }
 0xa58   :  { %v4228_v39 = vpop.xlane.xlu1 %4227 }
 0xa59   :  { %v4255_v43 = vmul.f32 1.442695, %v4241_v19  ;;  %v4240_v29 = vsub.f32 %v4185_v7, %v4228_v39 }
 0xa5b   :  { %v12768_v18 = vpop.eup %12767  ;;  %12769 = vpow2.f32 %v4255_v43  ;;  %v4253_v62 = vmul.f32 1.442695, %v4240_v29  ;;  %v15578_v51 = vpop.f32.mrf.mxu1  ;;  %v19226_v43 = vld [vmem:[#allocation19_spill] sm:$0xff] }
 0xa5c   :  { %v4271_v6 = vsel %vm1514_vm2, %v12768_v18, 0.0 }
 0xa5d   :  { %12771 = vpow2.f32 %v4253_v62  ;;  %4272 = vadd.xlane.f32.xlu0 %v4271_v6  ;;  %v15581_v35 = vpop.f32.mrf.mxu0 }
 0xa5e   :  { %v4234_v15 = vpop.xlane.xlu2 %4233 }
 0xa5f   :  { %v4242_v10 = vsub.f32 %v4208_v13, %v4234_v15 }
 0xa61   :  { %v12770_v17 = vpop.eup %12769  ;;  %v4257_v46 = vmul.f32 1.442695, %v4242_v10 }
 0xa62   :  { %v4277_v47 = vsel %vm1514_vm2, %v12770_v17, 0.0 }
 0xa63   :  { %v12772_v32 = vpop.eup %12771  ;;  %12773 = vpow2.f32 %v4257_v46  ;;  %4278 = vadd.xlane.f32.xlu1 %v4277_v47  ;;  %v15584_v1 = vpop.f32.mrf.mxu1 }
 0xa64   :  { %v4274_v57 = vsel %vm1514_vm2, %v12772_v32, 0.0 }
 0xa65   :  { %v15587_v23 = vpop.f32.mrf.mxu0  ;;  %4275 = vadd.xlane.f32.xlu2 %v4274_v57 }
 0xa69   :  { %v12774_v63 = vpop.eup %12773 }
 0xa6a   :  { %v4280_v42 = vsel %vm1514_vm2, %v12774_v63, 0.0 }
 0xa6b   :  { %4281 = vadd.xlane.f32.xlu0 %v4280_v42  ;;  %v15590_v56 = vpop.f32.mrf.mxu1  ;;  %v19228_v42 = vld [vmem:[#allocation56_spill] sm:$0xff] }
 0xa6c   :  { %19224 = vst [vmem:[#allocation53_spill] sm:$0xff] %v15590_v56 }
 0xa6d   :  { %v4136_v34 = vpop.f32.mrf.mxu0 }
 0xa6e   :  { %v4211_v33 = vsel %vm1514_vm2, %v4136_v34, -inf }
 0xa6f   :  { %4212 = vmax.xlane.f32.xlu1 %v4211_v33  ;;  %v19229_v33 = vld [vmem:[#allocation26_spill] sm:$0xff] }
 0xa73   :  { %v4159_v41 = vpop.f32.mrf.mxu1 }
 0xa74   :  { %v4217_v28 = vsel %vm1514_vm2, %v4159_v41, -inf }
 0xa75   :  { %v4139_v38 = vpop.f32.mrf.mxu0  ;;  %4218 = vmax.xlane.f32.xlu2 %v4217_v28 }
 0xa76   :  { %v4214_v55 = vsel %vm1514_vm2, %v4139_v38, -inf }
 0xa77   :  { %4215 = vmax.xlane.f32.xlu0 %v4214_v55 }
 0xa7b   :  { %v4162_v58 = vpop.f32.mrf.mxu1 }
 0xa7c   :  { %v4220_v50 = vsel %vm1514_vm2, %v4162_v58, -inf }
 0xa7d   :  { %4221 = vmax.xlane.f32.xlu1 %v4220_v50 }
 0xad0   :  { %v4273_v44 = vpop.xlane.xlu0 %4272 }
 0xad1   :  { %12775 = vrcp.f32 %v4273_v44 }
 0xad6   :  { %v4279_v45 = vpop.xlane.xlu1 %4278 }
 0xad7   :  { %v12776_v12 = vpop.eup %12775  ;;  %12777 = vrcp.f32 %v4279_v45 }
 0xad8   :  { %v4295_v60 = vmul.f32 %v12776_v12, %v4273_v44  ;;  %v4276_v52 = vpop.xlane.xlu2 %4275 }
 0xad9   :  { %12779 = vrcp.f32 %v4276_v52 }
 0xada   :  { %v4303_v16 = vsub.f32 2.0, %v4295_v60  ;;  %v19233_v60 = vld [vmem:[#allocation60_spill] sm:$0xff] }
 0xadc   :  { %v4311_v31 = vmul.f32 %v12776_v12, %v4303_v16  ;;  %v19232_v12 = vld [vmem:[#allocation27_spill] sm:$0xff] }
 0xadd   :  { %v12778_v8 = vpop.eup %12777 }
 0xade   :  { %v4319_v27 = vmul.f32 %v12768_v18, %v4311_v31  ;;  %v4297_v36 = vmul.f32 %v12778_v8, %v4279_v45  ;;  %v4282_v7 = vpop.xlane.xlu0 %4281  ;;  %v19231_v45 = vld [vmem:[#allocation57_spill] sm:$0xff] }
 0xadf   :  { %v12780_v11 = vpop.eup %12779  ;;  %12781 = vrcp.f32 %v4282_v7  ;;  %v19235_v31 = vld [vmem:[#allocation61_spill] sm:$0xff] }
 0xae0   :  { %v4296_v48 = vmul.f32 %v12780_v11, %v4276_v52  ;;  %v4305_v21 = vsub.f32 2.0, %v4297_v36  ;;  %11975 = vmatmul.msk.f32.vlgmr.msrb.gmra.mxu2 %vm1514_vm2, %v4319_v27  ;;  %v19237_v27 = vld [vmem:[#allocation5_spill] sm:$0xff]  ;;  %v19238_v36 = vld [vmem:[#allocation8_spill] sm:$0xff] }
 0xae1   :  { %12003 = vmatpush.xpose.msk.msrb.mxu2 %vm1373_vm1, %v19182_v22 }
 0xae2   :  { %v4304_v49 = vsub.f32 2.0, %v4296_v48  ;;  %v4313_v26 = vmul.f32 %v12778_v8, %v4305_v21  ;;  %v4213_v13 = vpop.xlane.xlu1 %4212  ;;  %v19236_v8 = vld [vmem:[#allocation7_spill] sm:$0xff] }
 0xae3   :  { %v4235_v25 = vsub.f32 %v4136_v34, %v4213_v13 }
 0xae4   :  { %v4312_v14 = vmul.f32 %v12780_v11, %v4304_v49  ;;  %v4321_v2 = vmul.f32 %v12770_v17, %v4313_v26  ;;  %v19227_v17 = vld [vmem:[#allocation15_spill] sm:$0xff] }
 0xae5   :  { %v12782_v9 = vpop.eup %12781  ;;  %v4243_v61 = vmul.f32 1.442695, %v4235_v25  ;;  %12004 = vmatpush.xpose.msk.msrb.mxu2 %vm1373_vm1, %v19225_v3 }
 0xae6   :  { %v4298_v19 = vmul.f32 %v12782_v9, %v4282_v7  ;;  %v4320_v39 = vmul.f32 %v12772_v32, %v4312_v14  ;;  %11977 = vmatmul.msk.f32.vlgmr.msrb.gmra.mxu3 %vm1514_vm2, %v4321_v2  ;;  %v19239_v7 = vld [vmem:[#allocation6_spill] sm:$0xff] }
 0xae7   :  { %12783 = vpow2.f32 %v4243_v61  ;;  %12007 = vmatpush.xpose.msk.msrb.mxu3 %vm1373_vm1, %v19226_v43 }
 0xae8   :  { %v4306_v22 = vsub.f32 2.0, %v4298_v19  ;;  %11976 = vmatmul.msk.f32.gmra.mxu2 %vm1514_vm2, %v4320_v39  ;;  %v4219_v29 = vpop.xlane.xlu2 %4218 }
 0xae9   :  { %v4237_v18 = vsub.f32 %v4159_v41, %v4219_v29 }
 0xaea   :  { %v4314_v62 = vmul.f32 %v12782_v9, %v4306_v22  ;;  %v4216_v6 = vpop.xlane.xlu0 %4215 }
 0xaeb   :  { %v4236_v15 = vsub.f32 %v4139_v38, %v4216_v6  ;;  %v4247_v10 = vmul.f32 1.442695, %v4237_v18  ;;  %12008 = vmatpush.xpose.msk.msrb.mxu3 %vm1373_vm1, %v19227_v17  ;;  %v19230_v38 = vld [vmem:[#allocation22_spill] sm:$0xff] }
 0xaec   :  { %v4322_v46 = vmul.f32 %v12774_v63, %v4314_v62  ;;  %v19240_v62 = vld [vmem:[#allocation36_spill] sm:$0xff] }
 0xaed   :  { %v12784_v47 = vpop.eup %12783  ;;  %v4245_v32 = vmul.f32 1.442695, %v4236_v15  ;;  %12785 = vpow2.f32 %v4247_v10 }
 0xaee   :  { %v4259_v57 = vsel %vm1514_vm2, %v12784_v47, 0.0  ;;  %11978 = vmatmul.msk.f32.gmra.mxu3 %vm1514_vm2, %v4322_v46 }
 0xaef   :  { %12787 = vpow2.f32 %v4245_v32  ;;  %4260 = vadd.xlane.f32.xlu2 %v4259_v57  ;;  %v19241_v32 = vld [vmem:[#allocation32_spill] sm:$0xff] }
 0xaf0   :  { %11989 = vmatmul.msk.f32.vlgmr.msra.gmra.mxu2 %vm1373_vm1, %v19228_v42  ;;  %v4222_v34 = vpop.xlane.xlu1 %4221 }
 0xaf1   :  { %4957 = vmatpush.msra.mxu2 %v19229_v33  ;;  %v4238_v41 = vsub.f32 %v4162_v58, %v4222_v34  ;;  %v19234_v58 = vld [vmem:[#allocation23_spill] sm:$0xff]  ;;  %v19242_v33 = vld [vmem:[#allocation37_spill] sm:$0xff] }
 0xaf3   :  { %v12786_v28 = vpop.eup %12785  ;;  %4958 = vmatpush.msra.mxu2 %v19230_v38  ;;  %v4249_v63 = vmul.f32 1.442695, %v4238_v41 }
 0xaf4   :  { %v4265_v55 = vsel %vm1514_vm2, %v12786_v28, 0.0 }
 0xaf5   :  { %v12788_v50 = vpop.eup %12787  ;;  %12789 = vpow2.f32 %v4249_v63  ;;  %4266 = vadd.xlane.f32.xlu0 %v4265_v55  ;;  %v19243_v55 = vld [vmem:[#allocation33_spill] sm:$0xff] }
 0xaf6   :  { %v4262_v44 = vsel %vm1514_vm2, %v12788_v50, 0.0  ;;  %11993 = vmatmul.msk.f32.vlgmr.msra.gmra.mxu3 %vm1373_vm1, %v19231_v45 }
 0xaf7   :  { %4263 = vadd.xlane.f32.xlu1 %v4262_v44  ;;  %4986 = vmatpush.msra.mxu3 %v19232_v12  ;;  %v19244_v12 = vld [vmem:[#allocation68_spill] sm:$0xff] }
 0xaf8   :  { %11990 = vmatmul.msk.f32.gmra.mxu2 %vm1373_vm1, %v19233_v60 }
 0xaf9   :  { %4987 = vmatpush.msra.mxu3 %v19234_v58  ;;  %v19245_v58 = vld [vmem:[#allocation44_spill] sm:$0xff] }
 0xafb   :  { %v12790_v52 = vpop.eup %12789 }
 0xafc   :  { %v4268_v16 = vsel %vm1514_vm2, %v12790_v52, 0.0 }
 0xafd   :  { %4269 = vadd.xlane.f32.xlu2 %v4268_v16 }
 0xafe   :  { %11994 = vmatmul.msk.f32.gmra.mxu3 %vm1373_vm1, %v19235_v31 }
 0xb00   :  { %12005 = vmatmul.msk.f32.vlgmr.msrb.gmra.mxu2 %vm1373_vm1, %v19228_v42 }
 0xb01   :  { %5073 = vmatpush.msrb.mxu2 %v19236_v8 }
 0xb03   :  { %5074 = vmatpush.msrb.mxu2 %v19237_v27  ;;  %v19246_v27 = vld [vmem:[#allocation40_spill] sm:$0xff] }
 0xb06   :  { %12009 = vmatmul.msk.f32.vlgmr.msrb.gmra.mxu3 %vm1373_vm1, %v19231_v45 }
 0xb07   :  { %5102 = vmatpush.msrb.mxu3 %v19238_v36  ;;  %v19247_v36 = vld [vmem:[#allocation69_spill] sm:$0xff] }
 0xb08   :  { %12006 = vmatmul.msk.f32.gmra.mxu2 %vm1373_vm1, %v19233_v60 }
 0xb09   :  { %5103 = vmatpush.msrb.mxu3 %v19239_v7  ;;  %v19248_v7 = vld [vmem:[#allocation45_spill] sm:$0xff] }
 0xb0e   :  { %12010 = vmatmul.msk.f32.gmra.mxu3 %vm1373_vm1, %v19235_v31 }
 0xb62   :  { %v4261_v11 = vpop.xlane.xlu2 %4260 }
 0xb63   :  { %12791 = vrcp.f32 %v4261_v11  ;;  %v15636_v48 = vpop.f32.mrf.mxu2 }
 0xb68   :  { %v4267_v21 = vpop.xlane.xlu0 %4266 }
 0xb69   :  { %v12792_v49 = vpop.eup %12791  ;;  %12793 = vrcp.f32 %v4267_v21  ;;  %v15638_v26 = vpop.f32.mrf.mxu3 }
 0xb6a   :  { %v4291_v13 = vmul.f32 %v12792_v49, %v4261_v11  ;;  %v4264_v25 = vpop.xlane.xlu1 %4263  ;;  %v19249_v11 = vld [vmem:[#allocation70_spill] sm:$0xff] }
 0xb6b   :  { %12795 = vrcp.f32 %v4264_v25  ;;  %v15640_v14 = vpop.f32.mrf.mxu2 }
 0xb6c   :  { %v4299_v2 = vsub.f32 2.0, %v4291_v13  ;;  %v19250_v13 = vld [vmem:[#allocation41_spill] sm:$0xff] }
 0xb6e   :  { %v4307_v9 = vmul.f32 %v12792_v49, %v4299_v2  ;;  %v19251_v2 = vld [vmem:[#allocation71_spill] sm:$0xff] }
 0xb6f   :  { %v12794_v61 = vpop.eup %12793 }
 0xb70   :  { %v4315_v3 = vmul.f32 %v12784_v47, %v4307_v9  ;;  %v4293_v19 = vmul.f32 %v12794_v61, %v4267_v21  ;;  %v4270_v39 = vpop.xlane.xlu2 %4269 }
 0xb71   :  { %v12796_v43 = vpop.eup %12795  ;;  %12797 = vrcp.f32 %v4270_v39  ;;  %v15642_v22 = vpop.f32.mrf.mxu3 }
 0xb72   :  { %v4301_v29 = vsub.f32 2.0, %v4293_v19  ;;  %v4292_v18 = vmul.f32 %v12796_v43, %v4264_v25  ;;  %11971 = vmatmul.msk.f32.vlgmr.msrb.gmra.mxu0 %vm1514_vm2, %v4315_v3  ;;  %v19252_v19 = vld [vmem:[#allocation20_spill] sm:$0xff] }
 0xb73   :  { %11995 = vmatpush.xpose.msk.msrb.mxu0 %vm1373_vm1, %v19240_v62  ;;  %v15647_v6 = vpop.f32.mrf.mxu2  ;;  %v19255_v62 = vld [vmem:[#allocation17_spill] sm:$0xff] }
 0xb74   :  { %v4309_v15 = vmul.f32 %v12794_v61, %v4301_v29  ;;  %v4300_v10 = vsub.f32 2.0, %v4292_v18  ;;  %v4575_v61 = vsel %vm1514_vm2, %v15647_v6, -inf  ;;  %v19254_v29 = vld [vmem:[#allocation21_spill] sm:$0xff] }
 0xb76   :  { %v4317_v17 = vmul.f32 %v12786_v28, %v4309_v15  ;;  %v4308_v46 = vmul.f32 %v12796_v43, %v4300_v10  ;;  %v19253_v43 = vld [vmem:[#allocation16_spill] sm:$0xff] }
 0xb77   :  { %v12798_v47 = vpop.eup %12797  ;;  %11996 = vmatpush.xpose.msk.msrb.mxu0 %vm1373_vm1, %v19241_v32 }
 0xb78   :  { %v4294_v57 = vmul.f32 %v12798_v47, %v4270_v39  ;;  %v4316_v34 = vmul.f32 %v12788_v50, %v4308_v46  ;;  %11973 = vmatmul.msk.f32.vlgmr.msrb.gmra.mxu1 %vm1514_vm2, %v4317_v17 }
 0xb79   :  { %11999 = vmatpush.xpose.msk.msrb.mxu1 %vm1373_vm1, %v19242_v33  ;;  %v15654_v41 = vpop.f32.mrf.mxu3 }
 0xb7a   :  { %v4302_v38 = vsub.f32 2.0, %v4294_v57  ;;  %11972 = vmatmul.msk.f32.gmra.mxu0 %vm1514_vm2, %v4316_v34  ;;  %v4581_v39 = vsel %vm1514_vm2, %v15654_v41, -inf }
 0xb7b   :  { %v15657_v63 = vpop.f32.mrf.mxu2 }
 0xb7c   :  { %v4310_v28 = vmul.f32 %v12798_v47, %v4302_v38  ;;  %v4578_v15 = vsel %vm1514_vm2, %v15657_v63, -inf }
 0xb7d   :  { %12000 = vmatpush.xpose.msk.msrb.mxu1 %vm1373_vm1, %v19243_v55 }
 0xb7e   :  { %v4318_v44 = vmul.f32 %v12790_v52, %v4310_v28 }
 0xb80   :  { %11974 = vmatmul.msk.f32.gmra.mxu1 %vm1514_vm2, %v4318_v44 }
 0xb81   :  { %v15662_v50 = vpop.f32.mrf.mxu3 }
 0xb82   :  { %11981 = vmatmul.msk.f32.vlgmr.msra.gmra.mxu0 %vm1373_vm1, %v19244_v12  ;;  %v4584_v18 = vsel %vm1514_vm2, %v15662_v50, -inf }
 0xb83   :  { %4899 = vmatpush.msra.mxu0 %v19245_v58  ;;  %v4738_v16 = vpop.f32.mrf.mxu2 }
 0xb84   :  { %v4779_v8 = vsel %vm1514_vm2, %v4738_v16, -inf }
 0xb85   :  { %4900 = vmatpush.msra.mxu0 %v19246_v27  ;;  %4780 = vmax.xlane.f32.xlu0 %v4779_v8 }
 0xb88   :  { %11985 = vmatmul.msk.f32.vlgmr.msra.gmra.mxu1 %vm1373_vm1, %v19247_v36 }
 0xb89   :  { %4928 = vmatpush.msra.mxu1 %v19248_v7  ;;  %v4761_v52 = vpop.f32.mrf.mxu3 }
 0xb8a   :  { %11982 = vmatmul.msk.f32.gmra.mxu0 %vm1373_vm1, %v19249_v11  ;;  %v4785_v21 = vsel %vm1514_vm2, %v4761_v52, -inf }
 0xb8b   :  { %v4741_v49 = vpop.f32.mrf.mxu2  ;;  %4929 = vmatpush.msra.mxu1 %v19250_v13  ;;  %4786 = vmax.xlane.f32.xlu1 %v4785_v21 }
 0xb8c   :  { %v4782_v25 = vsel %vm1514_vm2, %v4741_v49, -inf }
 0xb8d   :  { %4783 = vmax.xlane.f32.xlu2 %v4782_v25 }
 0xb90   :  { %11986 = vmatmul.msk.f32.gmra.mxu1 %vm1373_vm1, %v19251_v2 }
 0xb91   :  { %v4764_v9 = vpop.f32.mrf.mxu3 }
 0xb92   :  { %11997 = vmatmul.msk.f32.vlgmr.msrb.gmra.mxu0 %vm1373_vm1, %v19244_v12  ;;  %v4788_v3 = vsel %vm1514_vm2, %v4764_v9, -inf }
 0xb93   :  { %5015 = vmatpush.msrb.mxu0 %v19252_v19  ;;  %4576 = vmax.xlane.f32.xlu1 %v4575_v61 }
 0xb94   :  { %4789 = vmax.xlane.f32.xlu0 %v4788_v3 }
 0xb95   :  { %5016 = vmatpush.msrb.mxu0 %v19253_v43  ;;  %4582 = vmax.xlane.f32.xlu2 %v4581_v39 }
 0xb98   :  { %12001 = vmatmul.msk.f32.vlgmr.msrb.gmra.mxu1 %vm1373_vm1, %v19247_v36 }
 0xb99   :  { %5044 = vmatpush.msrb.mxu1 %v19254_v29 }
 0xb9a   :  { %11998 = vmatmul.msk.f32.gmra.mxu0 %vm1373_vm1, %v19249_v11 }
 0xb9b   :  { %5045 = vmatpush.msrb.mxu1 %v19255_v62  ;;  %4585 = vmax.xlane.f32.xlu1 %v4584_v18 }
 0xb9c   :  { %4579 = vmax.xlane.f32.xlu0 %v4578_v15 }
 0xba0   :  { %12002 = vmatmul.msk.f32.gmra.mxu1 %vm1373_vm1, %v19251_v2 }
 0xbef   :  { %v15700_v10 = vpop.f32.mrf.mxu0 }
 0xbf5   :  { %v15702_v17 = vpop.f32.mrf.mxu1 }
 0xbf7   :  { %v15704_v46 = vpop.f32.mrf.mxu0 }
 0xbf8   :  { %19256 = vst [vmem:[#allocation62_spill] sm:$0xff] %v15704_v46  ;;  %v4781_v47 = vpop.xlane.xlu0 %4780 }
 0xbf9   :  { %v4795_v32 = vsub.f32 %v4738_v16, %v4781_v47 }
 0xbfb   :  { %v4807_v57 = vmul.f32 1.442695, %v4795_v32 }
 0xbfd   :  { %12799 = vpow2.f32 %v4807_v57  ;;  %v15706_v34 = vpop.f32.mrf.mxu1 }
 0xbfe   :  { %19257 = vst [vmem:[#allocation63_spill] sm:$0xff] %v15706_v34  ;;  %v4787_v33 = vpop.xlane.xlu1 %4786  ;;  %v19258_v34 = vld [vmem:[#allocation42_spill] sm:$0xff] }
 0xbff   :  { %v4797_v38 = vsub.f32 %v4761_v52, %v4787_v33  ;;  %v15708_v58 = vpop.f32.mrf.mxu0 }
 0xc00   :  { %v4784_v28 = vpop.xlane.xlu2 %4783 }
 0xc01   :  { %v4796_v55 = vsub.f32 %v4741_v49, %v4784_v28  ;;  %v4811_v44 = vmul.f32 1.442695, %v4797_v38 }
 0xc03   :  { %v15710_v8 = vpop.eup %12799  ;;  %v4809_v27 = vmul.f32 1.442695, %v4796_v55  ;;  %12801 = vpow2.f32 %v4811_v44 }
 0xc04   :  { %v4827_v7 = vsel %vm1514_vm2, %v15710_v8, 0.0 }
 0xc05   :  { %12803 = vpow2.f32 %v4809_v27  ;;  %4828 = vadd.xlane.f32.xlu2 %v4827_v7  ;;  %v15714_v16 = vpop.f32.mrf.mxu1 }
 0xc06   :  { %v4577_v21 = vpop.xlane.xlu1 %4576 }
 0xc07   :  { %v4790_v13 = vpop.xlane.xlu0 %4789  ;;  %v4591_v52 = vsub.f32 %v15647_v6, %v4577_v21  ;;  %v15724_v62 = vpop.f32.mrf.mxu0 }
 0xc08   :  { %v4798_v25 = vsub.f32 %v4764_v9, %v4790_v13  ;;  %v4583_v49 = vpop.xlane.xlu2 %4582 }
 0xc09   :  { %v15717_v61 = vpop.eup %12801  ;;  %v4593_v3 = vsub.f32 %v15654_v41, %v4583_v49  ;;  %v4603_v19 = vmul.f32 1.442695, %v4591_v52 }
 0xc0a   :  { %v4813_v39 = vmul.f32 1.442695, %v4798_v25  ;;  %v4833_v43 = vsel %vm1514_vm2, %v15717_v61, 0.0 }
 0xc0b   :  { %v15722_v29 = vpop.eup %12803  ;;  %v4607_v18 = vmul.f32 1.442695, %v4593_v3  ;;  %12805 = vpow2.f32 %v4603_v19  ;;  %4834 = vadd.xlane.f32.xlu0 %v4833_v43 }
 0xc0c   :  { %12807 = vpow2.f32 %v4813_v39  ;;  %v4830_v6 = vsel %vm1514_vm2, %v15722_v29, 0.0 }
 0xc0d   :  { %12809 = vpow2.f32 %v4607_v18  ;;  %4831 = vadd.xlane.f32.xlu1 %v4830_v6  ;;  %v15728_v9 = vpop.f32.mrf.mxu1  ;;  %v4569_v6 = vsel %vm1514_vm2, %v15714_v16, -inf }
 0xc0e   :  { %v4586_v15 = vpop.xlane.xlu1 %4585 }
 0xc0f   :  { %v4580_v41 = vpop.xlane.xlu0 %4579  ;;  %v4594_v38 = vsub.f32 %v15662_v50, %v4586_v15  ;;  %v15744_v27 = vpop.f32.mrf.mxu0  ;;  %v4566_v15 = vsel %vm1514_vm2, %v15724_v62, -inf }
 0xc10   :  { %v4592_v47 = vsub.f32 %v15657_v63, %v4580_v41  ;;  %v4767_v13 = vsel %vm1514_vm2, %v15744_v27, -inf  ;;  %v4563_v41 = vsel %vm1514_vm2, %v15708_v58, -inf }
 0xc11   :  { %v15731_v32 = vpop.eup %12805  ;;  %v4609_v7 = vmul.f32 1.442695, %v4594_v38 }
 0xc12   :  { %v15733_v57 = vpop.eup %12807  ;;  %v4605_v33 = vmul.f32 1.442695, %v4592_v47  ;;  %v4623_v28 = vsel %vm1514_vm2, %v15731_v32, 0.0  ;;  %v4572_v47 = vsel %vm1514_vm2, %v15728_v9, -inf }
 0xc13   :  { %v15738_v55 = vpop.eup %12809  ;;  %v4836_v44 = vsel %vm1514_vm2, %v15733_v57, 0.0  ;;  %4624 = vadd.xlane.f32.xlu0 %v4623_v28 }
 0xc14   :  { %12811 = vpow2.f32 %v4605_v33  ;;  %4837 = vadd.xlane.f32.xlu2 %v4836_v44  ;;  %v4629_v63 = vsel %vm1514_vm2, %v15738_v55, 0.0 }
 0xc15   :  { %4630 = vadd.xlane.f32.xlu1 %v4629_v63  ;;  %v15746_v21 = vpop.f32.mrf.mxu1  ;;  %12813 = vpow2.f32 %v4609_v7 }
 0xc16   :  { %v4773_v25 = vsel %vm1514_vm2, %v15746_v21, -inf }
 0xc17   :  { %v15758_v3 = vpop.f32.mrf.mxu0 }
 0xc18   :  { %v4770_v39 = vsel %vm1514_vm2, %v15758_v3, -inf }
 0xc1a   :  { %v15748_v50 = vpop.eup %12811 }
 0xc1b   :  { %v4626_v52 = vsel %vm1514_vm2, %v15748_v50, 0.0  ;;  %v15756_v49 = vpop.eup %12813 }
 0xc1c   :  { %4768 = vmax.xlane.f32.xlu2 %v4767_v13  ;;  %4627 = vadd.xlane.f32.xlu0 %v4626_v52  ;;  %v4632_v43 = vsel %vm1514_vm2, %v15756_v49, 0.0 }
 0xc1d   :  { %4774 = vmax.xlane.f32.xlu1 %v4773_v25  ;;  %v15760_v19 = vpop.f32.mrf.mxu1 }
 0xc1e   :  { %v4776_v18 = vsel %vm1514_vm2, %v15760_v19, -inf }
 0xc24   :  { %4771 = vmax.xlane.f32.xlu0 %v4770_v39  ;;  %4633 = vadd.xlane.f32.xlu2 %v4632_v43 }
 0xc25   :  { %4777 = vmax.xlane.f32.xlu1 %v4776_v18 }
 0xc2c   :  { %4570 = vmax.xlane.f32.xlu0 %v4569_v6  ;;  %4564 = vmax.xlane.f32.xlu2 %v4563_v41 }
 0xc2d   :  { %4567 = vmax.xlane.f32.xlu1 %v4566_v15 }
 0xc34   :  { %4573 = vmax.xlane.f32.xlu2 %v4572_v47 }
 0xc78   :  { %v4829_v33 = vpop.xlane.xlu2 %4828 }
 0xc79   :  { %12815 = vrcp.f32 %v4829_v33 }
 0xc7e   :  { %v4835_v38 = vpop.xlane.xlu0 %4834 }
 0xc7f   :  { %v12816_v28 = vpop.eup %12815  ;;  %12817 = vrcp.f32 %v4835_v38 }
 0xc80   :  { %v4851_v44 = vmul.f32 %v12816_v28, %v4829_v33  ;;  %v4832_v63 = vpop.xlane.xlu1 %4831 }
 0xc81   :  { %12819 = vrcp.f32 %v4832_v63 }
 0xc82   :  { %v4859_v7 = vsub.f32 2.0, %v4851_v44 }
 0xc84   :  { %v4867_v13 = vmul.f32 %v12816_v28, %v4859_v7  ;;  %v19259_v7 = vld [vmem:[#allocation38_spill] sm:$0xff] }
 0xc85   :  { %v12818_v52 = vpop.eup %12817 }
 0xc86   :  { %v4875_v25 = vmul.f32 %v15710_v8, %v4867_v13  ;;  %v4853_v39 = vmul.f32 %v12818_v52, %v4835_v38  ;;  %v4625_v43 = vpop.xlane.xlu0 %4624 }
 0xc87   :  { %v12820_v18 = vpop.eup %12819  ;;  %v4838_v6 = vpop.xlane.xlu2 %4837  ;;  %12821 = vrcp.f32 %v4625_v43 }
 0xc88   :  { %v4861_v41 = vsub.f32 2.0, %v4853_v39  ;;  %v4852_v15 = vmul.f32 %v12820_v18, %v4832_v63  ;;  %12015 = vmatmul.msk.f32.vlgmr.msra.gmra.mxu2 %vm1514_vm2, %v4875_v25  ;;  %12823 = vrcp.f32 %v4838_v6  ;;  %v4631_v47 = vpop.xlane.xlu1 %4630 }
 0xc89   :  { %12035 = vmatpush.xpose.msk.msra.mxu2 %vm1373_vm1, %v19258_v34  ;;  %12825 = vrcp.f32 %v4631_v47  ;;  %v19260_v34 = vld [vmem:[#allocation43_spill] sm:$0xff] }
 0xc8a   :  { %v4869_v33 = vmul.f32 %v12818_v52, %v4861_v41  ;;  %v4860_v28 = vsub.f32 2.0, %v4852_v15 }
 0xc8c   :  { %v4877_v44 = vmul.f32 %v15717_v61, %v4869_v33  ;;  %v4868_v8 = vmul.f32 %v12820_v18, %v4860_v28 }
 0xc8d   :  { %v12822_v38 = vpop.eup %12821  ;;  %12036 = vmatpush.xpose.msk.msra.mxu2 %vm1373_vm1, %v19259_v7 }
 0xc8e   :  { %v12824_v13 = vpop.eup %12823  ;;  %v4647_v39 = vmul.f32 %v12822_v38, %v4625_v43  ;;  %12017 = vmatmul.msk.f32.vlgmr.msra.gmra.mxu3 %vm1514_vm2, %v4877_v44  ;;  %v4876_v63 = vmul.f32 %v15722_v29, %v4868_v8  ;;  %v19261_v8 = vld [vmem:[#allocation39_spill] sm:$0xff] }
 0xc8f   :  { %v12826_v25 = vpop.eup %12825  ;;  %v4854_v46 = vmul.f32 %v12824_v13, %v4838_v6  ;;  %v4769_v56 = vpop.xlane.xlu2 %4768  ;;  %12039 = vmatpush.xpose.msk.msra.mxu3 %vm1373_vm1, %v19260_v34 }
 0xc90   :  { %v4628_v52 = vpop.xlane.xlu0 %4627  ;;  %v4655_v41 = vsub.f32 2.0, %v4647_v39  ;;  %v4791_v61 = vsub.f32 %v15744_v27, %v4769_v56  ;;  %12016 = vmatmul.msk.f32.gmra.mxu2 %vm1514_vm2, %v4876_v63  ;;  %v4775_v18 = vpop.xlane.xlu1 %4774  ;;  %v4649_v43 = vmul.f32 %v12826_v25, %v4631_v47 }
 0xc91   :  { %12827 = vrcp.f32 %v4628_v52  ;;  %v4862_v15 = vsub.f32 2.0, %v4854_v46  ;;  %v4793_v33 = vsub.f32 %v15746_v21, %v4775_v18 }
 0xc92   :  { %v4663_v28 = vmul.f32 %v12822_v38, %v4655_v41  ;;  %v4799_v29 = vmul.f32 1.442695, %v4791_v61  ;;  %v4657_v39 = vsub.f32 2.0, %v4649_v43  ;;  %v19263_v43 = vld [vmem:[#allocation46_spill] sm:$0xff] }
 0xc93   :  { %v4870_v44 = vmul.f32 %v12824_v13, %v4862_v15  ;;  %v4803_v6 = vmul.f32 1.442695, %v4793_v33  ;;  %12040 = vmatpush.xpose.msk.msra.mxu3 %vm1373_vm1, %v19261_v8 }
 0xc94   :  { %v4671_v7 = vmul.f32 %v15731_v32, %v4663_v28  ;;  %12829 = vpow2.f32 %v4799_v29  ;;  %v4665_v13 = vmul.f32 %v12826_v25, %v4657_v39  ;;  %v19262_v32 = vld [vmem:[#allocation50_spill] sm:$0xff]  ;;  %v19264_v39 = vld [vmem:[#allocation51_spill] sm:$0xff] }
 0xc95   :  { %12831 = vpow2.f32 %v4803_v6  ;;  %v4878_v56 = vmul.f32 %v15733_v57, %v4870_v44 }
 0xc96   :  { %v4673_v33 = vmul.f32 %v15738_v55, %v4665_v13 }
 0xc97   :  { %v12828_v27 = vpop.eup %12827  ;;  %12018 = vmatmul.msk.f32.gmra.mxu3 %vm1514_vm2, %v4878_v56  ;;  %v4634_v21 = vpop.xlane.xlu2 %4633 }
 0xc98   :  { %v4648_v63 = vmul.f32 %v12828_v27, %v4628_v52  ;;  %v4772_v46 = vpop.xlane.xlu0 %4771  ;;  %12833 = vrcp.f32 %v4634_v21  ;;  %12023 = vmatmul.msk.f32.vlgmr.msrb.gmra.mxu2 %vm1514_vm2, %v4671_v7  ;;  %v4778_v38 = vpop.xlane.xlu1 %4777 }
 0xc99   :  { %v4792_v47 = vsub.f32 %v15758_v3, %v4772_v46  ;;  %5393 = vmatpush.msrb.mxu2 %v19262_v32  ;;  %v4794_v41 = vsub.f32 %v15760_v19, %v4778_v38 }
 0xc9a   :  { %v4656_v34 = vsub.f32 2.0, %v4648_v63  ;;  %v15799_v61 = vpop.eup %12829 }
 0xc9b   :  { %v4801_v57 = vmul.f32 1.442695, %v4792_v47  ;;  %v15801_v52 = vpop.eup %12831  ;;  %v4805_v15 = vmul.f32 1.442695, %v4794_v41  ;;  %5394 = vmatpush.msrb.mxu2 %v19263_v43  ;;  %v4815_v3 = vsel %vm1514_vm2, %v15799_v61, 0.0 }
 0xc9c   :  { %v4664_v18 = vmul.f32 %v12828_v27, %v4656_v34  ;;  %4816 = vadd.xlane.f32.xlu0 %v4815_v3  ;;  %v4821_v25 = vsel %vm1514_vm2, %v15801_v52, 0.0 }
 0xc9d   :  { %12835 = vpow2.f32 %v4801_v57  ;;  %4822 = vadd.xlane.f32.xlu1 %v4821_v25 }
 0xc9e   :  { %12837 = vpow2.f32 %v4805_v15  ;;  %v4672_v19 = vmul.f32 %v15748_v50, %v4664_v18  ;;  %v12834_v28 = vpop.eup %12833 }
 0xc9f   :  { %v4650_v29 = vmul.f32 %v12834_v28, %v4634_v21  ;;  %v4565_v6 = vpop.xlane.xlu2 %4564  ;;  %12025 = vmatmul.msk.f32.vlgmr.msrb.gmra.mxu3 %vm1514_vm2, %v4673_v33  ;;  %v19265_v21 = vld [vmem:[#allocation47_spill] sm:$0xff] }
 0xca0   :  { %v4571_v44 = vpop.xlane.xlu0 %4570  ;;  %v4587_v7 = vsub.f32 %v15708_v58, %v4565_v6  ;;  %12024 = vmatmul.msk.f32.gmra.mxu2 %vm1514_vm2, %v4672_v19  ;;  %5422 = vmatpush.msrb.mxu3 %v19264_v39  ;;  %v4568_v56 = vpop.xlane.xlu1 %4567 }
 0xca1   :  { %v4589_v8 = vsub.f32 %v15714_v16, %v4571_v44  ;;  %v4658_v55 = vsub.f32 2.0, %v4650_v29  ;;  %v4588_v27 = vsub.f32 %v15724_v62, %v4568_v56 }
 0xca2   :  { %v4595_v46 = vmul.f32 1.442695, %v4587_v7  ;;  %5423 = vmatpush.msrb.mxu3 %v19265_v21 }
 0xca3   :  { %v15816_v63 = vpop.eup %12835  ;;  %v4599_v50 = vmul.f32 1.442695, %v4589_v8  ;;  %v4666_v38 = vmul.f32 %v12834_v28, %v4658_v55  ;;  %v4597_v16 = vmul.f32 1.442695, %v4588_v27 }
 0xca4   :  { %v15819_v47 = vpop.eup %12837  ;;  %v4818_v58 = vsel %vm1514_vm2, %v15816_v63, 0.0 }
 0xca5   :  { %12839 = vpow2.f32 %v4599_v50  ;;  %4819 = vadd.xlane.f32.xlu2 %v4818_v58  ;;  %v4824_v13 = vsel %vm1514_vm2, %v15819_v47, 0.0  ;;  %v4674_v62 = vmul.f32 %v15756_v49, %v4666_v38 }
 0xca6   :  { %12841 = vpow2.f32 %v4595_v46  ;;  %4825 = vadd.xlane.f32.xlu0 %v4824_v13 }
 0xca7   :  { %12843 = vpow2.f32 %v4597_v16  ;;  %v4574_v34 = vpop.xlane.xlu2 %4573  ;;  %12026 = vmatmul.msk.f32.gmra.mxu3 %vm1514_vm2, %v4674_v62 }
 0xca8   :  { %v4590_v32 = vsub.f32 %v15728_v9, %v4574_v34  ;;  %12037 = vmatmul.msk.f32.vlgmr.msra.gmra.mxu2 %vm1373_vm1, %v19228_v42  ;;  %v19266_v34 = vld [vmem:[#allocation58_spill] sm:$0xff] }
 0xcaa   :  { %v4601_v57 = vmul.f32 1.442695, %v4590_v32 }
 0xcab   :  { %v15830_v41 = vpop.eup %12839 }
 0xcac   :  { %v15832_v18 = vpop.eup %12841  ;;  %v4617_v15 = vsel %vm1514_vm2, %v15830_v41, 0.0  ;;  %12845 = vpow2.f32 %v4601_v57 }
 0xcad   :  { %v15836_v43 = vpop.eup %12843  ;;  %4618 = vadd.xlane.f32.xlu2 %v4617_v15  ;;  %v4611_v49 = vsel %vm1514_vm2, %v15832_v18, 0.0 }
 0xcae   :  { %4612 = vadd.xlane.f32.xlu1 %v4611_v49  ;;  %v4614_v9 = vsel %vm1514_vm2, %v15836_v43, 0.0  ;;  %v19267_v49 = vld [vmem:[#allocation59_spill] sm:$0xff] }
 0xcaf   :  { %4615 = vadd.xlane.f32.xlu0 %v4614_v9  ;;  %12041 = vmatmul.msk.f32.vlgmr.msra.gmra.mxu3 %vm1373_vm1, %v19231_v45 }
 0xcb0   :  { %12038 = vmatmul.msk.f32.gmra.mxu2 %vm1373_vm1, %v19233_v60 }
 0xcb2   :  { %v15846_v42 = vpop.eup %12845 }
 0xcb3   :  { %v4620_v3 = vsel %vm1514_vm2, %v15846_v42, 0.0 }
 0xcb6   :  { %4621 = vadd.xlane.f32.xlu1 %v4620_v3 }
 0xcb7   :  { %12042 = vmatmul.msk.f32.gmra.mxu3 %vm1373_vm1, %v19235_v31 }
 0xd0b   :  { %v15852_v25 = vpop.f32.mrf.mxu2 }
 0xd0f   :  { %v4817_v33 = vpop.xlane.xlu0 %4816 }
 0xd10   :  { %12847 = vrcp.f32 %v4817_v33  ;;  %v4823_v19 = vpop.xlane.xlu1 %4822 }
 0xd11   :  { %12849 = vrcp.f32 %v4823_v19  ;;  %v15854_v28 = vpop.f32.mrf.mxu3 }
 0xd13   :  { %v15856_v45 = vpop.f32.mrf.mxu2 }
 0xd16   :  { %v12848_v60 = vpop.eup %12847 }
 0xd17   :  { %v12850_v29 = vpop.eup %12849  ;;  %v4847_v44 = vmul.f32 %v12848_v60, %v4817_v33 }
 0xd18   :  { %v4820_v6 = vpop.xlane.xlu2 %4819  ;;  %v4849_v8 = vmul.f32 %v12850_v29, %v4823_v19  ;;  %v19268_v19 = vld [vmem:[#allocation54_spill] sm:$0xff] }
 0xd19   :  { %12851 = vrcp.f32 %v4820_v6  ;;  %v4826_v7 = vpop.xlane.xlu0 %4825  ;;  %v4855_v39 = vsub.f32 2.0, %v4847_v44 }
 0xd1a   :  { %12853 = vrcp.f32 %v4826_v7  ;;  %v4857_v31 = vsub.f32 2.0, %v4849_v8  ;;  %v15858_v56 = vpop.f32.mrf.mxu3 }
 0xd1b   :  { %v4863_v55 = vmul.f32 %v12848_v60, %v4855_v39  ;;  %v15860_v27 = vpop.f32.mrf.mxu2  ;;  %v19269_v60 = vld [vmem:[#allocation55_spill] sm:$0xff] }
 0xd1c   :  { %v4865_v50 = vmul.f32 %v12850_v29, %v4857_v31 }
 0xd1d   :  { %v4871_v46 = vmul.f32 %v15799_v61, %v4863_v55 }
 0xd1e   :  { %v4873_v38 = vmul.f32 %v15801_v52, %v4865_v50 }
 0xd1f   :  { %v12852_v21 = vpop.eup %12851  ;;  %12011 = vmatmul.msk.f32.vlgmr.msra.gmra.mxu0 %vm1514_vm2, %v4871_v46 }
 0xd20   :  { %v12854_v16 = vpop.eup %12853  ;;  %v4848_v58 = vmul.f32 %v12852_v21, %v4820_v6  ;;  %v4619_v13 = vpop.xlane.xlu2 %4618  ;;  %12027 = vmatpush.xpose.msk.msra.mxu0 %vm1373_vm1, %v19266_v34  ;;  %12013 = vmatmul.msk.f32.vlgmr.msra.gmra.mxu1 %vm1514_vm2, %v4873_v38 }
 0xd21   :  { %v4850_v62 = vmul.f32 %v12854_v16, %v4826_v7  ;;  %12855 = vrcp.f32 %v4619_v13  ;;  %v4613_v32 = vpop.xlane.xlu1 %4612  ;;  %12031 = vmatpush.xpose.msk.msra.mxu1 %vm1373_vm1, %v19267_v49  ;;  %v19271_v49 = vld [vmem:[#allocation67_spill] sm:$0xff] }
 0xd22   :  { %v4856_v57 = vsub.f32 2.0, %v4848_v58  ;;  %v4616_v15 = vpop.xlane.xlu0 %4615  ;;  %12857 = vrcp.f32 %v4613_v32  ;;  %v15870_v52 = vpop.f32.mrf.mxu3 }
 0xd23   :  { %v4858_v61 = vsub.f32 2.0, %v4850_v62  ;;  %12859 = vrcp.f32 %v4616_v15  ;;  %v15872_v3 = vpop.f32.mrf.mxu2 }
 0xd24   :  { %v4864_v9 = vmul.f32 %v12852_v21, %v4856_v57  ;;  %12028 = vmatpush.xpose.msk.msra.mxu0 %vm1373_vm1, %v19268_v19  ;;  %v19272_v19 = vld [vmem:[#allocation64_spill] sm:$0xff] }
 0xd25   :  { %v4866_v33 = vmul.f32 %v12854_v16, %v4858_v61  ;;  %12032 = vmatpush.xpose.msk.msra.mxu1 %vm1373_vm1, %v19269_v60 }
 0xd26   :  { %v4872_v29 = vmul.f32 %v15816_v63, %v4864_v9 }
 0xd27   :  { %v12856_v44 = vpop.eup %12855  ;;  %v4874_v6 = vmul.f32 %v15819_v47, %v4866_v33 }
 0xd28   :  { %v12858_v8 = vpop.eup %12857  ;;  %v4645_v7 = vmul.f32 %v12856_v44, %v4619_v13  ;;  %12012 = vmatmul.msk.f32.gmra.mxu0 %vm1514_vm2, %v4872_v29 }
 0xd29   :  { %v12860_v39 = vpop.eup %12859  ;;  %v4643_v31 = vmul.f32 %v12858_v8, %v4613_v32  ;;  %12014 = vmatmul.msk.f32.gmra.mxu1 %vm1514_vm2, %v4874_v6  ;;  %v4622_v55 = vpop.xlane.xlu1 %4621 }
 0xd2a   :  { %v4653_v50 = vsub.f32 2.0, %v4645_v7  ;;  %12861 = vrcp.f32 %v4622_v55  ;;  %v4644_v46 = vmul.f32 %v12860_v39, %v4616_v15  ;;  %v15882_v38 = vpop.f32.mrf.mxu3  ;;  %v19270_v15 = vld [vmem:[#allocation66_spill] sm:$0xff] }
 0xd2b   :  { %v4651_v21 = vsub.f32 2.0, %v4643_v31  ;;  %v5174_v63 = vpop.f32.mrf.mxu2 }
 0xd2c   :  { %v4661_v16 = vmul.f32 %v12856_v44, %v4653_v50  ;;  %v5215_v47 = vsel %vm1514_vm2, %v5174_v63, -inf  ;;  %v4652_v62 = vsub.f32 2.0, %v4644_v46 }
 0xd2d   :  { %v4659_v58 = vmul.f32 %v12858_v8, %v4651_v21  ;;  %5216 = vmax.xlane.f32.xlu2 %v5215_v47 }
 0xd2e   :  { %v4669_v13 = vmul.f32 %v15830_v41, %v4661_v16  ;;  %v4660_v61 = vmul.f32 %v12860_v39, %v4652_v62  ;;  %v19273_v41 = vld [vmem:[#allocation65_spill] sm:$0xff] }
 0xd2f   :  { %v4667_v34 = vmul.f32 %v15832_v18, %v4659_v58 }
 0xd30   :  { %v12862_v32 = vpop.eup %12861  ;;  %v4668_v6 = vmul.f32 %v15836_v43, %v4660_v61 }
 0xd31   :  { %v4646_v57 = vmul.f32 %v12862_v32, %v4622_v55  ;;  %12019 = vmatmul.msk.f32.vlgmr.msrb.gmra.mxu0 %vm1514_vm2, %v4667_v34  ;;  %12021 = vmatmul.msk.f32.vlgmr.msrb.gmra.mxu1 %vm1514_vm2, %v4669_v13 }
 0xd32   :  { %5335 = vmatpush.msrb.mxu0 %v19270_v15  ;;  %5364 = vmatpush.msrb.mxu1 %v19271_v49  ;;  %v5197_v33 = vpop.f32.mrf.mxu3 }
 0xd33   :  { %v4654_v9 = vsub.f32 2.0, %v4646_v57  ;;  %v5177_v60 = vpop.f32.mrf.mxu2  ;;  %v5221_v18 = vsel %vm1514_vm2, %v5197_v33, -inf }
 0xd34   :  { %5336 = vmatpush.msrb.mxu0 %v19272_v19  ;;  %5365 = vmatpush.msrb.mxu1 %v19273_v41  ;;  %v5218_v44 = vsel %vm1514_vm2, %v5177_v60, -inf }
 0xd35   :  { %v4662_v29 = vmul.f32 %v12862_v32, %v4654_v9  ;;  %5222 = vmax.xlane.f32.xlu0 %v5221_v18  ;;  %5219 = vmax.xlane.f32.xlu1 %v5218_v44 }
 0xd37   :  { %v4670_v8 = vmul.f32 %v15846_v42, %v4662_v29 }
 0xd39   :  { %12020 = vmatmul.msk.f32.gmra.mxu0 %vm1514_vm2, %v4668_v6  ;;  %12022 = vmatmul.msk.f32.gmra.mxu1 %vm1514_vm2, %v4670_v8 }
 0xd3a   :  { %v5200_v7 = vpop.f32.mrf.mxu3 }
 0xd3b   :  { %v5224_v39 = vsel %vm1514_vm2, %v5200_v7, -inf }
 0xd3c   :  { %5225 = vmax.xlane.f32.xlu2 %v5224_v39 }
 0xd41   :  { %12029 = vmatmul.msk.f32.vlgmr.msra.gmra.mxu0 %vm1373_vm1, %v19244_v12  ;;  %12033 = vmatmul.msk.f32.vlgmr.msra.gmra.mxu1 %vm1373_vm1, %v19247_v36 }
 0xd49   :  { %12030 = vmatmul.msk.f32.gmra.mxu0 %vm1373_vm1, %v19249_v11  ;;  %12034 = vmatmul.msk.f32.gmra.mxu1 %vm1373_vm1, %v19251_v2 }
 0xd9c   :  { %v15908_v43 = vpop.f32.mrf.mxu0 }
 0xd9d   :  { %v15910_v42 = vpop.f32.mrf.mxu1 }
 0xda0   :  { %v5217_v31 = vpop.xlane.xlu2 %5216 }
 0xda1   :  { %v5231_v55 = vsub.f32 %v5174_v63, %v5217_v31 }
 0xda3   :  { %v5243_v50 = vmul.f32 1.442695, %v5231_v55  ;;  %v218_v55 = vld [vmem:[%s18834_s4 + $0x10] sm:$0xff] }
 0xda4   :  { %5518 = vmatpush.msra.mxu2 %v218_v55 }
 0xda5   :  { %v15912_v46 = vpop.f32.mrf.mxu0  ;;  %12863 = vpow2.f32 %v5243_v50 }
 0xda6   :  { %v15914_v12 = vpop.f32.mrf.mxu1 }
 0xda8   :  { %v5223_v21 = vpop.xlane.xlu0 %5222  ;;  %v5220_v16 = vpop.xlane.xlu1 %5219 }
 0xda9   :  { %v5233_v36 = vsub.f32 %v5197_v33, %v5223_v21  ;;  %v5232_v58 = vsub.f32 %v5177_v60, %v5220_v16  ;;  %v219_v21 = vld [vmem:[%s18834_s4 + $0x18] sm:$0xff] }
 0xdaa   :  { %5547 = vmatpush.msra.mxu3 %v219_v21 }
 0xdab   :  { %v5247_v11 = vmul.f32 1.442695, %v5233_v36  ;;  %v12864_v47 = vpop.eup %12863  ;;  %v5245_v13 = vmul.f32 1.442695, %v5232_v58 }
 0xdac   :  { %v5263_v2 = vsel %vm1514_vm2, %v12864_v47, 0.0 }
 0xdad   :  { %12865 = vpow2.f32 %v5247_v11  ;;  %5264 = vadd.xlane.f32.xlu0 %v5263_v2 }
 0xdae   :  { %12867 = vpow2.f32 %v5245_v13  ;;  %v15917_v62 = vpop.f32.mrf.mxu0  ;;  %v15919_v63 = vpop.f32.mrf.mxu1 }
 0xdaf   :  { %v5226_v34 = vpop.xlane.xlu2 %5225 }
 0xdb0   :  { %v5234_v32 = vsub.f32 %v5200_v7, %v5226_v34 }
 0xdb2   :  { %v5249_v15 = vmul.f32 1.442695, %v5234_v32 }
 0xdb3   :  { %v12866_v57 = vpop.eup %12865 }
 0xdb4   :  { %v12868_v49 = vpop.eup %12867  ;;  %v5269_v61 = vsel %vm1514_vm2, %v12866_v57, 0.0  ;;  %12869 = vpow2.f32 %v5249_v15  ;;  %v222_v15 = vld [vmem:[%s18834_s4 + $0x30] sm:$0xff] }
 0xdb5   :  { %5270 = vadd.xlane.f32.xlu1 %v5269_v61  ;;  %v5266_v9 = vsel %vm1514_vm2, %v12868_v49, 0.0 }
 0xdb6   :  { %v15923_v33 = vpop.f32.mrf.mxu0  ;;  %v15925_v19 = vpop.f32.mrf.mxu1  ;;  %5267 = vadd.xlane.f32.xlu2 %v5266_v9 }
 0xdb7   :  { %19274 = vst [vmem:[#allocation14_spill] sm:$0xff] %v15925_v19 }
 0xdba   :  { %v15927_v41 = vpop.eup %12869 }
 0xdbb   :  { %v5272_v60 = vsel %vm1514_vm2, %v15927_v41, 0.0 }
 0xdbc   :  { %5273 = vadd.xlane.f32.xlu0 %v5272_v60 }
 0xdbe   :  { %v5128_v18 = vpop.f32.mrf.mxu0  ;;  %v5151_v29 = vpop.f32.mrf.mxu1 }
 0xdbf   :  { %v5203_v44 = vsel %vm1514_vm2, %v5128_v18, -inf  ;;  %v5209_v6 = vsel %vm1514_vm2, %v5151_v29, -inf }
 0xdc0   :  { %5204 = vmax.xlane.f32.xlu1 %v5203_v44  ;;  %5210 = vmax.xlane.f32.xlu2 %v5209_v6 }
 0xdc6   :  { %v5131_v8 = vpop.f32.mrf.mxu0  ;;  %v5154_v7 = vpop.f32.mrf.mxu1 }
 0xdc7   :  { %v5206_v39 = vsel %vm1514_vm2, %v5131_v8, -inf  ;;  %v5212_v31 = vsel %vm1514_vm2, %v5154_v7, -inf }
 0xdc8   :  { %5207 = vmax.xlane.f32.xlu0 %v5206_v39  ;;  %5213 = vmax.xlane.f32.xlu1 %v5212_v31 }
 0xe20   :  { %v5265_v50 = vpop.xlane.xlu0 %5264 }
 0xe21   :  { %12871 = vrcp.f32 %v5265_v50 }
 0xe27   :  { %v12872_v36 = vpop.eup %12871 }
 0xe28   :  { %v5271_v16 = vpop.xlane.xlu1 %5270  ;;  %v5287_v58 = vmul.f32 %v12872_v36, %v5265_v50 }
 0xe29   :  { %v5268_v11 = vpop.xlane.xlu2 %5267  ;;  %12873 = vrcp.f32 %v5271_v16 }
 0xe2a   :  { %12875 = vrcp.f32 %v5268_v11  ;;  %v5295_v13 = vsub.f32 2.0, %v5287_v58 }
 0xe2c   :  { %v5303_v2 = vmul.f32 %v12872_v36, %v5295_v13 }
 0xe2e   :  { %v5311_v32 = vmul.f32 %v12864_v47, %v5303_v2 }
 0xe2f   :  { %v12874_v34 = vpop.eup %12873  ;;  %v5274_v60 = vpop.xlane.xlu0 %5273 }
 0xe30   :  { %v12876_v61 = vpop.eup %12875  ;;  %v5289_v9 = vmul.f32 %v12874_v34, %v5271_v16  ;;  %12047 = vmatmul.msk.f32.vlgmr.msrb.gmra.mxu2 %vm1514_vm2, %v5311_v32  ;;  %12877 = vrcp.f32 %v5274_v60  ;;  %v223_v16 = vld [vmem:[%s18834_s4 + $0x38] sm:$0xff] }
 0xe31   :  { %v5288_v44 = vmul.f32 %v12876_v61, %v5268_v11  ;;  %5634 = vmatpush.msrb.mxu2 %v222_v15 }
 0xe32   :  { %v5297_v6 = vsub.f32 2.0, %v5289_v9  ;;  %v19275_v9 = vld [vmem:[#allocation72_spill] sm:$0xff] }
 0xe33   :  { %v5296_v39 = vsub.f32 2.0, %v5288_v44  ;;  %v5211_v31 = vpop.xlane.xlu2 %5210  ;;  %v5205_v55 = vpop.xlane.xlu1 %5204  ;;  %v19276_v44 = vld [vmem:[#allocation76_spill] sm:$0xff] }
 0xe34   :  { %v5305_v50 = vmul.f32 %v12874_v34, %v5297_v6  ;;  %v5229_v21 = vsub.f32 %v5151_v29, %v5211_v31  ;;  %v5227_v36 = vsub.f32 %v5128_v18, %v5205_v55  ;;  %v2053_v6 = vadd.f32 %v19276_v44, %v19275_v9  ;;  %v19284_v9 = vld [vmem:[#allocation75_spill] sm:$0xff] }
 0xe35   :  { %v5304_v47 = vmul.f32 %v12876_v61, %v5296_v39  ;;  %v19285_v44 = vld [vmem:[#allocation79_spill] sm:$0xff] }
 0xe36   :  { %v5313_v58 = vmul.f32 %v12866_v57, %v5305_v50  ;;  %v5239_v13 = vmul.f32 1.442695, %v5229_v21  ;;  %v5235_v2 = vmul.f32 1.442695, %v5227_v36  ;;  %v12878_v11 = vpop.eup %12877  ;;  %v19277_v50 = vld [vmem:[#allocation10_spill] sm:$0xff]  ;;  %v19279_v36 = vld [vmem:[#allocation77_spill] sm:$0xff] }
 0xe37   :  { %v5312_v19 = vmul.f32 %v12868_v49, %v5304_v47  ;;  %v5290_v32 = vmul.f32 %v12878_v11, %v5274_v60 }
 0xe38   :  { %12879 = vpow2.f32 %v5239_v13  ;;  %12049 = vmatmul.msk.f32.vlgmr.msrb.gmra.mxu3 %vm1514_vm2, %v5313_v58  ;;  %v19280_v58 = vld [vmem:[#allocation74_spill] sm:$0xff] }
 0xe39   :  { %12881 = vpow2.f32 %v5235_v2  ;;  %12048 = vmatmul.msk.f32.gmra.mxu2 %vm1514_vm2, %v5312_v19  ;;  %5663 = vmatpush.msrb.mxu3 %v223_v16  ;;  %v5298_v29 = vsub.f32 2.0, %v5290_v32  ;;  %v2435_v19 = vadd.f32 %v19277_v50, %v2053_v6  ;;  %v19281_v13 = vld [vmem:[#allocation78_spill] sm:$0xff]  ;;  %v2085_v6 = vadd.f32 %v19285_v44, %v19284_v9  ;;  %v19288_v50 = vld [vmem:[#allocation13_spill] sm:$0xff] }
 0xe3a   :  { %v2056_v2 = vadd.f32 %v19281_v13, %v19280_v58  ;;  %v19293_v58 = vld [vmem:[#allocation94_spill] sm:$0xff] }
 0xe3b   :  { %v5208_v18 = vpop.xlane.xlu0 %5207  ;;  %v5214_v34 = vpop.xlane.xlu1 %5213  ;;  %v5306_v57 = vmul.f32 %v12878_v11, %v5298_v29  ;;  %v19282_v11 = vld [vmem:[#allocation11_spill] sm:$0xff]  ;;  %v19298_v9 = vld [vmem:[#allocation34_spill] sm:$0xff] }
 0xe3c   :  { %v5228_v15 = vsub.f32 %v5131_v8, %v5208_v18  ;;  %v5230_v61 = vsub.f32 %v5154_v7, %v5214_v34  ;;  %v226_v8 = vld [vmem:[%s18834_s4 + $0x50] sm:$0xff]  ;;  %v19283_v18 = vld [vmem:[#allocation12_spill] sm:$0xff] }
 0xe3d   :  { %v5314_v31 = vmul.f32 %v15927_v41, %v5306_v57  ;;  %v19278_v41 = vld [vmem:[#allocation73_spill] sm:$0xff]  ;;  %v2436_v34 = vadd.f32 %v19283_v18, %v2056_v2  ;;  %v19294_v2 = vld [vmem:[#allocation30_spill] sm:$0xff] }
 0xe3e   :  { %v15952_v39 = vpop.eup %12879  ;;  %v5237_v49 = vmul.f32 1.442695, %v5228_v15  ;;  %v5241_v60 = vmul.f32 1.442695, %v5230_v61  ;;  %v2082_v47 = vadd.f32 %v19279_v36, %v19278_v41  ;;  %v227_v15 = vld [vmem:[%s18834_s4 + $0x58] sm:$0xff]  ;;  %v19291_v41 = vld [vmem:[#allocation93_spill] sm:$0xff] }
 0xe3f   :  { %v15955_v55 = vpop.eup %12881  ;;  %v5257_v21 = vsel %vm1514_vm2, %v15952_v39, 0.0 }
 0xe40   :  { %12883 = vpow2.f32 %v5237_v49  ;;  %5258 = vadd.xlane.f32.xlu0 %v5257_v21  ;;  %v5251_v7 = vsel %vm1514_vm2, %v15955_v55, 0.0  ;;  %12050 = vmatmul.msk.f32.gmra.mxu3 %vm1514_vm2, %v5314_v31  ;;  %v2437_v32 = vadd.f32 %v19282_v11, %v2082_v47  ;;  %v19286_v49 = vld [vmem:[#allocation88_spill] sm:$0xff]  ;;  %v19289_v21 = vld [vmem:[#allocation18_spill] sm:$0xff] }
 0xe41   :  { %12885 = vpow2.f32 %v5241_v60  ;;  %5252 = vadd.xlane.f32.xlu2 %v5251_v7  ;;  %12055 = vmatmul.msk.f32.vlgmr.msra.gmra.mxu2 %vm1373_vm1, %v2435_v19  ;;  %v19287_v60 = vld [vmem:[#allocation92_spill] sm:$0xff]  ;;  %v2438_v19 = vadd.f32 %v19288_v50, %v2085_v6  ;;  %v19290_v7 = vld [vmem:[#allocation89_spill] sm:$0xff]  ;;  %v19292_v47 = vld [vmem:[#allocation90_spill] sm:$0xff] }
 0xe42   :  { %5750 = vmatpush.msra.mxu2 %v226_v8  ;;  %v3093_v31 = vadd.f32 %v19287_v60, %v19286_v49  ;;  %v3122_v36 = vadd.f32 %v19291_v41, %v19290_v7  ;;  %v3096_v13 = vadd.f32 %v19293_v58, %v19292_v47  ;;  %v4114_v49 = vadd.f32 %v15522_v5, %v15510_v40  ;;  %v230_v40 = vld [vmem:[%s18834_s4 + $0x70] sm:$0xff]  ;;  %v13287_v58 = vld [vmem:[%s18832_s2 + $0x58] sm:$0xff] }
 0xe43   :  { %v4088_v60 = vadd.f32 %v15524_v54, %v15512_v0  ;;  %v13279_v0 = vld [vmem:[%s18831_s1 + $0x58] sm:$0xff]  ;;  %v13280_v5 = vld [vmem:[%s18831_s1 + $0x50] sm:$0xff] }
 0xe44   :  { %v3451_v8 = vadd.f32 %v19289_v21, %v3093_v31  ;;  %v3453_v11 = vadd.f32 %v19294_v2, %v3122_v36  ;;  %v4445_v31 = vadd.f32 %v15638_v26, %v4114_v49  ;;  %v231_v54 = vld [vmem:[%s18834_s4 + $0x78] sm:$0xff]  ;;  %v13284_v26 = vld [vmem:[%s18831_s1 + $0x70] sm:$0xff]  ;;  %v217_v21 = vld [vmem:[%s18834_s4 + $0x8] sm:$0xff]  ;;  %v5106_v2 = vadd.f32 %v15870_v52, %v15854_v28 }
 0xe45   :  { %v4444_v50 = vadd.f32 %v15640_v14, %v4088_v60  ;;  %v13285_v14 = vld [vmem:[%s18831_s1 + $0x68] sm:$0xff]  ;;  %5489 = vmatpush.msra.mxu1 %v217_v21  ;;  %v13291_v49 = vld [vmem:[%s18832_s2 + $0x78] sm:$0xff] }
 0xe46   :  { %v15971_v16 = vpop.eup %12883  ;;  %v13289_v28 = vld [vmem:[%s18832_s2 + $0x48] sm:$0xff]  ;;  %v13295_v21 = vld [vmem:[%s18833_s3 + $0x58] sm:$0xff] }
 0xe47   :  { %v15974_v29 = vpop.eup %12885  ;;  %v5254_v57 = vsel %vm1514_vm2, %v15971_v16, 0.0 }
 0xe48   :  { %5255 = vadd.xlane.f32.xlu1 %v5254_v57  ;;  %v5260_v61 = vsel %vm1514_vm2, %v15974_v29, 0.0  ;;  %12057 = vmatmul.msk.f32.vlgmr.msra.gmra.mxu3 %vm1373_vm1, %v2437_v32  ;;  %v19295_v32 = vld [vmem:[#allocation31_spill] sm:$0xff] }
 0xe49   :  { %5261 = vadd.xlane.f32.xlu2 %v5260_v61  ;;  %12056 = vmatmul.msk.f32.gmra.mxu2 %vm1373_vm1, %v2436_v34  ;;  %v3452_v18 = vadd.f32 %v19295_v32, %v3096_v13  ;;  %v19296_v34 = vld [vmem:[#allocation91_spill] sm:$0xff]  ;;  %v4085_v61 = vadd.f32 %v15516_v24, %v15508_v30  ;;  %v4117_v30 = vadd.f32 %v15534_v37, %v15514_v20  ;;  %v13281_v20 = vld [vmem:[%s18831_s1 + $0x48] sm:$0xff]  ;;  %v13282_v37 = vld [vmem:[%s18831_s1 + $0x40] sm:$0xff] }
 0xe4a   :  { %5779 = vmatpush.msra.mxu3 %v227_v15  ;;  %v19297_v57 = vld [vmem:[#allocation95_spill] sm:$0xff] }
 0xe4b   :  { %v3125_v15 = vadd.f32 %v19297_v57, %v19296_v34  ;;  %v4443_v6 = vadd.f32 %v15636_v48, %v4085_v61  ;;  %v4446_v24 = vadd.f32 %v15642_v22, %v4117_v30  ;;  %v13283_v48 = vld [vmem:[%s18831_s1 + $0x78] sm:$0xff]  ;;  %v13286_v22 = vld [vmem:[%s18831_s1 + $0x60] sm:$0xff]  ;;  %v221_v30 = vld [vmem:[%s18834_s4 + $0x28] sm:$0xff] }
 0xe4d   :  { %v3454_v44 = vadd.f32 %v19298_v9, %v3125_v15 }
 0xe50   :  { %12058 = vmatmul.msk.f32.gmra.mxu3 %vm1373_vm1, %v2438_v19  ;;  %v216_v19 = vld [vmem:[%s18834_s4] sm:$0xff] }
 0xe51   :  { %12063 = vmatmul.msk.f32.vlgmr.msrb.gmra.mxu2 %vm1373_vm1, %v3451_v8  ;;  %5460 = vmatpush.msra.mxu0 %v216_v19  ;;  %v5077_v8 = vadd.f32 %v15860_v27, %v15852_v25  ;;  %v13288_v25 = vld [vmem:[%s18832_s2 + $0x50] sm:$0xff] }
 0xe52   :  { %5866 = vmatpush.msrb.mxu2 %v230_v40  ;;  %v5109_v40 = vadd.f32 %v15882_v38, %v15858_v56  ;;  %v16103_v38 = vld [vmem:[%s18830_s0 + $0x40] sm:$0xff] }
 0xe58   :  { %12065 = vmatmul.msk.f32.vlgmr.msrb.gmra.mxu3 %vm1373_vm1, %v3453_v11  ;;  %v5080_v11 = vadd.f32 %v15872_v3, %v15856_v45  ;;  %v13290_v45 = vld [vmem:[%s18832_s2 + $0x40] sm:$0xff] }
 0xe59   :  { %12064 = vmatmul.msk.f32.gmra.mxu2 %vm1373_vm1, %v3452_v18  ;;  %5895 = vmatpush.msrb.mxu3 %v231_v54 }
 0xe60   :  { %12066 = vmatmul.msk.f32.gmra.mxu3 %vm1373_vm1, %v3454_v44 }
 0xe61   :  { %12071 = vmatmul.msk.f32.vlgmr.msra.gmra.mxu2 %vm1373_vm1, %v4443_v6 }
 0xe62   :  { %6007 = vmatpush.msra.mxu2 %v13279_v0 }
 0xe64   :  { %6008 = vmatpush.msra.mxu2 %v13280_v5  ;;  %v220_v5 = vld [vmem:[%s18834_s4 + $0x20] sm:$0xff] }
 0xe66   :  { %6009 = vmatpush.msra.mxu2 %v13281_v20 }
 0xe68   :  { %12073 = vmatmul.msk.f32.vlgmr.msra.gmra.mxu3 %vm1373_vm1, %v4445_v31  ;;  %6010 = vmatpush.msra.mxu2 %v13282_v37  ;;  %v13293_v37 = vld [vmem:[%s18832_s2 + $0x68] sm:$0xff] }
 0xe69   :  { %12072 = vmatmul.msk.f32.gmra.mxu2 %vm1373_vm1, %v4444_v50  ;;  %6030 = vmatpush.msra.mxu3 %v13283_v48  ;;  %v13292_v50 = vld [vmem:[%s18832_s2 + $0x70] sm:$0xff] }
 0xe6b   :  { %6031 = vmatpush.msra.mxu3 %v13284_v26  ;;  %v13294_v26 = vld [vmem:[%s18832_s2 + $0x60] sm:$0xff] }
 0xe6d   :  { %6032 = vmatpush.msra.mxu3 %v13285_v14 }
 0xe6f   :  { %6033 = vmatpush.msra.mxu3 %v13286_v22 }
 0xe70   :  { %12074 = vmatmul.msk.f32.gmra.mxu3 %vm1373_vm1, %v4446_v24 }
 0xeb3   :  { %v5259_v7 = vpop.xlane.xlu0 %5258  ;;  %v5396_v36 = vpop.f32.mrf.mxu2 }
 0xeb4   :  { %12887 = vrcp.f32 %v5259_v7  ;;  %v5253_v41 = vpop.xlane.xlu2 %5252  ;;  %v5435_v47 = vadd.f32 %v5396_v36, %v5077_v8  ;;  %v16124_v36 = vld [vmem:[%s18830_s0 + $0x48] sm:$0xff] }
 0xeb5   :  { %12889 = vrcp.f32 %v5253_v41 }
 0xeb6   :  { %12079 = vmatmul.msk.f32.vlgmr.msrb.gmra.mxu2 %vm1373_vm1, %v5435_v47  ;;  %v19299_v47 = vld [vmem:[#allocation9_spill] sm:$0xff] }
 0xeb7   :  { %6099 = vmatpush.msrb.mxu2 %v13287_v58  ;;  %v19300_v58 = vld [vmem:[#allocation83_spill] sm:$0xff] }
 0xeb9   :  { %6100 = vmatpush.msrb.mxu2 %v13288_v25  ;;  %v19302_v25 = vld [vmem:[#allocation84_spill] sm:$0xff] }
 0xeba   :  { %v12888_v13 = vpop.eup %12887 }
 0xebb   :  { %v12890_v27 = vpop.eup %12889  ;;  %v5285_v32 = vmul.f32 %v12888_v13, %v5259_v7  ;;  %v5256_v18 = vpop.xlane.xlu1 %5255  ;;  %6101 = vmatpush.msrb.mxu2 %v13289_v28  ;;  %v225_v28 = vld [vmem:[%s18834_s4 + $0x48] sm:$0xff] }
 0xebc   :  { %v5425_v34 = vpop.f32.mrf.mxu3  ;;  %v5283_v57 = vmul.f32 %v12890_v27, %v5253_v41  ;;  %v5262_v15 = vpop.xlane.xlu2 %5261  ;;  %12891 = vrcp.f32 %v5256_v18  ;;  %v13296_v41 = vld [vmem:[%s18833_s3 + $0x50] sm:$0xff] }
 0xebd   :  { %v5399_v61 = vpop.f32.mrf.mxu2  ;;  %v5437_v9 = vadd.f32 %v5425_v34, %v5106_v2  ;;  %v5293_v52 = vsub.f32 2.0, %v5285_v32  ;;  %12893 = vrcp.f32 %v5262_v15  ;;  %6102 = vmatpush.msrb.mxu2 %v13290_v45  ;;  %v19301_v2 = vld [vmem:[#allocation80_spill] sm:$0xff]  ;;  %v13300_v32 = vld [vmem:[%s18833_s3 + $0x70] sm:$0xff] }
 0xebe   :  { %v5436_v44 = vadd.f32 %v5399_v61, %v5080_v11  ;;  %v5291_v6 = vsub.f32 2.0, %v5283_v57  ;;  %v13299_v11 = vld [vmem:[%s18833_s3 + $0x40] sm:$0xff] }
 0xebf   :  { %12081 = vmatmul.msk.f32.vlgmr.msrb.gmra.mxu3 %vm1373_vm1, %v5437_v9  ;;  %v5301_v3 = vmul.f32 %v12888_v13, %v5293_v52  ;;  %v1995_v13 = vadd.f32 %v19300_v58, %v19299_v47  ;;  %v19304_v57 = vld [vmem:[#allocation25_spill] sm:$0xff]  ;;  %v13301_v9 = vld [vmem:[%s18833_s3 + $0x68] sm:$0xff] }
 0xec0   :  { %12080 = vmatmul.msk.f32.gmra.mxu2 %vm1373_vm1, %v5436_v44  ;;  %6122 = vmatpush.msrb.mxu3 %v13291_v49  ;;  %v5299_v60 = vmul.f32 %v12890_v27, %v5291_v6  ;;  %v2024_v27 = vadd.f32 %v19302_v25, %v19301_v2  ;;  %v224_v61 = vld [vmem:[%s18834_s4 + $0x40] sm:$0xff]  ;;  %v19308_v49 = vld [vmem:[#allocation86_spill] sm:$0xff]  ;;  %v13311_v25 = vld [vmem:[%s18832_s2 + $0xd8] sm:$0xff] }
 0xec1   :  { %v5309_v31 = vmul.f32 %v15952_v39, %v5301_v3  ;;  %v13302_v52 = vld [vmem:[%s18833_s3 + $0x60] sm:$0xff]  ;;  %v19307_v3 = vld [vmem:[#allocation82_spill] sm:$0xff] }
 0xec2   :  { %6123 = vmatpush.msrb.mxu3 %v13292_v50  ;;  %v12892_v24 = vpop.eup %12891  ;;  %v5307_v0 = vmul.f32 %v15955_v55, %v5299_v60  ;;  %v19305_v44 = vld [vmem:[#allocation81_spill] sm:$0xff]  ;;  %v2027_v60 = vadd.f32 %v19308_v49, %v19307_v3  ;;  %v19309_v50 = vld [vmem:[#allocation28_spill] sm:$0xff]  ;;  %v19319_v58 = vld [vmem:[#allocation98_spill] sm:$0xff] }
 0xec3   :  { %v12894_v39 = vpop.eup %12893  ;;  %v5284_v20 = vmul.f32 %v12892_v24, %v5256_v18  ;;  %12045 = vmatmul.msk.f32.vlgmr.msrb.gmra.mxu1 %vm1514_vm2, %v5309_v31  ;;  %v19303_v18 = vld [vmem:[#allocation24_spill] sm:$0xff]  ;;  %v19306_v6 = vld [vmem:[#allocation85_spill] sm:$0xff]  ;;  %v19324_v3 = vld [vmem:[#allocation62_spill] sm:$0xff] }
 0xec4   :  { %v5428_v54 = vpop.f32.mrf.mxu3  ;;  %6124 = vmatpush.msrb.mxu3 %v13293_v37  ;;  %v5286_v48 = vmul.f32 %v12894_v39, %v5262_v15  ;;  %12043 = vmatmul.msk.f32.vlgmr.msrb.gmra.mxu0 %vm1514_vm2, %v5307_v0  ;;  %v2431_v34 = vadd.f32 %v19303_v18, %v1995_v13  ;;  %v2433_v15 = vadd.f32 %v19304_v57, %v2024_v27  ;;  %v13303_v31 = vld [vmem:[%s18831_s1 + $0xd8] sm:$0xff]  ;;  %v13304_v0 = vld [vmem:[%s18831_s1 + $0xd0] sm:$0xff]  ;;  %v19320_v13 = vld [vmem:[#allocation102_spill] sm:$0xff] }
 0xec5   :  { %v5438_v56 = vadd.f32 %v5428_v54, %v5109_v40  ;;  %5605 = vmatpush.msrb.mxu1 %v221_v30  ;;  %v5292_v55 = vsub.f32 2.0, %v5284_v20  ;;  %5576 = vmatpush.msrb.mxu0 %v220_v5  ;;  %v1998_v45 = vadd.f32 %v19306_v6, %v19305_v44  ;;  %v13305_v5 = vld [vmem:[%s18831_s1 + $0xc8] sm:$0xff]  ;;  %v19311_v20 = vld [vmem:[#allocation29_spill] sm:$0xff]  ;;  %v19312_v54 = vld [vmem:[#allocation99_spill] sm:$0xff]  ;;  %v3067_v2 = vadd.f32 %v19320_v13, %v19319_v58 }
 0xec6   :  { %6125 = vmatpush.msrb.mxu3 %v13294_v26  ;;  %v5294_v14 = vsub.f32 2.0, %v5286_v48  ;;  %v3035_v37 = vadd.f32 %v19312_v54, %v19311_v20  ;;  %v19313_v48 = vld [vmem:[#allocation96_spill] sm:$0xff]  ;;  %v13307_v26 = vld [vmem:[%s18831_s1 + $0xc0] sm:$0xff]  ;;  %v13313_v57 = vld [vmem:[%s18832_s2 + $0xc8] sm:$0xff] }
 0xec7   :  { %12082 = vmatmul.msk.f32.gmra.mxu3 %vm1373_vm1, %v5438_v56  ;;  %v5300_v22 = vmul.f32 %v12892_v24, %v5292_v55  ;;  %v2432_v30 = vadd.f32 %v19309_v50, %v1998_v45  ;;  %v19310_v24 = vld [vmem:[#allocation87_spill] sm:$0xff]  ;;  %v19314_v56 = vld [vmem:[#allocation100_spill] sm:$0xff]  ;;  %v19321_v27 = vld [vmem:[#allocation49_spill] sm:$0xff] }
 0xec8   :  { %12089 = vmatmul.msk.f32.vlgmr.msra.gmra.mxu2 %vm235_vm0, %v16103_v38  ;;  %v5302_v19 = vmul.f32 %v12894_v39, %v5294_v14  ;;  %v2434_v40 = vadd.f32 %v19310_v24, %v2027_v60  ;;  %v13306_v39 = vld [vmem:[%s18831_s1 + $0xf8] sm:$0xff]  ;;  %v3064_v55 = vadd.f32 %v19314_v56, %v19313_v48  ;;  %v13308_v14 = vld [vmem:[%s18831_s1 + $0xf0] sm:$0xff]  ;;  %v13323_v24 = vld [vmem:[%s18833_s3 + $0xc0] sm:$0xff] }
 0xec9   :  { %6191 = vmatpush.msra.mxu2 %v13295_v21  ;;  %v5308_v8 = vmul.f32 %v15971_v16, %v5300_v22  ;;  %v13297_v16 = vld [vmem:[%s18833_s3 + $0x48] sm:$0xff]  ;;  %v19315_v22 = vld [vmem:[#allocation35_spill] sm:$0xff]  ;;  %v19316_v21 = vld [vmem:[#allocation48_spill] sm:$0xff] }
 0xeca   :  { %v5310_v7 = vmul.f32 %v15974_v29, %v5302_v19  ;;  %v13298_v29 = vld [vmem:[%s18833_s3 + $0x78] sm:$0xff]  ;;  %v3447_v19 = vadd.f32 %v19315_v22, %v3035_v37  ;;  %v19325_v60 = vld [vmem:[#allocation63_spill] sm:$0xff]  ;;  %v13329_v48 = vld [vmem:[%s18831_s1 + $0x148] sm:$0xff] }
 0xecb   :  { %6192 = vmatpush.msra.mxu2 %v13296_v41  ;;  %v13310_v41 = vld [vmem:[%s18831_s1 + $0xe0] sm:$0xff]  ;;  %v13319_v45 = vld [vmem:[%s18833_s3 + $0xd8] sm:$0xff]  ;;  %v13320_v50 = vld [vmem:[%s18833_s3 + $0xd0] sm:$0xff] }
 0xecc   :  { %12044 = vmatmul.msk.f32.gmra.mxu0 %vm1514_vm2, %v5308_v8  ;;  %12046 = vmatmul.msk.f32.gmra.mxu1 %vm1514_vm2, %v5310_v7  ;;  %v3449_v8 = vadd.f32 %v19316_v21, %v3064_v55  ;;  %v13309_v7 = vld [vmem:[%s18831_s1 + $0xe8] sm:$0xff]  ;;  %v13327_v20 = vld [vmem:[%s18831_s1 + $0x158] sm:$0xff]  ;;  %v13328_v37 = vld [vmem:[%s18831_s1 + $0x150] sm:$0xff] }
 0xecd   :  { %6193 = vmatpush.msra.mxu2 %v13297_v16  ;;  %v19317_v16 = vld [vmem:[#allocation97_spill] sm:$0xff]  ;;  %v13331_v55 = vld [vmem:[%s18831_s1 + $0x178] sm:$0xff]  ;;  %v13333_v22 = vld [vmem:[%s18831_s1 + $0x168] sm:$0xff] }
 0xece   :  { %v13330_v56 = vld [vmem:[%s18831_s1 + $0x140] sm:$0xff] }
 0xecf   :  { %12091 = vmatmul.msk.f32.vlgmr.msra.gmra.mxu3 %vm235_vm0, %v16103_v38  ;;  %6194 = vmatpush.msra.mxu2 %v13299_v11  ;;  %v13334_v21 = vld [vmem:[%s18831_s1 + $0x160] sm:$0xff] }
 0xed0   :  { %12090 = vmatmul.msk.f32.gmra.mxu2 %vm235_vm0, %v16124_v36  ;;  %6214 = vmatpush.msra.mxu3 %v13298_v29  ;;  %v19318_v29 = vld [vmem:[#allocation101_spill] sm:$0xff] }
 0xed1   :  { %v3038_v47 = vadd.f32 %v19318_v29, %v19317_v16  ;;  %v13337_v29 = vld [vmem:[%s18832_s2 + $0x148] sm:$0xff]  ;;  %v13339_v13 = vld [vmem:[%s18832_s2 + $0x140] sm:$0xff] }
 0xed2   :  { %6215 = vmatpush.msra.mxu3 %v13300_v32  ;;  %v19322_v32 = vld [vmem:[#allocation52_spill] sm:$0xff] }
 0xed3   :  { %v3448_v11 = vadd.f32 %v19321_v27, %v3038_v47  ;;  %v3450_v18 = vadd.f32 %v19322_v32, %v3067_v2  ;;  %v13338_v47 = vld [vmem:[%s18831_s1 + $0x38] sm:$0xff]  ;;  %v13342_v27 = vld [vmem:[%s18832_s2 + $0x170] sm:$0xff]  ;;  %v13343_v32 = vld [vmem:[%s18831_s1 + $0x28] sm:$0xff] }
 0xed4   :  { %6216 = vmatpush.msra.mxu3 %v13301_v9  ;;  %12051 = vmatmul.msk.f32.vlgmr.msra.gmra.mxu0 %vm1373_vm1, %v2431_v34  ;;  %v13312_v34 = vld [vmem:[%s18832_s2 + $0xd0] sm:$0xff]  ;;  %v4056_v9 = vadd.f32 %v15584_v1, %v15574_v53  ;;  %v4030_v1 = vadd.f32 %v15587_v23, %v15576_v59  ;;  %v16284_v59 = vld [vmem:[%s18830_s0 + $0x58] sm:$0xff] }
 0xed5   :  { %12053 = vmatmul.msk.f32.vlgmr.msra.gmra.mxu1 %vm1373_vm1, %v2433_v15  ;;  %5692 = vmatpush.msra.mxu0 %v224_v61  ;;  %v13314_v15 = vld [vmem:[%s18832_s2 + $0xf8] sm:$0xff]  ;;  %v4027_v61 = vadd.f32 %v15581_v35, %v15572_v4  ;;  %v13317_v4 = vld [vmem:[%s18832_s2 + $0xe8] sm:$0xff]  ;;  %v16258_v53 = vld [vmem:[%s18830_s0 + $0x50] sm:$0xff] }
 0xed6   :  { %6217 = vmatpush.msra.mxu3 %v13302_v52  ;;  %5721 = vmatpush.msra.mxu1 %v225_v28  ;;  %v13315_v28 = vld [vmem:[%s18832_s2 + $0xc0] sm:$0xff]  ;;  %v13316_v52 = vld [vmem:[%s18832_s2 + $0xf0] sm:$0xff]  ;;  %v4441_v6 = vadd.f32 %v15702_v17, %v4056_v9  ;;  %v4440_v49 = vadd.f32 %v19324_v3, %v4030_v1  ;;  %v13322_v23 = vld [vmem:[%s18833_s3 + $0xf8] sm:$0xff] }
 0xed7   :  { %12092 = vmatmul.msk.f32.gmra.mxu3 %vm235_vm0, %v16124_v36  ;;  %v4439_v44 = vadd.f32 %v15700_v10, %v4027_v61  ;;  %v13318_v35 = vld [vmem:[%s18832_s2 + $0xe0] sm:$0xff]  ;;  %v13340_v2 = vld [vmem:[%s18832_s2 + $0x178] sm:$0xff]  ;;  %v16438_v1 = vld [vmem:[%s18830_s0 + $0x68] sm:$0xff] }
 0xed8   :  { %12097 = vmatmul.msk.f32.vlgmr.msrb.gmra.mxu2 %vm235_vm0, %v16103_v38  ;;  %v19323_v10 = vld [vmem:[#allocation53_spill] sm:$0xff]  ;;  %v13355_v3 = vld [vmem:[%s18833_s3 + $0x178] sm:$0xff] }
 0xed9   :  { %6292 = vmatpush.msrb.mxu2 %v13303_v31  ;;  %v4059_v17 = vadd.f32 %v19323_v10, %v15578_v51  ;;  %v13321_v51 = vld [vmem:[%s18833_s3 + $0xc8] sm:$0xff]  ;;  %v13347_v9 = vld [vmem:[%s18832_s2 + $0x160] sm:$0xff] }
 0xeda   :  { %v13353_v10 = vld [vmem:[%s18833_s3 + $0x148] sm:$0xff] }
 0xedb   :  { %6293 = vmatpush.msrb.mxu2 %v13304_v0  ;;  %v4442_v31 = vadd.f32 %v19325_v60, %v4059_v17  ;;  %v13325_v0 = vld [vmem:[%s18833_s3 + $0xe8] sm:$0xff]  ;;  %v13354_v17 = vld [vmem:[%s18833_s3 + $0x140] sm:$0xff] }
 0xedc   :  { %12052 = vmatmul.msk.f32.gmra.mxu0 %vm1373_vm1, %v2432_v30  ;;  %v16296_v30 = vpop.f32.mrf.mxu2 }
 0xedd   :  { %12054 = vmatmul.msk.f32.gmra.mxu1 %vm1373_vm1, %v2434_v40  ;;  %6294 = vmatpush.msrb.mxu2 %v13305_v5  ;;  %v13324_v40 = vld [vmem:[%s18833_s3 + $0xf0] sm:$0xff]  ;;  %v13326_v5 = vld [vmem:[%s18833_s3 + $0xe0] sm:$0xff] }
 0xedf   :  { %12099 = vmatmul.msk.f32.vlgmr.msrb.gmra.mxu3 %vm235_vm0, %v16103_v38  ;;  %6295 = vmatpush.msrb.mxu2 %v13307_v26 }
 0xee0   :  { %12098 = vmatmul.msk.f32.gmra.mxu2 %vm235_vm0, %v16124_v36  ;;  %6315 = vmatpush.msrb.mxu3 %v13306_v39  ;;  %v16312_v39 = vpop.f32.mrf.mxu3 }
 0xee2   :  { %6316 = vmatpush.msrb.mxu3 %v13308_v14  ;;  %v13332_v14 = vld [vmem:[%s18831_s1 + $0x170] sm:$0xff] }
 0xee4   :  { %6317 = vmatpush.msrb.mxu3 %v13309_v7  ;;  %12059 = vmatmul.msk.f32.vlgmr.msrb.gmra.mxu0 %vm1373_vm1, %v3447_v19  ;;  %v16319_v54 = vpop.f32.mrf.mxu2  ;;  %v13336_v7 = vld [vmem:[%s18832_s2 + $0x150] sm:$0xff] }
 0xee5   :  { %12061 = vmatmul.msk.f32.vlgmr.msrb.gmra.mxu1 %vm1373_vm1, %v3449_v8  ;;  %v13335_v8 = vld [vmem:[%s18832_s2 + $0x158] sm:$0xff] }
 0xee6   :  { %6318 = vmatpush.msrb.mxu3 %v13310_v41  ;;  %v229_v41 = vld [vmem:[%s18834_s4 + $0x68] sm:$0xff] }
 0xee7   :  { %12100 = vmatmul.msk.f32.gmra.mxu3 %vm235_vm0, %v16124_v36  ;;  %5837 = vmatpush.msrb.mxu1 %v229_v41  ;;  %v13369_v41 = vld [vmem:[%s18832_s2 + $0x30] sm:$0xff] }
 0xee8   :  { %12105 = vmatmul.msk.f32.vlgmr.msra.gmra.mxu2 %vm235_vm0, %v16103_v38  ;;  %v16337_v26 = vpop.f32.mrf.mxu3 }
 0xee9   :  { %6384 = vmatpush.msra.mxu2 %v13311_v25  ;;  %v13341_v25 = vld [vmem:[%s18831_s1 + $0x30] sm:$0xff] }
 0xeeb   :  { %6385 = vmatpush.msra.mxu2 %v13312_v34  ;;  %v16401_v34 = vld [vmem:[%s18830_s0 + $0x60] sm:$0xff] }
 0xeec   :  { %12060 = vmatmul.msk.f32.gmra.mxu0 %vm1373_vm1, %v3448_v11  ;;  %v16345_v19 = vpop.f32.mrf.mxu2  ;;  %v228_v11 = vld [vmem:[%s18834_s4 + $0x60] sm:$0xff] }
 0xeed   :  { %12062 = vmatmul.msk.f32.gmra.mxu1 %vm1373_vm1, %v3450_v18  ;;  %6386 = vmatpush.msra.mxu2 %v13313_v57  ;;  %v13344_v18 = vld [vmem:[%s18832_s2 + $0x168] sm:$0xff]  ;;  %v13345_v57 = vld [vmem:[%s18831_s1 + $0x18] sm:$0xff] }
 0xeee   :  { %5808 = vmatpush.msrb.mxu0 %v228_v11 }
 0xeef   :  { %12107 = vmatmul.msk.f32.vlgmr.msra.gmra.mxu3 %vm235_vm0, %v16103_v38  ;;  %6387 = vmatpush.msra.mxu2 %v13315_v28  ;;  %v13348_v28 = vld [vmem:[%s18831_s1 + $0x10] sm:$0xff] }
 0xef0   :  { %12106 = vmatmul.msk.f32.gmra.mxu2 %vm235_vm0, %v16124_v36  ;;  %6407 = vmatpush.msra.mxu3 %v13314_v15  ;;  %v16363_v16 = vpop.f32.mrf.mxu3  ;;  %v13346_v15 = vld [vmem:[%s18831_s1 + $0x20] sm:$0xff] }
 0xef2   :  { %6408 = vmatpush.msra.mxu3 %v13316_v52 }
 0xef4   :  { %6409 = vmatpush.msra.mxu3 %v13317_v4  ;;  %12067 = vmatmul.msk.f32.vlgmr.msra.gmra.mxu0 %vm1373_vm1, %v4439_v44  ;;  %v16371_v58 = vpop.f32.mrf.mxu2  ;;  %v13349_v44 = vld [vmem:[%s18833_s3 + $0x158] sm:$0xff]  ;;  %v13351_v4 = vld [vmem:[%s18833_s3 + $0x150] sm:$0xff] }
 0xef5   :  { %12069 = vmatmul.msk.f32.vlgmr.msra.gmra.mxu1 %vm1373_vm1, %v4441_v6  ;;  %5961 = vmatpush.msra.mxu0 %v13345_v57  ;;  %v13350_v6 = vld [vmem:[%s18831_s1 + $0x8] sm:$0xff] }
 0xef6   :  { %6410 = vmatpush.msra.mxu3 %v13318_v35  ;;  %5984 = vmatpush.msra.mxu1 %v13338_v47  ;;  %v13352_v35 = vld [vmem:[%s18831_s1] sm:$0xff]  ;;  %v5022_v47 = vadd.f32 %v15923_v33, %v15912_v46 }
 0xef7   :  { %12108 = vmatmul.msk.f32.gmra.mxu3 %vm235_vm0, %v16124_v36  ;;  %5962 = vmatpush.msra.mxu0 %v13348_v28  ;;  %v13376_v28 = vld [vmem:[%s18832_s2] sm:$0xff] }
 0xef8   :  { %12115 = vmatmul.msk.f32.vlgmr.msrb.gmra.mxu2 %vm235_vm0, %v16258_v53  ;;  %5985 = vmatpush.msra.mxu1 %v13341_v25  ;;  %v16409_v61 = vpop.f32.mrf.mxu3  ;;  %v13371_v25 = vld [vmem:[%s18832_s2 + $0x28] sm:$0xff] }
 0xef9   :  { %6476 = vmatpush.msrb.mxu2 %v13319_v45  ;;  %5963 = vmatpush.msra.mxu0 %v13350_v6  ;;  %v13378_v6 = vld [vmem:[%s18832_s2 + $0x1f8] sm:$0xff] }
 0xefa   :  { %5986 = vmatpush.msra.mxu1 %v13343_v32 }
 0xefb   :  { %6477 = vmatpush.msrb.mxu2 %v13320_v50  ;;  %5964 = vmatpush.msra.mxu0 %v13352_v35  ;;  %v13358_v50 = vld [vmem:[%s18833_s3 + $0x160] sm:$0xff]  ;;  %v13380_v35 = vld [vmem:[%s18832_s2 + $0x1f0] sm:$0xff] }
 0xefc   :  { %12068 = vmatmul.msk.f32.gmra.mxu0 %vm1373_vm1, %v4440_v49  ;;  %5987 = vmatpush.msra.mxu1 %v13346_v15  ;;  %v16421_v52 = vpop.f32.mrf.mxu2  ;;  %v13356_v49 = vld [vmem:[%s18833_s3 + $0x170] sm:$0xff]  ;;  %v13374_v15 = vld [vmem:[%s18832_s2 + $0x20] sm:$0xff] }
 0xefd   :  { %12070 = vmatmul.msk.f32.gmra.mxu1 %vm1373_vm1, %v4442_v31  ;;  %6478 = vmatpush.msrb.mxu2 %v13321_v51  ;;  %v13357_v31 = vld [vmem:[%s18833_s3 + $0x168] sm:$0xff]  ;;  %v13359_v51 = vld [vmem:[%s18831_s1 + $0x1d8] sm:$0xff] }
 0xeff   :  { %12117 = vmatmul.msk.f32.vlgmr.msrb.gmra.mxu3 %vm235_vm0, %v16258_v53  ;;  %6479 = vmatpush.msrb.mxu2 %v13323_v24 }
 0xf00   :  { %12116 = vmatmul.msk.f32.gmra.mxu2 %vm235_vm0, %v16284_v59  ;;  %6499 = vmatpush.msrb.mxu3 %v13322_v23  ;;  %v16448_v45 = vpop.f32.mrf.mxu3 }
 0xf02   :  { %6500 = vmatpush.msrb.mxu3 %v13324_v40  ;;  %v13360_v40 = vld [vmem:[%s18831_s1 + $0x1d0] sm:$0xff] }
 0xf04   :  { %6501 = vmatpush.msrb.mxu3 %v13325_v0  ;;  %v16458_v60 = vpop.f32.mrf.mxu2  ;;  %v13361_v0 = vld [vmem:[%s18831_s1 + $0x1c8] sm:$0xff] }
 0xf06   :  { %6502 = vmatpush.msrb.mxu3 %v13326_v5  ;;  %v13362_v5 = vld [vmem:[%s18831_s1 + $0x1c0] sm:$0xff] }
 0xf07   :  { %12118 = vmatmul.msk.f32.gmra.mxu3 %vm235_vm0, %v16284_v59 }
 0xf08   :  { %12123 = vmatmul.msk.f32.vlgmr.msra.gmra.mxu2 %vm235_vm0, %v16258_v53  ;;  %v16473_v23 = vpop.f32.mrf.mxu3 }
 0xf09   :  { %6577 = vmatpush.msra.mxu2 %v13327_v20  ;;  %v5048_v20 = vadd.f32 %v15919_v63, %v15910_v42  ;;  %v13364_v42 = vld [vmem:[%s18831_s1 + $0x1f0] sm:$0xff] }
 0xf0b   :  { %6578 = vmatpush.msra.mxu2 %v13328_v37  ;;  %v13363_v37 = vld [vmem:[%s18831_s1 + $0x1f8] sm:$0xff] }
 0xf0d   :  { %6579 = vmatpush.msra.mxu2 %v13329_v48  ;;  %v5019_v48 = vadd.f32 %v15917_v62, %v15908_v43  ;;  %v13366_v43 = vld [vmem:[%s18832_s2 + $0x38] sm:$0xff] }
 0xf0e   :  { %v13367_v62 = vld [vmem:[%s18832_s2 + $0x18] sm:$0xff] }
 0xf0f   :  { %12125 = vmatmul.msk.f32.vlgmr.msra.gmra.mxu3 %vm235_vm0, %v16258_v53  ;;  %6580 = vmatpush.msra.mxu2 %v13330_v56 }
 0xf10   :  { %12124 = vmatmul.msk.f32.gmra.mxu2 %vm235_vm0, %v16284_v59  ;;  %6600 = vmatpush.msra.mxu3 %v13331_v55 }
 0xf12   :  { %6601 = vmatpush.msra.mxu3 %v13332_v14 }
 0xf14   :  { %6602 = vmatpush.msra.mxu3 %v13333_v22 }
 0xf16   :  { %6603 = vmatpush.msra.mxu3 %v13334_v21 }
 0xf17   :  { %12126 = vmatmul.msk.f32.gmra.mxu3 %vm235_vm0, %v16284_v59 }
 0xf18   :  { %12131 = vmatmul.msk.f32.vlgmr.msrb.gmra.mxu2 %vm235_vm0, %v16258_v53 }
 0xf19   :  { %6669 = vmatpush.msrb.mxu2 %v13335_v8  ;;  %v13365_v8 = vld [vmem:[%s18831_s1 + $0x1e8] sm:$0xff] }
 0xf1b   :  { %6670 = vmatpush.msrb.mxu2 %v13336_v7  ;;  %v13368_v7 = vld [vmem:[%s18831_s1 + $0x1e0] sm:$0xff] }
 0xf1d   :  { %6671 = vmatpush.msrb.mxu2 %v13337_v29  ;;  %v13370_v29 = vld [vmem:[%s18832_s2 + $0x10] sm:$0xff] }
 0xf1f   :  { %12133 = vmatmul.msk.f32.vlgmr.msrb.gmra.mxu3 %vm235_vm0, %v16258_v53  ;;  %6672 = vmatpush.msrb.mxu2 %v13339_v13  ;;  %v19326_v13 = vld [vmem:[#allocation14_spill] sm:$0xff] }
 0xf20   :  { %12132 = vmatmul.msk.f32.gmra.mxu2 %vm235_vm0, %v16284_v59  ;;  %6692 = vmatpush.msrb.mxu3 %v13340_v2  ;;  %v5051_v2 = vadd.f32 %v19326_v13, %v15914_v12  ;;  %v13398_v13 = vld [vmem:[%s18831_s1 + $0x98] sm:$0xff] }
 0xf22   :  { %6693 = vmatpush.msrb.mxu3 %v13342_v27  ;;  %v13372_v27 = vld [vmem:[%s18832_s2 + $0x1d8] sm:$0xff] }
 0xf24   :  { %6694 = vmatpush.msrb.mxu3 %v13344_v18  ;;  %v13373_v18 = vld [vmem:[%s18832_s2 + $0x8] sm:$0xff] }
 0xf26   :  { %6695 = vmatpush.msrb.mxu3 %v13347_v9  ;;  %v13375_v9 = vld [vmem:[%s18832_s2 + $0x1d0] sm:$0xff] }
 0xf27   :  { %12134 = vmatmul.msk.f32.gmra.mxu3 %vm235_vm0, %v16284_v59 }
 0xf28   :  { %12141 = vmatmul.msk.f32.vlgmr.msra.gmra.mxu2 %vm235_vm0, %v16401_v34 }
 0xf29   :  { %6761 = vmatpush.msra.mxu2 %v13349_v44  ;;  %v13377_v44 = vld [vmem:[%s18832_s2 + $0x1c8] sm:$0xff] }
 0xf2b   :  { %6762 = vmatpush.msra.mxu2 %v13351_v4  ;;  %v13379_v4 = vld [vmem:[%s18832_s2 + $0x1c0] sm:$0xff] }
 0xf2d   :  { %6763 = vmatpush.msra.mxu2 %v13353_v10 }
 0xf2f   :  { %12143 = vmatmul.msk.f32.vlgmr.msra.gmra.mxu3 %vm235_vm0, %v16401_v34  ;;  %6764 = vmatpush.msra.mxu2 %v13354_v17 }
 0xf30   :  { %12142 = vmatmul.msk.f32.gmra.mxu2 %vm235_vm0, %v16438_v1  ;;  %6784 = vmatpush.msra.mxu3 %v13355_v3  ;;  %v13381_v3 = vld [vmem:[%s18832_s2 + $0x1e8] sm:$0xff] }
 0xf32   :  { %6785 = vmatpush.msra.mxu3 %v13356_v49  ;;  %v16586_v49 = vld [vmem:[%s18830_s0 + $0x70] sm:$0xff] }
 0xf34   :  { %6786 = vmatpush.msra.mxu3 %v13357_v31  ;;  %v13382_v31 = vld [vmem:[%s18833_s3 + $0x18] sm:$0xff] }
 0xf36   :  { %6787 = vmatpush.msra.mxu3 %v13358_v50  ;;  %v13383_v50 = vld [vmem:[%s18833_s3 + $0x38] sm:$0xff] }
 0xf37   :  { %12144 = vmatmul.msk.f32.gmra.mxu3 %vm235_vm0, %v16438_v1 }
 0xf38   :  { %12149 = vmatmul.msk.f32.vlgmr.msrb.gmra.mxu2 %vm235_vm0, %v16401_v34 }
 0xf39   :  { %6862 = vmatpush.msrb.mxu2 %v13359_v51  ;;  %v16475_v24 = vpop.f32.mrf.mxu2  ;;  %v13384_v51 = vld [vmem:[%s18833_s3 + $0x10] sm:$0xff] }
 0xf3b   :  { %6863 = vmatpush.msrb.mxu2 %v13360_v40  ;;  %v13385_v40 = vld [vmem:[%s18833_s3 + $0x30] sm:$0xff] }
 0xf3d   :  { %6864 = vmatpush.msrb.mxu2 %v13361_v0  ;;  %v13386_v0 = vld [vmem:[%s18832_s2 + $0x1e0] sm:$0xff] }
 0xf3f   :  { %12151 = vmatmul.msk.f32.vlgmr.msrb.gmra.mxu3 %vm235_vm0, %v16401_v34  ;;  %6865 = vmatpush.msrb.mxu2 %v13362_v5  ;;  %v13387_v5 = vld [vmem:[%s18833_s3 + $0x8] sm:$0xff] }
 0xf40   :  { %12150 = vmatmul.msk.f32.gmra.mxu2 %vm235_vm0, %v16438_v1  ;;  %6885 = vmatpush.msrb.mxu3 %v13363_v37  ;;  %v5367_v56 = vpop.f32.mrf.mxu1 }
 0xf41   :  { %v5338_v55 = vpop.f32.mrf.mxu0  ;;  %v5433_v14 = vadd.f32 %v5367_v56, %v5048_v20  ;;  %v13388_v20 = vld [vmem:[%s18833_s3 + $0x1d8] sm:$0xff]  ;;  %v13389_v56 = vld [vmem:[%s18833_s3 + $0x28] sm:$0xff] }
 0xf42   :  { %v16497_v22 = vpop.f32.mrf.mxu3  ;;  %6886 = vmatpush.msrb.mxu3 %v13364_v42  ;;  %v5431_v63 = vadd.f32 %v5338_v55, %v5019_v48  ;;  %v13390_v55 = vld [vmem:[%s18833_s3] sm:$0xff]  ;;  %v16633_v42 = vld [vmem:[%s18830_s0 + $0x78] sm:$0xff] }
 0xf43   :  { %v16502_v21 = vpop.f32.mrf.mxu2  ;;  %12077 = vmatmul.msk.f32.vlgmr.msrb.gmra.mxu1 %vm1373_vm1, %v5433_v14  ;;  %v13391_v14 = vld [vmem:[%s18833_s3 + $0x1d0] sm:$0xff] }
 0xf44   :  { %6887 = vmatpush.msrb.mxu3 %v13365_v8  ;;  %12075 = vmatmul.msk.f32.vlgmr.msrb.gmra.mxu0 %vm1373_vm1, %v5431_v63  ;;  %v13392_v63 = vld [vmem:[%s18833_s3 + $0x20] sm:$0xff]  ;;  %v13393_v8 = vld [vmem:[%s18833_s3 + $0x1c8] sm:$0xff] }
 0xf45   :  { %6076 = vmatpush.msrb.mxu1 %v13366_v43  ;;  %6053 = vmatpush.msrb.mxu0 %v13367_v62  ;;  %v13394_v43 = vld [vmem:[%s18833_s3 + $0x1f8] sm:$0xff]  ;;  %v13395_v62 = vld [vmem:[%s18833_s3 + $0x1c0] sm:$0xff] }
 0xf46   :  { %6888 = vmatpush.msrb.mxu3 %v13368_v7  ;;  %v13396_v7 = vld [vmem:[%s18833_s3 + $0x1f0] sm:$0xff] }
 0xf47   :  { %12152 = vmatmul.msk.f32.gmra.mxu3 %vm235_vm0, %v16438_v1  ;;  %6077 = vmatpush.msrb.mxu1 %v13369_v41 }
 0xf48   :  { %12157 = vmatmul.msk.f32.vlgmr.msra.gmra.mxu2 %vm235_vm0, %v16401_v34  ;;  %6054 = vmatpush.msrb.mxu0 %v13370_v29 }
 0xf49   :  { %6078 = vmatpush.msrb.mxu1 %v13371_v25  ;;  %6954 = vmatpush.msra.mxu2 %v13372_v27  ;;  %v5341_v11 = vpop.f32.mrf.mxu0  ;;  %v5370_v32 = vpop.f32.mrf.mxu1  ;;  %v13400_v25 = vld [vmem:[%s18831_s1 + $0x90] sm:$0xff] }
 0xf4a   :  { %6055 = vmatpush.msrb.mxu0 %v13373_v18  ;;  %v5432_v46 = vadd.f32 %v5341_v11, %v5022_v47  ;;  %v5434_v33 = vadd.f32 %v5370_v32, %v5051_v2  ;;  %v16541_v12 = vpop.f32.mrf.mxu3  ;;  %v13397_v47 = vld [vmem:[%s18833_s3 + $0x1e8] sm:$0xff]  ;;  %v13399_v2 = vld [vmem:[%s18831_s1 + $0xb8] sm:$0xff]  ;;  %v13401_v27 = vld [vmem:[%s18831_s1 + $0xb0] sm:$0xff] }
 0xf4b   :  { %v16543_v57 = vpop.f32.mrf.mxu2  ;;  %6079 = vmatpush.msrb.mxu1 %v13374_v15  ;;  %6955 = vmatpush.msra.mxu2 %v13375_v9  ;;  %v13402_v11 = vld [vmem:[%s18833_s3 + $0x1e0] sm:$0xff]  ;;  %v13403_v32 = vld [vmem:[%s18831_s1 + $0x88] sm:$0xff] }
 0xf4c   :  { %6056 = vmatpush.msrb.mxu0 %v13376_v28  ;;  %12078 = vmatmul.msk.f32.gmra.mxu1 %vm1373_vm1, %v5434_v33  ;;  %v13404_v33 = vld [vmem:[%s18831_s1 + $0xa8] sm:$0xff]  ;;  %v13405_v15 = vld [vmem:[%s18831_s1 + $0x80] sm:$0xff] }
 0xf4d   :  { %12076 = vmatmul.msk.f32.gmra.mxu0 %vm1373_vm1, %v5432_v46  ;;  %6956 = vmatpush.msra.mxu2 %v13377_v44  ;;  %v13406_v9 = vld [vmem:[%s18831_s1 + $0xa0] sm:$0xff] }
 0xf4f   :  { %12159 = vmatmul.msk.f32.vlgmr.msra.gmra.mxu3 %vm235_vm0, %v16401_v34  ;;  %6957 = vmatpush.msra.mxu2 %v13379_v4  ;;  %v13408_v4 = vld [vmem:[%s18832_s2 + $0xb8] sm:$0xff] }
 0xf50   :  { %12158 = vmatmul.msk.f32.gmra.mxu2 %vm235_vm0, %v16438_v1  ;;  %6977 = vmatpush.msra.mxu3 %v13378_v6  ;;  %v13407_v6 = vld [vmem:[%s18832_s2 + $0x98] sm:$0xff] }
 0xf52   :  { %6978 = vmatpush.msra.mxu3 %v13380_v35  ;;  %v16574_v17 = vpop.f32.mrf.mxu3  ;;  %v13410_v35 = vld [vmem:[%s18832_s2 + $0xb0] sm:$0xff] }
 0xf53   :  { %v16572_v10 = vpop.f32.mrf.mxu2 }
 0xf54   :  { %6979 = vmatpush.msra.mxu3 %v13381_v3  ;;  %12087 = vmatmul.msk.f32.vlgmr.msra.gmra.mxu1 %vm235_vm0, %v16103_v38  ;;  %v13411_v3 = vld [vmem:[%s18832_s2 + $0x88] sm:$0xff] }
 0xf55   :  { %12085 = vmatmul.msk.f32.vlgmr.msra.gmra.mxu0 %vm235_vm0, %v16103_v38  ;;  %6168 = vmatpush.msra.mxu1 %v13383_v50 }
 0xf56   :  { %6145 = vmatpush.msra.mxu0 %v13382_v31  ;;  %6980 = vmatpush.msra.mxu3 %v13386_v0  ;;  %v13414_v0 = vld [vmem:[%s18832_s2 + $0xa0] sm:$0xff] }
 0xf57   :  { %12160 = vmatmul.msk.f32.gmra.mxu3 %vm235_vm0, %v16438_v1  ;;  %6169 = vmatpush.msra.mxu1 %v13385_v40  ;;  %v13413_v40 = vld [vmem:[%s18832_s2 + $0x80] sm:$0xff] }
 0xf58   :  { %12167 = vmatmul.msk.f32.vlgmr.msrb.gmra.mxu2 %vm235_vm0, %v16586_v49  ;;  %6146 = vmatpush.msra.mxu0 %v13384_v51  ;;  %v13412_v51 = vld [vmem:[%s18832_s2 + $0xa8] sm:$0xff] }
 0xf59   :  { %7046 = vmatpush.msrb.mxu2 %v13388_v20  ;;  %6170 = vmatpush.msra.mxu1 %v13389_v56  ;;  %v13415_v56 = vld [vmem:[%s18833_s3 + $0x98] sm:$0xff] }
 0xf5a   :  { %6147 = vmatpush.msra.mxu0 %v13387_v5  ;;  %v16613_v37 = vpop.f32.mrf.mxu3 }
 0xf5b   :  { %v16615_v48 = vpop.f32.mrf.mxu2  ;;  %7047 = vmatpush.msrb.mxu2 %v13391_v14  ;;  %6171 = vmatpush.msra.mxu1 %v13392_v63  ;;  %v5462_v14 = vpop.f32.mrf.mxu0  ;;  %v13417_v63 = vld [vmem:[%s18833_s3 + $0x90] sm:$0xff] }
 0xf5c   :  { %6148 = vmatpush.msra.mxu0 %v13390_v55  ;;  %12088 = vmatmul.msk.f32.gmra.mxu1 %vm235_vm0, %v16124_v36  ;;  %v13416_v55 = vld [vmem:[%s18833_s3 + $0xb8] sm:$0xff] }
 0xf5d   :  { %12086 = vmatmul.msk.f32.gmra.mxu0 %vm235_vm0, %v16124_v36  ;;  %7048 = vmatpush.msrb.mxu2 %v13393_v8  ;;  %v13418_v8 = vld [vmem:[%s18833_s3 + $0xb0] sm:$0xff] }
 0xf5f   :  { %12169 = vmatmul.msk.f32.vlgmr.msrb.gmra.mxu3 %vm235_vm0, %v16586_v49  ;;  %7049 = vmatpush.msrb.mxu2 %v13395_v62  ;;  %v13420_v62 = vld [vmem:[%s18833_s3 + $0xa8] sm:$0xff] }
 0xf60   :  { %12168 = vmatmul.msk.f32.gmra.mxu2 %vm235_vm0, %v16633_v42  ;;  %7069 = vmatpush.msrb.mxu3 %v13394_v43  ;;  %v13419_v43 = vld [vmem:[%s18833_s3 + $0x88] sm:$0xff] }
 0xf62   :  { %7070 = vmatpush.msrb.mxu3 %v13396_v7  ;;  %v16656_v29 = vpop.f32.mrf.mxu3 }
 0xf63   :  { %v16654_v41 = vpop.f32.mrf.mxu2 }
 0xf64   :  { %7071 = vmatpush.msrb.mxu3 %v13397_v47  ;;  %12095 = vmatmul.msk.f32.vlgmr.msrb.gmra.mxu1 %vm235_vm0, %v16103_v38 }
 0xf65   :  { %12093 = vmatmul.msk.f32.vlgmr.msrb.gmra.mxu0 %vm235_vm0, %v16103_v38  ;;  %6269 = vmatpush.msrb.mxu1 %v13399_v2  ;;  %v13422_v2 = vld [vmem:[%s18833_s3 + $0xa0] sm:$0xff] }
 0xf66   :  { %6246 = vmatpush.msrb.mxu0 %v13398_v13  ;;  %7072 = vmatpush.msrb.mxu3 %v13402_v11  ;;  %v13421_v13 = vld [vmem:[%s18833_s3 + $0x80] sm:$0xff] }
 0xf67   :  { %12170 = vmatmul.msk.f32.gmra.mxu3 %vm235_vm0, %v16633_v42  ;;  %6270 = vmatpush.msrb.mxu1 %v13401_v27  ;;  %v5465_v27 = vpop.f32.mrf.mxu0 }
 0xf68   :  { %12175 = vmatmul.msk.f32.vlgmr.msra.gmra.mxu2 %vm235_vm0, %v16586_v49  ;;  %6247 = vmatpush.msrb.mxu0 %v13400_v25 }
 0xf69   :  { %6271 = vmatpush.msrb.mxu1 %v13404_v33  ;;  %v13423_v33 = vld [vmem:[%s18831_s1 + $0x118] sm:$0xff] }
 0xf6a   :  { %6248 = vmatpush.msrb.mxu0 %v13403_v32  ;;  %v16687_v18 = vpop.f32.mrf.mxu3 }
 0xf6b   :  { %v16689_v46 = vpop.f32.mrf.mxu2  ;;  %6272 = vmatpush.msrb.mxu1 %v13406_v9  ;;  %v13425_v9 = vld [vmem:[%s18831_s1 + $0x110] sm:$0xff] }
 0xf6c   :  { %19327 = vst [vmem:[#allocation19_spill] sm:$0xff] %v16689_v46  ;;  %6249 = vmatpush.msrb.mxu0 %v13405_v15  ;;  %12096 = vmatmul.msk.f32.gmra.mxu1 %vm235_vm0, %v16124_v36  ;;  %v13424_v15 = vld [vmem:[%s18831_s1 + $0x138] sm:$0xff] }
 0xf6d   :  { %12094 = vmatmul.msk.f32.gmra.mxu0 %vm235_vm0, %v16124_v36 }
 0xf6f   :  { %12177 = vmatmul.msk.f32.vlgmr.msra.gmra.mxu3 %vm235_vm0, %v16586_v49 }
 0xf70   :  { %12176 = vmatmul.msk.f32.gmra.mxu2 %vm235_vm0, %v16633_v42 }
 0xf72   :  { %v16710_v44 = vpop.f32.mrf.mxu3 }
 0xf73   :  { %v16708_v28 = vpop.f32.mrf.mxu2  ;;  %19329 = vst [vmem:[#allocation56_spill] sm:$0xff] %v16710_v44 }
 0xf74   :  { %19328 = vst [vmem:[#allocation15_spill] sm:$0xff] %v16708_v28  ;;  %12103 = vmatmul.msk.f32.vlgmr.msra.gmra.mxu1 %vm235_vm0, %v16103_v38 }
 0xf75   :  { %12101 = vmatmul.msk.f32.vlgmr.msra.gmra.mxu0 %vm235_vm0, %v16103_v38  ;;  %6361 = vmatpush.msra.mxu1 %v13408_v4  ;;  %v13409_v38 = vld [vmem:[%s18832_s2 + $0x90] sm:$0xff] }
 0xf76   :  { %6338 = vmatpush.msra.mxu0 %v13407_v6  ;;  %v13426_v6 = vld [vmem:[%s18831_s1 + $0x130] sm:$0xff] }
 0xf77   :  { %12178 = vmatmul.msk.f32.gmra.mxu3 %vm235_vm0, %v16633_v42  ;;  %6362 = vmatpush.msra.mxu1 %v13410_v35 }
 0xf78   :  { %12183 = vmatmul.msk.f32.vlgmr.msrb.gmra.mxu2 %vm235_vm0, %v16586_v49  ;;  %6339 = vmatpush.msra.mxu0 %v13409_v38  ;;  %v13427_v38 = vld [vmem:[%s18831_s1 + $0x108] sm:$0xff] }
 0xf79   :  { %6363 = vmatpush.msra.mxu1 %v13412_v51  ;;  %v13428_v51 = vld [vmem:[%s18831_s1 + $0x128] sm:$0xff] }
 0xf7a   :  { %6340 = vmatpush.msra.mxu0 %v13411_v3  ;;  %v16735_v31 = vpop.f32.mrf.mxu3 }
 0xf7b   :  { %19330 = vst [vmem:[#allocation26_spill] sm:$0xff] %v16735_v31  ;;  %v16737_v50 = vpop.f32.mrf.mxu2  ;;  %6364 = vmatpush.msra.mxu1 %v13414_v0  ;;  %v13429_v0 = vld [vmem:[%s18831_s1 + $0x100] sm:$0xff] }
 0xf7c   :  { %19331 = vst [vmem:[#allocation22_spill] sm:$0xff] %v16737_v50  ;;  %6341 = vmatpush.msra.mxu0 %v13413_v40  ;;  %12104 = vmatmul.msk.f32.gmra.mxu1 %vm235_vm0, %v16124_v36  ;;  %v5578_v40 = vpop.f32.mrf.mxu0 }
 0xf7d   :  { %12102 = vmatmul.msk.f32.gmra.mxu0 %vm235_vm0, %v16124_v36  ;;  %v5491_v36 = vpop.f32.mrf.mxu1 }
 0xf7f   :  { %12185 = vmatmul.msk.f32.vlgmr.msrb.gmra.mxu3 %vm235_vm0, %v16586_v49 }
 0xf80   :  { %12184 = vmatmul.msk.f32.gmra.mxu2 %vm235_vm0, %v16633_v42 }
 0xf82   :  { %v16758_v20 = vpop.f32.mrf.mxu3 }
 0xf83   :  { %v16756_v5 = vpop.f32.mrf.mxu2  ;;  %19333 = vst [vmem:[#allocation27_spill] sm:$0xff] %v16758_v20 }
 0xf84   :  { %19332 = vst [vmem:[#allocation57_spill] sm:$0xff] %v16756_v5  ;;  %12113 = vmatmul.msk.f32.vlgmr.msrb.gmra.mxu1 %vm235_vm0, %v16258_v53 }
 0xf85   :  { %12111 = vmatmul.msk.f32.vlgmr.msrb.gmra.mxu0 %vm235_vm0, %v16258_v53  ;;  %6453 = vmatpush.msrb.mxu1 %v13416_v55  ;;  %v5494_v25 = vpop.f32.mrf.mxu1  ;;  %v13430_v55 = vld [vmem:[%s18831_s1 + $0x120] sm:$0xff] }
 0xf86   :  { %6430 = vmatpush.msrb.mxu0 %v13415_v56  ;;  %v5903_v56 = vadd.f32 %v5491_v36, %v5462_v14  ;;  %v5918_v36 = vadd.f32 %v5494_v25, %v5465_v27 }
 0xf87   :  { %12186 = vmatmul.msk.f32.gmra.mxu3 %vm235_vm0, %v16633_v42  ;;  %6454 = vmatpush.msrb.mxu1 %v13418_v8 }
 0xf88   :  { %6431 = vmatpush.msrb.mxu0 %v13417_v63  ;;  %v5904_v63 = vadd.f32 %v5903_v56, %v16296_v30  ;;  %v5581_v30 = vpop.f32.mrf.mxu0  ;;  %v5919_v27 = vadd.f32 %v5918_v36, %v16319_v54  ;;  %v13437_v54 = vld [vmem:[%s18832_s2 + $0x100] sm:$0xff] }
 0xf89   :  { %6455 = vmatpush.msrb.mxu1 %v13420_v62 }
 0xf8a   :  { %6432 = vmatpush.msrb.mxu0 %v13419_v43  ;;  %v16784_v7 = vpop.f32.mrf.mxu3  ;;  %v5905_v14 = vadd.f32 %v5904_v63, %v16312_v39  ;;  %v13433_v39 = vld [vmem:[%s18832_s2 + $0x110] sm:$0xff] }
 0xf8b   :  { %19334 = vst [vmem:[#allocation60_spill] sm:$0xff] %v16784_v7  ;;  %v16786_v47 = vpop.f32.mrf.mxu2  ;;  %6456 = vmatpush.msrb.mxu1 %v13422_v2  ;;  %v13432_v2 = vld [vmem:[%s18832_s2 + $0x138] sm:$0xff] }
 0xf8c   :  { %19335 = vst [vmem:[#allocation23_spill] sm:$0xff] %v16786_v47  ;;  %6433 = vmatpush.msrb.mxu0 %v13421_v13  ;;  %12114 = vmatmul.msk.f32.gmra.mxu1 %vm235_vm0, %v16284_v59  ;;  %v13431_v13 = vld [vmem:[%s18832_s2 + $0x118] sm:$0xff]  ;;  %v5906_v25 = vadd.f32 %v5905_v14, %v5578_v40  ;;  %v5920_v40 = vadd.f32 %v5919_v27, %v16337_v26 }
 0xf8d   :  { %12112 = vmatmul.msk.f32.gmra.mxu0 %vm235_vm0, %v16284_v59  ;;  %v5607_v4 = vpop.f32.mrf.mxu1  ;;  %v13440_v26 = vld [vmem:[%s18833_s3 + $0x138] sm:$0xff] }
 0xf92   :  { %v16800_v32 = vpop.f32.mrf.mxu3 }
 0xf93   :  { %v16798_v11 = vpop.f32.mrf.mxu2  ;;  %19337 = vst [vmem:[#allocation7_spill] sm:$0xff] %v16800_v32 }
 0xf94   :  { %19336 = vst [vmem:[#allocation61_spill] sm:$0xff] %v16798_v11  ;;  %12195 = vmatpush.xpose.msk.msra.mxu2 %vm1373_vm1, %v16798_v11  ;;  %12121 = vmatmul.msk.f32.vlgmr.msra.gmra.mxu1 %vm235_vm0, %v16258_v53 }
 0xf95   :  { %12119 = vmatmul.msk.f32.vlgmr.msra.gmra.mxu0 %vm235_vm0, %v16258_v53  ;;  %6554 = vmatpush.msra.mxu1 %v13424_v15  ;;  %v5610_v62 = vpop.f32.mrf.mxu1  ;;  %v13436_v15 = vld [vmem:[%s18832_s2 + $0x128] sm:$0xff] }
 0xf96   :  { %6531 = vmatpush.msra.mxu0 %v13423_v33  ;;  %v13435_v33 = vld [vmem:[%s18832_s2 + $0x108] sm:$0xff] }
 0xf97   :  { %6555 = vmatpush.msra.mxu1 %v13426_v6 }
 0xf98   :  { %12196 = vmatpush.xpose.msk.msra.mxu2 %vm1373_vm1, %v16786_v47  ;;  %6532 = vmatpush.msra.mxu0 %v13425_v9  ;;  %v5907_v9 = vadd.f32 %v5906_v25, %v5607_v4 }
 0xf99   :  { %6556 = vmatpush.msra.mxu1 %v13428_v51  ;;  %v13438_v51 = vld [vmem:[%s18832_s2 + $0x120] sm:$0xff] }
 0xf9a   :  { %6533 = vmatpush.msra.mxu0 %v13427_v38  ;;  %v16825_v35 = vpop.f32.mrf.mxu3  ;;  %v5908_v4 = vadd.f32 %v5907_v9, %v16345_v19  ;;  %v13445_v9 = vld [vmem:[%s18833_s3 + $0x100] sm:$0xff] }
 0xf9b   :  { %19338 = vst [vmem:[#allocation5_spill] sm:$0xff] %v16825_v35  ;;  %v16827_v3 = vpop.f32.mrf.mxu2  ;;  %12197 = vmatmul.msk.f32.vlgmr.msra.gmra.mxu2 %vm1373_vm1, %v16543_v57  ;;  %12199 = vmatpush.xpose.msk.msra.mxu3 %vm1373_vm1, %v16825_v35 }
 0xf9c   :  { %19339 = vst [vmem:[#allocation8_spill] sm:$0xff] %v16827_v3  ;;  %6534 = vmatpush.msra.mxu0 %v13429_v0  ;;  %12122 = vmatmul.msk.f32.gmra.mxu1 %vm235_vm0, %v16284_v59  ;;  %v5921_v0 = vadd.f32 %v5920_v40, %v5581_v30  ;;  %v5909_v36 = vadd.f32 %v5908_v4, %v16363_v16  ;;  %v13441_v16 = vld [vmem:[%s18833_s3 + $0x110] sm:$0xff] }
 0xf9d   :  { %12120 = vmatmul.msk.f32.gmra.mxu0 %vm235_vm0, %v16284_v59  ;;  %6557 = vmatpush.msra.mxu1 %v13430_v55  ;;  %v5723_v56 = vpop.f32.mrf.mxu1  ;;  %v5694_v55 = vpop.f32.mrf.mxu0 }
 0xf9e   :  { %v5922_v63 = vadd.f32 %v5921_v0, %v5610_v62  ;;  %v13442_v62 = vld [vmem:[%s18833_s3 + $0x130] sm:$0xff] }
 0xf9f   :  { %12200 = vmatpush.xpose.msk.msra.mxu3 %vm1373_vm1, %v16800_v32 }
 0xfa0   :  { %v5923_v19 = vadd.f32 %v5922_v63, %v16371_v58  ;;  %v13444_v58 = vld [vmem:[%s18833_s3 + $0x128] sm:$0xff] }
 0xfa2   :  { %v16851_v43 = vpop.f32.mrf.mxu3  ;;  %12201 = vmatmul.msk.f32.vlgmr.msra.gmra.mxu3 %vm1373_vm1, %v16574_v17  ;;  %v5924_v27 = vadd.f32 %v5923_v19, %v16409_v61  ;;  %v13449_v19 = vld [vmem:[%s18831_s1 + $0x190] sm:$0xff] }
 0xfa3   :  { %v16849_v8 = vpop.f32.mrf.mxu2  ;;  %19341 = vst [vmem:[#allocation36_spill] sm:$0xff] %v16851_v43  ;;  %12198 = vmatmul.msk.f32.gmra.mxu2 %vm1373_vm1, %v16572_v10 }
 0xfa4   :  { %19340 = vst [vmem:[#allocation6_spill] sm:$0xff] %v16849_v8  ;;  %12129 = vmatmul.msk.f32.vlgmr.msrb.gmra.mxu1 %vm235_vm0, %v16258_v53 }
 0xfa5   :  { %12127 = vmatmul.msk.f32.vlgmr.msrb.gmra.mxu0 %vm235_vm0, %v16258_v53  ;;  %6646 = vmatpush.msrb.mxu1 %v13432_v2  ;;  %v13434_v53 = vld [vmem:[%s18832_s2 + $0x130] sm:$0xff]  ;;  %v5910_v2 = vadd.f32 %v5909_v36, %v5694_v55  ;;  %v5726_v25 = vpop.f32.mrf.mxu1 }
 0xfa6   :  { %6623 = vmatpush.msrb.mxu0 %v13431_v13 }
 0xfa7   :  { %6647 = vmatpush.msrb.mxu1 %v13434_v53  ;;  %v5911_v30 = vadd.f32 %v5910_v2, %v5723_v56  ;;  %v13443_v53 = vld [vmem:[%s18833_s3 + $0x108] sm:$0xff] }
 0xfa8   :  { %6624 = vmatpush.msrb.mxu0 %v13433_v39  ;;  %v5697_v39 = vpop.f32.mrf.mxu0 }
 0xfa9   :  { %6648 = vmatpush.msrb.mxu1 %v13436_v15  ;;  %v5925_v40 = vadd.f32 %v5924_v27, %v5697_v39  ;;  %v13451_v39 = vld [vmem:[%s18831_s1 + $0x188] sm:$0xff] }
 0xfaa   :  { %6625 = vmatpush.msrb.mxu0 %v13435_v33  ;;  %v16881_v6 = vpop.f32.mrf.mxu3  ;;  %12202 = vmatmul.msk.f32.gmra.mxu3 %vm1373_vm1, %v16613_v37 }
 0xfab   :  { %19342 = vst [vmem:[#allocation32_spill] sm:$0xff] %v16881_v6  ;;  %v16883_v38 = vpop.f32.mrf.mxu2  ;;  %6649 = vmatpush.msrb.mxu1 %v13438_v51  ;;  %v5912_v51 = vadd.f32 %v5911_v30, %v16421_v52  ;;  %v5926_v61 = vadd.f32 %v5925_v40, %v5726_v25 }
 0xfac   :  { %19343 = vst [vmem:[#allocation37_spill] sm:$0xff] %v16883_v38  ;;  %6626 = vmatpush.msrb.mxu0 %v13437_v54  ;;  %12130 = vmatmul.msk.f32.gmra.mxu1 %vm235_vm0, %v16284_v59  ;;  %v13446_v54 = vld [vmem:[%s18833_s3 + $0x120] sm:$0xff] }
 0xfad   :  { %12128 = vmatmul.msk.f32.gmra.mxu0 %vm235_vm0, %v16284_v59  ;;  %v13439_v59 = vld [vmem:[%s18833_s3 + $0x118] sm:$0xff]  ;;  %v5913_v4 = vadd.f32 %v5912_v51, %v16448_v45  ;;  %v5927_v52 = vadd.f32 %v5926_v61, %v16458_v60  ;;  %v12510_v60 = vld [vmem:[%s18835_s5] ss:$0 sm:$0xff] }
 0xfae   :  { %v13447_v45 = vld [vmem:[%s18831_s1 + $0x198] sm:$0xff]  ;;  %v13454_v51 = vld [vmem:[%s18831_s1 + $0x1a0] sm:$0xff] }
 0xfb2   :  { %v16902_v13 = vpop.f32.mrf.mxu3 }
 0xfb3   :  { %v16900_v14 = vpop.f32.mrf.mxu2  ;;  %19345 = vst [vmem:[#allocation68_spill] sm:$0xff] %v16902_v13 }
 0xfb4   :  { %19344 = vst [vmem:[#allocation33_spill] sm:$0xff] %v16900_v14  ;;  %12139 = vmatmul.msk.f32.vlgmr.msra.gmra.mxu1 %vm235_vm0, %v16401_v34 }
 0xfb5   :  { %12137 = vmatmul.msk.f32.vlgmr.msra.gmra.mxu0 %vm235_vm0, %v16401_v34  ;;  %6738 = vmatpush.msra.mxu1 %v13440_v26 }
 0xfb6   :  { %6715 = vmatpush.msra.mxu0 %v13439_v59  ;;  %v13448_v59 = vld [vmem:[%s18831_s1 + $0x1b8] sm:$0xff] }
 0xfb7   :  { %6739 = vmatpush.msra.mxu1 %v13442_v62  ;;  %v5928_v62 = vadd.f32 %v5927_v52, %v16473_v23  ;;  %v13452_v23 = vld [vmem:[%s18831_s1 + $0x1a8] sm:$0xff] }
 0xfb8   :  { %6716 = vmatpush.msra.mxu0 %v13441_v16 }
 0xfb9   :  { %6740 = vmatpush.msra.mxu1 %v13444_v58 }
 0xfba   :  { %6717 = vmatpush.msra.mxu0 %v13443_v53  ;;  %v16928_v33 = vpop.f32.mrf.mxu3 }
 0xfbb   :  { %19346 = vst [vmem:[#allocation44_spill] sm:$0xff] %v16928_v33  ;;  %v16930_v15 = vpop.f32.mrf.mxu2  ;;  %6741 = vmatpush.msra.mxu1 %v13446_v54 }
 0xfbc   :  { %19347 = vst [vmem:[#allocation40_spill] sm:$0xff] %v16930_v15  ;;  %6718 = vmatpush.msra.mxu0 %v13445_v9  ;;  %12140 = vmatmul.msk.f32.gmra.mxu1 %vm235_vm0, %v16438_v1 }
 0xfbd   :  { %12138 = vmatmul.msk.f32.gmra.mxu0 %vm235_vm0, %v16438_v1 }
 0xfc0   :  { %v5839_v0 = vpop.f32.mrf.mxu1 }
 0xfc1   :  { %v5810_v56 = vpop.f32.mrf.mxu0 }
 0xfc2   :  { %v5914_v55 = vadd.f32 %v5913_v4, %v5810_v56  ;;  %v16946_v36 = vpop.f32.mrf.mxu3 }
 0xfc3   :  { %v16944_v63 = vpop.f32.mrf.mxu2  ;;  %19349 = vst [vmem:[#allocation45_spill] sm:$0xff] %v16946_v36 }
 0xfc4   :  { %19348 = vst [vmem:[#allocation69_spill] sm:$0xff] %v16944_v63  ;;  %12211 = vmatpush.xpose.msk.msrb.mxu2 %vm1373_vm1, %v16944_v63  ;;  %v5915_v2 = vadd.f32 %v5914_v55, %v5839_v0  ;;  %12147 = vmatmul.msk.f32.vlgmr.msrb.gmra.mxu1 %vm235_vm0, %v16401_v34 }
 0xfc5   :  { %12145 = vmatmul.msk.f32.vlgmr.msrb.gmra.mxu0 %vm235_vm0, %v16401_v34  ;;  %6839 = vmatpush.msrb.mxu1 %v13448_v59 }
 0xfc6   :  { %6816 = vmatpush.msrb.mxu0 %v13447_v45  ;;  %v5916_v26 = vadd.f32 %v5915_v2, %v16475_v24  ;;  %v13450_v24 = vld [vmem:[%s18831_s1 + $0x1b0] sm:$0xff] }
 0xfc7   :  { %6840 = vmatpush.msrb.mxu1 %v13450_v24  ;;  %v13457_v2 = vld [vmem:[%s18832_s2 + $0x190] sm:$0xff] }
 0xfc8   :  { %12212 = vmatpush.xpose.msk.msrb.mxu2 %vm1373_vm1, %v16930_v15  ;;  %6817 = vmatpush.msrb.mxu0 %v13449_v19  ;;  %v5917_v16 = vadd.f32 %v5916_v26, %v16497_v22  ;;  %v13453_v22 = vld [vmem:[%s18831_s1 + $0x180] sm:$0xff]  ;;  %v13459_v26 = vld [vmem:[%s18832_s2 + $0x188] sm:$0xff] }
 0xfc9   :  { %v5842_v25 = vpop.f32.mrf.mxu1  ;;  %6841 = vmatpush.msrb.mxu1 %v13452_v23  ;;  %v13460_v19 = vld [vmem:[%s18832_s2 + $0x1a8] sm:$0xff] }
 0xfca   :  { %v5813_v30 = vpop.f32.mrf.mxu0  ;;  %6818 = vmatpush.msrb.mxu0 %v13451_v39  ;;  %v5936_v53 = vadd.f32 %v12510_v60, %v5917_v16  ;;  %v16978_v27 = vpop.f32.mrf.mxu3  ;;  %v13461_v16 = vld [vmem:[%s18832_s2 + $0x180] sm:$0xff]  ;;  %v13465_v39 = vld [vmem:[%s18833_s3 + $0x190] sm:$0xff] }
 0xfcb   :  { %v5929_v58 = vadd.f32 %v5928_v62, %v5813_v30  ;;  %19350 = vst [vmem:[#allocation70_spill] sm:$0xff] %v16978_v27  ;;  %v16980_v9 = vpop.f32.mrf.mxu2  ;;  %12213 = vmatmul.msk.f32.vlgmr.msrb.gmra.mxu2 %vm1373_vm1, %v16543_v57  ;;  %12215 = vmatpush.xpose.msk.msrb.mxu3 %vm1373_vm1, %v16978_v27  ;;  %v13462_v62 = vld [vmem:[%s18832_s2 + $0x1a0] sm:$0xff] }
 0xfcc   :  { %19351 = vst [vmem:[#allocation41_spill] sm:$0xff] %v16980_v9  ;;  %6819 = vmatpush.msrb.mxu0 %v13453_v22  ;;  %12148 = vmatmul.msk.f32.gmra.mxu1 %vm235_vm0, %v16438_v1  ;;  %v13467_v22 = vld [vmem:[%s18833_s3 + $0x188] sm:$0xff] }
 0xfcd   :  { %5938 = vst [vmem:[#allocation2] sm:$0xff] %v5936_v53  ;;  %v5930_v54 = vadd.f32 %v5929_v58, %v5842_v25  ;;  %12146 = vmatmul.msk.f32.gmra.mxu0 %vm235_vm0, %v16438_v1  ;;  %6842 = vmatpush.msrb.mxu1 %v13454_v51  ;;  %v13464_v25 = vld [vmem:[%s18833_s3 + $0x1b8] sm:$0xff]  ;;  %v13466_v53 = vld [vmem:[%s18833_s3 + $0x1b0] sm:$0xff]  ;;  %v13469_v51 = vld [vmem:[%s18833_s3 + $0x180] sm:$0xff] }
 0xfcf   :  { %v5931_v40 = vadd.f32 %v5930_v54, %v16502_v21  ;;  %12216 = vmatpush.xpose.msk.msrb.mxu3 %vm1373_vm1, %v16946_v36  ;;  %v13455_v21 = vld [vmem:[%s18832_s2 + $0x198] sm:$0xff]  ;;  %v13468_v54 = vld [vmem:[%s18833_s3 + $0x1a8] sm:$0xff] }
 0xfd1   :  { %v5932_v61 = vadd.f32 %v5931_v40, %v16541_v12  ;;  %v17005_v0 = vpop.f32.mrf.mxu1  ;;  %v13456_v12 = vld [vmem:[%s18832_s2 + $0x1b8] sm:$0xff]  ;;  %v13470_v40 = vld [vmem:[%s18833_s3 + $0x1a0] sm:$0xff] }
 0xfd2   :  { %v17003_v4 = vpop.f32.mrf.mxu0  ;;  %v17009_v52 = vpop.f32.mrf.mxu3  ;;  %12217 = vmatmul.msk.f32.vlgmr.msrb.gmra.mxu3 %vm1373_vm1, %v16574_v17 }
 0xfd3   :  { %v5937_v56 = vadd.f32 %v12510_v60, %v5932_v61  ;;  %v17007_v55 = vpop.f32.mrf.mxu2  ;;  %19353 = vst [vmem:[#allocation20_spill] sm:$0xff] %v17009_v52  ;;  %12214 = vmatmul.msk.f32.gmra.mxu2 %vm1373_vm1, %v16572_v10 }
 0xfd4   :  { %19352 = vst [vmem:[#allocation71_spill] sm:$0xff] %v17007_v55  ;;  %7638 = vmatpush.msra.mxu2 %v17007_v55  ;;  %12155 = vmatmul.msk.f32.vlgmr.msra.gmra.mxu1 %vm235_vm0, %v16401_v34 }
 0xfd5   :  { %5939 = vst [vmem:[#allocation2 + $0x8] sm:$0xff] %v5937_v56  ;;  %12153 = vmatmul.msk.f32.vlgmr.msra.gmra.mxu0 %vm235_vm0, %v16401_v34  ;;  %6931 = vmatpush.msra.mxu1 %v13456_v12  ;;  %v13458_v34 = vld [vmem:[%s18832_s2 + $0x1b0] sm:$0xff] }
 0xfd6   :  { %7639 = vmatpush.msra.mxu2 %v16980_v9  ;;  %6908 = vmatpush.msra.mxu0 %v13455_v21 }
 0xfd7   :  { %6932 = vmatpush.msra.mxu1 %v13458_v34 }
 0xfd8   :  { %7754 = vmatpush.msrb.mxu2 %v16849_v8  ;;  %6909 = vmatpush.msra.mxu0 %v13457_v2 }
 0xfd9   :  { %v17037_v59 = vpop.f32.mrf.mxu1  ;;  %6933 = vmatpush.msra.mxu1 %v13460_v19 }
 0xfda   :  { %7755 = vmatpush.msrb.mxu2 %v16827_v3  ;;  %v17035_v45 = vpop.f32.mrf.mxu0  ;;  %19355 = vst [vmem:[#allocation21_spill] sm:$0xff] %v17037_v59  ;;  %6910 = vmatpush.msra.mxu0 %v13459_v26  ;;  %v17042_v60 = vpop.f32.mrf.mxu3 }
 0xfdb   :  { %19354 = vst [vmem:[#allocation16_spill] sm:$0xff] %v17035_v45  ;;  %12218 = vmatmul.msk.f32.gmra.mxu3 %vm1373_vm1, %v16613_v37  ;;  %6934 = vmatpush.msra.mxu1 %v13462_v62  ;;  %v17119_v2 = vpop.f32.mrf.mxu2 }
 0xfdc   :  { %19356 = vst [vmem:[#allocation17_spill] sm:$0xff] %v17042_v60  ;;  %7667 = vmatpush.msra.mxu3 %v17042_v60  ;;  %6911 = vmatpush.msra.mxu0 %v13461_v16 }
 0xfdd   :  { %12154 = vmatmul.msk.f32.gmra.mxu0 %vm235_vm0, %v16438_v1  ;;  %12156 = vmatmul.msk.f32.gmra.mxu1 %vm235_vm0, %v16438_v1  ;;  %v13463_v1 = vld [vmem:[%s18833_s3 + $0x198] sm:$0xff]  ;;  %19362 = vst [vmem:[#allocation46_spill] sm:$0xff] %v17119_v2 }
 0xfde   :  { %7668 = vmatpush.msra.mxu3 %v17009_v52 }
 0xfe0   :  { %7783 = vmatpush.msrb.mxu3 %v16881_v6 }
 0xfe1   :  { %v17065_v30 = vpop.f32.mrf.mxu1 }
 0xfe2   :  { %7784 = vmatpush.msrb.mxu3 %v16851_v43  ;;  %v17063_v24 = vpop.f32.mrf.mxu0  ;;  %19357 = vst [vmem:[#allocation42_spill] sm:$0xff] %v17065_v30  ;;  %v17129_v19 = vpop.f32.mrf.mxu3 }
 0xfe3   :  { %19365 = vst [vmem:[#allocation58_spill] sm:$0xff] %v17129_v19  ;;  %v17131_v16 = vpop.f32.mrf.mxu2 }
 0xfe4   :  { %19366 = vst [vmem:[#allocation59_spill] sm:$0xff] %v17131_v16 }
 0xfe5   :  { %12163 = vmatmul.msk.f32.vlgmr.msrb.gmra.mxu0 %vm235_vm0, %v16586_v49  ;;  %12165 = vmatmul.msk.f32.vlgmr.msrb.gmra.mxu1 %vm235_vm0, %v16586_v49 }
 0xfe6   :  { %7000 = vmatpush.msrb.mxu0 %v13463_v1  ;;  %7023 = vmatpush.msrb.mxu1 %v13464_v25 }
 0xfe8   :  { %7001 = vmatpush.msrb.mxu0 %v13465_v39  ;;  %7024 = vmatpush.msrb.mxu1 %v13466_v53 }
 0xfe9   :  { %v17085_v23 = vpop.f32.mrf.mxu1 }
 0xfea   :  { %v17083_v58 = vpop.f32.mrf.mxu0  ;;  %7002 = vmatpush.msrb.mxu0 %v13467_v22  ;;  %7025 = vmatpush.msrb.mxu1 %v13468_v54  ;;  %v17141_v25 = vpop.f32.mrf.mxu3 }
 0xfeb   :  { %19369 = vst [vmem:[#allocation66_spill] sm:$0xff] %v17141_v25 }
 0xfec   :  { %7003 = vmatpush.msrb.mxu0 %v13469_v51  ;;  %7026 = vmatpush.msrb.mxu1 %v13470_v40 }
 0xfed   :  { %12164 = vmatmul.msk.f32.gmra.mxu0 %vm235_vm0, %v16633_v42  ;;  %12166 = vmatmul.msk.f32.gmra.mxu1 %vm235_vm0, %v16633_v42 }
 0xff1   :  { %v17105_v56 = vpop.f32.mrf.mxu1 }
 0xff2   :  { %v17103_v61 = vpop.f32.mrf.mxu0  ;;  %19359 = vst [vmem:[#allocation43_spill] sm:$0xff] %v17105_v56  ;;  %v17153_v51 = vpop.f32.mrf.mxu3 }
 0xff3   :  { %19358 = vst [vmem:[#allocation38_spill] sm:$0xff] %v17103_v61 }
 0xff5   :  { %12171 = vmatmul.msk.f32.vlgmr.msra.gmra.mxu0 %vm235_vm0, %v16586_v49  ;;  %12173 = vmatmul.msk.f32.vlgmr.msra.gmra.mxu1 %vm235_vm0, %v16586_v49 }
 0xff9   :  { %v17113_v12 = vpop.f32.mrf.mxu1 }
 0xffa   :  { %v17111_v21 = vpop.f32.mrf.mxu0  ;;  %19361 = vst [vmem:[#allocation50_spill] sm:$0xff] %v17113_v12  ;;  %v17173_v16 = vpop.f32.mrf.mxu3 }
 0xffb   :  { %19360 = vst [vmem:[#allocation39_spill] sm:$0xff] %v17111_v21 }
 0xffd   :  { %12172 = vmatmul.msk.f32.gmra.mxu0 %vm235_vm0, %v16633_v42  ;;  %12174 = vmatmul.msk.f32.gmra.mxu1 %vm235_vm0, %v16633_v42 }
0x1001   :  { %v17123_v26 = vpop.f32.mrf.mxu1 }
0x1002   :  { %v17121_v34 = vpop.f32.mrf.mxu0  ;;  %19364 = vst [vmem:[#allocation47_spill] sm:$0xff] %v17123_v26 }
0x1003   :  { %19363 = vst [vmem:[#allocation51_spill] sm:$0xff] %v17121_v34 }
0x1005   :  { %12179 = vmatmul.msk.f32.vlgmr.msrb.gmra.mxu0 %vm235_vm0, %v16586_v49  ;;  %12181 = vmatmul.msk.f32.vlgmr.msrb.gmra.mxu1 %vm235_vm0, %v16586_v49  ;;  %v17147_v49 = vpop.f32.mrf.mxu2 }
0x1009   :  { %v17135_v1 = vpop.f32.mrf.mxu1 }
0x100a   :  { %v17133_v62 = vpop.f32.mrf.mxu0  ;;  %19368 = vst [vmem:[#allocation55_spill] sm:$0xff] %v17135_v1 }
0x100b   :  { %19367 = vst [vmem:[#allocation54_spill] sm:$0xff] %v17133_v62 }
0x100d   :  { %12180 = vmatmul.msk.f32.gmra.mxu0 %vm235_vm0, %v16633_v42  ;;  %12182 = vmatmul.msk.f32.gmra.mxu1 %vm235_vm0, %v16633_v42  ;;  %v17159_v42 = vpop.f32.mrf.mxu2 }
0x1011   :  { %v17145_v53 = vpop.f32.mrf.mxu1 }
0x1012   :  { %v17143_v39 = vpop.f32.mrf.mxu0  ;;  %19371 = vst [vmem:[#allocation64_spill] sm:$0xff] %v17145_v53 }
0x1013   :  { %19370 = vst [vmem:[#allocation67_spill] sm:$0xff] %v17143_v39 }
0x1015   :  { %v17175_v19 = vpop.f32.mrf.mxu2 }
0x1019   :  { %v17151_v54 = vpop.f32.mrf.mxu1 }
0x101a   :  { %v17149_v22 = vpop.f32.mrf.mxu0  ;;  %19373 = vst [vmem:[#allocation72_spill] sm:$0xff] %v17151_v54  ;;  %12191 = vmatpush.xpose.msk.msra.mxu1 %vm1373_vm1, %v17151_v54 }
0x101b   :  { %19372 = vst [vmem:[#allocation65_spill] sm:$0xff] %v17149_v22  ;;  %12187 = vmatpush.xpose.msk.msra.mxu0 %vm1373_vm1, %v17149_v22 }
0x101e   :  { %12192 = vmatpush.xpose.msk.msra.mxu1 %vm1373_vm1, %v17145_v53  ;;  %v17185_v53 = vpop.f32.mrf.mxu3 }
0x101f   :  { %12188 = vmatpush.xpose.msk.msra.mxu0 %vm1373_vm1, %v17143_v39  ;;  %v17187_v39 = vpop.f32.mrf.mxu2 }
0x1021   :  { %v17167_v25 = vpop.f32.mrf.mxu1  ;;  %12193 = vmatmul.msk.f32.vlgmr.msra.gmra.mxu1 %vm1373_vm1, %v17005_v0 }
0x1022   :  { %v17165_v40 = vpop.f32.mrf.mxu0  ;;  %19375 = vst [vmem:[#allocation10_spill] sm:$0xff] %v17167_v25  ;;  %12189 = vmatmul.msk.f32.vlgmr.msra.gmra.mxu0 %vm1373_vm1, %v17003_v4 }
0x1023   :  { %19374 = vst [vmem:[#allocation76_spill] sm:$0xff] %v17165_v40 }
0x1026   :  { %v17193_v43 = vpop.f32.mrf.mxu3 }
0x1027   :  { %v17199_v13 = vpop.f32.mrf.mxu2 }
0x1028   :  { %v7232_v62 = vsel %vm1514_vm2, %v17199_v13, -inf }
0x1029   :  { %v17179_v54 = vpop.f32.mrf.mxu1  ;;  %12194 = vmatmul.msk.f32.gmra.mxu1 %vm1373_vm1, %v17037_v59 }
0x102a   :  { %v17177_v2 = vpop.f32.mrf.mxu0  ;;  %19377 = vst [vmem:[#allocation77_spill] sm:$0xff] %v17179_v54  ;;  %12190 = vmatmul.msk.f32.gmra.mxu0 %vm1373_vm1, %v17035_v45 }
0x102b   :  { %19376 = vst [vmem:[#allocation73_spill] sm:$0xff] %v17177_v2 }
0x102e   :  { %v17205_v38 = vpop.f32.mrf.mxu3 }
0x102f   :  { %v17207_v32 = vpop.f32.mrf.mxu2 }
0x1031   :  { %v17191_v33 = vpop.f32.mrf.mxu1 }
0x1032   :  { %v17189_v22 = vpop.f32.mrf.mxu0  ;;  %19379 = vst [vmem:[#allocation78_spill] sm:$0xff] %v17191_v33 }
0x1033   :  { %19378 = vst [vmem:[#allocation74_spill] sm:$0xff] %v17189_v22 }
0x1039   :  { %v17197_v6 = vpop.f32.mrf.mxu1 }
0x103a   :  { %v17195_v14 = vpop.f32.mrf.mxu0  ;;  %19381 = vst [vmem:[#allocation12_spill] sm:$0xff] %v17197_v6  ;;  %v17217_v6 = vpop.f32.mrf.mxu3 }
0x103b   :  { %19380 = vst [vmem:[#allocation11_spill] sm:$0xff] %v17195_v14 }
0x1041   :  { %v17203_v8 = vpop.f32.mrf.mxu1 }
0x1042   :  { %v17201_v3 = vpop.f32.mrf.mxu0  ;;  %19383 = vst [vmem:[#allocation79_spill] sm:$0xff] %v17203_v8 }
0x1043   :  { %19382 = vst [vmem:[#allocation75_spill] sm:$0xff] %v17201_v3 }
0x1049   :  { %v17211_v22 = vpop.f32.mrf.mxu1 }
0x104a   :  { %v17209_v35 = vpop.f32.mrf.mxu0  ;;  %19385 = vst [vmem:[#allocation92_spill] sm:$0xff] %v17211_v22  ;;  %12207 = vmatpush.xpose.msk.msrb.mxu1 %vm1373_vm1, %v17211_v22 }
0x104b   :  { %19384 = vst [vmem:[#allocation88_spill] sm:$0xff] %v17209_v35  ;;  %12203 = vmatpush.xpose.msk.msrb.mxu0 %vm1373_vm1, %v17209_v35 }
0x104e   :  { %v17219_v14 = vpop.f32.mrf.mxu2  ;;  %12208 = vmatpush.xpose.msk.msrb.mxu1 %vm1373_vm1, %v17203_v8 }
0x104f   :  { %12204 = vmatpush.xpose.msk.msrb.mxu0 %vm1373_vm1, %v17201_v3  ;;  %v7460_v33 = vsel %vm1514_vm2, %v17219_v14, -inf }
0x1050   :  { %7461 = vmax.xlane.f32.xlu0 %v7460_v33 }
0x1051   :  { %v17229_v11 = vpop.f32.mrf.mxu1  ;;  %12209 = vmatmul.msk.f32.vlgmr.msrb.gmra.mxu1 %vm1373_vm1, %v17005_v0 }
0x1052   :  { %v17227_v47 = vpop.f32.mrf.mxu0  ;;  %19387 = vst [vmem:[#allocation18_spill] sm:$0xff] %v17229_v11  ;;  %12205 = vmatmul.msk.f32.vlgmr.msrb.gmra.mxu0 %vm1373_vm1, %v17003_v4 }
0x1053   :  { %19386 = vst [vmem:[#allocation13_spill] sm:$0xff] %v17227_v47 }
0x1055   :  { %v7442_v61 = vpop.f32.mrf.mxu3 }
0x1056   :  { %v7416_v56 = vpop.f32.mrf.mxu2  ;;  %v7466_v12 = vsel %vm1514_vm2, %v7442_v61, -inf }
0x1057   :  { %v7463_v21 = vsel %vm1514_vm2, %v7416_v56, -inf  ;;  %7467 = vmax.xlane.f32.xlu1 %v7466_v12 }
0x1058   :  { %7464 = vmax.xlane.f32.xlu2 %v7463_v21 }
0x1059   :  { %12210 = vmatmul.msk.f32.gmra.mxu1 %vm1373_vm1, %v17037_v59 }
0x105a   :  { %v17237_v1 = vpop.f32.mrf.mxu0  ;;  %v17239_v33 = vpop.f32.mrf.mxu1  ;;  %12206 = vmatmul.msk.f32.gmra.mxu0 %vm1373_vm1, %v17035_v45 }
0x105b   :  { %19388 = vst [vmem:[#allocation89_spill] sm:$0xff] %v17237_v1  ;;  %7580 = vmatpush.msra.mxu0 %v17237_v1  ;;  %7609 = vmatpush.msra.mxu1 %v17239_v33 }
0x105c   :  { %19389 = vst [vmem:[#allocation93_spill] sm:$0xff] %v17239_v33 }
0x105d   :  { %7581 = vmatpush.msra.mxu0 %v17227_v47  ;;  %7610 = vmatpush.msra.mxu1 %v17229_v11  ;;  %v7238_v47 = vsel %vm1514_vm2, %v17205_v38, -inf }
0x105e   :  { %v7445_v21 = vpop.f32.mrf.mxu3 }
0x105f   :  { %7696 = vmatpush.msrb.mxu0 %v17177_v2  ;;  %7725 = vmatpush.msrb.mxu1 %v17179_v54  ;;  %v7469_v12 = vsel %vm1514_vm2, %v7445_v21, -inf  ;;  %v7235_v2 = vsel %vm1514_vm2, %v17207_v32, -inf  ;;  %v7241_v54 = vsel %vm1514_vm2, %v17217_v6, -inf }
0x1060   :  { %7233 = vmax.xlane.f32.xlu1 %v7232_v62  ;;  %7470 = vmax.xlane.f32.xlu0 %v7469_v12 }
0x1061   :  { %7697 = vmatpush.msrb.mxu0 %v17165_v40  ;;  %7726 = vmatpush.msrb.mxu1 %v17167_v25 }
0x1062   :  { %7239 = vmax.xlane.f32.xlu2 %v7238_v47  ;;  %v17262_v40 = vpop.f32.mrf.mxu0  ;;  %v17264_v25 = vpop.f32.mrf.mxu1 }
0x1063   :  { %19390 = vst [vmem:[#allocation90_spill] sm:$0xff] %v17262_v40 }
0x1064   :  { %19391 = vst [vmem:[#allocation94_spill] sm:$0xff] %v17264_v25 }
0x1068   :  { %7236 = vmax.xlane.f32.xlu0 %v7235_v2  ;;  %7242 = vmax.xlane.f32.xlu1 %v7241_v54 }
0x106a   :  { %v17266_v11 = vpop.f32.mrf.mxu0  ;;  %v17268_v62 = vpop.f32.mrf.mxu1 }
0x106b   :  { %19392 = vst [vmem:[#allocation30_spill] sm:$0xff] %v17266_v11 }
0x106c   :  { %19393 = vst [vmem:[#allocation31_spill] sm:$0xff] %v17268_v62 }
0x1072   :  { %v17270_v12 = vpop.f32.mrf.mxu0  ;;  %v17272_v33 = vpop.f32.mrf.mxu1 }
0x107a   :  { %v17274_v47 = vpop.f32.mrf.mxu0  ;;  %v17276_v1 = vpop.f32.mrf.mxu1 }
0x1082   :  { %v17278_v26 = vpop.f32.mrf.mxu0  ;;  %v17280_v2 = vpop.f32.mrf.mxu1 }
0x108a   :  { %v17282_v54 = vpop.f32.mrf.mxu0  ;;  %v17284_v40 = vpop.f32.mrf.mxu1 }
0x109e   :  { %v17288_v11 = vpop.f32.mrf.mxu1 }
0x109f   :  { %v17286_v25 = vpop.f32.mrf.mxu0 }
0x10a6   :  { %v17292_v34 = vpop.f32.mrf.mxu1 }
0x10a7   :  { %v17290_v62 = vpop.f32.mrf.mxu0 }
0x10c3   :  { %v7462_v3 = vpop.xlane.xlu0 %7461 }
0x10c4   :  { %v7476_v46 = vsub.f32 %v17219_v14, %v7462_v3 }
0x10c6   :  { %v7488_v9 = vmul.f32 1.442695, %v7476_v46 }
0x10ca   :  { %v7468_v8 = vpop.xlane.xlu1 %7467 }
0x10cb   :  { %v7478_v22 = vsub.f32 %v7442_v61, %v7468_v8  ;;  %v7465_v35 = vpop.xlane.xlu2 %7464 }
0x10cc   :  { %v7477_v7 = vsub.f32 %v7416_v56, %v7465_v35 }
0x10cd   :  { %v7492_v44 = vmul.f32 1.442695, %v7478_v22 }
0x10ce   :  { %v17297_v28 = vpop.f32.mrf.mxu1  ;;  %v7490_v8 = vmul.f32 1.442695, %v7477_v7 }
0x10cf   :  { %v17295_v31 = vpop.f32.mrf.mxu0  ;;  %v7454_v5 = vsel %vm1514_vm2, %v17297_v28, -inf  ;;  %12895 = vpow2.f32 %v7492_v44 }
0x10d0   :  { %v7448_v52 = vsel %vm1514_vm2, %v17295_v31, -inf  ;;  %7455 = vmax.xlane.f32.xlu0 %v7454_v5  ;;  %12897 = vpow2.f32 %v7488_v9 }
0x10d1   :  { %7449 = vmax.xlane.f32.xlu2 %v7448_v52  ;;  %12899 = vpow2.f32 %v7490_v8 }
0x10d3   :  { %v7471_v61 = vpop.xlane.xlu0 %7470  ;;  %v7234_v22 = vpop.xlane.xlu1 %7233 }
0x10d4   :  { %v7479_v60 = vsub.f32 %v7445_v21, %v7471_v61  ;;  %v7248_v35 = vsub.f32 %v17199_v13, %v7234_v22 }
0x10d5   :  { %v17303_v3 = vpop.eup %12895  ;;  %v7240_v13 = vpop.xlane.xlu2 %7239 }
0x10d6   :  { %v7494_v14 = vmul.f32 1.442695, %v7479_v60  ;;  %v17308_v55 = vpop.f32.mrf.mxu1  ;;  %v7514_v5 = vsel %vm1514_vm2, %v17303_v3, 0.0  ;;  %v7260_v7 = vmul.f32 1.442695, %v7248_v35  ;;  %v17316_v9 = vpop.eup %12897  ;;  %v7250_v21 = vsub.f32 %v17205_v38, %v7240_v13 }
0x10d7   :  { %v17306_v56 = vpop.f32.mrf.mxu0  ;;  %v7457_v44 = vsel %vm1514_vm2, %v17308_v55, -inf  ;;  %v17318_v52 = vpop.eup %12899  ;;  %v7508_v8 = vsel %vm1514_vm2, %v17316_v9, 0.0 }
0x10d8   :  { %v7451_v46 = vsel %vm1514_vm2, %v17306_v56, -inf  ;;  %12901 = vpow2.f32 %v7494_v14  ;;  %7458 = vmax.xlane.f32.xlu1 %v7457_v44  ;;  %v7511_v22 = vsel %vm1514_vm2, %v17318_v52, 0.0  ;;  %v7264_v14 = vmul.f32 1.442695, %v7250_v21 }
0x10d9   :  { %7452 = vmax.xlane.f32.xlu0 %v7451_v46  ;;  %7515 = vadd.xlane.f32.xlu2 %v7514_v5  ;;  %12903 = vpow2.f32 %v7260_v7  ;;  %v7220_v7 = vsel %vm1514_vm2, %v17286_v25, -inf }
0x10da   :  { %12905 = vpow2.f32 %v7264_v14  ;;  %v7223_v14 = vsel %vm1514_vm2, %v17290_v62, -inf }
0x10db   :  { %v7237_v35 = vpop.xlane.xlu0 %7236  ;;  %v7243_v46 = vpop.xlane.xlu1 %7242 }
0x10dc   :  { %v7249_v38 = vsub.f32 %v17207_v32, %v7237_v35  ;;  %v7251_v5 = vsub.f32 %v17217_v6, %v7243_v46  ;;  %v7229_v6 = vsel %vm1514_vm2, %v17292_v34, -inf }
0x10de   :  { %v17320_v60 = vpop.eup %12901  ;;  %v7262_v21 = vmul.f32 1.442695, %v7249_v38 }
0x10df   :  { %v7517_v61 = vsel %vm1514_vm2, %v17320_v60, 0.0  ;;  %v17329_v44 = vpop.eup %12903 }
0x10e0   :  { %7509 = vadd.xlane.f32.xlu1 %v7508_v8  ;;  %v7280_v13 = vsel %vm1514_vm2, %v17329_v44, 0.0  ;;  %v7226_v8 = vsel %vm1514_vm2, %v17288_v11, -inf  ;;  %12907 = vpow2.f32 %v7262_v21 }
0x10e1   :  { %7518 = vadd.xlane.f32.xlu0 %v7517_v61  ;;  %7512 = vadd.xlane.f32.xlu2 %v7511_v22  ;;  %v7266_v61 = vmul.f32 1.442695, %v7251_v5  ;;  %v17339_v22 = vpop.eup %12905 }
0x10e2   :  { %v7286_v32 = vsel %vm1514_vm2, %v17339_v22, 0.0 }
0x10e3   :  { %12909 = vpow2.f32 %v7266_v61 }
0x10e6   :  { %v17347_v35 = vpop.eup %12907 }
0x10e7   :  { %v7283_v38 = vsel %vm1514_vm2, %v17347_v35, 0.0 }
0x10e8   :  { %7221 = vmax.xlane.f32.xlu1 %v7220_v7 }
0x10e9   :  { %7281 = vadd.xlane.f32.xlu0 %v7280_v13  ;;  %7227 = vmax.xlane.f32.xlu2 %v7226_v8  ;;  %v17349_v46 = vpop.eup %12909 }
0x10ea   :  { %v7289_v5 = vsel %vm1514_vm2, %v17349_v46, 0.0 }
0x10f0   :  { %7287 = vadd.xlane.f32.xlu1 %v7286_v32 }
0x10f1   :  { %7230 = vmax.xlane.f32.xlu0 %v7229_v6  ;;  %7224 = vmax.xlane.f32.xlu2 %v7223_v14 }
0x10f8   :  { %7284 = vadd.xlane.f32.xlu1 %v7283_v38 }
0x10f9   :  { %7290 = vadd.xlane.f32.xlu2 %v7289_v5 }
0x1143   :  { %v7456_v7 = vpop.xlane.xlu0 %7455 }
0x1144   :  { %v7450_v13 = vpop.xlane.xlu2 %7449  ;;  %v7474_v8 = vsub.f32 %v17297_v28, %v7456_v7 }
0x1145   :  { %v7472_v21 = vsub.f32 %v17295_v31, %v7450_v13 }
0x1146   :  { %v7484_v61 = vmul.f32 1.442695, %v7474_v8 }
0x1147   :  { %v7480_v32 = vmul.f32 1.442695, %v7472_v21 }
0x1148   :  { %12911 = vpow2.f32 %v7484_v61 }
0x1149   :  { %12913 = vpow2.f32 %v7480_v32 }
0x114b   :  { %v7459_v14 = vpop.xlane.xlu1 %7458 }
0x114c   :  { %v7453_v6 = vpop.xlane.xlu0 %7452  ;;  %v7516_v50 = vpop.xlane.xlu2 %7515  ;;  %v7475_v38 = vsub.f32 %v17308_v55, %v7459_v14 }
0x114d   :  { %v7473_v20 = vsub.f32 %v17306_v56, %v7453_v6  ;;  %12915 = vrcp.f32 %v7516_v50 }
0x114e   :  { %v17359_v36 = vpop.eup %12911  ;;  %v7486_v15 = vmul.f32 1.442695, %v7475_v38 }
0x114f   :  { %v7482_v5 = vmul.f32 1.442695, %v7473_v20  ;;  %v17361_v27 = vpop.eup %12913  ;;  %v7502_v28 = vsel %vm1514_vm2, %v17359_v36, 0.0 }
0x1150   :  { %7503 = vadd.xlane.f32.xlu1 %v7502_v28  ;;  %v7496_v31 = vsel %vm1514_vm2, %v17361_v27, 0.0 }
0x1151   :  { %12917 = vpow2.f32 %v7482_v5  ;;  %7497 = vadd.xlane.f32.xlu0 %v7496_v31 }
0x1152   :  { %12919 = vpow2.f32 %v7486_v15 }
0x1153   :  { %v12916_v56 = vpop.eup %12915  ;;  %v7510_v55 = vpop.xlane.xlu1 %7509 }
0x1154   :  { %v7519_v7 = vpop.xlane.xlu0 %7518  ;;  %v7534_v13 = vmul.f32 %v12916_v56, %v7516_v50  ;;  %v7513_v8 = vpop.xlane.xlu2 %7512 }
0x1155   :  { %12921 = vrcp.f32 %v7519_v7 }
0x1156   :  { %12923 = vrcp.f32 %v7513_v8  ;;  %v7542_v21 = vsub.f32 2.0, %v7534_v13 }
0x1157   :  { %v17367_v20 = vpop.eup %12917  ;;  %12925 = vrcp.f32 %v7510_v55 }
0x1158   :  { %v17369_v61 = vpop.eup %12919  ;;  %v7499_v32 = vsel %vm1514_vm2, %v17367_v20, 0.0  ;;  %v7550_v6 = vmul.f32 %v12916_v56, %v7542_v21 }
0x1159   :  { %7500 = vadd.xlane.f32.xlu2 %v7499_v32  ;;  %v7505_v15 = vsel %vm1514_vm2, %v17369_v61, 0.0 }
0x115a   :  { %7506 = vadd.xlane.f32.xlu0 %v7505_v15  ;;  %v7558_v50 = vmul.f32 %v17303_v3, %v7550_v6 }
0x115b   :  { %v12922_v14 = vpop.eup %12921  ;;  %v7222_v31 = vpop.xlane.xlu1 %7221 }
0x115c   :  { %v12924_v38 = vpop.eup %12923  ;;  %v7535_v5 = vmul.f32 %v12922_v14, %v7519_v7  ;;  %v7282_v28 = vpop.xlane.xlu0 %7281  ;;  %12225 = vmatmul.msk.f32.vlgmr.msra.gmra.mxu3 %vm1514_vm2, %v7558_v50  ;;  %v7244_v59 = vsub.f32 %v17286_v25, %v7222_v31 }
0x115d   :  { %v12926_v13 = vpop.eup %12925  ;;  %v7228_v63 = vpop.xlane.xlu2 %7227  ;;  %12247 = vmatpush.xpose.msk.msra.mxu3 %vm1373_vm1, %v17173_v16  ;;  %12927 = vrcp.f32 %v7282_v28  ;;  %v7533_v6 = vmul.f32 %v12924_v38, %v7513_v8 }
0x115e   :  { %v7543_v45 = vsub.f32 2.0, %v7535_v5  ;;  %v7532_v56 = vmul.f32 %v12926_v13, %v7510_v55  ;;  %v7246_v21 = vsub.f32 %v17288_v11, %v7228_v63  ;;  %v7252_v32 = vmul.f32 1.442695, %v7244_v59 }
0x115f   :  { %v7541_v55 = vsub.f32 2.0, %v7533_v6 }
0x1160   :  { %v7551_v3 = vmul.f32 %v12922_v14, %v7543_v45  ;;  %v7540_v7 = vsub.f32 2.0, %v7532_v56  ;;  %v7256_v15 = vmul.f32 1.442695, %v7246_v21  ;;  %12929 = vpow2.f32 %v7252_v32 }
0x1161   :  { %12248 = vmatpush.xpose.msk.msra.mxu3 %vm1373_vm1, %v17153_v51 }
0x1162   :  { %v7548_v30 = vmul.f32 %v12926_v13, %v7540_v7  ;;  %12931 = vpow2.f32 %v7256_v15  ;;  %v7559_v25 = vmul.f32 %v17320_v60, %v7551_v3 }
0x1163   :  { %v7288_v31 = vpop.xlane.xlu1 %7287  ;;  %v12928_v11 = vpop.eup %12927 }
0x1164   :  { %v7556_v50 = vmul.f32 %v17316_v9, %v7548_v30  ;;  %v7231_v5 = vpop.xlane.xlu0 %7230  ;;  %12226 = vmatmul.msk.f32.gmra.mxu3 %vm1514_vm2, %v7559_v25  ;;  %12933 = vrcp.f32 %v7288_v31  ;;  %v7549_v9 = vmul.f32 %v12924_v38, %v7541_v55  ;;  %v7304_v60 = vmul.f32 %v12928_v11, %v7282_v28 }
0x1165   :  { %v7225_v63 = vpop.xlane.xlu2 %7224  ;;  %v7247_v45 = vsub.f32 %v17292_v34, %v7231_v5 }
0x1166   :  { %v7245_v59 = vsub.f32 %v17290_v62, %v7225_v63  ;;  %12223 = vmatmul.msk.f32.vlgmr.msra.gmra.mxu2 %vm1514_vm2, %v7556_v50  ;;  %v17389_v8 = vpop.eup %12929  ;;  %v7312_v21 = vsub.f32 2.0, %v7304_v60  ;;  %v7557_v38 = vmul.f32 %v17318_v52, %v7549_v9 }
0x1167   :  { %v7258_v14 = vmul.f32 1.442695, %v7247_v45  ;;  %12243 = vmatpush.xpose.msk.msra.mxu2 %vm1373_vm1, %v17159_v42  ;;  %v7268_v56 = vsel %vm1514_vm2, %v17389_v8, 0.0 }
0x1168   :  { %v17393_v30 = vpop.eup %12931  ;;  %v7254_v13 = vmul.f32 1.442695, %v7245_v59  ;;  %7269 = vadd.xlane.f32.xlu1 %v7268_v56  ;;  %v7320_v25 = vmul.f32 %v12928_v11, %v7312_v21 }
0x1169   :  { %12935 = vpow2.f32 %v7258_v14  ;;  %v7274_v34 = vsel %vm1514_vm2, %v17393_v30, 0.0 }
0x116a   :  { %12937 = vpow2.f32 %v7254_v13  ;;  %7275 = vadd.xlane.f32.xlu2 %v7274_v34  ;;  %v12934_v62 = vpop.eup %12933  ;;  %v7328_v45 = vmul.f32 %v17329_v44, %v7320_v25 }
0x116b   :  { %12244 = vmatpush.xpose.msk.msra.mxu2 %vm1373_vm1, %v17147_v49  ;;  %v7306_v32 = vmul.f32 %v12934_v62, %v7288_v31  ;;  %v7285_v28 = vpop.xlane.xlu1 %7284 }
0x116c   :  { %12939 = vrcp.f32 %v7285_v28 }
0x116d   :  { %v7291_v3 = vpop.xlane.xlu2 %7290  ;;  %v7314_v6 = vsub.f32 2.0, %v7306_v32 }
0x116e   :  { %12941 = vrcp.f32 %v7291_v3  ;;  %12224 = vmatmul.msk.f32.gmra.mxu2 %vm1514_vm2, %v7557_v38 }
0x116f   :  { %v17403_v7 = vpop.eup %12935  ;;  %v7322_v55 = vmul.f32 %v12934_v62, %v7314_v6 }
0x1170   :  { %v17405_v15 = vpop.eup %12937  ;;  %v7277_v50 = vsel %vm1514_vm2, %v17403_v7, 0.0 }
0x1171   :  { %v7271_v5 = vsel %vm1514_vm2, %v17405_v15, 0.0  ;;  %7278 = vadd.xlane.f32.xlu1 %v7277_v50  ;;  %v7330_v52 = vmul.f32 %v17339_v22, %v7322_v55 }
0x1172   :  { %7272 = vadd.xlane.f32.xlu0 %v7271_v5  ;;  %v12940_v31 = vpop.eup %12939 }
0x1173   :  { %v7305_v59 = vmul.f32 %v12940_v31, %v7285_v28  ;;  %12233 = vmatmul.msk.f32.vlgmr.msrb.gmra.mxu3 %vm1514_vm2, %v7330_v52 }
0x1174   :  { %v12942_v63 = vpop.eup %12941  ;;  %8127 = vmatpush.msrb.mxu3 %v17193_v43 }
0x1175   :  { %v7307_v14 = vmul.f32 %v12942_v63, %v7291_v3  ;;  %v7313_v11 = vsub.f32 2.0, %v7305_v59 }
0x1176   :  { %12231 = vmatmul.msk.f32.vlgmr.msrb.gmra.mxu2 %vm1514_vm2, %v7328_v45  ;;  %8128 = vmatpush.msrb.mxu3 %v17185_v53 }
0x1177   :  { %v7315_v9 = vsub.f32 2.0, %v7307_v14  ;;  %8098 = vmatpush.msrb.mxu2 %v17187_v39  ;;  %v7321_v22 = vmul.f32 %v12940_v31, %v7313_v11 }
0x1179   :  { %v7323_v60 = vmul.f32 %v12942_v63, %v7315_v9  ;;  %8099 = vmatpush.msrb.mxu2 %v17175_v19  ;;  %v7329_v44 = vmul.f32 %v17347_v35, %v7321_v22 }
0x117b   :  { %v7331_v13 = vmul.f32 %v17349_v46, %v7323_v60 }
0x117d   :  { %12234 = vmatmul.msk.f32.gmra.mxu3 %vm1514_vm2, %v7331_v13 }
0x117e   :  { %12232 = vmatmul.msk.f32.gmra.mxu2 %vm1514_vm2, %v7329_v44 }
0x1185   :  { %12249 = vmatmul.msk.f32.vlgmr.msra.gmra.mxu3 %vm1373_vm1, %v16574_v17 }
0x1186   :  { %12245 = vmatmul.msk.f32.vlgmr.msra.gmra.mxu2 %vm1373_vm1, %v16543_v57  ;;  %12271 = vmatpush.xpose.msk.msra.mxu3 %vm1373_vm1, %v16687_v18 }
0x1187   :  { %12267 = vmatpush.xpose.msk.msra.mxu2 %vm1373_vm1, %v16654_v41 }
0x118a   :  { %12272 = vmatpush.xpose.msk.msra.mxu3 %vm1373_vm1, %v16656_v29 }
0x118b   :  { %12268 = vmatpush.xpose.msk.msra.mxu2 %vm1373_vm1, %v16615_v48 }
0x118d   :  { %12250 = vmatmul.msk.f32.gmra.mxu3 %vm1373_vm1, %v16613_v37 }
0x118e   :  { %12246 = vmatmul.msk.f32.gmra.mxu2 %vm1373_vm1, %v16572_v10 }
0x11c3   :  { %v7504_v17 = vpop.xlane.xlu1 %7503 }
0x11c4   :  { %v7498_v57 = vpop.xlane.xlu0 %7497  ;;  %12943 = vrcp.f32 %v7504_v17 }
0x11c5   :  { %12945 = vrcp.f32 %v7498_v57 }
0x11ca   :  { %v12944_v35 = vpop.eup %12943 }
0x11cb   :  { %v12946_v46 = vpop.eup %12945  ;;  %v7530_v56 = vmul.f32 %v12944_v35, %v7504_v17 }
0x11cc   :  { %v7501_v34 = vpop.xlane.xlu2 %7500  ;;  %v7528_v62 = vmul.f32 %v12946_v46, %v7498_v57 }
0x11cd   :  { %12947 = vrcp.f32 %v7501_v34  ;;  %v7507_v21 = vpop.xlane.xlu0 %7506  ;;  %v7538_v32 = vsub.f32 2.0, %v7530_v56 }
0x11ce   :  { %12949 = vrcp.f32 %v7507_v21  ;;  %v7536_v38 = vsub.f32 2.0, %v7528_v62 }
0x11cf   :  { %v7546_v28 = vmul.f32 %v12944_v35, %v7538_v32 }
0x11d0   :  { %v7544_v3 = vmul.f32 %v12946_v46, %v7536_v38 }
0x11d1   :  { %v7554_v37 = vmul.f32 %v17359_v36, %v7546_v28 }
0x11d2   :  { %v7552_v10 = vmul.f32 %v17361_v27, %v7544_v3 }
0x11d3   :  { %v12948_v6 = vpop.eup %12947  ;;  %12221 = vmatmul.msk.f32.vlgmr.msra.gmra.mxu1 %vm1514_vm2, %v7554_v37 }
0x11d4   :  { %v12950_v25 = vpop.eup %12949  ;;  %v7529_v55 = vmul.f32 %v12948_v6, %v7501_v34  ;;  %12219 = vmatmul.msk.f32.vlgmr.msra.gmra.mxu0 %vm1514_vm2, %v7552_v10  ;;  %12239 = vmatpush.xpose.msk.msra.mxu1 %vm1373_vm1, %v17276_v1 }
0x11d5   :  { %v7531_v50 = vmul.f32 %v12950_v25, %v7507_v21  ;;  %12235 = vmatpush.xpose.msk.msra.mxu0 %vm1373_vm1, %v17274_v47 }
0x11d6   :  { %v7537_v5 = vsub.f32 2.0, %v7529_v55 }
0x11d7   :  { %v7539_v52 = vsub.f32 2.0, %v7531_v50  ;;  %v19402_v50 = vld [vmem:[#allocation42_spill] sm:$0xff] }
0x11d8   :  { %v7545_v31 = vmul.f32 %v12948_v6, %v7537_v5  ;;  %12240 = vmatpush.xpose.msk.msra.mxu1 %vm1373_vm1, %v17272_v33 }
0x11d9   :  { %v7547_v36 = vmul.f32 %v12950_v25, %v7539_v52  ;;  %12236 = vmatpush.xpose.msk.msra.mxu0 %vm1373_vm1, %v17270_v12 }
0x11da   :  { %v7553_v27 = vmul.f32 %v17367_v20, %v7545_v31 }
0x11db   :  { %v7555_v63 = vmul.f32 %v17369_v61, %v7547_v36  ;;  %v7270_v45 = vpop.xlane.xlu1 %7269 }
0x11dc   :  { %12220 = vmatmul.msk.f32.gmra.mxu0 %vm1514_vm2, %v7553_v27  ;;  %12951 = vrcp.f32 %v7270_v45 }
0x11dd   :  { %v7276_v59 = vpop.xlane.xlu2 %7275  ;;  %12222 = vmatmul.msk.f32.gmra.mxu1 %vm1514_vm2, %v7555_v63 }
0x11de   :  { %12953 = vrcp.f32 %v7276_v59 }
0x11df   :  { %v17455_v44 = vpop.f32.mrf.mxu3 }
0x11e0   :  { %19394 = vst [vmem:[#allocation91_spill] sm:$0xff] %v17455_v44 }
0x11e2   :  { %v12952_v14 = vpop.eup %12951 }
0x11e3   :  { %v7300_v9 = vmul.f32 %v12952_v14, %v7270_v45 }
0x11e4   :  { %v12954_v11 = vpop.eup %12953  ;;  %v7279_v22 = vpop.xlane.xlu1 %7278 }
0x11e5   :  { %v7302_v60 = vmul.f32 %v12954_v11, %v7276_v59  ;;  %v7273_v13 = vpop.xlane.xlu0 %7272  ;;  %12955 = vrcp.f32 %v7279_v22  ;;  %v7308_v20 = vsub.f32 2.0, %v7300_v9 }
0x11e6   :  { %12957 = vrcp.f32 %v7273_v13 }
0x11e7   :  { %v7310_v61 = vsub.f32 2.0, %v7302_v60  ;;  %v7316_v17 = vmul.f32 %v12952_v14, %v7308_v20  ;;  %v17465_v3 = vpop.f32.mrf.mxu3 }
0x11e8   :  { %19396 = vst [vmem:[#allocation34_spill] sm:$0xff] %v17465_v3 }
0x11e9   :  { %v7318_v57 = vmul.f32 %v12954_v11, %v7310_v61  ;;  %v17457_v35 = vpop.f32.mrf.mxu2  ;;  %v7324_v46 = vmul.f32 %v17389_v8, %v7316_v17 }
0x11ea   :  { %19395 = vst [vmem:[#allocation95_spill] sm:$0xff] %v17457_v35 }
0x11eb   :  { %v12956_v56 = vpop.eup %12955  ;;  %v7326_v34 = vmul.f32 %v17393_v30, %v7318_v57  ;;  %12227 = vmatmul.msk.f32.vlgmr.msrb.gmra.mxu0 %vm1514_vm2, %v7324_v46 }
0x11ec   :  { %v12958_v62 = vpop.eup %12957  ;;  %v7303_v21 = vmul.f32 %v12956_v56, %v7279_v22  ;;  %8040 = vmatpush.msrb.mxu0 %v17282_v54 }
0x11ed   :  { %v7301_v32 = vmul.f32 %v12958_v62, %v7273_v13  ;;  %12229 = vmatmul.msk.f32.vlgmr.msrb.gmra.mxu1 %vm1514_vm2, %v7326_v34 }
0x11ee   :  { %v7311_v38 = vsub.f32 2.0, %v7303_v21  ;;  %8069 = vmatpush.msrb.mxu1 %v17284_v40  ;;  %8041 = vmatpush.msrb.mxu0 %v17278_v26 }
0x11ef   :  { %v7309_v28 = vsub.f32 2.0, %v7301_v32 }
0x11f0   :  { %v7319_v8 = vmul.f32 %v12956_v56, %v7311_v38  ;;  %8070 = vmatpush.msrb.mxu1 %v17280_v2 }
0x11f1   :  { %v7317_v30 = vmul.f32 %v12958_v62, %v7309_v28  ;;  %v17469_v37 = vpop.f32.mrf.mxu2 }
0x11f2   :  { %19397 = vst [vmem:[#allocation9_spill] sm:$0xff] %v17469_v37  ;;  %v7327_v6 = vmul.f32 %v17403_v7, %v7319_v8 }
0x11f3   :  { %v7325_v10 = vmul.f32 %v17405_v15, %v7317_v30 }
0x11f5   :  { %12228 = vmatmul.msk.f32.gmra.mxu0 %vm1514_vm2, %v7325_v10  ;;  %12230 = vmatmul.msk.f32.gmra.mxu1 %vm1514_vm2, %v7327_v6 }
0x11f6   :  { %v17475_v25 = vpop.f32.mrf.mxu3 }
0x11f7   :  { %19398 = vst [vmem:[#allocation83_spill] sm:$0xff] %v17475_v25 }
0x11f9   :  { %v17477_v55 = vpop.f32.mrf.mxu2 }
0x11fa   :  { %19399 = vst [vmem:[#allocation80_spill] sm:$0xff] %v17477_v55 }
0x11fd   :  { %12237 = vmatmul.msk.f32.vlgmr.msra.gmra.mxu0 %vm1373_vm1, %v17003_v4  ;;  %12241 = vmatmul.msk.f32.vlgmr.msra.gmra.mxu1 %vm1373_vm1, %v17005_v0  ;;  %v19403_v4 = vld [vmem:[#allocation16_spill] sm:$0xff]  ;;  %v19404_v0 = vld [vmem:[#allocation21_spill] sm:$0xff] }
0x11fe   :  { %12259 = vmatpush.xpose.msk.msra.mxu0 %vm1373_vm1, %v17083_v58  ;;  %12263 = vmatpush.xpose.msk.msra.mxu1 %vm1373_vm1, %v17085_v23 }
0x1200   :  { %v17487_v7 = vpop.f32.mrf.mxu3 }
0x1201   :  { %19400 = vst [vmem:[#allocation84_spill] sm:$0xff] %v17487_v7  ;;  %v17489_v15 = vpop.f32.mrf.mxu2 }
0x1202   :  { %19401 = vst [vmem:[#allocation24_spill] sm:$0xff] %v17489_v15  ;;  %12260 = vmatpush.xpose.msk.msra.mxu0 %vm1373_vm1, %v17063_v24  ;;  %12264 = vmatpush.xpose.msk.msra.mxu1 %vm1373_vm1, %v19402_v50 }
0x1205   :  { %12238 = vmatmul.msk.f32.gmra.mxu0 %vm1373_vm1, %v19403_v4  ;;  %12242 = vmatmul.msk.f32.gmra.mxu1 %vm1373_vm1, %v19404_v0 }
0x1208   :  { %v7902_v5 = vpop.f32.mrf.mxu3 }
0x1209   :  { %v7873_v52 = vpop.f32.mrf.mxu2  ;;  %v7926_v31 = vsel %vm1514_vm2, %v7902_v5, -inf }
0x120a   :  { %7927 = vmax.xlane.f32.xlu0 %v7926_v31  ;;  %v7920_v36 = vsel %vm1514_vm2, %v7873_v52, -inf }
0x120b   :  { %7921 = vmax.xlane.f32.xlu2 %v7920_v36 }
0x1210   :  { %v7905_v27 = vpop.f32.mrf.mxu3 }
0x1211   :  { %v7876_v63 = vpop.f32.mrf.mxu2  ;;  %v7929_v45 = vsel %vm1514_vm2, %v7905_v27, -inf }
0x1212   :  { %v7923_v59 = vsel %vm1514_vm2, %v7876_v63, -inf }
0x1213   :  { %7930 = vmax.xlane.f32.xlu2 %v7929_v45  ;;  %7924 = vmax.xlane.f32.xlu1 %v7923_v59 }
0x1250   :  { %v17505_v11 = vpop.f32.mrf.mxu1 }
0x1251   :  { %v17503_v14 = vpop.f32.mrf.mxu0  ;;  %19406 = vst [vmem:[#allocation81_spill] sm:$0xff] %v17505_v11 }
0x1252   :  { %19405 = vst [vmem:[#allocation25_spill] sm:$0xff] %v17503_v14 }
0x1259   :  { %v17507_v9 = vpop.f32.mrf.mxu0 }
0x125a   :  { %19407 = vst [vmem:[#allocation85_spill] sm:$0xff] %v17507_v9  ;;  %v17509_v22 = vpop.f32.mrf.mxu1 }
0x125b   :  { %19408 = vst [vmem:[#allocation82_spill] sm:$0xff] %v17509_v22 }
0x1268   :  { %v17511_v60 = vpop.f32.mrf.mxu0 }
0x1269   :  { %19409 = vst [vmem:[#allocation86_spill] sm:$0xff] %v17511_v60 }
0x126a   :  { %v17513_v13 = vpop.f32.mrf.mxu1 }
0x126b   :  { %19410 = vst [vmem:[#allocation28_spill] sm:$0xff] %v17513_v13 }
0x1272   :  { %v17515_v20 = vpop.f32.mrf.mxu0  ;;  %v17517_v61 = vpop.f32.mrf.mxu1 }
0x1273   :  { %19411 = vst [vmem:[#allocation87_spill] sm:$0xff] %v17515_v20 }
0x1274   :  { %19412 = vst [vmem:[#allocation29_spill] sm:$0xff] %v17517_v61 }
0x127a   :  { %v7815_v17 = vpop.f32.mrf.mxu0  ;;  %v7844_v57 = vpop.f32.mrf.mxu1 }
0x127b   :  { %v7908_v46 = vsel %vm1514_vm2, %v7815_v17, -inf  ;;  %v7914_v56 = vsel %vm1514_vm2, %v7844_v57, -inf }
0x127c   :  { %7909 = vmax.xlane.f32.xlu0 %v7908_v46  ;;  %7915 = vmax.xlane.f32.xlu1 %v7914_v56 }
0x127d   :  { %v7928_v34 = vpop.xlane.xlu0 %7927 }
0x127e   :  { %v7938_v62 = vsub.f32 %v7902_v5, %v7928_v34  ;;  %v7922_v21 = vpop.xlane.xlu2 %7921 }
0x127f   :  { %v7936_v32 = vsub.f32 %v7873_v52, %v7922_v21 }
0x1280   :  { %v7952_v38 = vmul.f32 1.442695, %v7938_v62 }
0x1281   :  { %v7948_v28 = vmul.f32 1.442695, %v7936_v32 }
0x1282   :  { %12959 = vpow2.f32 %v7952_v38  ;;  %v7818_v8 = vpop.f32.mrf.mxu0  ;;  %v7847_v30 = vpop.f32.mrf.mxu1 }
0x1283   :  { %12961 = vpow2.f32 %v7948_v28  ;;  %v7911_v6 = vsel %vm1514_vm2, %v7818_v8, -inf  ;;  %v7917_v10 = vsel %vm1514_vm2, %v7847_v30, -inf }
0x1284   :  { %7912 = vmax.xlane.f32.xlu2 %v7911_v6  ;;  %7918 = vmax.xlane.f32.xlu1 %v7917_v10 }
0x1286   :  { %v7931_v4 = vpop.xlane.xlu2 %7930  ;;  %v7925_v0 = vpop.xlane.xlu1 %7924 }
0x1287   :  { %v7939_v31 = vsub.f32 %v7905_v27, %v7931_v4  ;;  %v7937_v36 = vsub.f32 %v7876_v63, %v7925_v0 }
0x1288   :  { %v12960_v45 = vpop.eup %12959 }
0x1289   :  { %v12962_v5 = vpop.eup %12961  ;;  %v7954_v59 = vmul.f32 1.442695, %v7939_v31  ;;  %v7950_v52 = vmul.f32 1.442695, %v7937_v36  ;;  %v7974_v56 = vsel %vm1514_vm2, %v12960_v45, 0.0 }
0x128a   :  { %v7968_v46 = vsel %vm1514_vm2, %v12962_v5, 0.0 }
0x128b   :  { %12963 = vpow2.f32 %v7954_v59  ;;  %7969 = vadd.xlane.f32.xlu0 %v7968_v46 }
0x128c   :  { %12965 = vpow2.f32 %v7950_v52  ;;  %7975 = vadd.xlane.f32.xlu2 %v7974_v56 }
0x1291   :  { %v17525_v34 = vpop.eup %12963 }
0x1292   :  { %v17527_v62 = vpop.eup %12965  ;;  %v7977_v27 = vsel %vm1514_vm2, %v17525_v34, 0.0 }
0x1293   :  { %7978 = vadd.xlane.f32.xlu1 %v7977_v27  ;;  %v7971_v63 = vsel %vm1514_vm2, %v17527_v62, 0.0 }
0x1294   :  { %7972 = vadd.xlane.f32.xlu0 %v7971_v63 }
0x12ef   :  { %v7910_v21 = vpop.xlane.xlu0 %7909  ;;  %v7916_v32 = vpop.xlane.xlu1 %7915 }
0x12f0   :  { %v7932_v38 = vsub.f32 %v7815_v17, %v7910_v21  ;;  %v7934_v28 = vsub.f32 %v7844_v57, %v7916_v32 }
0x12f2   :  { %v7940_v6 = vmul.f32 1.442695, %v7932_v38  ;;  %v7944_v10 = vmul.f32 1.442695, %v7934_v28 }
0x12f4   :  { %12967 = vpow2.f32 %v7940_v6 }
0x12f5   :  { %12969 = vpow2.f32 %v7944_v10 }
0x12f7   :  { %v7913_v4 = vpop.xlane.xlu2 %7912  ;;  %v7919_v0 = vpop.xlane.xlu1 %7918 }
0x12f8   :  { %v7933_v31 = vsub.f32 %v7818_v8, %v7913_v4  ;;  %v7935_v36 = vsub.f32 %v7847_v30, %v7919_v0 }
0x12fa   :  { %v17533_v59 = vpop.eup %12967  ;;  %v7942_v52 = vmul.f32 1.442695, %v7933_v31  ;;  %v7946_v46 = vmul.f32 1.442695, %v7935_v36 }
0x12fb   :  { %v17535_v56 = vpop.eup %12969  ;;  %v7956_v27 = vsel %vm1514_vm2, %v17533_v59, 0.0 }
0x12fc   :  { %12971 = vpow2.f32 %v7942_v52  ;;  %7957 = vadd.xlane.f32.xlu2 %v7956_v27  ;;  %v7962_v17 = vsel %vm1514_vm2, %v17535_v56, 0.0 }
0x12fd   :  { %12973 = vpow2.f32 %v7946_v46  ;;  %7963 = vadd.xlane.f32.xlu0 %v7962_v17 }
0x12fe   :  { %v7970_v57 = vpop.xlane.xlu0 %7969 }
0x12ff   :  { %12975 = vrcp.f32 %v7970_v57  ;;  %v7976_v8 = vpop.xlane.xlu2 %7975 }
0x1300   :  { %12977 = vrcp.f32 %v7976_v8 }
0x1302   :  { %v17541_v30 = vpop.eup %12971 }
0x1303   :  { %v17543_v63 = vpop.eup %12973  ;;  %v7959_v21 = vsel %vm1514_vm2, %v17541_v30, 0.0 }
0x1304   :  { %7960 = vadd.xlane.f32.xlu1 %v7959_v21  ;;  %v7965_v32 = vsel %vm1514_vm2, %v17543_v63, 0.0 }
0x1305   :  { %v12976_v38 = vpop.eup %12975  ;;  %7966 = vadd.xlane.f32.xlu2 %v7965_v32  ;;  %v19413_v32 = vld [vmem:[#allocation69_spill] sm:$0xff] }
0x1306   :  { %v12978_v28 = vpop.eup %12977  ;;  %v7992_v6 = vmul.f32 %v12976_v38, %v7970_v57  ;;  %v7979_v10 = vpop.xlane.xlu1 %7978 }
0x1307   :  { %v7994_v4 = vmul.f32 %v12978_v28, %v7976_v8  ;;  %v7973_v0 = vpop.xlane.xlu0 %7972  ;;  %12979 = vrcp.f32 %v7979_v10  ;;  %v19414_v8 = vld [vmem:[#allocation70_spill] sm:$0xff] }
0x1308   :  { %v8000_v31 = vsub.f32 2.0, %v7992_v6  ;;  %12981 = vrcp.f32 %v7973_v0 }
0x1309   :  { %v8002_v36 = vsub.f32 2.0, %v7994_v4 }
0x130a   :  { %v8008_v52 = vmul.f32 %v12976_v38, %v8000_v31  ;;  %v19421_v31 = vld [vmem:[#allocation41_spill] sm:$0xff] }
0x130b   :  { %v8010_v46 = vmul.f32 %v12978_v28, %v8002_v36  ;;  %v19422_v36 = vld [vmem:[#allocation20_spill] sm:$0xff] }
0x130c   :  { %v8016_v27 = vmul.f32 %v12962_v5, %v8008_v52  ;;  %v19415_v5 = vld [vmem:[#allocation40_spill] sm:$0xff]  ;;  %v19425_v52 = vld [vmem:[#allocation15_spill] sm:$0xff] }
0x130d   :  { %v12980_v17 = vpop.eup %12979  ;;  %v8018_v61 = vmul.f32 %v12960_v45, %v8010_v46  ;;  %v19416_v45 = vld [vmem:[#allocation45_spill] sm:$0xff]  ;;  %v19426_v46 = vld [vmem:[#allocation26_spill] sm:$0xff] }
0x130e   :  { %v12982_v21 = vpop.eup %12981  ;;  %v7995_v22 = vmul.f32 %v12980_v17, %v7979_v10  ;;  %12255 = vmatmul.msk.f32.vlgmr.msrb.gmra.mxu2 %vm1514_vm2, %v8016_v27  ;;  %v19427_v27 = vld [vmem:[#allocation19_spill] sm:$0xff] }
0x130f   :  { %v7993_v7 = vmul.f32 %v12982_v21, %v7973_v0  ;;  %12283 = vmatpush.xpose.msk.msrb.mxu2 %vm1373_vm1, %v19413_v32  ;;  %12257 = vmatmul.msk.f32.vlgmr.msrb.gmra.mxu3 %vm1514_vm2, %v8018_v61  ;;  %v19419_v61 = vld [vmem:[#allocation71_spill] sm:$0xff]  ;;  %v19420_v0 = vld [vmem:[#allocation17_spill] sm:$0xff] }
0x1310   :  { %v8003_v57 = vsub.f32 2.0, %v7995_v22  ;;  %12287 = vmatpush.xpose.msk.msrb.mxu3 %vm1373_vm1, %v19414_v8  ;;  %v19417_v22 = vld [vmem:[#allocation22_spill] sm:$0xff] }
0x1311   :  { %v8001_v6 = vsub.f32 2.0, %v7993_v7  ;;  %v19418_v7 = vld [vmem:[#allocation27_spill] sm:$0xff] }
0x1312   :  { %v8011_v38 = vmul.f32 %v12980_v17, %v8003_v57  ;;  %v19428_v17 = vld [vmem:[#allocation56_spill] sm:$0xff] }
0x1313   :  { %v8009_v28 = vmul.f32 %v12982_v21, %v8001_v6  ;;  %12284 = vmatpush.xpose.msk.msrb.mxu2 %vm1373_vm1, %v19415_v5 }
0x1314   :  { %12288 = vmatpush.xpose.msk.msrb.mxu3 %vm1373_vm1, %v19416_v45  ;;  %v8019_v4 = vmul.f32 %v17525_v34, %v8011_v38  ;;  %v19424_v34 = vld [vmem:[#allocation60_spill] sm:$0xff] }
0x1315   :  { %v8017_v10 = vmul.f32 %v17527_v62, %v8009_v28  ;;  %v19423_v62 = vld [vmem:[#allocation57_spill] sm:$0xff] }
0x1317   :  { %12256 = vmatmul.msk.f32.gmra.mxu2 %vm1514_vm2, %v8017_v10  ;;  %12258 = vmatmul.msk.f32.gmra.mxu3 %vm1514_vm2, %v8019_v4 }
0x131f   :  { %12269 = vmatmul.msk.f32.vlgmr.msra.gmra.mxu2 %vm1373_vm1, %v19417_v22  ;;  %12273 = vmatmul.msk.f32.vlgmr.msra.gmra.mxu3 %vm1373_vm1, %v19418_v7 }
0x1320   :  { %8678 = vmatpush.msra.mxu2 %v19419_v61  ;;  %8707 = vmatpush.msra.mxu3 %v19420_v0 }
0x1322   :  { %8679 = vmatpush.msra.mxu2 %v19421_v31  ;;  %8708 = vmatpush.msra.mxu3 %v19422_v36 }
0x1327   :  { %12270 = vmatmul.msk.f32.gmra.mxu2 %vm1373_vm1, %v19423_v62  ;;  %12274 = vmatmul.msk.f32.gmra.mxu3 %vm1373_vm1, %v19424_v34 }
0x132f   :  { %12285 = vmatmul.msk.f32.vlgmr.msrb.gmra.mxu2 %vm1373_vm1, %v19417_v22  ;;  %12289 = vmatmul.msk.f32.vlgmr.msrb.gmra.mxu3 %vm1373_vm1, %v19418_v7 }
0x1330   :  { %8794 = vmatpush.msrb.mxu2 %v19425_v52  ;;  %8823 = vmatpush.msrb.mxu3 %v19426_v46 }
0x1332   :  { %8795 = vmatpush.msrb.mxu2 %v19427_v27  ;;  %8824 = vmatpush.msrb.mxu3 %v19428_v17 }
0x1337   :  { %12286 = vmatmul.msk.f32.gmra.mxu2 %vm1373_vm1, %v19423_v62  ;;  %12290 = vmatmul.msk.f32.gmra.mxu3 %vm1373_vm1, %v19424_v34 }
0x136f   :  { %v7958_v21 = vpop.xlane.xlu2 %7957 }
0x1370   :  { %12983 = vrcp.f32 %v7958_v21  ;;  %v7964_v57 = vpop.xlane.xlu0 %7963 }
0x1371   :  { %12985 = vrcp.f32 %v7964_v57 }
0x1376   :  { %v12984_v6 = vpop.eup %12983 }
0x1377   :  { %v12986_v38 = vpop.eup %12985  ;;  %v7988_v28 = vmul.f32 %v12984_v6, %v7958_v21  ;;  %v7961_v10 = vpop.xlane.xlu1 %7960  ;;  %v19429_v21 = vld [vmem:[#allocation88_spill] sm:$0xff] }
0x1378   :  { %v7990_v4 = vmul.f32 %v12986_v38, %v7964_v57  ;;  %v7967_v3 = vpop.xlane.xlu2 %7966  ;;  %12987 = vrcp.f32 %v7961_v10 }
0x1379   :  { %v7996_v20 = vsub.f32 2.0, %v7988_v28  ;;  %12989 = vrcp.f32 %v7967_v3  ;;  %v19430_v28 = vld [vmem:[#allocation92_spill] sm:$0xff] }
0x137a   :  { %v7998_v9 = vsub.f32 2.0, %v7990_v4 }
0x137b   :  { %v8004_v13 = vmul.f32 %v12984_v6, %v7996_v20  ;;  %v19441_v6 = vld [vmem:[#allocation54_spill] sm:$0xff] }
0x137c   :  { %v8006_v11 = vmul.f32 %v12986_v38, %v7998_v9  ;;  %v19442_v38 = vld [vmem:[#allocation55_spill] sm:$0xff] }
0x137d   :  { %v8012_v25 = vmul.f32 %v17533_v59, %v8004_v13  ;;  %v19431_v59 = vld [vmem:[#allocation75_spill] sm:$0xff] }
0x137e   :  { %v12988_v44 = vpop.eup %12987  ;;  %v8014_v60 = vmul.f32 %v17535_v56, %v8006_v11  ;;  %v19432_v56 = vld [vmem:[#allocation79_spill] sm:$0xff] }
0x137f   :  { %v12990_v14 = vpop.eup %12989  ;;  %v7989_v15 = vmul.f32 %v12988_v44, %v7961_v10  ;;  %12251 = vmatmul.msk.f32.vlgmr.msrb.gmra.mxu0 %vm1514_vm2, %v8012_v25  ;;  %v19433_v25 = vld [vmem:[#allocation51_spill] sm:$0xff] }
0x1380   :  { %v7991_v37 = vmul.f32 %v12990_v14, %v7967_v3  ;;  %12253 = vmatmul.msk.f32.vlgmr.msrb.gmra.mxu1 %vm1514_vm2, %v8014_v60  ;;  %12275 = vmatpush.xpose.msk.msrb.mxu0 %vm1373_vm1, %v19429_v21  ;;  %v19438_v60 = vld [vmem:[#allocation13_spill] sm:$0xff] }
0x1381   :  { %v7997_v57 = vsub.f32 2.0, %v7989_v15  ;;  %12279 = vmatpush.xpose.msk.msrb.mxu1 %vm1373_vm1, %v19430_v28  ;;  %v19436_v15 = vld [vmem:[#allocation93_spill] sm:$0xff] }
0x1382   :  { %v7999_v9 = vsub.f32 2.0, %v7991_v37  ;;  %v19434_v37 = vld [vmem:[#allocation47_spill] sm:$0xff] }
0x1383   :  { %v8005_v20 = vmul.f32 %v12988_v44, %v7997_v57  ;;  %v19435_v44 = vld [vmem:[#allocation89_spill] sm:$0xff]  ;;  %v19445_v57 = vld [vmem:[#allocation39_spill] sm:$0xff] }
0x1384   :  { %v8007_v13 = vmul.f32 %v12990_v14, %v7999_v9  ;;  %12276 = vmatpush.xpose.msk.msrb.mxu0 %vm1373_vm1, %v19431_v59  ;;  %v19446_v9 = vld [vmem:[#allocation50_spill] sm:$0xff] }
0x1385   :  { %v8013_v11 = vmul.f32 %v17541_v30, %v8005_v20  ;;  %12280 = vmatpush.xpose.msk.msrb.mxu1 %vm1373_vm1, %v19432_v56 }
0x1386   :  { %v8015_v3 = vmul.f32 %v17543_v63, %v8007_v13  ;;  %v19440_v63 = vld [vmem:[#allocation18_spill] sm:$0xff] }
0x1387   :  { %12252 = vmatmul.msk.f32.gmra.mxu0 %vm1514_vm2, %v8013_v11  ;;  %v19447_v13 = vld [vmem:[#allocation38_spill] sm:$0xff] }
0x1388   :  { %12254 = vmatmul.msk.f32.gmra.mxu1 %vm1514_vm2, %v8015_v3  ;;  %v19448_v3 = vld [vmem:[#allocation43_spill] sm:$0xff] }
0x138f   :  { %12261 = vmatmul.msk.f32.vlgmr.msra.gmra.mxu0 %vm1373_vm1, %v19433_v25 }
0x1390   :  { %12265 = vmatmul.msk.f32.vlgmr.msra.gmra.mxu1 %vm1373_vm1, %v19434_v37  ;;  %8620 = vmatpush.msra.mxu0 %v19435_v44 }
0x1391   :  { %8649 = vmatpush.msra.mxu1 %v19436_v15  ;;  %v17609_v14 = vpop.f32.mrf.mxu2 }
0x1392   :  { %19437 = vst [vmem:[#allocation99_spill] sm:$0xff] %v17609_v14  ;;  %8621 = vmatpush.msra.mxu0 %v19438_v60  ;;  %v17612_v30 = vpop.f32.mrf.mxu3 }
0x1393   :  { %19439 = vst [vmem:[#allocation96_spill] sm:$0xff] %v17612_v30  ;;  %8650 = vmatpush.msra.mxu1 %v19440_v63 }
0x1397   :  { %12262 = vmatmul.msk.f32.gmra.mxu0 %vm1373_vm1, %v19441_v6 }
0x1398   :  { %12266 = vmatmul.msk.f32.gmra.mxu1 %vm1373_vm1, %v19442_v38 }
0x139a   :  { %v17619_v10 = vpop.f32.mrf.mxu2  ;;  %v17621_v4 = vpop.f32.mrf.mxu3 }
0x139b   :  { %19443 = vst [vmem:[#allocation100_spill] sm:$0xff] %v17619_v10 }
0x139c   :  { %19444 = vst [vmem:[#allocation35_spill] sm:$0xff] %v17621_v4 }
0x139f   :  { %12277 = vmatmul.msk.f32.vlgmr.msrb.gmra.mxu0 %vm1373_vm1, %v19433_v25 }
0x13a0   :  { %12281 = vmatmul.msk.f32.vlgmr.msrb.gmra.mxu1 %vm1373_vm1, %v19434_v37  ;;  %8736 = vmatpush.msrb.mxu0 %v19445_v57 }
0x13a1   :  { %8765 = vmatpush.msrb.mxu1 %v19446_v9 }
0x13a2   :  { %v17629_v20 = vpop.f32.mrf.mxu2  ;;  %8737 = vmatpush.msrb.mxu0 %v19447_v13  ;;  %v17632_v11 = vpop.f32.mrf.mxu3 }
0x13a3   :  { %8766 = vmatpush.msrb.mxu1 %v19448_v3  ;;  %v8296_v44 = vsel %vm1514_vm2, %v17629_v20, -inf  ;;  %v8302_v56 = vsel %vm1514_vm2, %v17632_v11, -inf }
0x13a7   :  { %12278 = vmatmul.msk.f32.gmra.mxu0 %vm1373_vm1, %v19441_v6 }
0x13a8   :  { %12282 = vmatmul.msk.f32.gmra.mxu1 %vm1373_vm1, %v19442_v38 }
0x13aa   :  { %v17639_v4 = vpop.f32.mrf.mxu2  ;;  %v17641_v30 = vpop.f32.mrf.mxu3 }
0x13ab   :  { %v8305_v0 = vsel %vm1514_vm2, %v17641_v30, -inf }
0x13b2   :  { %v8459_v10 = vpop.f32.mrf.mxu2  ;;  %v8482_v14 = vpop.f32.mrf.mxu3 }
0x13b3   :  { %v8500_v55 = vsel %vm1514_vm2, %v8459_v10, -inf  ;;  %v8506_v35 = vsel %vm1514_vm2, %v8482_v14, -inf }
0x13b4   :  { %8501 = vmax.xlane.f32.xlu0 %v8500_v55  ;;  %8507 = vmax.xlane.f32.xlu1 %v8506_v35  ;;  %v8299_v35 = vsel %vm1514_vm2, %v17639_v4, -inf }
0x13ba   :  { %v8462_v63 = vpop.f32.mrf.mxu2  ;;  %v8485_v15 = vpop.f32.mrf.mxu3 }
0x13bb   :  { %v8503_v60 = vsel %vm1514_vm2, %v8462_v63, -inf  ;;  %v8509_v36 = vsel %vm1514_vm2, %v8485_v15, -inf }
0x13bc   :  { %8504 = vmax.xlane.f32.xlu2 %v8503_v60  ;;  %8297 = vmax.xlane.f32.xlu1 %v8296_v44 }
0x13bd   :  { %8510 = vmax.xlane.f32.xlu0 %v8509_v36 }
0x13c4   :  { %8303 = vmax.xlane.f32.xlu2 %v8302_v56  ;;  %8306 = vmax.xlane.f32.xlu1 %v8305_v0 }
0x13c5   :  { %8300 = vmax.xlane.f32.xlu0 %v8299_v35 }
0x13fc   :  { %v17655_v55 = vpop.f32.mrf.mxu0 }
0x13fd   :  { %19449 = vst [vmem:[#allocation48_spill] sm:$0xff] %v17655_v55  ;;  %v17657_v28 = vpop.f32.mrf.mxu1 }
0x13fe   :  { %19450 = vst [vmem:[#allocation97_spill] sm:$0xff] %v17657_v28 }
0x1404   :  { %v17659_v59 = vpop.f32.mrf.mxu0 }
0x1405   :  { %19451 = vst [vmem:[#allocation101_spill] sm:$0xff] %v17659_v59  ;;  %v17661_v44 = vpop.f32.mrf.mxu1 }
0x1406   :  { %19452 = vst [vmem:[#allocation98_spill] sm:$0xff] %v17661_v44 }
0x140c   :  { %v17663_v36 = vpop.f32.mrf.mxu0 }
0x140d   :  { %v17665_v60 = vpop.f32.mrf.mxu1 }
0x1414   :  { %v17667_v21 = vpop.f32.mrf.mxu0 }
0x1415   :  { %v17669_v56 = vpop.f32.mrf.mxu1 }
0x141c   :  { %v17671_v31 = vpop.f32.mrf.mxu0 }
0x141d   :  { %v17673_v0 = vpop.f32.mrf.mxu1  ;;  %v8488_v35 = vsel %vm1514_vm2, %v17671_v31, -inf }
0x141e   :  { %v8494_v59 = vsel %vm1514_vm2, %v17673_v0, -inf  ;;  %8489 = vmax.xlane.f32.xlu2 %v8488_v35 }
0x141f   :  { %8495 = vmax.xlane.f32.xlu0 %v8494_v59  ;;  %v8284_v59 = vsel %vm1514_vm2, %v17663_v36, -inf }
0x1424   :  { %v17679_v44 = vpop.f32.mrf.mxu0 }
0x1425   :  { %v17681_v28 = vpop.f32.mrf.mxu1  ;;  %v8491_v55 = vsel %vm1514_vm2, %v17679_v44, -inf }
0x1426   :  { %v8497_v61 = vsel %vm1514_vm2, %v17681_v28, -inf  ;;  %8492 = vmax.xlane.f32.xlu1 %v8491_v55 }
0x1427   :  { %v8502_v45 = vpop.xlane.xlu0 %8501  ;;  %8498 = vmax.xlane.f32.xlu2 %v8497_v61  ;;  %v8508_v8 = vpop.xlane.xlu1 %8507 }
0x1428   :  { %v8516_v5 = vsub.f32 %v8459_v10, %v8502_v45  ;;  %v8518_v32 = vsub.f32 %v8482_v14, %v8508_v8 }
0x142a   :  { %v8528_v3 = vmul.f32 1.442695, %v8516_v5  ;;  %v8532_v9 = vmul.f32 1.442695, %v8518_v32 }
0x142c   :  { %12991 = vpow2.f32 %v8528_v3  ;;  %v8287_v3 = vsel %vm1514_vm2, %v17667_v21, -inf }
0x142d   :  { %12993 = vpow2.f32 %v8532_v9 }
0x142e   :  { %8285 = vmax.xlane.f32.xlu1 %v8284_v59 }
0x142f   :  { %v8505_v35 = vpop.xlane.xlu2 %8504  ;;  %v8298_v13 = vpop.xlane.xlu1 %8297 }
0x1430   :  { %v8517_v57 = vsub.f32 %v8462_v63, %v8505_v35  ;;  %v8511_v17 = vpop.xlane.xlu0 %8510  ;;  %v8312_v8 = vsub.f32 %v17629_v20, %v8298_v13  ;;  %v8290_v13 = vsel %vm1514_vm2, %v17665_v60, -inf }
0x1431   :  { %v8519_v27 = vsub.f32 %v8485_v15, %v8511_v17 }
0x1432   :  { %v17689_v46 = vpop.eup %12991  ;;  %v8530_v55 = vmul.f32 1.442695, %v8517_v57  ;;  %v8324_v14 = vmul.f32 1.442695, %v8312_v8  ;;  %v8293_v8 = vsel %vm1514_vm2, %v17669_v56, -inf }
0x1433   :  { %v17691_v61 = vpop.eup %12993  ;;  %v8548_v32 = vsel %vm1514_vm2, %v17689_v46, 0.0  ;;  %v8534_v45 = vmul.f32 1.442695, %v8519_v27 }
0x1434   :  { %12995 = vpow2.f32 %v8530_v55  ;;  %8549 = vadd.xlane.f32.xlu0 %v8548_v32  ;;  %v8554_v5 = vsel %vm1514_vm2, %v17691_v61, 0.0 }
0x1435   :  { %8555 = vadd.xlane.f32.xlu2 %v8554_v5  ;;  %12997 = vpow2.f32 %v8534_v45 }
0x1436   :  { %12999 = vpow2.f32 %v8324_v14 }
0x1437   :  { %v8304_v63 = vpop.xlane.xlu2 %8303  ;;  %v8307_v9 = vpop.xlane.xlu1 %8306 }
0x1438   :  { %v8301_v10 = vpop.xlane.xlu0 %8300  ;;  %v8314_v17 = vsub.f32 %v17632_v11, %v8304_v63  ;;  %v8315_v20 = vsub.f32 %v17641_v30, %v8307_v9 }
0x1439   :  { %v8313_v57 = vsub.f32 %v17639_v4, %v8301_v10 }
0x143a   :  { %v17699_v15 = vpop.eup %12995  ;;  %v8328_v11 = vmul.f32 1.442695, %v8314_v17  ;;  %v8330_v35 = vmul.f32 1.442695, %v8315_v20 }
0x143b   :  { %v8551_v27 = vsel %vm1514_vm2, %v17699_v15, 0.0  ;;  %v8326_v59 = vmul.f32 1.442695, %v8313_v57  ;;  %v17709_v55 = vpop.eup %12997 }
0x143c   :  { %8291 = vmax.xlane.f32.xlu0 %v8290_v13  ;;  %8552 = vadd.xlane.f32.xlu1 %v8551_v27  ;;  %v17711_v4 = vpop.eup %12999  ;;  %13001 = vpow2.f32 %v8328_v11  ;;  %v8557_v30 = vsel %vm1514_vm2, %v17709_v55, 0.0 }
0x143d   :  { %8288 = vmax.xlane.f32.xlu2 %v8287_v3  ;;  %13003 = vpow2.f32 %v8326_v59  ;;  %v8344_v32 = vsel %vm1514_vm2, %v17711_v4, 0.0 }
0x143e   :  { %13005 = vpow2.f32 %v8330_v35 }
0x1442   :  { %v17719_v5 = vpop.eup %13001 }
0x1443   :  { %v17721_v45 = vpop.eup %13003  ;;  %v8350_v63 = vsel %vm1514_vm2, %v17719_v5, 0.0 }
0x1444   :  { %8558 = vadd.xlane.f32.xlu0 %v8557_v30  ;;  %8294 = vmax.xlane.f32.xlu1 %v8293_v8  ;;  %v17723_v14 = vpop.eup %13005  ;;  %v8347_v10 = vsel %vm1514_vm2, %v17721_v45, 0.0 }
0x1445   :  { %8345 = vadd.xlane.f32.xlu2 %v8344_v32  ;;  %v8353_v9 = vsel %vm1514_vm2, %v17723_v14, 0.0 }
0x144c   :  { %8351 = vadd.xlane.f32.xlu0 %v8350_v63  ;;  %8348 = vadd.xlane.f32.xlu1 %v8347_v10 }
0x144d   :  { %8354 = vadd.xlane.f32.xlu2 %v8353_v9 }
0x1491   :  { %v8490_v17 = vpop.xlane.xlu2 %8489 }
0x1492   :  { %v8496_v57 = vpop.xlane.xlu0 %8495  ;;  %v8512_v20 = vsub.f32 %v17671_v31, %v8490_v17 }
0x1493   :  { %v8514_v13 = vsub.f32 %v17673_v0, %v8496_v57 }
0x1494   :  { %v8520_v27 = vmul.f32 1.442695, %v8512_v20 }
0x1495   :  { %v8524_v3 = vmul.f32 1.442695, %v8514_v13 }
0x1496   :  { %13007 = vpow2.f32 %v8520_v27 }
0x1497   :  { %13009 = vpow2.f32 %v8524_v3 }
0x1499   :  { %v8493_v11 = vpop.xlane.xlu1 %8492 }
0x149a   :  { %v8499_v59 = vpop.xlane.xlu2 %8498  ;;  %v8513_v35 = vsub.f32 %v17679_v44, %v8493_v11 }
0x149b   :  { %v8515_v30 = vsub.f32 %v17681_v28, %v8499_v59 }
0x149c   :  { %v17735_v8 = vpop.eup %13007  ;;  %v8522_v32 = vmul.f32 1.442695, %v8513_v35 }
0x149d   :  { %v17737_v63 = vpop.eup %13009  ;;  %v8526_v10 = vmul.f32 1.442695, %v8515_v30  ;;  %v8536_v31 = vsel %vm1514_vm2, %v17735_v8, 0.0 }
0x149e   :  { %13011 = vpow2.f32 %v8522_v32  ;;  %8537 = vadd.xlane.f32.xlu0 %v8536_v31  ;;  %v8542_v0 = vsel %vm1514_vm2, %v17737_v63, 0.0 }
0x149f   :  { %13013 = vpow2.f32 %v8526_v10  ;;  %8543 = vadd.xlane.f32.xlu1 %v8542_v0 }
0x14a1   :  { %v8286_v9 = vpop.xlane.xlu1 %8285 }
0x14a2   :  { %v8308_v44 = vsub.f32 %v17663_v36, %v8286_v9 }
0x14a4   :  { %v17744_v28 = vpop.eup %13011  ;;  %v8316_v17 = vmul.f32 1.442695, %v8308_v44 }
0x14a5   :  { %v17746_v57 = vpop.eup %13013  ;;  %v8539_v20 = vsel %vm1514_vm2, %v17744_v28, 0.0 }
0x14a6   :  { %13015 = vpow2.f32 %v8316_v17  ;;  %v8545_v13 = vsel %vm1514_vm2, %v17746_v57, 0.0  ;;  %8540 = vadd.xlane.f32.xlu2 %v8539_v20 }
0x14a7   :  { %v8550_v27 = vpop.xlane.xlu0 %8549  ;;  %8546 = vadd.xlane.f32.xlu0 %v8545_v13 }
0x14a8   :  { %13017 = vrcp.f32 %v8550_v27  ;;  %v8556_v3 = vpop.xlane.xlu2 %8555 }
0x14a9   :  { %13019 = vrcp.f32 %v8556_v3 }
0x14ac   :  { %v17752_v11 = vpop.eup %13015 }
0x14ad   :  { %v8332_v36 = vsel %vm1514_vm2, %v17752_v11, 0.0 }
0x14ae   :  { %v13018_v59 = vpop.eup %13017  ;;  %8333 = vadd.xlane.f32.xlu1 %v8332_v36 }
0x14af   :  { %v13020_v35 = vpop.eup %13019  ;;  %v8572_v30 = vmul.f32 %v13018_v59, %v8550_v27  ;;  %v8292_v32 = vpop.xlane.xlu0 %8291 }
0x14b0   :  { %v8553_v10 = vpop.xlane.xlu1 %8552  ;;  %v8574_v31 = vmul.f32 %v13020_v35, %v8556_v3  ;;  %v8310_v0 = vsub.f32 %v17665_v60, %v8292_v32  ;;  %v8289_v9 = vpop.xlane.xlu2 %8288 }
0x14b1   :  { %13021 = vrcp.f32 %v8553_v10  ;;  %v8580_v44 = vsub.f32 2.0, %v8572_v30  ;;  %v8309_v17 = vsub.f32 %v17667_v21, %v8289_v9 }
0x14b2   :  { %v8582_v20 = vsub.f32 2.0, %v8574_v31  ;;  %v8320_v13 = vmul.f32 1.442695, %v8310_v0 }
0x14b3   :  { %v8588_v52 = vmul.f32 %v13018_v59, %v8580_v44  ;;  %v8318_v38 = vmul.f32 1.442695, %v8309_v17 }
0x14b4   :  { %v8590_v50 = vmul.f32 %v13020_v35, %v8582_v20  ;;  %13023 = vpow2.f32 %v8320_v13 }
0x14b5   :  { %v8596_v36 = vmul.f32 %v17689_v46, %v8588_v52  ;;  %13025 = vpow2.f32 %v8318_v38 }
0x14b6   :  { %v8598_v6 = vmul.f32 %v17691_v61, %v8590_v50 }
0x14b7   :  { %v13022_v27 = vpop.eup %13021  ;;  %12295 = vmatmul.msk.f32.vlgmr.msra.gmra.mxu2 %vm1514_vm2, %v8596_v36  ;;  %v8559_v60 = vpop.xlane.xlu0 %8558 }
0x14b8   :  { %v8573_v3 = vmul.f32 %v13022_v27, %v8553_v10  ;;  %v8295_v32 = vpop.xlane.xlu1 %8294  ;;  %12315 = vmatpush.xpose.msk.msra.mxu2 %vm1373_vm1, %v17159_v42  ;;  %13027 = vrcp.f32 %v8559_v60  ;;  %12297 = vmatmul.msk.f32.vlgmr.msra.gmra.mxu3 %vm1514_vm2, %v8598_v6  ;;  %v8346_v59 = vpop.xlane.xlu2 %8345 }
0x14b9   :  { %v8311_v21 = vsub.f32 %v17669_v56, %v8295_v32  ;;  %12319 = vmatpush.xpose.msk.msra.mxu3 %vm1373_vm1, %v17173_v16  ;;  %13029 = vrcp.f32 %v8346_v59 }
0x14ba   :  { %v8581_v35 = vsub.f32 2.0, %v8573_v3  ;;  %v17767_v50 = vpop.eup %13023 }
0x14bb   :  { %v8322_v52 = vmul.f32 1.442695, %v8311_v21  ;;  %v17769_v46 = vpop.eup %13025  ;;  %v8338_v61 = vsel %vm1514_vm2, %v17767_v50, 0.0 }
0x14bc   :  { %v8589_v38 = vmul.f32 %v13022_v27, %v8581_v35  ;;  %12316 = vmatpush.xpose.msk.msra.mxu2 %vm1373_vm1, %v17147_v49  ;;  %8339 = vadd.xlane.f32.xlu2 %v8338_v61  ;;  %v8335_v6 = vsel %vm1514_vm2, %v17769_v46, 0.0 }
0x14bd   :  { %13031 = vpow2.f32 %v8322_v52  ;;  %12320 = vmatpush.xpose.msk.msra.mxu3 %vm1373_vm1, %v17153_v51  ;;  %8336 = vadd.xlane.f32.xlu0 %v8335_v6 }
0x14be   :  { %v8597_v56 = vmul.f32 %v17699_v15, %v8589_v38  ;;  %v13028_v30 = vpop.eup %13027 }
0x14bf   :  { %v13030_v10 = vpop.eup %13029  ;;  %v8575_v31 = vmul.f32 %v13028_v30, %v8559_v60  ;;  %v8352_v0 = vpop.xlane.xlu0 %8351 }
0x14c0   :  { %12296 = vmatmul.msk.f32.gmra.mxu2 %vm1514_vm2, %v8597_v56  ;;  %v8349_v9 = vpop.xlane.xlu1 %8348  ;;  %v8368_v44 = vmul.f32 %v13030_v10, %v8346_v59  ;;  %13033 = vrcp.f32 %v8352_v0  ;;  %v8355_v17 = vpop.xlane.xlu2 %8354 }
0x14c1   :  { %v8583_v20 = vsub.f32 2.0, %v8575_v31  ;;  %13035 = vrcp.f32 %v8349_v9 }
0x14c2   :  { %v8376_v36 = vsub.f32 2.0, %v8368_v44  ;;  %13037 = vrcp.f32 %v8355_v17 }
0x14c3   :  { %v17781_v13 = vpop.eup %13031  ;;  %v8591_v15 = vmul.f32 %v13028_v30, %v8583_v20 }
0x14c4   :  { %v8341_v27 = vsel %vm1514_vm2, %v17781_v13, 0.0  ;;  %v8384_v3 = vmul.f32 %v13030_v10, %v8376_v36 }
0x14c5   :  { %8342 = vadd.xlane.f32.xlu1 %v8341_v27  ;;  %v8599_v60 = vmul.f32 %v17709_v55, %v8591_v15 }
0x14c6   :  { %v13034_v32 = vpop.eup %13033  ;;  %v8392_v21 = vmul.f32 %v17711_v4, %v8384_v3 }
0x14c7   :  { %v13036_v59 = vpop.eup %13035  ;;  %v8370_v35 = vmul.f32 %v13034_v32, %v8352_v0  ;;  %12298 = vmatmul.msk.f32.gmra.mxu3 %vm1514_vm2, %v8599_v60 }
0x14c8   :  { %v13038_v52 = vpop.eup %13037  ;;  %v8369_v38 = vmul.f32 %v13036_v59, %v8349_v9  ;;  %12303 = vmatmul.msk.f32.vlgmr.msrb.gmra.mxu2 %vm1514_vm2, %v8392_v21 }
0x14c9   :  { %v8378_v61 = vsub.f32 2.0, %v8370_v35  ;;  %v8371_v6 = vmul.f32 %v13038_v52, %v8355_v17  ;;  %9114 = vmatpush.msrb.mxu2 %v17187_v39 }
0x14ca   :  { %v8377_v56 = vsub.f32 2.0, %v8369_v38 }
0x14cb   :  { %v8386_v30 = vmul.f32 %v13034_v32, %v8378_v61  ;;  %9115 = vmatpush.msrb.mxu2 %v17175_v19  ;;  %v8379_v4 = vsub.f32 2.0, %v8371_v6 }
0x14cc   :  { %v8385_v55 = vmul.f32 %v13036_v59, %v8377_v56 }
0x14cd   :  { %v8394_v10 = vmul.f32 %v17719_v5, %v8386_v30  ;;  %v8387_v0 = vmul.f32 %v13038_v52, %v8379_v4 }
0x14ce   :  { %v8393_v31 = vmul.f32 %v17721_v45, %v8385_v55 }
0x14cf   :  { %12305 = vmatmul.msk.f32.vlgmr.msrb.gmra.mxu3 %vm1514_vm2, %v8394_v10  ;;  %v8395_v9 = vmul.f32 %v17723_v14, %v8387_v0 }
0x14d0   :  { %9143 = vmatpush.msrb.mxu3 %v17193_v43  ;;  %12304 = vmatmul.msk.f32.gmra.mxu2 %vm1514_vm2, %v8393_v31 }
0x14d2   :  { %9144 = vmatpush.msrb.mxu3 %v17185_v53 }
0x14d7   :  { %12306 = vmatmul.msk.f32.gmra.mxu3 %vm1514_vm2, %v8395_v9 }
0x14d8   :  { %12317 = vmatmul.msk.f32.vlgmr.msra.gmra.mxu2 %vm1373_vm1, %v19417_v22 }
0x14d9   :  { %12339 = vmatpush.xpose.msk.msra.mxu2 %vm1373_vm1, %v16654_v41 }
0x14dd   :  { %12340 = vmatpush.xpose.msk.msra.mxu2 %vm1373_vm1, %v16615_v48 }
0x14df   :  { %12321 = vmatmul.msk.f32.vlgmr.msra.gmra.mxu3 %vm1373_vm1, %v19418_v7 }
0x14e0   :  { %12343 = vmatpush.xpose.msk.msra.mxu3 %vm1373_vm1, %v16687_v18  ;;  %12318 = vmatmul.msk.f32.gmra.mxu2 %vm1373_vm1, %v19423_v62 }
0x14e4   :  { %12344 = vmatpush.xpose.msk.msra.mxu3 %vm1373_vm1, %v16656_v29 }
0x14e7   :  { %12322 = vmatmul.msk.f32.gmra.mxu3 %vm1373_vm1, %v19424_v34 }
0x1511   :  { %v8538_v22 = vpop.xlane.xlu0 %8537 }
0x1512   :  { %13039 = vrcp.f32 %v8538_v22  ;;  %v8544_v5 = vpop.xlane.xlu1 %8543 }
0x1513   :  { %13041 = vrcp.f32 %v8544_v5 }
0x1518   :  { %v13040_v45 = vpop.eup %13039 }
0x1519   :  { %v13042_v14 = vpop.eup %13041  ;;  %v8568_v44 = vmul.f32 %v13040_v45, %v8538_v22  ;;  %v8541_v7 = vpop.xlane.xlu2 %8540 }
0x151a   :  { %v8570_v17 = vmul.f32 %v13042_v14, %v8544_v5  ;;  %v8547_v20 = vpop.xlane.xlu0 %8546  ;;  %13043 = vrcp.f32 %v8541_v7 }
0x151b   :  { %v8576_v36 = vsub.f32 2.0, %v8568_v44  ;;  %13045 = vrcp.f32 %v8547_v20 }
0x151c   :  { %v8578_v62 = vsub.f32 2.0, %v8570_v17 }
0x151d   :  { %v8584_v15 = vmul.f32 %v13040_v45, %v8576_v36 }
0x151e   :  { %v8586_v27 = vmul.f32 %v13042_v14, %v8578_v62 }
0x151f   :  { %v8592_v3 = vmul.f32 %v17735_v8, %v8584_v15 }
0x1520   :  { %v13044_v60 = vpop.eup %13043  ;;  %v8594_v34 = vmul.f32 %v17737_v63, %v8586_v27 }
0x1521   :  { %v13046_v32 = vpop.eup %13045  ;;  %v8569_v21 = vmul.f32 %v13044_v60, %v8541_v7  ;;  %12291 = vmatmul.msk.f32.vlgmr.msra.gmra.mxu0 %vm1514_vm2, %v8592_v3  ;;  %v8334_v59 = vpop.xlane.xlu1 %8333 }
0x1522   :  { %v8571_v35 = vmul.f32 %v13046_v32, %v8547_v20  ;;  %12293 = vmatmul.msk.f32.vlgmr.msra.gmra.mxu1 %vm1514_vm2, %v8594_v34  ;;  %12307 = vmatpush.xpose.msk.msra.mxu0 %vm1373_vm1, %v17274_v47  ;;  %13047 = vrcp.f32 %v8334_v59 }
0x1523   :  { %v8577_v52 = vsub.f32 2.0, %v8569_v21  ;;  %12311 = vmatpush.xpose.msk.msra.mxu1 %vm1373_vm1, %v17276_v1  ;;  %v19461_v21 = vld [vmem:[#allocation42_spill] sm:$0xff] }
0x1524   :  { %v8579_v8 = vsub.f32 2.0, %v8571_v35 }
0x1525   :  { %v8585_v38 = vmul.f32 %v13044_v60, %v8577_v52 }
0x1526   :  { %v8587_v61 = vmul.f32 %v13046_v32, %v8579_v8  ;;  %12308 = vmatpush.xpose.msk.msra.mxu0 %vm1373_vm1, %v17270_v12 }
0x1527   :  { %v8593_v63 = vmul.f32 %v17744_v28, %v8585_v38  ;;  %12312 = vmatpush.xpose.msk.msra.mxu1 %vm1373_vm1, %v17272_v33 }
0x1528   :  { %v13048_v6 = vpop.eup %13047  ;;  %v8595_v56 = vmul.f32 %v17746_v57, %v8587_v61 }
0x1529   :  { %v8364_v30 = vmul.f32 %v13048_v6, %v8334_v59  ;;  %12292 = vmatmul.msk.f32.gmra.mxu0 %vm1514_vm2, %v8593_v63  ;;  %v19462_v59 = vld [vmem:[#allocation55_spill] sm:$0xff] }
0x152a   :  { %12294 = vmatmul.msk.f32.gmra.mxu1 %vm1514_vm2, %v8595_v56 }
0x152b   :  { %v8372_v55 = vsub.f32 2.0, %v8364_v30 }
0x152d   :  { %v8380_v10 = vmul.f32 %v13048_v6, %v8372_v55 }
0x152f   :  { %v8388_v4 = vmul.f32 %v17752_v11, %v8380_v10  ;;  %v8340_v31 = vpop.xlane.xlu2 %8339 }
0x1530   :  { %13049 = vrcp.f32 %v8340_v31  ;;  %v8337_v0 = vpop.xlane.xlu0 %8336 }
0x1531   :  { %13051 = vrcp.f32 %v8337_v0  ;;  %12299 = vmatmul.msk.f32.vlgmr.msrb.gmra.mxu0 %vm1514_vm2, %v8388_v4 }
0x1532   :  { %9056 = vmatpush.msrb.mxu0 %v17282_v54 }
0x1534   :  { %9057 = vmatpush.msrb.mxu0 %v17278_v26 }
0x1536   :  { %v13050_v28 = vpop.eup %13049 }
0x1537   :  { %v13052_v57 = vpop.eup %13051  ;;  %v8366_v9 = vmul.f32 %v13050_v28, %v8340_v31 }
0x1538   :  { %v8343_v22 = vpop.xlane.xlu1 %8342  ;;  %v8365_v5 = vmul.f32 %v13052_v57, %v8337_v0 }
0x1539   :  { %13053 = vrcp.f32 %v8343_v22  ;;  %v8374_v45 = vsub.f32 2.0, %v8366_v9 }
0x153a   :  { %v8373_v14 = vsub.f32 2.0, %v8365_v5  ;;  %v17835_v44 = vpop.f32.mrf.mxu2 }
0x153b   :  { %19453 = vst [vmem:[#allocation102_spill] sm:$0xff] %v17835_v44  ;;  %v8382_v11 = vmul.f32 %v13050_v28, %v8374_v45  ;;  %v17842_v27 = vpop.f32.mrf.mxu3 }
0x153c   :  { %v8381_v7 = vmul.f32 %v13052_v57, %v8373_v14  ;;  %19454 = vst [vmem:[#allocation49_spill] sm:$0xff] %v17842_v27 }
0x153d   :  { %v8390_v17 = vmul.f32 %v17767_v50, %v8382_v11 }
0x153e   :  { %v8389_v36 = vmul.f32 %v17769_v46, %v8381_v7 }
0x153f   :  { %v13054_v20 = vpop.eup %13053  ;;  %12301 = vmatmul.msk.f32.vlgmr.msrb.gmra.mxu1 %vm1514_vm2, %v8390_v17 }
0x1540   :  { %v8367_v62 = vmul.f32 %v13054_v20, %v8343_v22  ;;  %9085 = vmatpush.msrb.mxu1 %v17284_v40  ;;  %12300 = vmatmul.msk.f32.gmra.mxu0 %vm1514_vm2, %v8389_v36 }
0x1542   :  { %v8375_v15 = vsub.f32 2.0, %v8367_v62  ;;  %9086 = vmatpush.msrb.mxu1 %v17280_v2 }
0x1543   :  { %v17845_v60 = vpop.f32.mrf.mxu2 }
0x1544   :  { %v8383_v3 = vmul.f32 %v13054_v20, %v8375_v15  ;;  %19455 = vst [vmem:[#allocation52_spill] sm:$0xff] %v17845_v60 }
0x1546   :  { %v8391_v50 = vmul.f32 %v17781_v13, %v8383_v3  ;;  %v19458_v13 = vld [vmem:[#allocation54_spill] sm:$0xff] }
0x1548   :  { %12302 = vmatmul.msk.f32.gmra.mxu1 %vm1514_vm2, %v8391_v50  ;;  %12309 = vmatmul.msk.f32.vlgmr.msra.gmra.mxu0 %vm1373_vm1, %v19433_v25 }
0x1549   :  { %12331 = vmatpush.xpose.msk.msra.mxu0 %vm1373_vm1, %v17083_v58 }
0x154a   :  { %v17853_v46 = vpop.f32.mrf.mxu3 }
0x154b   :  { %19456 = vst [vmem:[#allocation53_spill] sm:$0xff] %v17853_v46  ;;  %v17855_v34 = vpop.f32.mrf.mxu2 }
0x154c   :  { %19457 = vst [vmem:[#allocation62_spill] sm:$0xff] %v17855_v34 }
0x154d   :  { %12332 = vmatpush.xpose.msk.msra.mxu0 %vm1373_vm1, %v17063_v24 }
0x1550   :  { %12313 = vmatmul.msk.f32.vlgmr.msra.gmra.mxu1 %vm1373_vm1, %v19434_v37  ;;  %12310 = vmatmul.msk.f32.gmra.mxu0 %vm1373_vm1, %v19458_v13 }
0x1551   :  { %12335 = vmatpush.xpose.msk.msra.mxu1 %vm1373_vm1, %v17085_v23 }
0x1552   :  { %v17865_v25 = vpop.f32.mrf.mxu3 }
0x1553   :  { %19459 = vst [vmem:[#allocation63_spill] sm:$0xff] %v17865_v25  ;;  %v17867_v32 = vpop.f32.mrf.mxu2 }
0x1554   :  { %19460 = vst [vmem:[#allocation14_spill] sm:$0xff] %v17867_v32 }
0x1555   :  { %12336 = vmatpush.xpose.msk.msra.mxu1 %vm1373_vm1, %v19461_v21 }
0x1558   :  { %12314 = vmatmul.msk.f32.gmra.mxu1 %vm1373_vm1, %v19462_v59 }
0x155a   :  { %v17873_v35 = vpop.f32.mrf.mxu3 }
0x155b   :  { %19463 = vst [vmem:[#allocation16_spill] sm:$0xff] %v17873_v35  ;;  %v8895_v52 = vpop.f32.mrf.mxu2  ;;  %v19473_v35 = vld [vmem:[#allocation23_spill] sm:$0xff] }
0x155c   :  { %v8936_v37 = vsel %vm1514_vm2, %v8895_v52, -inf }
0x155d   :  { %8937 = vmax.xlane.f32.xlu2 %v8936_v37 }
0x1562   :  { %v8918_v8 = vpop.f32.mrf.mxu3 }
0x1563   :  { %v8942_v38 = vsel %vm1514_vm2, %v8918_v8, -inf  ;;  %v8898_v61 = vpop.f32.mrf.mxu2 }
0x1564   :  { %8943 = vmax.xlane.f32.xlu0 %v8942_v38  ;;  %v8939_v63 = vsel %vm1514_vm2, %v8898_v61, -inf }
0x1565   :  { %8940 = vmax.xlane.f32.xlu1 %v8939_v63 }
0x156a   :  { %v8921_v6 = vpop.f32.mrf.mxu3 }
0x156b   :  { %v8945_v56 = vsel %vm1514_vm2, %v8921_v6, -inf }
0x156c   :  { %8946 = vmax.xlane.f32.xlu2 %v8945_v56 }
0x159e   :  { %v17879_v30 = vpop.f32.mrf.mxu0 }
0x159f   :  { %19464 = vst [vmem:[#allocation21_spill] sm:$0xff] %v17879_v30  ;;  %v17881_v55 = vpop.f32.mrf.mxu1 }
0x15a0   :  { %19465 = vst [vmem:[#allocation22_spill] sm:$0xff] %v17881_v55 }
0x15a6   :  { %v17883_v10 = vpop.f32.mrf.mxu0 }
0x15a7   :  { %19466 = vst [vmem:[#allocation27_spill] sm:$0xff] %v17883_v10  ;;  %v17885_v4 = vpop.f32.mrf.mxu1 }
0x15a8   :  { %19467 = vst [vmem:[#allocation57_spill] sm:$0xff] %v17885_v4 }
0x15ae   :  { %v17887_v31 = vpop.f32.mrf.mxu0 }
0x15af   :  { %19468 = vst [vmem:[#allocation60_spill] sm:$0xff] %v17887_v31  ;;  %v19488_v31 = vld [vmem:[#allocation65_spill] sm:$0xff] }
0x15bc   :  { %v17889_v0 = vpop.f32.mrf.mxu1 }
0x15bd   :  { %19469 = vst [vmem:[#allocation51_spill] sm:$0xff] %v17889_v0  ;;  %v17891_v28 = vpop.f32.mrf.mxu0 }
0x15be   :  { %19470 = vst [vmem:[#allocation47_spill] sm:$0xff] %v17891_v28 }
0x15c5   :  { %v17893_v57 = vpop.f32.mrf.mxu1  ;;  %v8849_v9 = vpop.f32.mrf.mxu0 }
0x15c6   :  { %19471 = vst [vmem:[#allocation54_spill] sm:$0xff] %v17893_v57  ;;  %v8924_v22 = vsel %vm1514_vm2, %v8849_v9, -inf }
0x15c7   :  { %8925 = vmax.xlane.f32.xlu0 %v8924_v22 }
0x15cd   :  { %v8872_v5 = vpop.f32.mrf.mxu1  ;;  %v8852_v45 = vpop.f32.mrf.mxu0 }
0x15ce   :  { %v8930_v14 = vsel %vm1514_vm2, %v8872_v5, -inf  ;;  %v8927_v11 = vsel %vm1514_vm2, %v8852_v45, -inf }
0x15cf   :  { %8931 = vmax.xlane.f32.xlu1 %v8930_v14  ;;  %8928 = vmax.xlane.f32.xlu2 %v8927_v11 }
0x15d0   :  { %v8938_v7 = vpop.xlane.xlu2 %8937 }
0x15d1   :  { %v8952_v17 = vsub.f32 %v8895_v52, %v8938_v7 }
0x15d3   :  { %v8964_v20 = vmul.f32 1.442695, %v8952_v17 }
0x15d5   :  { %v8875_v36 = vpop.f32.mrf.mxu1  ;;  %13055 = vpow2.f32 %v8964_v20 }
0x15d6   :  { %v8933_v62 = vsel %vm1514_vm2, %v8875_v36, -inf }
0x15d7   :  { %8934 = vmax.xlane.f32.xlu0 %v8933_v62  ;;  %v8944_v15 = vpop.xlane.xlu0 %8943 }
0x15d8   :  { %v8954_v3 = vsub.f32 %v8918_v8, %v8944_v15  ;;  %v8941_v50 = vpop.xlane.xlu1 %8940 }
0x15d9   :  { %v8953_v13 = vsub.f32 %v8898_v61, %v8941_v50 }
0x15da   :  { %v8968_v59 = vmul.f32 1.442695, %v8954_v3 }
0x15db   :  { %v13056_v37 = vpop.eup %13055  ;;  %v8966_v38 = vmul.f32 1.442695, %v8953_v13 }
0x15dc   :  { %13057 = vpow2.f32 %v8968_v59  ;;  %v8984_v63 = vsel %vm1514_vm2, %v13056_v37, 0.0 }
0x15dd   :  { %13059 = vpow2.f32 %v8966_v38  ;;  %8985 = vadd.xlane.f32.xlu1 %v8984_v63 }
0x15df   :  { %v8947_v56 = vpop.xlane.xlu2 %8946 }
0x15e0   :  { %v8955_v52 = vsub.f32 %v8921_v6, %v8947_v56 }
0x15e2   :  { %v13058_v22 = vpop.eup %13057  ;;  %v8970_v14 = vmul.f32 1.442695, %v8955_v52 }
0x15e3   :  { %v17900_v11 = vpop.eup %13059  ;;  %v8990_v7 = vsel %vm1514_vm2, %v13058_v22, 0.0 }
0x15e4   :  { %13061 = vpow2.f32 %v8970_v14  ;;  %8991 = vadd.xlane.f32.xlu2 %v8990_v7  ;;  %v8987_v8 = vsel %vm1514_vm2, %v17900_v11, 0.0 }
0x15e5   :  { %8988 = vadd.xlane.f32.xlu0 %v8987_v8 }
0x15ea   :  { %v17905_v61 = vpop.eup %13061 }
0x15eb   :  { %v8993_v17 = vsel %vm1514_vm2, %v17905_v61, 0.0 }
0x15ec   :  { %8994 = vadd.xlane.f32.xlu1 %v8993_v17 }
0x163a   :  { %v8926_v20 = vpop.xlane.xlu0 %8925 }
0x163b   :  { %v8948_v6 = vsub.f32 %v8849_v9, %v8926_v20 }
0x163d   :  { %v8956_v62 = vmul.f32 1.442695, %v8948_v6 }
0x163f   :  { %13063 = vpow2.f32 %v8956_v62 }
0x1642   :  { %v8932_v15 = vpop.xlane.xlu1 %8931  ;;  %v8929_v50 = vpop.xlane.xlu2 %8928 }
0x1643   :  { %v8950_v3 = vsub.f32 %v8872_v5, %v8932_v15  ;;  %v8949_v13 = vsub.f32 %v8852_v45, %v8929_v50 }
0x1645   :  { %v8960_v59 = vmul.f32 1.442695, %v8950_v3  ;;  %v17909_v38 = vpop.eup %13063  ;;  %v8958_v63 = vmul.f32 1.442695, %v8949_v13 }
0x1646   :  { %v8972_v56 = vsel %vm1514_vm2, %v17909_v38, 0.0 }
0x1647   :  { %13065 = vpow2.f32 %v8960_v59  ;;  %8973 = vadd.xlane.f32.xlu2 %v8972_v56 }
0x1648   :  { %13067 = vpow2.f32 %v8958_v63 }
0x164a   :  { %v8935_v52 = vpop.xlane.xlu0 %8934 }
0x164b   :  { %v8951_v14 = vsub.f32 %v8875_v36, %v8935_v52 }
0x164d   :  { %v17913_v7 = vpop.eup %13065  ;;  %v8962_v9 = vmul.f32 1.442695, %v8951_v14 }
0x164e   :  { %v17915_v8 = vpop.eup %13067  ;;  %v8978_v5 = vsel %vm1514_vm2, %v17913_v7, 0.0 }
0x164f   :  { %13069 = vpow2.f32 %v8962_v9  ;;  %8979 = vadd.xlane.f32.xlu0 %v8978_v5  ;;  %v8975_v45 = vsel %vm1514_vm2, %v17915_v8, 0.0 }
0x1650   :  { %8976 = vadd.xlane.f32.xlu1 %v8975_v45  ;;  %v8986_v17 = vpop.xlane.xlu1 %8985  ;;  %v19472_v45 = vld [vmem:[#allocation61_spill] sm:$0xff] }
0x1651   :  { %13071 = vrcp.f32 %v8986_v17 }
0x1655   :  { %v17921_v20 = vpop.eup %13069 }
0x1656   :  { %v8981_v36 = vsel %vm1514_vm2, %v17921_v20, 0.0 }
0x1657   :  { %8982 = vadd.xlane.f32.xlu2 %v8981_v36  ;;  %v13072_v6 = vpop.eup %13071  ;;  %v8992_v62 = vpop.xlane.xlu2 %8991 }
0x1658   :  { %v9008_v15 = vmul.f32 %v13072_v6, %v8986_v17  ;;  %13073 = vrcp.f32 %v8992_v62  ;;  %v8989_v3 = vpop.xlane.xlu0 %8988 }
0x1659   :  { %13075 = vrcp.f32 %v8989_v3 }
0x165a   :  { %v9016_v50 = vsub.f32 2.0, %v9008_v15  ;;  %v19474_v15 = vld [vmem:[#allocation5_spill] sm:$0xff] }
0x165c   :  { %v9024_v13 = vmul.f32 %v13072_v6, %v9016_v50 }
0x165e   :  { %v13074_v59 = vpop.eup %13073  ;;  %v9032_v63 = vmul.f32 %v13056_v37, %v9024_v13  ;;  %v19475_v13 = vld [vmem:[#allocation7_spill] sm:$0xff] }
0x165f   :  { %v13076_v56 = vpop.eup %13075  ;;  %v9010_v52 = vmul.f32 %v13074_v59, %v8992_v62  ;;  %v8995_v14 = vpop.xlane.xlu1 %8994 }
0x1660   :  { %v9009_v9 = vmul.f32 %v13076_v56, %v8989_v3  ;;  %13077 = vrcp.f32 %v8995_v14  ;;  %12327 = vmatmul.msk.f32.vlgmr.msrb.gmra.mxu2 %vm1514_vm2, %v9032_v63  ;;  %v19480_v63 = vld [vmem:[#allocation32_spill] sm:$0xff] }
0x1661   :  { %v9018_v5 = vsub.f32 2.0, %v9010_v52  ;;  %12355 = vmatpush.xpose.msk.msrb.mxu2 %vm1373_vm1, %v19472_v45  ;;  %v19482_v52 = vld [vmem:[#allocation36_spill] sm:$0xff] }
0x1662   :  { %v9017_v36 = vsub.f32 2.0, %v9009_v9  ;;  %v19485_v9 = vld [vmem:[#allocation19_spill] sm:$0xff] }
0x1663   :  { %v9026_v17 = vmul.f32 %v13074_v59, %v9018_v5  ;;  %v19476_v59 = vld [vmem:[#allocation37_spill] sm:$0xff]  ;;  %v19486_v5 = vld [vmem:[#allocation26_spill] sm:$0xff] }
0x1664   :  { %v9025_v57 = vmul.f32 %v13076_v56, %v9017_v36  ;;  %v19481_v56 = vld [vmem:[#allocation33_spill] sm:$0xff]  ;;  %v19487_v36 = vld [vmem:[#allocation56_spill] sm:$0xff] }
0x1665   :  { %v9034_v4 = vmul.f32 %v13058_v22, %v9026_v17  ;;  %12356 = vmatpush.xpose.msk.msrb.mxu2 %vm1373_vm1, %v19473_v35 }
0x1666   :  { %v13078_v6 = vpop.eup %13077  ;;  %v9033_v37 = vmul.f32 %v17900_v11, %v9025_v57  ;;  %v19477_v57 = vld [vmem:[#allocation6_spill] sm:$0xff]  ;;  %v19479_v11 = vld [vmem:[#allocation68_spill] sm:$0xff] }
0x1667   :  { %v9011_v62 = vmul.f32 %v13078_v6, %v8995_v14  ;;  %12329 = vmatmul.msk.f32.vlgmr.msrb.gmra.mxu3 %vm1514_vm2, %v9034_v4  ;;  %v19478_v4 = vld [vmem:[#allocation8_spill] sm:$0xff]  ;;  %v19484_v14 = vld [vmem:[#allocation15_spill] sm:$0xff] }
0x1668   :  { %12359 = vmatpush.xpose.msk.msrb.mxu3 %vm1373_vm1, %v19474_v15  ;;  %12328 = vmatmul.msk.f32.gmra.mxu2 %vm1514_vm2, %v9033_v37 }
0x1669   :  { %v9019_v3 = vsub.f32 2.0, %v9011_v62 }
0x166b   :  { %v9027_v50 = vmul.f32 %v13078_v6, %v9019_v3 }
0x166c   :  { %12360 = vmatpush.xpose.msk.msrb.mxu3 %vm1373_vm1, %v19475_v13 }
0x166d   :  { %v9035_v22 = vmul.f32 %v17905_v61, %v9027_v50  ;;  %v19483_v61 = vld [vmem:[#allocation44_spill] sm:$0xff] }
0x166f   :  { %12330 = vmatmul.msk.f32.gmra.mxu3 %vm1514_vm2, %v9035_v22 }
0x1670   :  { %12341 = vmatmul.msk.f32.vlgmr.msra.gmra.mxu2 %vm1373_vm1, %v19476_v59 }
0x1671   :  { %9670 = vmatpush.msra.mxu2 %v19477_v57 }
0x1673   :  { %9671 = vmatpush.msra.mxu2 %v19478_v4 }
0x1677   :  { %12345 = vmatmul.msk.f32.vlgmr.msra.gmra.mxu3 %vm1373_vm1, %v19479_v11 }
0x1678   :  { %9699 = vmatpush.msra.mxu3 %v19480_v63  ;;  %12342 = vmatmul.msk.f32.gmra.mxu2 %vm1373_vm1, %v19481_v56 }
0x167a   :  { %9700 = vmatpush.msra.mxu3 %v19482_v52 }
0x167f   :  { %12346 = vmatmul.msk.f32.gmra.mxu3 %vm1373_vm1, %v19483_v61 }
0x1680   :  { %12357 = vmatmul.msk.f32.vlgmr.msrb.gmra.mxu2 %vm1373_vm1, %v19476_v59 }
0x1681   :  { %9786 = vmatpush.msrb.mxu2 %v19484_v14 }
0x1683   :  { %9787 = vmatpush.msrb.mxu2 %v19485_v9 }
0x1687   :  { %12361 = vmatmul.msk.f32.vlgmr.msrb.gmra.mxu3 %vm1373_vm1, %v19479_v11 }
0x1688   :  { %9815 = vmatpush.msrb.mxu3 %v19486_v5  ;;  %12358 = vmatmul.msk.f32.gmra.mxu2 %vm1373_vm1, %v19481_v56 }
0x168a   :  { %9816 = vmatpush.msrb.mxu3 %v19487_v36 }
0x168f   :  { %12362 = vmatmul.msk.f32.gmra.mxu3 %vm1373_vm1, %v19483_v61 }
0x16ba   :  { %v8974_v17 = vpop.xlane.xlu2 %8973 }
0x16bb   :  { %13079 = vrcp.f32 %v8974_v17 }
0x16c1   :  { %v13080_v6 = vpop.eup %13079 }
0x16c2   :  { %v8980_v37 = vpop.xlane.xlu0 %8979  ;;  %v9004_v62 = vmul.f32 %v13080_v6, %v8974_v17 }
0x16c3   :  { %13081 = vrcp.f32 %v8980_v37  ;;  %v8977_v3 = vpop.xlane.xlu1 %8976 }
0x16c4   :  { %13083 = vrcp.f32 %v8977_v3  ;;  %v9012_v50 = vsub.f32 2.0, %v9004_v62 }
0x16c6   :  { %v9020_v22 = vmul.f32 %v13080_v6, %v9012_v50  ;;  %v19489_v6 = vld [vmem:[#allocation67_spill] sm:$0xff] }
0x16c8   :  { %v9028_v28 = vmul.f32 %v17909_v38, %v9020_v22  ;;  %v19500_v22 = vld [vmem:[#allocation12_spill] sm:$0xff] }
0x16c9   :  { %v13082_v46 = vpop.eup %13081 }
0x16ca   :  { %v13084_v10 = vpop.eup %13083  ;;  %v9006_v0 = vmul.f32 %v13082_v46, %v8980_v37  ;;  %v8983_v55 = vpop.xlane.xlu2 %8982  ;;  %12323 = vmatmul.msk.f32.vlgmr.msrb.gmra.mxu0 %vm1514_vm2, %v9028_v28  ;;  %v19496_v28 = vld [vmem:[#allocation77_spill] sm:$0xff] }
0x16cb   :  { %v9005_v25 = vmul.f32 %v13084_v10, %v8977_v3  ;;  %13085 = vrcp.f32 %v8983_v55  ;;  %12347 = vmatpush.xpose.msk.msrb.mxu0 %vm1373_vm1, %v19488_v31  ;;  %v19490_v3 = vld [vmem:[#allocation72_spill] sm:$0xff] }
0x16cc   :  { %v9014_v27 = vsub.f32 2.0, %v9006_v0 }
0x16cd   :  { %v9013_v17 = vsub.f32 2.0, %v9005_v25 }
0x16ce   :  { %v9022_v30 = vmul.f32 %v13082_v46, %v9014_v27  ;;  %v19491_v27 = vld [vmem:[#allocation64_spill] sm:$0xff] }
0x16cf   :  { %v9021_v32 = vmul.f32 %v13084_v10, %v9013_v17  ;;  %12348 = vmatpush.xpose.msk.msrb.mxu0 %vm1373_vm1, %v19489_v6  ;;  %v19495_v10 = vld [vmem:[#allocation78_spill] sm:$0xff] }
0x16d0   :  { %v9030_v62 = vmul.f32 %v17913_v7, %v9022_v30  ;;  %v19492_v30 = vld [vmem:[#allocation74_spill] sm:$0xff]  ;;  %v19497_v7 = vld [vmem:[#allocation11_spill] sm:$0xff] }
0x16d1   :  { %v13086_v38 = vpop.eup %13085  ;;  %v9029_v37 = vmul.f32 %v17915_v8, %v9021_v32  ;;  %v19493_v32 = vld [vmem:[#allocation73_spill] sm:$0xff] }
0x16d2   :  { %v9007_v50 = vmul.f32 %v13086_v38, %v8983_v55  ;;  %12325 = vmatmul.msk.f32.vlgmr.msrb.gmra.mxu1 %vm1514_vm2, %v9030_v62  ;;  %v19494_v55 = vld [vmem:[#allocation76_spill] sm:$0xff]  ;;  %v19502_v62 = vld [vmem:[#allocation39_spill] sm:$0xff] }
0x16d3   :  { %12351 = vmatpush.xpose.msk.msrb.mxu1 %vm1373_vm1, %v19490_v3  ;;  %12324 = vmatmul.msk.f32.gmra.mxu0 %vm1514_vm2, %v9029_v37  ;;  %v19504_v37 = vld [vmem:[#allocation38_spill] sm:$0xff] }
0x16d4   :  { %v9015_v0 = vsub.f32 2.0, %v9007_v50  ;;  %v19505_v50 = vld [vmem:[#allocation50_spill] sm:$0xff] }
0x16d6   :  { %v9023_v25 = vmul.f32 %v13086_v38, %v9015_v0 }
0x16d7   :  { %12352 = vmatpush.xpose.msk.msrb.mxu1 %vm1373_vm1, %v19491_v27 }
0x16d8   :  { %v9031_v46 = vmul.f32 %v17921_v20, %v9023_v25  ;;  %v19499_v20 = vld [vmem:[#allocation10_spill] sm:$0xff] }
0x16da   :  { %12326 = vmatmul.msk.f32.gmra.mxu1 %vm1514_vm2, %v9031_v46  ;;  %v19507_v46 = vld [vmem:[#allocation43_spill] sm:$0xff] }
0x16db   :  { %12333 = vmatmul.msk.f32.vlgmr.msra.gmra.mxu0 %vm1373_vm1, %v19492_v30 }
0x16dc   :  { %9612 = vmatpush.msra.mxu0 %v19493_v32 }
0x16de   :  { %9613 = vmatpush.msra.mxu0 %v19494_v55 }
0x16e2   :  { %12337 = vmatmul.msk.f32.vlgmr.msra.gmra.mxu1 %vm1373_vm1, %v19495_v10 }
0x16e3   :  { %9641 = vmatpush.msra.mxu1 %v19496_v28  ;;  %12334 = vmatmul.msk.f32.gmra.mxu0 %vm1373_vm1, %v19497_v7  ;;  %v17988_v8 = vpop.f32.mrf.mxu2 }
0x16e4   :  { %19498 = vst [vmem:[#allocation55_spill] sm:$0xff] %v17988_v8 }
0x16e5   :  { %9642 = vmatpush.msra.mxu1 %v19499_v20 }
0x16ea   :  { %12338 = vmatmul.msk.f32.gmra.mxu1 %vm1373_vm1, %v19500_v22  ;;  %v17993_v17 = vpop.f32.mrf.mxu3 }
0x16eb   :  { %19501 = vst [vmem:[#allocation37_spill] sm:$0xff] %v17993_v17  ;;  %12349 = vmatmul.msk.f32.vlgmr.msrb.gmra.mxu0 %vm1373_vm1, %v19492_v30  ;;  %v17998_v38 = vpop.f32.mrf.mxu2 }
0x16ec   :  { %9728 = vmatpush.msrb.mxu0 %v19502_v62  ;;  %19503 = vst [vmem:[#allocation68_spill] sm:$0xff] %v17998_v38 }
0x16ee   :  { %9729 = vmatpush.msrb.mxu0 %v19504_v37 }
0x16f2   :  { %12353 = vmatmul.msk.f32.vlgmr.msrb.gmra.mxu1 %vm1373_vm1, %v19495_v10  ;;  %v18004_v0 = vpop.f32.mrf.mxu3 }
0x16f3   :  { %9757 = vmatpush.msrb.mxu1 %v19505_v50  ;;  %19506 = vst [vmem:[#allocation33_spill] sm:$0xff] %v18004_v0  ;;  %12350 = vmatmul.msk.f32.gmra.mxu0 %vm1373_vm1, %v19497_v7  ;;  %v18008_v25 = vpop.f32.mrf.mxu2 }
0x16f4   :  { %v9288_v62 = vsel %vm1514_vm2, %v18008_v25, -inf }
0x16f5   :  { %9758 = vmatpush.msrb.mxu1 %v19507_v46 }
0x16fa   :  { %12354 = vmatmul.msk.f32.gmra.mxu1 %vm1373_vm1, %v19500_v22  ;;  %v18013_v17 = vpop.f32.mrf.mxu3 }
0x16fb   :  { %v18015_v38 = vpop.f32.mrf.mxu2  ;;  %v9294_v28 = vsel %vm1514_vm2, %v18013_v17, -inf }
0x1702   :  { %v18017_v60 = vpop.f32.mrf.mxu3 }
0x1703   :  { %v9451_v8 = vpop.f32.mrf.mxu2 }
0x1704   :  { %v9492_v34 = vsel %vm1514_vm2, %v9451_v8, -inf }
0x1705   :  { %9493 = vmax.xlane.f32.xlu0 %v9492_v34  ;;  %v9291_v34 = vsel %vm1514_vm2, %v18015_v38, -inf }
0x170a   :  { %v9474_v0 = vpop.f32.mrf.mxu3 }
0x170b   :  { %v9454_v44 = vpop.f32.mrf.mxu2  ;;  %v9498_v50 = vsel %vm1514_vm2, %v9474_v0, -inf }
0x170c   :  { %9499 = vmax.xlane.f32.xlu1 %v9498_v50  ;;  %v9495_v46 = vsel %vm1514_vm2, %v9454_v44, -inf  ;;  %v9297_v50 = vsel %vm1514_vm2, %v18017_v60, -inf }
0x170d   :  { %9496 = vmax.xlane.f32.xlu2 %v9495_v46 }
0x1712   :  { %v9477_v37 = vpop.f32.mrf.mxu3 }
0x1713   :  { %v9501_v20 = vsel %vm1514_vm2, %v9477_v37, -inf }
0x1714   :  { %9289 = vmax.xlane.f32.xlu1 %v9288_v62  ;;  %9502 = vmax.xlane.f32.xlu0 %v9501_v20 }
0x1715   :  { %9295 = vmax.xlane.f32.xlu2 %v9294_v28 }
0x171c   :  { %9292 = vmax.xlane.f32.xlu0 %v9291_v34  ;;  %9298 = vmax.xlane.f32.xlu1 %v9297_v50 }
0x1747   :  { %v18031_v46 = vpop.f32.mrf.mxu0 }
0x1748   :  { %19508 = vst [vmem:[#allocation44_spill] sm:$0xff] %v18031_v46 }
0x174f   :  { %v18033_v55 = vpop.f32.mrf.mxu1 }
0x1750   :  { %19509 = vst [vmem:[#allocation74_spill] sm:$0xff] %v18033_v55  ;;  %v18035_v32 = vpop.f32.mrf.mxu0 }
0x1751   :  { %19510 = vst [vmem:[#allocation78_spill] sm:$0xff] %v18035_v32 }
0x1757   :  { %v18037_v62 = vpop.f32.mrf.mxu1 }
0x1758   :  { %19511 = vst [vmem:[#allocation11_spill] sm:$0xff] %v18037_v62  ;;  %v18039_v20 = vpop.f32.mrf.mxu0 }
0x1759   :  { %v9276_v31 = vsel %vm1514_vm2, %v18039_v20, -inf }
0x175f   :  { %v18041_v27 = vpop.f32.mrf.mxu1 }
0x1760   :  { %v18043_v28 = vpop.f32.mrf.mxu0  ;;  %v9282_v5 = vsel %vm1514_vm2, %v18041_v27, -inf }
0x1761   :  { %v9279_v52 = vsel %vm1514_vm2, %v18043_v28, -inf }
0x1767   :  { %v18045_v3 = vpop.f32.mrf.mxu1 }
0x1768   :  { %v18047_v6 = vpop.f32.mrf.mxu0 }
0x1769   :  { %v9480_v34 = vsel %vm1514_vm2, %v18047_v6, -inf }
0x176a   :  { %9481 = vmax.xlane.f32.xlu2 %v9480_v34 }
0x176f   :  { %v18051_v50 = vpop.f32.mrf.mxu1 }
0x1770   :  { %v9486_v32 = vsel %vm1514_vm2, %v18051_v50, -inf  ;;  %v18055_v62 = vpop.f32.mrf.mxu0 }
0x1771   :  { %9487 = vmax.xlane.f32.xlu0 %v9486_v32  ;;  %v9483_v55 = vsel %vm1514_vm2, %v18055_v62, -inf }
0x1772   :  { %9484 = vmax.xlane.f32.xlu1 %v9483_v55  ;;  %v9285_v55 = vsel %vm1514_vm2, %v18045_v3, -inf }
0x1777   :  { %v18059_v46 = vpop.f32.mrf.mxu1 }
0x1778   :  { %v9489_v34 = vsel %vm1514_vm2, %v18059_v46, -inf  ;;  %v9494_v36 = vpop.xlane.xlu0 %9493 }
0x1779   :  { %9277 = vmax.xlane.f32.xlu0 %v9276_v31  ;;  %9490 = vmax.xlane.f32.xlu2 %v9489_v34  ;;  %v9508_v9 = vsub.f32 %v9451_v8, %v9494_v36 }
0x177a   :  { %9283 = vmax.xlane.f32.xlu1 %v9282_v5 }
0x177b   :  { %v9520_v32 = vmul.f32 1.442695, %v9508_v9 }
0x177d   :  { %13087 = vpow2.f32 %v9520_v32 }
0x177f   :  { %v9500_v14 = vpop.xlane.xlu1 %9499 }
0x1780   :  { %v9510_v63 = vsub.f32 %v9474_v0, %v9500_v14  ;;  %v9497_v31 = vpop.xlane.xlu2 %9496 }
0x1781   :  { %9286 = vmax.xlane.f32.xlu0 %v9285_v55  ;;  %9280 = vmax.xlane.f32.xlu2 %v9279_v52  ;;  %v9509_v34 = vsub.f32 %v9454_v44, %v9497_v31 }
0x1782   :  { %v9524_v4 = vmul.f32 1.442695, %v9510_v63 }
0x1783   :  { %v18071_v57 = vpop.eup %13087  ;;  %v9522_v13 = vmul.f32 1.442695, %v9509_v34 }
0x1784   :  { %13089 = vpow2.f32 %v9524_v4  ;;  %v9540_v9 = vsel %vm1514_vm2, %v18071_v57, 0.0 }
0x1785   :  { %13091 = vpow2.f32 %v9522_v13  ;;  %9541 = vadd.xlane.f32.xlu1 %v9540_v9 }
0x1787   :  { %v9503_v5 = vpop.xlane.xlu0 %9502  ;;  %v9290_v36 = vpop.xlane.xlu1 %9289 }
0x1788   :  { %v9511_v8 = vsub.f32 %v9477_v37, %v9503_v5  ;;  %v9304_v32 = vsub.f32 %v18008_v25, %v9290_v36  ;;  %v9296_v14 = vpop.xlane.xlu2 %9295 }
0x1789   :  { %v9306_v52 = vsub.f32 %v18013_v17, %v9296_v14 }
0x178a   :  { %v18077_v0 = vpop.eup %13089  ;;  %v9526_v44 = vmul.f32 1.442695, %v9511_v8  ;;  %v9316_v63 = vmul.f32 1.442695, %v9304_v32 }
0x178b   :  { %v18079_v55 = vpop.eup %13091  ;;  %v9320_v4 = vmul.f32 1.442695, %v9306_v52  ;;  %v9546_v31 = vsel %vm1514_vm2, %v18077_v0, 0.0 }
0x178c   :  { %13093 = vpow2.f32 %v9526_v44  ;;  %9547 = vadd.xlane.f32.xlu2 %v9546_v31  ;;  %v9543_v13 = vsel %vm1514_vm2, %v18079_v55, 0.0 }
0x178d   :  { %13095 = vpow2.f32 %v9316_v63  ;;  %9544 = vadd.xlane.f32.xlu0 %v9543_v13 }
0x178e   :  { %13097 = vpow2.f32 %v9320_v4 }
0x178f   :  { %v9293_v37 = vpop.xlane.xlu0 %9292  ;;  %v9299_v17 = vpop.xlane.xlu1 %9298 }
0x1790   :  { %v9305_v25 = vsub.f32 %v18015_v38, %v9293_v37  ;;  %v9307_v34 = vsub.f32 %v18017_v60, %v9299_v17 }
0x1792   :  { %v18087_v9 = vpop.eup %13093  ;;  %v9318_v5 = vmul.f32 1.442695, %v9305_v25  ;;  %v9322_v36 = vmul.f32 1.442695, %v9307_v34 }
0x1793   :  { %v18089_v8 = vpop.eup %13095  ;;  %v9549_v32 = vsel %vm1514_vm2, %v18087_v9, 0.0 }
0x1794   :  { %v18093_v14 = vpop.eup %13097  ;;  %13099 = vpow2.f32 %v9318_v5  ;;  %9550 = vadd.xlane.f32.xlu1 %v9549_v32  ;;  %v9336_v52 = vsel %vm1514_vm2, %v18089_v8, 0.0 }
0x1795   :  { %13101 = vpow2.f32 %v9322_v36  ;;  %9337 = vadd.xlane.f32.xlu2 %v9336_v52  ;;  %v9342_v60 = vsel %vm1514_vm2, %v18093_v14, 0.0 }
0x1796   :  { %9343 = vadd.xlane.f32.xlu0 %v9342_v60 }
0x179a   :  { %v18099_v38 = vpop.eup %13099 }
0x179b   :  { %v18101_v44 = vpop.eup %13101  ;;  %v9339_v63 = vsel %vm1514_vm2, %v18099_v38, 0.0 }
0x179c   :  { %9340 = vadd.xlane.f32.xlu1 %v9339_v63  ;;  %v9345_v4 = vsel %vm1514_vm2, %v18101_v44, 0.0 }
0x179d   :  { %9346 = vadd.xlane.f32.xlu2 %v9345_v4 }
0x17dd   :  { %v9482_v31 = vpop.xlane.xlu2 %9481 }
0x17de   :  { %v9504_v13 = vsub.f32 %v18047_v6, %v9482_v31 }
0x17e0   :  { %v9512_v37 = vmul.f32 1.442695, %v9504_v13 }
0x17e2   :  { %13103 = vpow2.f32 %v9512_v37 }
0x17e4   :  { %v9488_v17 = vpop.xlane.xlu0 %9487 }
0x17e5   :  { %v9506_v25 = vsub.f32 %v18051_v50, %v9488_v17  ;;  %v9485_v34 = vpop.xlane.xlu1 %9484 }
0x17e6   :  { %v9505_v5 = vsub.f32 %v18055_v62, %v9485_v34 }
0x17e7   :  { %v9516_v36 = vmul.f32 1.442695, %v9506_v25 }
0x17e8   :  { %v18110_v32 = vpop.eup %13103  ;;  %v9514_v52 = vmul.f32 1.442695, %v9505_v5 }
0x17e9   :  { %13105 = vpow2.f32 %v9516_v36  ;;  %v9528_v60 = vsel %vm1514_vm2, %v18110_v32, 0.0 }
0x17ea   :  { %13107 = vpow2.f32 %v9514_v52  ;;  %9529 = vadd.xlane.f32.xlu0 %v9528_v60 }
0x17ec   :  { %v9278_v63 = vpop.xlane.xlu0 %9277  ;;  %v9491_v6 = vpop.xlane.xlu2 %9490 }
0x17ed   :  { %v9300_v4 = vsub.f32 %v18039_v20, %v9278_v63  ;;  %v9507_v31 = vsub.f32 %v18059_v46, %v9491_v6  ;;  %v9284_v50 = vpop.xlane.xlu1 %9283 }
0x17ee   :  { %v9302_v13 = vsub.f32 %v18041_v27, %v9284_v50 }
0x17ef   :  { %v18117_v62 = vpop.eup %13105  ;;  %v9308_v37 = vmul.f32 1.442695, %v9300_v4  ;;  %v9518_v17 = vmul.f32 1.442695, %v9507_v31 }
0x17f0   :  { %v18119_v25 = vpop.eup %13107  ;;  %v9312_v34 = vmul.f32 1.442695, %v9302_v13  ;;  %v9534_v5 = vsel %vm1514_vm2, %v18117_v62, 0.0 }
0x17f1   :  { %13109 = vpow2.f32 %v9308_v37  ;;  %9535 = vadd.xlane.f32.xlu1 %v9534_v5  ;;  %v9531_v20 = vsel %vm1514_vm2, %v18119_v25, 0.0 }
0x17f2   :  { %13111 = vpow2.f32 %v9518_v17  ;;  %9532 = vadd.xlane.f32.xlu2 %v9531_v20 }
0x17f3   :  { %13113 = vpow2.f32 %v9312_v34 }
0x17f4   :  { %v9287_v46 = vpop.xlane.xlu0 %9286  ;;  %v9281_v27 = vpop.xlane.xlu2 %9280 }
0x17f5   :  { %v9303_v36 = vsub.f32 %v18045_v3, %v9287_v46  ;;  %v9301_v52 = vsub.f32 %v18043_v28, %v9281_v27 }
0x17f7   :  { %v18127_v60 = vpop.eup %13109  ;;  %v9314_v63 = vmul.f32 1.442695, %v9303_v36  ;;  %v9310_v6 = vmul.f32 1.442695, %v9301_v52 }
0x17f8   :  { %v18129_v4 = vpop.eup %13111  ;;  %v9324_v31 = vsel %vm1514_vm2, %v18127_v60, 0.0  ;;  %v9542_v37 = vpop.xlane.xlu1 %9541 }
0x17f9   :  { %v18133_v50 = vpop.eup %13113  ;;  %13115 = vpow2.f32 %v9314_v63  ;;  %v9537_v13 = vsel %vm1514_vm2, %v18129_v4, 0.0  ;;  %9325 = vadd.xlane.f32.xlu1 %v9324_v31 }
0x17fa   :  { %13117 = vpow2.f32 %v9310_v6  ;;  %9538 = vadd.xlane.f32.xlu0 %v9537_v13  ;;  %v9330_v3 = vsel %vm1514_vm2, %v18133_v50, 0.0 }
0x17fb   :  { %13119 = vrcp.f32 %v9542_v37  ;;  %9331 = vadd.xlane.f32.xlu2 %v9330_v3 }
0x17ff   :  { %v18139_v28 = vpop.eup %13115  ;;  %v9548_v34 = vpop.xlane.xlu2 %9547 }
0x1800   :  { %v18141_v17 = vpop.eup %13117  ;;  %v9333_v5 = vsel %vm1514_vm2, %v18139_v28, 0.0  ;;  %13121 = vrcp.f32 %v9548_v34  ;;  %v9545_v27 = vpop.xlane.xlu0 %9544 }
0x1801   :  { %v13120_v20 = vpop.eup %13119  ;;  %9334 = vadd.xlane.f32.xlu1 %v9333_v5  ;;  %v9327_v46 = vsel %vm1514_vm2, %v18141_v17, 0.0  ;;  %13123 = vrcp.f32 %v9545_v27 }
0x1802   :  { %v9564_v36 = vmul.f32 %v13120_v20, %v9542_v37  ;;  %9328 = vadd.xlane.f32.xlu0 %v9327_v46 }
0x1804   :  { %v9572_v52 = vsub.f32 2.0, %v9564_v36 }
0x1806   :  { %v9580_v63 = vmul.f32 %v13120_v20, %v9572_v52  ;;  %v13122_v6 = vpop.eup %13121 }
0x1807   :  { %v13124_v31 = vpop.eup %13123  ;;  %v9566_v3 = vmul.f32 %v13122_v6, %v9548_v34  ;;  %v9551_v15 = vpop.xlane.xlu1 %9550 }
0x1808   :  { %v9588_v13 = vmul.f32 %v18071_v57, %v9580_v63  ;;  %v9565_v35 = vmul.f32 %v13124_v31, %v9545_v27  ;;  %v9338_v45 = vpop.xlane.xlu2 %9337  ;;  %13125 = vrcp.f32 %v9551_v15 }
0x1809   :  { %v9574_v22 = vsub.f32 2.0, %v9566_v3  ;;  %13127 = vrcp.f32 %v9338_v45  ;;  %v9344_v5 = vpop.xlane.xlu0 %9343 }
0x180a   :  { %12367 = vmatmul.msk.f32.vlgmr.msra.gmra.mxu2 %vm1514_vm2, %v9588_v13  ;;  %v9573_v21 = vsub.f32 2.0, %v9565_v35  ;;  %13129 = vrcp.f32 %v9344_v5 }
0x180b   :  { %12387 = vmatpush.xpose.msk.msra.mxu2 %vm1373_vm1, %v17159_v42  ;;  %v9582_v37 = vmul.f32 %v13122_v6, %v9574_v22 }
0x180c   :  { %v9581_v20 = vmul.f32 %v13124_v31, %v9573_v21 }
0x180d   :  { %v9590_v46 = vmul.f32 %v18077_v0, %v9582_v37 }
0x180e   :  { %v13126_v57 = vpop.eup %13125  ;;  %v9589_v34 = vmul.f32 %v18079_v55, %v9581_v20 }
0x180f   :  { %12388 = vmatpush.xpose.msk.msra.mxu2 %vm1373_vm1, %v17147_v49  ;;  %v13128_v27 = vpop.eup %13127  ;;  %v9567_v36 = vmul.f32 %v13126_v57, %v9551_v15  ;;  %12369 = vmatmul.msk.f32.vlgmr.msra.gmra.mxu3 %vm1514_vm2, %v9590_v46  ;;  %v9341_v52 = vpop.xlane.xlu1 %9340 }
0x1810   :  { %v13130_v35 = vpop.eup %13129  ;;  %v9360_v63 = vmul.f32 %v13128_v27, %v9338_v45  ;;  %12391 = vmatpush.xpose.msk.msra.mxu3 %vm1373_vm1, %v17173_v16  ;;  %v9347_v42 = vpop.xlane.xlu2 %9346  ;;  %13131 = vrcp.f32 %v9341_v52 }
0x1811   :  { %v9575_v21 = vsub.f32 2.0, %v9567_v36  ;;  %v9362_v22 = vmul.f32 %v13130_v35, %v9344_v5  ;;  %13133 = vrcp.f32 %v9347_v42 }
0x1812   :  { %12368 = vmatmul.msk.f32.gmra.mxu2 %vm1514_vm2, %v9589_v34  ;;  %v9368_v0 = vsub.f32 2.0, %v9360_v63 }
0x1813   :  { %v9583_v55 = vmul.f32 %v13126_v57, %v9575_v21  ;;  %v9370_v6 = vsub.f32 2.0, %v9362_v22 }
0x1814   :  { %v9376_v49 = vmul.f32 %v13128_v27, %v9368_v0  ;;  %12392 = vmatpush.xpose.msk.msra.mxu3 %vm1373_vm1, %v17153_v51 }
0x1815   :  { %v9591_v15 = vmul.f32 %v18087_v9, %v9583_v55  ;;  %v9378_v3 = vmul.f32 %v13130_v35, %v9370_v6 }
0x1816   :  { %v13132_v45 = vpop.eup %13131  ;;  %v9384_v16 = vmul.f32 %v18089_v8, %v9376_v49 }
0x1817   :  { %v13134_v31 = vpop.eup %13133  ;;  %v9361_v13 = vmul.f32 %v13132_v45, %v9341_v52  ;;  %12370 = vmatmul.msk.f32.gmra.mxu3 %vm1514_vm2, %v9591_v15  ;;  %v9386_v51 = vmul.f32 %v18093_v14, %v9378_v3 }
0x1818   :  { %v9363_v5 = vmul.f32 %v13134_v31, %v9347_v42 }
0x1819   :  { %v9369_v37 = vsub.f32 2.0, %v9361_v13 }
0x181a   :  { %12375 = vmatmul.msk.f32.vlgmr.msrb.gmra.mxu2 %vm1514_vm2, %v9384_v16  ;;  %v9371_v9 = vsub.f32 2.0, %v9363_v5 }
0x181b   :  { %10106 = vmatpush.msrb.mxu2 %v17187_v39  ;;  %v9377_v20 = vmul.f32 %v13132_v45, %v9369_v37 }
0x181c   :  { %v9379_v8 = vmul.f32 %v13134_v31, %v9371_v9 }
0x181d   :  { %10107 = vmatpush.msrb.mxu2 %v17175_v19  ;;  %v9385_v46 = vmul.f32 %v18099_v38, %v9377_v20 }
0x181e   :  { %v9387_v57 = vmul.f32 %v18101_v44, %v9379_v8 }
0x181f   :  { %12377 = vmatmul.msk.f32.vlgmr.msrb.gmra.mxu3 %vm1514_vm2, %v9386_v51 }
0x1820   :  { %10135 = vmatpush.msrb.mxu3 %v17193_v43 }
0x1822   :  { %12376 = vmatmul.msk.f32.gmra.mxu2 %vm1514_vm2, %v9385_v46  ;;  %10136 = vmatpush.msrb.mxu3 %v17185_v53 }
0x1827   :  { %12378 = vmatmul.msk.f32.gmra.mxu3 %vm1514_vm2, %v9387_v57 }
0x182a   :  { %12389 = vmatmul.msk.f32.vlgmr.msra.gmra.mxu2 %vm1373_vm1, %v19476_v59 }
0x182b   :  { %12411 = vmatpush.xpose.msk.msra.mxu2 %vm1373_vm1, %v16654_v41 }
0x182f   :  { %12412 = vmatpush.xpose.msk.msra.mxu2 %vm1373_vm1, %v16615_v48  ;;  %12393 = vmatmul.msk.f32.vlgmr.msra.gmra.mxu3 %vm1373_vm1, %v19479_v11 }
0x1830   :  { %12415 = vmatpush.xpose.msk.msra.mxu3 %vm1373_vm1, %v16687_v18 }
0x1832   :  { %12390 = vmatmul.msk.f32.gmra.mxu2 %vm1373_vm1, %v19481_v56 }
0x1834   :  { %12416 = vmatpush.xpose.msk.msra.mxu3 %vm1373_vm1, %v16656_v29 }
0x1837   :  { %12394 = vmatmul.msk.f32.gmra.mxu3 %vm1373_vm1, %v19483_v61 }
0x185d   :  { %v9530_v43 = vpop.xlane.xlu0 %9529 }
0x185e   :  { %13135 = vrcp.f32 %v9530_v43 }
0x1864   :  { %v13136_v41 = vpop.eup %13135  ;;  %v9536_v19 = vpop.xlane.xlu1 %9535 }
0x1865   :  { %v9560_v48 = vmul.f32 %v13136_v41, %v9530_v43  ;;  %13137 = vrcp.f32 %v9536_v19  ;;  %v9533_v39 = vpop.xlane.xlu2 %9532 }
0x1866   :  { %13139 = vrcp.f32 %v9533_v39 }
0x1867   :  { %v9568_v53 = vsub.f32 2.0, %v9560_v48 }
0x1869   :  { %v9576_v59 = vmul.f32 %v13136_v41, %v9568_v53 }
0x186b   :  { %v13138_v18 = vpop.eup %13137  ;;  %v9584_v11 = vmul.f32 %v18110_v32, %v9576_v59 }
0x186c   :  { %v13140_v56 = vpop.eup %13139  ;;  %v9562_v14 = vmul.f32 %v13138_v18, %v9536_v19  ;;  %v9326_v38 = vpop.xlane.xlu1 %9325 }
0x186d   :  { %v9561_v29 = vmul.f32 %v13140_v56, %v9533_v39  ;;  %v9539_v44 = vpop.xlane.xlu0 %9538  ;;  %13141 = vrcp.f32 %v9326_v38  ;;  %12363 = vmatmul.msk.f32.vlgmr.msra.gmra.mxu0 %vm1514_vm2, %v9584_v11 }
0x186e   :  { %v9570_v61 = vsub.f32 2.0, %v9562_v14  ;;  %13143 = vrcp.f32 %v9539_v44  ;;  %12379 = vmatpush.xpose.msk.msra.mxu0 %vm1373_vm1, %v17274_v47  ;;  %v9332_v34 = vpop.xlane.xlu2 %9331 }
0x186f   :  { %v9569_v27 = vsub.f32 2.0, %v9561_v29  ;;  %13145 = vrcp.f32 %v9332_v34 }
0x1870   :  { %v9578_v36 = vmul.f32 %v13138_v18, %v9570_v61 }
0x1871   :  { %v9577_v52 = vmul.f32 %v13140_v56, %v9569_v27 }
0x1872   :  { %v9586_v32 = vmul.f32 %v18117_v62, %v9578_v36  ;;  %12380 = vmatpush.xpose.msk.msra.mxu0 %vm1373_vm1, %v17270_v12 }
0x1873   :  { %v13142_v35 = vpop.eup %13141  ;;  %v9585_v63 = vmul.f32 %v18119_v25, %v9577_v52 }
0x1874   :  { %v13144_v42 = vpop.eup %13143  ;;  %v9356_v21 = vmul.f32 %v13142_v35, %v9326_v38  ;;  %12365 = vmatmul.msk.f32.vlgmr.msra.gmra.mxu1 %vm1514_vm2, %v9586_v32  ;;  %v9335_v22 = vpop.xlane.xlu1 %9334 }
0x1875   :  { %v13146_v0 = vpop.eup %13145  ;;  %v9563_v47 = vmul.f32 %v13144_v42, %v9539_v44  ;;  %v9329_v55 = vpop.xlane.xlu0 %9328  ;;  %12383 = vmatpush.xpose.msk.msra.mxu1 %vm1373_vm1, %v17276_v1  ;;  %13147 = vrcp.f32 %v9335_v22  ;;  %12364 = vmatmul.msk.f32.gmra.mxu0 %vm1514_vm2, %v9585_v63 }
0x1876   :  { %v9364_v62 = vsub.f32 2.0, %v9356_v21  ;;  %13149 = vrcp.f32 %v9329_v55  ;;  %v9358_v49 = vmul.f32 %v13146_v0, %v9332_v34 }
0x1877   :  { %v9571_v12 = vsub.f32 2.0, %v9563_v47 }
0x1878   :  { %v9372_v15 = vmul.f32 %v13142_v35, %v9364_v62  ;;  %v9366_v16 = vsub.f32 2.0, %v9358_v49 }
0x1879   :  { %v9579_v25 = vmul.f32 %v13144_v42, %v9571_v12  ;;  %12384 = vmatpush.xpose.msk.msra.mxu1 %vm1373_vm1, %v17272_v33 }
0x187a   :  { %v9380_v31 = vmul.f32 %v18127_v60, %v9372_v15  ;;  %v9374_v3 = vmul.f32 %v13146_v0, %v9366_v16 }
0x187b   :  { %v13148_v6 = vpop.eup %13147  ;;  %v9587_v45 = vmul.f32 %v18129_v4, %v9579_v25 }
0x187c   :  { %v13150_v13 = vpop.eup %13149  ;;  %v9359_v37 = vmul.f32 %v13148_v6, %v9335_v22  ;;  %v9382_v20 = vmul.f32 %v18133_v50, %v9374_v3 }
0x187d   :  { %v9357_v1 = vmul.f32 %v13150_v13, %v9329_v55  ;;  %12366 = vmatmul.msk.f32.gmra.mxu1 %vm1514_vm2, %v9587_v45  ;;  %12371 = vmatmul.msk.f32.vlgmr.msrb.gmra.mxu0 %vm1514_vm2, %v9380_v31 }
0x187e   :  { %10048 = vmatpush.msrb.mxu0 %v17282_v54  ;;  %v9367_v60 = vsub.f32 2.0, %v9359_v37 }
0x187f   :  { %v9365_v5 = vsub.f32 2.0, %v9357_v1 }
0x1880   :  { %10049 = vmatpush.msrb.mxu0 %v17278_v26  ;;  %v9375_v51 = vmul.f32 %v13148_v6, %v9367_v60 }
0x1881   :  { %v9373_v33 = vmul.f32 %v13150_v13, %v9365_v5 }
0x1882   :  { %v9383_v54 = vmul.f32 %v18139_v28, %v9375_v51 }
0x1883   :  { %v9381_v4 = vmul.f32 %v18141_v17, %v9373_v33 }
0x1885   :  { %12373 = vmatmul.msk.f32.vlgmr.msrb.gmra.mxu1 %vm1514_vm2, %v9382_v20  ;;  %12372 = vmatmul.msk.f32.gmra.mxu0 %vm1514_vm2, %v9381_v4 }
0x1886   :  { %10077 = vmatpush.msrb.mxu1 %v17284_v40 }
0x1888   :  { %10078 = vmatpush.msrb.mxu1 %v17280_v2  ;;  %v19512_v2 = vld [vmem:[#allocation42_spill] sm:$0xff] }
0x188d   :  { %12374 = vmatmul.msk.f32.gmra.mxu1 %vm1514_vm2, %v9383_v54  ;;  %v18219_v26 = vpop.f32.mrf.mxu2  ;;  %12381 = vmatmul.msk.f32.vlgmr.msra.gmra.mxu0 %vm1373_vm1, %v19492_v30  ;;  %v19513_v30 = vld [vmem:[#allocation12_spill] sm:$0xff] }
0x188e   :  { %12403 = vmatpush.xpose.msk.msra.mxu0 %vm1373_vm1, %v17083_v58 }
0x1892   :  { %12404 = vmatpush.xpose.msk.msra.mxu0 %vm1373_vm1, %v17063_v24  ;;  %v18227_v50 = vpop.f32.mrf.mxu3 }
0x1895   :  { %12385 = vmatmul.msk.f32.vlgmr.msra.gmra.mxu1 %vm1373_vm1, %v19495_v10  ;;  %v18231_v40 = vpop.f32.mrf.mxu2  ;;  %12382 = vmatmul.msk.f32.gmra.mxu0 %vm1373_vm1, %v19497_v7 }
0x1896   :  { %12407 = vmatpush.xpose.msk.msra.mxu1 %vm1373_vm1, %v17085_v23 }
0x189a   :  { %12408 = vmatpush.xpose.msk.msra.mxu1 %vm1373_vm1, %v19512_v2  ;;  %v18239_v58 = vpop.f32.mrf.mxu3 }
0x189d   :  { %12386 = vmatmul.msk.f32.gmra.mxu1 %vm1373_vm1, %v19513_v30  ;;  %v18243_v24 = vpop.f32.mrf.mxu2 }
0x18a2   :  { %v18245_v28 = vpop.f32.mrf.mxu3 }
0x18a5   :  { %v18247_v10 = vpop.f32.mrf.mxu2 }
0x18aa   :  { %v18249_v17 = vpop.f32.mrf.mxu3 }
0x18ad   :  { %v9887_v7 = vpop.f32.mrf.mxu2 }
0x18ae   :  { %v9928_v9 = vsel %vm1514_vm2, %v9887_v7, -inf }
0x18af   :  { %9929 = vmax.xlane.f32.xlu2 %v9928_v9 }
0x18b2   :  { %v9910_v23 = vpop.f32.mrf.mxu3 }
0x18b3   :  { %v9934_v46 = vsel %vm1514_vm2, %v9910_v23, -inf }
0x18b4   :  { %9935 = vmax.xlane.f32.xlu0 %v9934_v46 }
0x18b5   :  { %v9890_v8 = vpop.f32.mrf.mxu2 }
0x18b6   :  { %v9931_v57 = vsel %vm1514_vm2, %v9890_v8, -inf }
0x18b7   :  { %9932 = vmax.xlane.f32.xlu1 %v9931_v57 }
0x18ba   :  { %v9913_v43 = vpop.f32.mrf.mxu3 }
0x18bb   :  { %v9937_v41 = vsel %vm1514_vm2, %v9913_v43, -inf }
0x18bc   :  { %9938 = vmax.xlane.f32.xlu2 %v9937_v41 }
0x18ea   :  { %v18255_v19 = vpop.f32.mrf.mxu0 }
0x18f1   :  { %v18257_v48 = vpop.f32.mrf.mxu1 }
0x18f2   :  { %v18259_v39 = vpop.f32.mrf.mxu0 }
0x18fa   :  { %v18261_v53 = vpop.f32.mrf.mxu1  ;;  %v18263_v59 = vpop.f32.mrf.mxu0 }
0x1902   :  { %v18265_v18 = vpop.f32.mrf.mxu1  ;;  %v18267_v11 = vpop.f32.mrf.mxu0 }
0x190a   :  { %v18269_v56 = vpop.f32.mrf.mxu1  ;;  %v9841_v14 = vpop.f32.mrf.mxu0 }
0x190b   :  { %v9916_v38 = vsel %vm1514_vm2, %v9841_v14, -inf }
0x190c   :  { %9917 = vmax.xlane.f32.xlu0 %v9916_v38 }
0x1912   :  { %v9864_v29 = vpop.f32.mrf.mxu1  ;;  %v9844_v44 = vpop.f32.mrf.mxu0 }
0x1913   :  { %v9922_v61 = vsel %vm1514_vm2, %v9864_v29, -inf  ;;  %v9919_v34 = vsel %vm1514_vm2, %v9844_v44, -inf }
0x1914   :  { %9923 = vmax.xlane.f32.xlu1 %v9922_v61  ;;  %9920 = vmax.xlane.f32.xlu2 %v9919_v34 }
0x191a   :  { %v9867_v27 = vpop.f32.mrf.mxu1 }
0x191b   :  { %v9925_v36 = vsel %vm1514_vm2, %v9867_v27, -inf }
0x191c   :  { %9926 = vmax.xlane.f32.xlu0 %v9925_v36 }
0x1922   :  { %v9930_v52 = vpop.xlane.xlu2 %9929 }
0x1923   :  { %v9944_v32 = vsub.f32 %v9887_v7, %v9930_v52 }
0x1925   :  { %v9956_v35 = vmul.f32 1.442695, %v9944_v32 }
0x1927   :  { %13151 = vpow2.f32 %v9956_v35  ;;  %v9936_v63 = vpop.xlane.xlu0 %9935 }
0x1928   :  { %v9946_v42 = vsub.f32 %v9910_v23, %v9936_v63 }
0x192a   :  { %v9933_v21 = vpop.xlane.xlu1 %9932  ;;  %v9960_v22 = vmul.f32 1.442695, %v9946_v42 }
0x192b   :  { %v9945_v0 = vsub.f32 %v9890_v8, %v9933_v21 }
0x192c   :  { %13153 = vpow2.f32 %v9960_v22  ;;  %v19514_v22 = vld [vmem:[#allocation61_spill] sm:$0xff] }
0x192d   :  { %v13152_v47 = vpop.eup %13151  ;;  %v9958_v55 = vmul.f32 1.442695, %v9945_v0 }
0x192e   :  { %v9976_v62 = vsel %vm1514_vm2, %v13152_v47, 0.0 }
0x192f   :  { %13155 = vpow2.f32 %v9958_v55  ;;  %9977 = vadd.xlane.f32.xlu1 %v9976_v62  ;;  %v9939_v12 = vpop.xlane.xlu2 %9938 }
0x1930   :  { %v9947_v49 = vsub.f32 %v9913_v43, %v9939_v12 }
0x1932   :  { %v13154_v15 = vpop.eup %13153  ;;  %v9962_v25 = vmul.f32 1.442695, %v9947_v49 }
0x1933   :  { %v9982_v6 = vsel %vm1514_vm2, %v13154_v15, 0.0 }
0x1934   :  { %13157 = vpow2.f32 %v9962_v25  ;;  %9983 = vadd.xlane.f32.xlu2 %v9982_v6  ;;  %v19515_v25 = vld [vmem:[#allocation23_spill] sm:$0xff] }
0x1935   :  { %v13156_v45 = vpop.eup %13155 }
0x1936   :  { %v9979_v31 = vsel %vm1514_vm2, %v13156_v45, 0.0 }
0x1937   :  { %9980 = vadd.xlane.f32.xlu0 %v9979_v31  ;;  %v19516_v31 = vld [vmem:[#allocation5_spill] sm:$0xff] }
0x193a   :  { %v18278_v16 = vpop.eup %13157 }
0x193b   :  { %v9985_v13 = vsel %vm1514_vm2, %v18278_v16, 0.0 }
0x193c   :  { %9986 = vadd.xlane.f32.xlu1 %v9985_v13 }
0x197f   :  { %v9918_v1 = vpop.xlane.xlu0 %9917 }
0x1980   :  { %v9940_v3 = vsub.f32 %v9841_v14, %v9918_v1 }
0x1982   :  { %v9948_v5 = vmul.f32 1.442695, %v9940_v3  ;;  %v19517_v3 = vld [vmem:[#allocation7_spill] sm:$0xff] }
0x1984   :  { %13159 = vpow2.f32 %v9948_v5  ;;  %v19518_v5 = vld [vmem:[#allocation46_spill] sm:$0xff] }
0x1987   :  { %v9924_v37 = vpop.xlane.xlu1 %9923  ;;  %v9921_v33 = vpop.xlane.xlu2 %9920 }
0x1988   :  { %v9942_v20 = vsub.f32 %v9864_v29, %v9924_v37  ;;  %v9941_v4 = vsub.f32 %v9844_v44, %v9921_v33  ;;  %v19520_v37 = vld [vmem:[#allocation8_spill] sm:$0xff]  ;;  %v19521_v33 = vld [vmem:[#allocation58_spill] sm:$0xff] }
0x198a   :  { %v18282_v60 = vpop.eup %13159  ;;  %v9952_v51 = vmul.f32 1.442695, %v9942_v20  ;;  %v9950_v54 = vmul.f32 1.442695, %v9941_v4  ;;  %v19522_v20 = vld [vmem:[#allocation32_spill] sm:$0xff]  ;;  %v19523_v4 = vld [vmem:[#allocation59_spill] sm:$0xff] }
0x198b   :  { %v9964_v2 = vsel %vm1514_vm2, %v18282_v60, 0.0 }
0x198c   :  { %13161 = vpow2.f32 %v9952_v51  ;;  %9965 = vadd.xlane.f32.xlu2 %v9964_v2  ;;  %v19524_v51 = vld [vmem:[#allocation36_spill] sm:$0xff]  ;;  %v19527_v2 = vld [vmem:[#allocation19_spill] sm:$0xff] }
0x198d   :  { %13163 = vpow2.f32 %v9950_v54  ;;  %v19526_v54 = vld [vmem:[#allocation15_spill] sm:$0xff] }
0x198f   :  { %v9927_v30 = vpop.xlane.xlu0 %9926 }
0x1990   :  { %v9943_v7 = vsub.f32 %v9867_v27, %v9927_v30  ;;  %v19528_v30 = vld [vmem:[#allocation26_spill] sm:$0xff] }
0x1992   :  { %v18286_v9 = vpop.eup %13161  ;;  %v9954_v23 = vmul.f32 1.442695, %v9943_v7  ;;  %v19529_v7 = vld [vmem:[#allocation56_spill] sm:$0xff] }
0x1993   :  { %v18288_v46 = vpop.eup %13163  ;;  %v9970_v8 = vsel %vm1514_vm2, %v18286_v9, 0.0 }
0x1994   :  { %13165 = vpow2.f32 %v9954_v23  ;;  %9971 = vadd.xlane.f32.xlu0 %v9970_v8  ;;  %v9967_v57 = vsel %vm1514_vm2, %v18288_v46, 0.0 }
0x1995   :  { %9968 = vadd.xlane.f32.xlu1 %v9967_v57 }
0x199a   :  { %v18294_v43 = vpop.eup %13165 }
0x199b   :  { %v9973_v41 = vsel %vm1514_vm2, %v18294_v43, 0.0 }
0x199c   :  { %9974 = vadd.xlane.f32.xlu2 %v9973_v41 }
0x19a2   :  { %v9978_v14 = vpop.xlane.xlu1 %9977 }
0x19a3   :  { %13167 = vrcp.f32 %v9978_v14 }
0x19a7   :  { %v9984_v38 = vpop.xlane.xlu2 %9983 }
0x19a8   :  { %13169 = vrcp.f32 %v9984_v38 }
0x19a9   :  { %v13168_v29 = vpop.eup %13167 }
0x19aa   :  { %v10000_v44 = vmul.f32 %v13168_v29, %v9978_v14  ;;  %v9981_v61 = vpop.xlane.xlu0 %9980 }
0x19ab   :  { %13171 = vrcp.f32 %v9981_v61 }
0x19ac   :  { %v10008_v34 = vsub.f32 2.0, %v10000_v44 }
0x19ae   :  { %v10016_v27 = vmul.f32 %v13168_v29, %v10008_v34  ;;  %v13170_v36 = vpop.eup %13169 }
0x19af   :  { %v10002_v32 = vmul.f32 %v13170_v36, %v9984_v38  ;;  %v9987_v35 = vpop.xlane.xlu1 %9986 }
0x19b0   :  { %v10024_v52 = vmul.f32 %v13152_v47, %v10016_v27  ;;  %13173 = vrcp.f32 %v9987_v35 }
0x19b1   :  { %v13172_v63 = vpop.eup %13171  ;;  %v10010_v42 = vsub.f32 2.0, %v10002_v32  ;;  %v19530_v32 = vld [vmem:[#allocation65_spill] sm:$0xff] }
0x19b2   :  { %v10001_v21 = vmul.f32 %v13172_v63, %v9981_v61  ;;  %12399 = vmatmul.msk.f32.vlgmr.msrb.gmra.mxu2 %vm1514_vm2, %v10024_v52 }
0x19b3   :  { %12427 = vmatpush.xpose.msk.msrb.mxu2 %vm1373_vm1, %v19514_v22  ;;  %v10018_v0 = vmul.f32 %v13170_v36, %v10010_v42  ;;  %v19531_v22 = vld [vmem:[#allocation67_spill] sm:$0xff] }
0x19b4   :  { %v10009_v55 = vsub.f32 2.0, %v10001_v21 }
0x19b5   :  { %v10026_v62 = vmul.f32 %v13154_v15, %v10018_v0 }
0x19b6   :  { %v10017_v12 = vmul.f32 %v13172_v63, %v10009_v55  ;;  %v13174_v49 = vpop.eup %13173 }
0x19b7   :  { %12428 = vmatpush.xpose.msk.msrb.mxu2 %vm1373_vm1, %v19515_v25  ;;  %v10003_v6 = vmul.f32 %v13174_v49, %v9987_v35  ;;  %12401 = vmatmul.msk.f32.vlgmr.msrb.gmra.mxu3 %vm1514_vm2, %v10026_v62 }
0x19b8   :  { %v10025_v47 = vmul.f32 %v13156_v45, %v10017_v12  ;;  %12431 = vmatpush.xpose.msk.msrb.mxu3 %vm1373_vm1, %v19516_v31  ;;  %v19519_v45 = vld [vmem:[#allocation6_spill] sm:$0xff]  ;;  %v19532_v12 = vld [vmem:[#allocation72_spill] sm:$0xff] }
0x19b9   :  { %v10011_v13 = vsub.f32 2.0, %v10003_v6  ;;  %v19536_v31 = vld [vmem:[#allocation76_spill] sm:$0xff] }
0x19ba   :  { %12400 = vmatmul.msk.f32.gmra.mxu2 %vm1514_vm2, %v10025_v47  ;;  %v19533_v47 = vld [vmem:[#allocation64_spill] sm:$0xff] }
0x19bb   :  { %v10019_v1 = vmul.f32 %v13174_v49, %v10011_v13  ;;  %v19537_v13 = vld [vmem:[#allocation94_spill] sm:$0xff] }
0x19bc   :  { %12432 = vmatpush.xpose.msk.msrb.mxu3 %vm1373_vm1, %v19517_v3  ;;  %v19539_v3 = vld [vmem:[#allocation30_spill] sm:$0xff] }
0x19bd   :  { %v10027_v15 = vmul.f32 %v18278_v16, %v10019_v1  ;;  %v19525_v16 = vld [vmem:[#allocation66_spill] sm:$0xff]  ;;  %v19538_v1 = vld [vmem:[#allocation77_spill] sm:$0xff] }
0x19bf   :  { %12402 = vmatmul.msk.f32.gmra.mxu3 %vm1514_vm2, %v10027_v15  ;;  %v19540_v15 = vld [vmem:[#allocation10_spill] sm:$0xff] }
0x19c2   :  { %12413 = vmatmul.msk.f32.vlgmr.msra.gmra.mxu2 %vm1373_vm1, %v19518_v5 }
0x19c3   :  { %10662 = vmatpush.msra.mxu2 %v19519_v45  ;;  %v19542_v45 = vld [vmem:[#allocation39_spill] sm:$0xff] }
0x19c5   :  { %10663 = vmatpush.msra.mxu2 %v19520_v37  ;;  %v19543_v37 = vld [vmem:[#allocation38_spill] sm:$0xff] }
0x19c7   :  { %12417 = vmatmul.msk.f32.vlgmr.msra.gmra.mxu3 %vm1373_vm1, %v19521_v33 }
0x19c8   :  { %10691 = vmatpush.msra.mxu3 %v19522_v20 }
0x19ca   :  { %12414 = vmatmul.msk.f32.gmra.mxu2 %vm1373_vm1, %v19523_v4  ;;  %10692 = vmatpush.msra.mxu3 %v19524_v51  ;;  %v19544_v51 = vld [vmem:[#allocation50_spill] sm:$0xff] }
0x19cf   :  { %12418 = vmatmul.msk.f32.gmra.mxu3 %vm1373_vm1, %v19525_v16 }
0x19d2   :  { %12429 = vmatmul.msk.f32.vlgmr.msrb.gmra.mxu2 %vm1373_vm1, %v19518_v5 }
0x19d3   :  { %10778 = vmatpush.msrb.mxu2 %v19526_v54  ;;  %v19545_v54 = vld [vmem:[#allocation43_spill] sm:$0xff] }
0x19d5   :  { %10779 = vmatpush.msrb.mxu2 %v19527_v2 }
0x19d7   :  { %12433 = vmatmul.msk.f32.vlgmr.msrb.gmra.mxu3 %vm1373_vm1, %v19521_v33 }
0x19d8   :  { %10807 = vmatpush.msrb.mxu3 %v19528_v30 }
0x19da   :  { %12430 = vmatmul.msk.f32.gmra.mxu2 %vm1373_vm1, %v19523_v4  ;;  %10808 = vmatpush.msrb.mxu3 %v19529_v7 }
0x19df   :  { %12434 = vmatmul.msk.f32.gmra.mxu3 %vm1373_vm1, %v19525_v16 }
0x19ff   :  { %v9966_v23 = vpop.xlane.xlu2 %9965 }
0x1a00   :  { %13175 = vrcp.f32 %v9966_v23 }
0x1a06   :  { %v13176_v8 = vpop.eup %13175 }
0x1a07   :  { %v9996_v57 = vmul.f32 %v13176_v8, %v9966_v23  ;;  %v9972_v41 = vpop.xlane.xlu0 %9971 }
0x1a08   :  { %13177 = vrcp.f32 %v9972_v41  ;;  %v9969_v14 = vpop.xlane.xlu1 %9968 }
0x1a09   :  { %v10004_v38 = vsub.f32 2.0, %v9996_v57  ;;  %13179 = vrcp.f32 %v9969_v14 }
0x1a0b   :  { %v10012_v29 = vmul.f32 %v13176_v8, %v10004_v38 }
0x1a0d   :  { %v10020_v44 = vmul.f32 %v18282_v60, %v10012_v29 }
0x1a0e   :  { %v13178_v61 = vpop.eup %13177 }
0x1a0f   :  { %v13180_v34 = vpop.eup %13179  ;;  %v9998_v27 = vmul.f32 %v13178_v61, %v9972_v41  ;;  %v9975_v36 = vpop.xlane.xlu2 %9974  ;;  %12395 = vmatmul.msk.f32.vlgmr.msrb.gmra.mxu0 %vm1514_vm2, %v10020_v44 }
0x1a10   :  { %v9997_v52 = vmul.f32 %v13180_v34, %v9969_v14  ;;  %13181 = vrcp.f32 %v9975_v36  ;;  %12419 = vmatpush.xpose.msk.msrb.mxu0 %vm1373_vm1, %v19530_v32 }
0x1a11   :  { %v10006_v35 = vsub.f32 2.0, %v9998_v27 }
0x1a12   :  { %v10005_v63 = vsub.f32 2.0, %v9997_v52 }
0x1a13   :  { %v10014_v42 = vmul.f32 %v13178_v61, %v10006_v35 }
0x1a14   :  { %v10013_v21 = vmul.f32 %v13180_v34, %v10005_v63  ;;  %12420 = vmatpush.xpose.msk.msrb.mxu0 %vm1373_vm1, %v19531_v22 }
0x1a15   :  { %v10022_v60 = vmul.f32 %v18286_v9, %v10014_v42  ;;  %v19534_v9 = vld [vmem:[#allocation90_spill] sm:$0xff] }
0x1a16   :  { %v13182_v0 = vpop.eup %13181  ;;  %v10021_v55 = vmul.f32 %v18288_v46, %v10013_v21  ;;  %v19535_v46 = vld [vmem:[#allocation73_spill] sm:$0xff] }
0x1a17   :  { %v9999_v62 = vmul.f32 %v13182_v0, %v9975_v36  ;;  %12397 = vmatmul.msk.f32.vlgmr.msrb.gmra.mxu1 %vm1514_vm2, %v10022_v60 }
0x1a18   :  { %12423 = vmatpush.xpose.msk.msrb.mxu1 %vm1373_vm1, %v19532_v12  ;;  %12396 = vmatmul.msk.f32.gmra.mxu0 %vm1514_vm2, %v10021_v55 }
0x1a19   :  { %v10007_v49 = vsub.f32 2.0, %v9999_v62 }
0x1a1b   :  { %v10015_v25 = vmul.f32 %v13182_v0, %v10007_v49 }
0x1a1c   :  { %12424 = vmatpush.xpose.msk.msrb.mxu1 %vm1373_vm1, %v19533_v47 }
0x1a1d   :  { %v10023_v6 = vmul.f32 %v18294_v43, %v10015_v25  ;;  %v19541_v43 = vld [vmem:[#allocation31_spill] sm:$0xff] }
0x1a1f   :  { %12398 = vmatmul.msk.f32.gmra.mxu1 %vm1514_vm2, %v10023_v6 }
0x1a20   :  { %12405 = vmatmul.msk.f32.vlgmr.msra.gmra.mxu0 %vm1373_vm1, %v19534_v9 }
0x1a21   :  { %10604 = vmatpush.msra.mxu0 %v19535_v46 }
0x1a23   :  { %10605 = vmatpush.msra.mxu0 %v19536_v31 }
0x1a27   :  { %12409 = vmatmul.msk.f32.vlgmr.msra.gmra.mxu1 %vm1373_vm1, %v19537_v13 }
0x1a28   :  { %10633 = vmatpush.msra.mxu1 %v19538_v1  ;;  %12406 = vmatmul.msk.f32.gmra.mxu0 %vm1373_vm1, %v19539_v3 }
0x1a2a   :  { %10634 = vmatpush.msra.mxu1 %v19540_v15 }
0x1a2f   :  { %12410 = vmatmul.msk.f32.gmra.mxu1 %vm1373_vm1, %v19541_v43 }
0x1a30   :  { %12421 = vmatmul.msk.f32.vlgmr.msrb.gmra.mxu0 %vm1373_vm1, %v19534_v9 }
0x1a31   :  { %10720 = vmatpush.msrb.mxu0 %v19542_v45 }
0x1a33   :  { %10721 = vmatpush.msrb.mxu0 %v19543_v37 }
0x1a35   :  { %v18367_v20 = vpop.f32.mrf.mxu2 }
0x1a37   :  { %12425 = vmatmul.msk.f32.vlgmr.msrb.gmra.mxu1 %vm1373_vm1, %v19537_v13 }
0x1a38   :  { %10749 = vmatpush.msrb.mxu1 %v19544_v51  ;;  %12422 = vmatmul.msk.f32.gmra.mxu0 %vm1373_vm1, %v19539_v3 }
0x1a3a   :  { %10750 = vmatpush.msrb.mxu1 %v19545_v54  ;;  %v18375_v2 = vpop.f32.mrf.mxu3 }
0x1a3d   :  { %v18377_v30 = vpop.f32.mrf.mxu2 }
0x1a3f   :  { %12426 = vmatmul.msk.f32.gmra.mxu1 %vm1373_vm1, %v19541_v43 }
0x1a42   :  { %v18381_v7 = vpop.f32.mrf.mxu3 }
0x1a45   :  { %v18383_v23 = vpop.f32.mrf.mxu2 }
0x1a46   :  { %v10280_v52 = vsel %vm1514_vm2, %v18383_v23, -inf }
0x1a4a   :  { %v18385_v8 = vpop.f32.mrf.mxu3 }
0x1a4b   :  { %v10286_v47 = vsel %vm1514_vm2, %v18385_v8, -inf }
0x1a4d   :  { %v18387_v57 = vpop.f32.mrf.mxu2 }
0x1a4e   :  { %v10283_v31 = vsel %vm1514_vm2, %v18387_v57, -inf }
0x1a52   :  { %v18389_v41 = vpop.f32.mrf.mxu3 }
0x1a53   :  { %v10289_v15 = vsel %vm1514_vm2, %v18389_v41, -inf }
0x1a55   :  { %v10443_v14 = vpop.f32.mrf.mxu2 }
0x1a56   :  { %v10484_v38 = vsel %vm1514_vm2, %v10443_v14, -inf }
0x1a57   :  { %10485 = vmax.xlane.f32.xlu0 %v10484_v38 }
0x1a5a   :  { %v10466_v29 = vpop.f32.mrf.mxu3 }
0x1a5b   :  { %v10490_v44 = vsel %vm1514_vm2, %v10466_v29, -inf }
0x1a5c   :  { %10491 = vmax.xlane.f32.xlu1 %v10490_v44 }
0x1a5d   :  { %v10446_v61 = vpop.f32.mrf.mxu2 }
0x1a5e   :  { %v10487_v34 = vsel %vm1514_vm2, %v10446_v61, -inf }
0x1a5f   :  { %10488 = vmax.xlane.f32.xlu2 %v10487_v34 }
0x1a62   :  { %v10469_v27 = vpop.f32.mrf.mxu3 }
0x1a63   :  { %v10493_v36 = vsel %vm1514_vm2, %v10469_v27, -inf }
0x1a64   :  { %10494 = vmax.xlane.f32.xlu0 %v10493_v36 }
0x1a67   :  { %10281 = vmax.xlane.f32.xlu2 %v10280_v52 }
0x1a8c   :  { %v18397_v32 = vpop.f32.mrf.mxu0 }
0x1a94   :  { %v18399_v35 = vpop.f32.mrf.mxu1 }
0x1a95   :  { %v18401_v63 = vpop.f32.mrf.mxu0 }
0x1a9c   :  { %v18403_v42 = vpop.f32.mrf.mxu1 }
0x1a9d   :  { %19546 = vst [vmem:[#allocation42_spill] sm:$0xff] %v18403_v42  ;;  %v18405_v21 = vpop.f32.mrf.mxu0 }
0x1a9e   :  { %v10268_v45 = vsel %vm1514_vm2, %v18405_v21, -inf }
0x1aa4   :  { %v18407_v22 = vpop.f32.mrf.mxu1 }
0x1aa5   :  { %v18409_v60 = vpop.f32.mrf.mxu0  ;;  %v10274_v37 = vsel %vm1514_vm2, %v18407_v22, -inf }
0x1aa6   :  { %v10271_v51 = vsel %vm1514_vm2, %v18409_v60, -inf }
0x1aac   :  { %v18411_v0 = vpop.f32.mrf.mxu1 }
0x1aad   :  { %v18413_v55 = vpop.f32.mrf.mxu0  ;;  %v10277_v34 = vsel %vm1514_vm2, %v18411_v0, -inf }
0x1aae   :  { %v10472_v62 = vsel %vm1514_vm2, %v18413_v55, -inf }
0x1aaf   :  { %10473 = vmax.xlane.f32.xlu1 %v10472_v62 }
0x1ab4   :  { %v18417_v12 = vpop.f32.mrf.mxu1 }
0x1ab5   :  { %v10478_v49 = vsel %vm1514_vm2, %v18417_v12, -inf  ;;  %v18421_v25 = vpop.f32.mrf.mxu0 }
0x1ab6   :  { %10479 = vmax.xlane.f32.xlu0 %v10478_v49  ;;  %v10475_v6 = vsel %vm1514_vm2, %v18421_v25, -inf }
0x1ab7   :  { %10287 = vmax.xlane.f32.xlu1 %v10286_v47  ;;  %10476 = vmax.xlane.f32.xlu2 %v10475_v6 }
0x1abc   :  { %v18427_v46 = vpop.f32.mrf.mxu1 }
0x1abd   :  { %v10481_v1 = vsel %vm1514_vm2, %v18427_v46, -inf }
0x1abe   :  { %10284 = vmax.xlane.f32.xlu0 %v10283_v31 }
0x1abf   :  { %10482 = vmax.xlane.f32.xlu1 %v10481_v1  ;;  %10290 = vmax.xlane.f32.xlu2 %v10289_v15 }
0x1ac6   :  { %10269 = vmax.xlane.f32.xlu0 %v10268_v45 }
0x1ac7   :  { %10275 = vmax.xlane.f32.xlu1 %v10274_v37  ;;  %10272 = vmax.xlane.f32.xlu2 %v10271_v51 }
0x1aca   :  { %v10486_v54 = vpop.xlane.xlu0 %10485 }
0x1acb   :  { %v10500_v38 = vsub.f32 %v10443_v14, %v10486_v54 }
0x1acd   :  { %v10512_v44 = vmul.f32 1.442695, %v10500_v38 }
0x1ace   :  { %10278 = vmax.xlane.f32.xlu0 %v10277_v34 }
0x1acf   :  { %13183 = vpow2.f32 %v10512_v44  ;;  %v10492_v36 = vpop.xlane.xlu1 %10491 }
0x1ad0   :  { %v10502_v52 = vsub.f32 %v10466_v29, %v10492_v36 }
0x1ad2   :  { %v10489_v62 = vpop.xlane.xlu2 %10488  ;;  %v10516_v49 = vmul.f32 1.442695, %v10502_v52 }
0x1ad3   :  { %v10501_v47 = vsub.f32 %v10446_v61, %v10489_v62 }
0x1ad4   :  { %13185 = vpow2.f32 %v10516_v49 }
0x1ad5   :  { %v18443_v6 = vpop.eup %13183  ;;  %v10514_v31 = vmul.f32 1.442695, %v10501_v47 }
0x1ad6   :  { %v10532_v1 = vsel %vm1514_vm2, %v18443_v6, 0.0 }
0x1ad7   :  { %13187 = vpow2.f32 %v10514_v31  ;;  %10533 = vadd.xlane.f32.xlu1 %v10532_v1  ;;  %v10495_v14 = vpop.xlane.xlu0 %10494 }
0x1ad8   :  { %v10503_v15 = vsub.f32 %v10469_v27, %v10495_v14 }
0x1ada   :  { %v10282_v45 = vpop.xlane.xlu2 %10281  ;;  %v18447_v37 = vpop.eup %13185  ;;  %v10518_v51 = vmul.f32 1.442695, %v10503_v15 }
0x1adb   :  { %v10296_v29 = vsub.f32 %v18383_v23, %v10282_v45  ;;  %v10538_v61 = vsel %vm1514_vm2, %v18447_v37, 0.0 }
0x1adc   :  { %13189 = vpow2.f32 %v10518_v51  ;;  %10539 = vadd.xlane.f32.xlu2 %v10538_v61 }
0x1add   :  { %v18452_v54 = vpop.eup %13187  ;;  %v10308_v38 = vmul.f32 1.442695, %v10296_v29 }
0x1ade   :  { %v10535_v44 = vsel %vm1514_vm2, %v18452_v54, 0.0 }
0x1adf   :  { %13191 = vpow2.f32 %v10308_v38  ;;  %10536 = vadd.xlane.f32.xlu0 %v10535_v44 }
0x1ae2   :  { %v18456_v27 = vpop.eup %13189 }
0x1ae3   :  { %v10541_v34 = vsel %vm1514_vm2, %v18456_v27, 0.0 }
0x1ae4   :  { %10542 = vadd.xlane.f32.xlu1 %v10541_v34 }
0x1ae5   :  { %v18460_v36 = vpop.eup %13191 }
0x1ae6   :  { %v10328_v23 = vsel %vm1514_vm2, %v18460_v36, 0.0 }
0x1ae7   :  { %10329 = vadd.xlane.f32.xlu0 %v10328_v23 }
0x1b22   :  { %v10474_v52 = vpop.xlane.xlu1 %10473 }
0x1b23   :  { %v10496_v62 = vsub.f32 %v18413_v55, %v10474_v52 }
0x1b25   :  { %v10504_v49 = vmul.f32 1.442695, %v10496_v62 }
0x1b27   :  { %13193 = vpow2.f32 %v10504_v49 }
0x1b29   :  { %v10480_v47 = vpop.xlane.xlu0 %10479 }
0x1b2a   :  { %v10498_v31 = vsub.f32 %v18417_v12, %v10480_v47  ;;  %v10477_v1 = vpop.xlane.xlu2 %10476  ;;  %v10288_v14 = vpop.xlane.xlu1 %10287 }
0x1b2b   :  { %v10497_v15 = vsub.f32 %v18421_v25, %v10477_v1  ;;  %v10298_v45 = vsub.f32 %v18385_v8, %v10288_v14 }
0x1b2c   :  { %v10508_v51 = vmul.f32 1.442695, %v10498_v31 }
0x1b2d   :  { %v18468_v29 = vpop.eup %13193  ;;  %v10506_v61 = vmul.f32 1.442695, %v10497_v15  ;;  %v10312_v38 = vmul.f32 1.442695, %v10298_v45 }
0x1b2e   :  { %13195 = vpow2.f32 %v10508_v51  ;;  %v10520_v55 = vsel %vm1514_vm2, %v18468_v29, 0.0 }
0x1b2f   :  { %13197 = vpow2.f32 %v10506_v61  ;;  %10521 = vadd.xlane.f32.xlu2 %v10520_v55 }
0x1b30   :  { %13199 = vpow2.f32 %v10312_v38 }
0x1b31   :  { %v10285_v44 = vpop.xlane.xlu0 %10284 }
0x1b32   :  { %v10297_v12 = vsub.f32 %v18387_v57, %v10285_v44  ;;  %v10291_v34 = vpop.xlane.xlu2 %10290  ;;  %v10483_v23 = vpop.xlane.xlu1 %10482 }
0x1b33   :  { %v10299_v25 = vsub.f32 %v18389_v41, %v10291_v34  ;;  %v10499_v8 = vsub.f32 %v18427_v46, %v10483_v23 }
0x1b34   :  { %v18475_v52 = vpop.eup %13195  ;;  %v10310_v62 = vmul.f32 1.442695, %v10297_v12 }
0x1b35   :  { %v18477_v49 = vpop.eup %13197  ;;  %v10314_v47 = vmul.f32 1.442695, %v10299_v25  ;;  %v10510_v31 = vmul.f32 1.442695, %v10499_v8  ;;  %v10526_v1 = vsel %vm1514_vm2, %v18475_v52, 0.0 }
0x1b36   :  { %v18481_v14 = vpop.eup %13199  ;;  %13201 = vpow2.f32 %v10310_v62  ;;  %10527 = vadd.xlane.f32.xlu1 %v10526_v1  ;;  %v10523_v57 = vsel %vm1514_vm2, %v18477_v49, 0.0 }
0x1b37   :  { %13203 = vpow2.f32 %v10314_v47  ;;  %10524 = vadd.xlane.f32.xlu0 %v10523_v57  ;;  %v10334_v41 = vsel %vm1514_vm2, %v18481_v14, 0.0 }
0x1b38   :  { %13205 = vpow2.f32 %v10510_v31  ;;  %10335 = vadd.xlane.f32.xlu2 %v10334_v41 }
0x1b39   :  { %v10270_v46 = vpop.xlane.xlu0 %10269 }
0x1b3a   :  { %v10292_v15 = vsub.f32 %v18405_v21, %v10270_v46  ;;  %v10273_v45 = vpop.xlane.xlu2 %10272  ;;  %v10276_v51 = vpop.xlane.xlu1 %10275 }
0x1b3b   :  { %v10293_v61 = vsub.f32 %v18409_v60, %v10273_v45  ;;  %v10294_v38 = vsub.f32 %v18407_v22, %v10276_v51 }
0x1b3c   :  { %v18490_v55 = vpop.eup %13201  ;;  %v10300_v44 = vmul.f32 1.442695, %v10292_v15 }
0x1b3d   :  { %v18492_v12 = vpop.eup %13203  ;;  %v10302_v34 = vmul.f32 1.442695, %v10293_v61  ;;  %v10304_v23 = vmul.f32 1.442695, %v10294_v38  ;;  %v10331_v25 = vsel %vm1514_vm2, %v18490_v55, 0.0 }
0x1b3e   :  { %v18496_v8 = vpop.eup %13205  ;;  %13207 = vpow2.f32 %v10300_v44  ;;  %10332 = vadd.xlane.f32.xlu1 %v10331_v25  ;;  %v10337_v21 = vsel %vm1514_vm2, %v18492_v12, 0.0 }
0x1b3f   :  { %13209 = vpow2.f32 %v10302_v34  ;;  %10338 = vadd.xlane.f32.xlu0 %v10337_v21  ;;  %v10529_v22 = vsel %vm1514_vm2, %v18496_v8, 0.0 }
0x1b40   :  { %13211 = vpow2.f32 %v10304_v23  ;;  %10530 = vadd.xlane.f32.xlu2 %v10529_v22 }
0x1b41   :  { %v10279_v60 = vpop.xlane.xlu0 %10278 }
0x1b42   :  { %v10295_v62 = vsub.f32 %v18411_v0, %v10279_v60 }
0x1b44   :  { %v18503_v47 = vpop.eup %13207  ;;  %v10306_v31 = vmul.f32 1.442695, %v10295_v62 }
0x1b45   :  { %v18505_v1 = vpop.eup %13209  ;;  %v10316_v57 = vsel %vm1514_vm2, %v18503_v47, 0.0 }
0x1b46   :  { %v18509_v41 = vpop.eup %13211  ;;  %13213 = vpow2.f32 %v10306_v31  ;;  %10317 = vadd.xlane.f32.xlu1 %v10316_v57  ;;  %v10319_v46 = vsel %vm1514_vm2, %v18505_v1, 0.0 }
0x1b47   :  { %10320 = vadd.xlane.f32.xlu0 %v10319_v46  ;;  %v10322_v15 = vsel %vm1514_vm2, %v18509_v41, 0.0 }
0x1b48   :  { %10323 = vadd.xlane.f32.xlu2 %v10322_v15 }
0x1b4a   :  { %v10534_v0 = vpop.xlane.xlu1 %10533 }
0x1b4b   :  { %13215 = vrcp.f32 %v10534_v0 }
0x1b4c   :  { %v18515_v45 = vpop.eup %13213 }
0x1b4d   :  { %v10325_v51 = vsel %vm1514_vm2, %v18515_v45, 0.0 }
0x1b4e   :  { %10326 = vadd.xlane.f32.xlu1 %v10325_v51  ;;  %v19547_v51 = vld [vmem:[#allocation69_spill] sm:$0xff] }
0x1b4f   :  { %v10540_v61 = vpop.xlane.xlu2 %10539 }
0x1b50   :  { %13217 = vrcp.f32 %v10540_v61 }
0x1b51   :  { %v13216_v38 = vpop.eup %13215 }
0x1b52   :  { %v10556_v44 = vmul.f32 %v13216_v38, %v10534_v0  ;;  %v10537_v34 = vpop.xlane.xlu0 %10536 }
0x1b53   :  { %13219 = vrcp.f32 %v10537_v34 }
0x1b54   :  { %v10564_v23 = vsub.f32 2.0, %v10556_v44 }
0x1b56   :  { %v10572_v25 = vmul.f32 %v13216_v38, %v10564_v23  ;;  %v13218_v21 = vpop.eup %13217 }
0x1b57   :  { %v10558_v60 = vmul.f32 %v13218_v21, %v10540_v61  ;;  %v10543_v62 = vpop.xlane.xlu1 %10542 }
0x1b58   :  { %v10580_v22 = vmul.f32 %v18443_v6, %v10572_v25  ;;  %13221 = vrcp.f32 %v10543_v62  ;;  %v19548_v6 = vld [vmem:[#allocation40_spill] sm:$0xff] }
0x1b59   :  { %v13220_v31 = vpop.eup %13219  ;;  %v10566_v57 = vsub.f32 2.0, %v10558_v60 }
0x1b5a   :  { %v10557_v46 = vmul.f32 %v13220_v31, %v10537_v34  ;;  %v10330_v15 = vpop.xlane.xlu0 %10329  ;;  %12439 = vmatmul.msk.f32.vlgmr.msra.gmra.mxu2 %vm1514_vm2, %v10580_v22  ;;  %v19549_v22 = vld [vmem:[#allocation70_spill] sm:$0xff] }
0x1b5b   :  { %13223 = vrcp.f32 %v10330_v15  ;;  %12459 = vmatpush.xpose.msk.msra.mxu2 %vm1373_vm1, %v19547_v51  ;;  %v10574_v0 = vmul.f32 %v13218_v21, %v10566_v57 }
0x1b5c   :  { %v10565_v42 = vsub.f32 2.0, %v10557_v46  ;;  %v19552_v46 = vld [vmem:[#allocation41_spill] sm:$0xff] }
0x1b5d   :  { %v10582_v38 = vmul.f32 %v18447_v37, %v10574_v0 }
0x1b5e   :  { %v10573_v44 = vmul.f32 %v13220_v31, %v10565_v42  ;;  %v13222_v23 = vpop.eup %13221  ;;  %v19550_v42 = vld [vmem:[#allocation45_spill] sm:$0xff] }
0x1b5f   :  { %12460 = vmatpush.xpose.msk.msra.mxu2 %vm1373_vm1, %v19548_v6  ;;  %v10559_v25 = vmul.f32 %v13222_v23, %v10543_v62  ;;  %12441 = vmatmul.msk.f32.vlgmr.msra.gmra.mxu3 %vm1514_vm2, %v10582_v38  ;;  %v19551_v62 = vld [vmem:[#allocation71_spill] sm:$0xff] }
0x1b60   :  { %v10581_v61 = vmul.f32 %v18452_v54, %v10573_v44  ;;  %12463 = vmatpush.xpose.msk.msra.mxu3 %vm1373_vm1, %v19549_v22 }
0x1b61   :  { %v13224_v34 = vpop.eup %13223  ;;  %v10567_v60 = vsub.f32 2.0, %v10559_v25 }
0x1b62   :  { %v10352_v51 = vmul.f32 %v13224_v34, %v10330_v15  ;;  %12440 = vmatmul.msk.f32.gmra.mxu2 %vm1514_vm2, %v10581_v61 }
0x1b63   :  { %v10575_v21 = vmul.f32 %v13222_v23, %v10567_v60 }
0x1b64   :  { %v10360_v37 = vsub.f32 2.0, %v10352_v51  ;;  %12464 = vmatpush.xpose.msk.msra.mxu3 %vm1373_vm1, %v19550_v42 }
0x1b65   :  { %v10583_v31 = vmul.f32 %v18456_v27, %v10575_v21 }
0x1b66   :  { %v10368_v57 = vmul.f32 %v13224_v34, %v10360_v37 }
0x1b67   :  { %12442 = vmatmul.msk.f32.gmra.mxu3 %vm1514_vm2, %v10583_v31 }
0x1b68   :  { %v10376_v54 = vmul.f32 %v18460_v36, %v10368_v57  ;;  %v19553_v57 = vld [vmem:[#allocation88_spill] sm:$0xff] }
0x1b6a   :  { %12447 = vmatmul.msk.f32.vlgmr.msrb.gmra.mxu2 %vm1514_vm2, %v10376_v54 }
0x1b6b   :  { %11098 = vmatpush.msrb.mxu2 %v19551_v62 }
0x1b6d   :  { %11099 = vmatpush.msrb.mxu2 %v19552_v46 }
0x1ba2   :  { %v10522_v15 = vpop.xlane.xlu2 %10521 }
0x1ba3   :  { %13225 = vrcp.f32 %v10522_v15 }
0x1ba9   :  { %v13226_v0 = vpop.eup %13225  ;;  %v10528_v38 = vpop.xlane.xlu1 %10527 }
0x1baa   :  { %v10552_v44 = vmul.f32 %v13226_v0, %v10522_v15  ;;  %13227 = vrcp.f32 %v10528_v38  ;;  %v10525_v23 = vpop.xlane.xlu0 %10524 }
0x1bab   :  { %13229 = vrcp.f32 %v10525_v23  ;;  %v10336_v27 = vpop.xlane.xlu2 %10335 }
0x1bac   :  { %v10560_v6 = vsub.f32 2.0, %v10552_v44  ;;  %13231 = vrcp.f32 %v10336_v27  ;;  %v19554_v44 = vld [vmem:[#allocation75_spill] sm:$0xff] }
0x1bae   :  { %v10568_v36 = vmul.f32 %v13226_v0, %v10560_v6 }
0x1bb0   :  { %v13228_v61 = vpop.eup %13227  ;;  %v10576_v25 = vmul.f32 %v18468_v29, %v10568_v36 }
0x1bb1   :  { %v13230_v34 = vpop.eup %13229  ;;  %v10554_v22 = vmul.f32 %v13228_v61, %v10528_v38  ;;  %v10333_v60 = vpop.xlane.xlu1 %10332 }
0x1bb2   :  { %v13232_v51 = vpop.eup %13231  ;;  %v10553_v21 = vmul.f32 %v13230_v34, %v10525_v23  ;;  %13233 = vrcp.f32 %v10333_v60  ;;  %v10339_v37 = vpop.xlane.xlu0 %10338  ;;  %12435 = vmatmul.msk.f32.vlgmr.msra.gmra.mxu0 %vm1514_vm2, %v10576_v25 }
0x1bb3   :  { %v10562_v42 = vsub.f32 2.0, %v10554_v22  ;;  %v10354_v31 = vmul.f32 %v13232_v51, %v10336_v27  ;;  %13235 = vrcp.f32 %v10339_v37  ;;  %12451 = vmatpush.xpose.msk.msra.mxu0 %vm1373_vm1, %v19553_v57  ;;  %v10531_v54 = vpop.xlane.xlu2 %10530 }
0x1bb4   :  { %v10561_v62 = vsub.f32 2.0, %v10553_v21  ;;  %13237 = vrcp.f32 %v10531_v54 }
0x1bb5   :  { %v10570_v46 = vmul.f32 %v13228_v61, %v10562_v42  ;;  %v10362_v29 = vsub.f32 2.0, %v10354_v31  ;;  %v19555_v42 = vld [vmem:[#allocation92_spill] sm:$0xff] }
0x1bb6   :  { %v10569_v15 = vmul.f32 %v13230_v34, %v10561_v62  ;;  %v19557_v62 = vld [vmem:[#allocation79_spill] sm:$0xff] }
0x1bb7   :  { %v10578_v0 = vmul.f32 %v18475_v52, %v10570_v46  ;;  %v10370_v38 = vmul.f32 %v13232_v51, %v10362_v29  ;;  %12452 = vmatpush.xpose.msk.msra.mxu0 %vm1373_vm1, %v19554_v44  ;;  %v19558_v46 = vld [vmem:[#allocation20_spill] sm:$0xff] }
0x1bb8   :  { %v13234_v23 = vpop.eup %13233  ;;  %v10577_v6 = vmul.f32 %v18477_v49, %v10569_v15 }
0x1bb9   :  { %v13236_v27 = vpop.eup %13235  ;;  %v10378_v36 = vmul.f32 %v18481_v14, %v10370_v38  ;;  %v10353_v25 = vmul.f32 %v13234_v23, %v10333_v60  ;;  %12437 = vmatmul.msk.f32.vlgmr.msra.gmra.mxu1 %vm1514_vm2, %v10578_v0  ;;  %v10318_v22 = vpop.xlane.xlu1 %10317  ;;  %v19556_v60 = vld [vmem:[#allocation17_spill] sm:$0xff] }
0x1bba   :  { %v13238_v21 = vpop.eup %13237  ;;  %v10355_v61 = vmul.f32 %v13236_v27, %v10339_v37  ;;  %12455 = vmatpush.xpose.msk.msra.mxu1 %vm1373_vm1, %v19555_v42  ;;  %13239 = vrcp.f32 %v10318_v22  ;;  %v10321_v52 = vpop.xlane.xlu0 %10320  ;;  %12436 = vmatmul.msk.f32.gmra.mxu0 %vm1514_vm2, %v10577_v6 }
0x1bbb   :  { %v10361_v34 = vsub.f32 2.0, %v10353_v25  ;;  %v10555_v51 = vmul.f32 %v13238_v21, %v10531_v54  ;;  %13241 = vrcp.f32 %v10321_v52  ;;  %v10324_v49 = vpop.xlane.xlu2 %10323  ;;  %12449 = vmatmul.msk.f32.vlgmr.msrb.gmra.mxu3 %vm1514_vm2, %v10378_v36 }
0x1bbc   :  { %v10363_v14 = vsub.f32 2.0, %v10355_v61  ;;  %13243 = vrcp.f32 %v10324_v49  ;;  %11127 = vmatpush.msrb.mxu3 %v19556_v60  ;;  %v19561_v60 = vld [vmem:[#allocation93_spill] sm:$0xff] }
0x1bbd   :  { %v10369_v31 = vmul.f32 %v13234_v23, %v10361_v34  ;;  %v10563_v57 = vsub.f32 2.0, %v10555_v51 }
0x1bbe   :  { %v10371_v37 = vmul.f32 %v13236_v27, %v10363_v14  ;;  %12456 = vmatpush.xpose.msk.msra.mxu1 %vm1373_vm1, %v19557_v62  ;;  %11128 = vmatpush.msrb.mxu3 %v19558_v46 }
0x1bbf   :  { %v10377_v29 = vmul.f32 %v18490_v55, %v10369_v31  ;;  %v10571_v15 = vmul.f32 %v13238_v21, %v10563_v57  ;;  %v19562_v57 = vld [vmem:[#allocation18_spill] sm:$0xff] }
0x1bc0   :  { %v13240_v54 = vpop.eup %13239  ;;  %v10379_v0 = vmul.f32 %v18492_v12, %v10371_v37 }
0x1bc1   :  { %v13242_v38 = vpop.eup %13241  ;;  %v10579_v44 = vmul.f32 %v18496_v8, %v10571_v15  ;;  %v10348_v6 = vmul.f32 %v13240_v54, %v10318_v22  ;;  %12448 = vmatmul.msk.f32.gmra.mxu2 %vm1514_vm2, %v10377_v29  ;;  %v10327_v23 = vpop.xlane.xlu1 %10326 }
0x1bc2   :  { %v13244_v36 = vpop.eup %13243  ;;  %13245 = vrcp.f32 %v10327_v23  ;;  %v10349_v25 = vmul.f32 %v13242_v38, %v10321_v52  ;;  %v19559_v52 = vld [vmem:[#allocation89_spill] sm:$0xff] }
0x1bc3   :  { %v10356_v27 = vsub.f32 2.0, %v10348_v6  ;;  %v10350_v61 = vmul.f32 %v13244_v36, %v10324_v49  ;;  %12438 = vmatmul.msk.f32.gmra.mxu1 %vm1514_vm2, %v10579_v44  ;;  %12450 = vmatmul.msk.f32.gmra.mxu3 %vm1514_vm2, %v10379_v0  ;;  %v13471_v49 = vld [vmem:[%s18834_s4 + $0x10] sm:$0xff] }
0x1bc4   :  { %v10357_v42 = vsub.f32 2.0, %v10349_v25 }
0x1bc5   :  { %v10364_v55 = vmul.f32 %v13240_v54, %v10356_v27  ;;  %v10358_v21 = vsub.f32 2.0, %v10350_v61 }
0x1bc6   :  { %v10365_v14 = vmul.f32 %v13242_v38, %v10357_v42 }
0x1bc7   :  { %v10372_v12 = vmul.f32 %v18503_v47, %v10364_v55  ;;  %v10366_v34 = vmul.f32 %v13244_v36, %v10358_v21 }
0x1bc8   :  { %v13246_v8 = vpop.eup %13245  ;;  %v10373_v37 = vmul.f32 %v18505_v1, %v10365_v14 }
0x1bc9   :  { %v10374_v22 = vmul.f32 %v18509_v41, %v10366_v34  ;;  %v10351_v51 = vmul.f32 %v13246_v8, %v10327_v23  ;;  %12443 = vmatmul.msk.f32.vlgmr.msrb.gmra.mxu0 %vm1514_vm2, %v10372_v12  ;;  %12461 = vmatmul.msk.f32.vlgmr.msra.gmra.mxu2 %vm1373_vm1, %v19518_v5  ;;  %v19560_v41 = vld [vmem:[#allocation13_spill] sm:$0xff]  ;;  %v13472_v5 = vld [vmem:[%s18834_s4 + $0x18] sm:$0xff] }
0x1bca   :  { %11040 = vmatpush.msrb.mxu0 %v19559_v52  ;;  %11223 = vmatpush.msra.mxu2 %v13471_v49 }
0x1bcb   :  { %v10359_v47 = vsub.f32 2.0, %v10351_v51  ;;  %12445 = vmatmul.msk.f32.vlgmr.msrb.gmra.mxu1 %vm1514_vm2, %v10374_v22  ;;  %12465 = vmatmul.msk.f32.vlgmr.msra.gmra.mxu3 %vm1373_vm1, %v19521_v33  ;;  %v13473_v33 = vld [vmem:[%s18834_s4] sm:$0xff] }
0x1bcc   :  { %11041 = vmatpush.msrb.mxu0 %v19560_v41  ;;  %11069 = vmatpush.msrb.mxu1 %v19561_v60 }
0x1bcd   :  { %v10367_v31 = vmul.f32 %v13246_v8, %v10359_v47  ;;  %11252 = vmatpush.msra.mxu3 %v13472_v5 }
0x1bce   :  { %11070 = vmatpush.msrb.mxu1 %v19562_v57 }
0x1bcf   :  { %v10375_v62 = vmul.f32 %v18515_v45, %v10367_v31 }
0x1bd1   :  { %12444 = vmatmul.msk.f32.gmra.mxu0 %vm1514_vm2, %v10373_v37  ;;  %12462 = vmatmul.msk.f32.gmra.mxu2 %vm1373_vm1, %v19523_v4  ;;  %v13474_v4 = vld [vmem:[%s18834_s4 + $0x8] sm:$0xff] }
0x1bd3   :  { %12446 = vmatmul.msk.f32.gmra.mxu1 %vm1514_vm2, %v10375_v62  ;;  %12466 = vmatmul.msk.f32.gmra.mxu3 %vm1373_vm1, %v19525_v16 }
0x1bd9   :  { %12453 = vmatmul.msk.f32.vlgmr.msra.gmra.mxu0 %vm1373_vm1, %v19534_v9 }
0x1bda   :  { %11165 = vmatpush.msra.mxu0 %v13473_v33 }
0x1bdb   :  { %12457 = vmatmul.msk.f32.vlgmr.msra.gmra.mxu1 %vm1373_vm1, %v19537_v13 }
0x1bdc   :  { %11194 = vmatpush.msra.mxu1 %v13474_v4 }
0x1bdd   :  { %v18603_v16 = vpop.f32.mrf.mxu2 }
0x1be1   :  { %12454 = vmatmul.msk.f32.gmra.mxu0 %vm1373_vm1, %v19539_v3 }
0x1be2   :  { %v18605_v9 = vpop.f32.mrf.mxu3 }
0x1be3   :  { %12458 = vmatmul.msk.f32.gmra.mxu1 %vm1373_vm1, %v19541_v43 }
0x1be5   :  { %v18607_v1 = vpop.f32.mrf.mxu2 }
0x1bea   :  { %v10697_v46 = vpop.f32.mrf.mxu3 }
0x1bed   :  { %v18609_v29 = vpop.f32.mrf.mxu2 }
0x1c2f   :  { %v10607_v45 = vpop.f32.mrf.mxu0 }
0x1c36   :  { %v10636_v13 = vpop.f32.mrf.mxu1 }
0x1c37   :  { %v10610_v15 = vpop.f32.mrf.mxu0 }
0x1c3e   :  { %v18611_v54 = vpop.f32.mrf.mxu3 }
0x1c40   :  { %v10639_v0 = vpop.f32.mrf.mxu1 }
0x1c44   :  { %v18613_v38 = vpop.f32.mrf.mxu2 }
0x1c46   :  { %v10723_v3 = vpop.f32.mrf.mxu0  ;;  %v10813_v44 = vpop.f32.mrf.mxu3 }
0x1c47   :  { %v18615_v43 = vadd.f32 %v10723_v3, %v10607_v45  ;;  %v18617_v6 = vadd.f32 %v10813_v44, %v10697_v46 }
0x1c48   :  { %v10752_v23 = vpop.f32.mrf.mxu1 }
0x1c49   :  { %v18619_v36 = vadd.f32 %v10752_v23, %v10636_v13 }
0x1c4c   :  { %v10879_v27 = vpop.f32.mrf.mxu2 }
0x1c4d   :  { %v10920_v25 = vsel %vm1514_vm2, %v10879_v27, -inf }
0x1c4e   :  { %v10902_v61 = vpop.f32.mrf.mxu3  ;;  %10921 = vmax.xlane.f32.xlu2 %v10920_v25  ;;  %v10726_v55 = vpop.f32.mrf.mxu0 }
0x1c4f   :  { %v18622_v21 = vadd.f32 %v10726_v55, %v10610_v15  ;;  %v10926_v12 = vsel %vm1514_vm2, %v10902_v61, -inf }
0x1c50   :  { %10927 = vmax.xlane.f32.xlu0 %v10926_v12  ;;  %v10755_v42 = vpop.f32.mrf.mxu1 }
0x1c51   :  { %v18625_v34 = vadd.f32 %v10755_v42, %v10639_v0 }
0x1c54   :  { %v10882_v8 = vpop.f32.mrf.mxu2 }
0x1c55   :  { %v10923_v22 = vsel %vm1514_vm2, %v10882_v8, -inf }
0x1c56   :  { %10924 = vmax.xlane.f32.xlu2 %v10923_v22  ;;  %v10833_v51 = vpop.f32.mrf.mxu0  ;;  %v10905_v47 = vpop.f32.mrf.mxu3 }
0x1c57   :  { %v10908_v52 = vsel %vm1514_vm2, %v10833_v51, -inf  ;;  %v10929_v60 = vsel %vm1514_vm2, %v10905_v47, -inf }
0x1c58   :  { %10909 = vmax.xlane.f32.xlu1 %v10908_v52  ;;  %v10856_v49 = vpop.f32.mrf.mxu1 }
0x1c59   :  { %v10914_v14 = vsel %vm1514_vm2, %v10856_v49, -inf }
0x1c5a   :  { %10915 = vmax.xlane.f32.xlu0 %v10914_v14 }
0x1c5e   :  { %v10836_v41 = vpop.f32.mrf.mxu0 }
0x1c5f   :  { %v10911_v31 = vsel %vm1514_vm2, %v10836_v41, -inf }
0x1c60   :  { %10930 = vmax.xlane.f32.xlu1 %v10929_v60  ;;  %10912 = vmax.xlane.f32.xlu2 %v10911_v31  ;;  %v10859_v5 = vpop.f32.mrf.mxu1 }
0x1c61   :  { %v10917_v57 = vsel %vm1514_vm2, %v10859_v5, -inf }
0x1c62   :  { %10918 = vmax.xlane.f32.xlu0 %v10917_v57 }
0x1cc1   :  { %v10922_v37 = vpop.xlane.xlu2 %10921 }
0x1cc2   :  { %v10936_v62 = vsub.f32 %v10879_v27, %v10922_v37 }
0x1cc3   :  { %v10928_v33 = vpop.xlane.xlu0 %10927 }
0x1cc4   :  { %v10948_v4 = vmul.f32 1.442695, %v10936_v62  ;;  %v10938_v45 = vsub.f32 %v10902_v61, %v10928_v33 }
0x1cc6   :  { %13247 = vpow2.f32 %v10948_v4  ;;  %v10952_v46 = vmul.f32 1.442695, %v10938_v45 }
0x1cc8   :  { %13249 = vpow2.f32 %v10952_v46 }
0x1cc9   :  { %v10925_v13 = vpop.xlane.xlu2 %10924 }
0x1cca   :  { %v10937_v15 = vsub.f32 %v10882_v8, %v10925_v13 }
0x1ccb   :  { %v10910_v0 = vpop.xlane.xlu1 %10909 }
0x1ccc   :  { %v13248_v3 = vpop.eup %13247  ;;  %v10950_v44 = vmul.f32 1.442695, %v10937_v15  ;;  %v10932_v23 = vsub.f32 %v10833_v51, %v10910_v0 }
0x1ccd   :  { %v10916_v25 = vpop.xlane.xlu0 %10915  ;;  %v10968_v55 = vsel %vm1514_vm2, %v13248_v3, 0.0 }
0x1cce   :  { %v13250_v12 = vpop.eup %13249  ;;  %13251 = vpow2.f32 %v10950_v44  ;;  %v10940_v42 = vmul.f32 1.442695, %v10932_v23  ;;  %v10934_v22 = vsub.f32 %v10856_v49, %v10916_v25  ;;  %10969 = vadd.xlane.f32.xlu1 %v10968_v55 }
0x1ccf   :  { %v10974_v27 = vsel %vm1514_vm2, %v13250_v12, 0.0 }
0x1cd0   :  { %13253 = vpow2.f32 %v10940_v42  ;;  %v10944_v61 = vmul.f32 1.442695, %v10934_v22  ;;  %10975 = vadd.xlane.f32.xlu2 %v10974_v27 }
0x1cd2   :  { %13255 = vpow2.f32 %v10944_v61 }
0x1cd3   :  { %v10913_v52 = vpop.xlane.xlu2 %10912  ;;  %v10931_v8 = vpop.xlane.xlu1 %10930 }
0x1cd4   :  { %v18635_v14 = vpop.eup %13251  ;;  %v10933_v60 = vsub.f32 %v10836_v41, %v10913_v52  ;;  %v10939_v51 = vsub.f32 %v10905_v47, %v10931_v8 }
0x1cd5   :  { %v10919_v31 = vpop.xlane.xlu0 %10918  ;;  %v10971_v57 = vsel %vm1514_vm2, %v18635_v14, 0.0 }
0x1cd6   :  { %v18639_v37 = vpop.eup %13253  ;;  %v10942_v49 = vmul.f32 1.442695, %v10933_v60  ;;  %v10954_v62 = vmul.f32 1.442695, %v10939_v51  ;;  %v10935_v33 = vsub.f32 %v10859_v5, %v10919_v31  ;;  %10972 = vadd.xlane.f32.xlu1 %v10971_v57 }
0x1cd7   :  { %v10956_v4 = vsel %vm1514_vm2, %v18639_v37, 0.0 }
0x1cd8   :  { %v18643_v45 = vpop.eup %13255  ;;  %13257 = vpow2.f32 %v10942_v49  ;;  %v10946_v46 = vmul.f32 1.442695, %v10935_v33  ;;  %10957 = vadd.xlane.f32.xlu0 %v10956_v4 }
0x1cd9   :  { %13259 = vpow2.f32 %v10954_v62  ;;  %v10962_v47 = vsel %vm1514_vm2, %v18643_v45, 0.0 }
0x1cda   :  { %13261 = vpow2.f32 %v10946_v46  ;;  %10963 = vadd.xlane.f32.xlu2 %v10962_v47  ;;  %v13475_v47 = vld [vmem:[%s18834_s4 + $0x30] sm:$0xff] }
0x1cde   :  { %v18647_v41 = vpop.eup %13257 }
0x1cdf   :  { %v18649_v13 = vpop.eup %13259  ;;  %v10959_v5 = vsel %vm1514_vm2, %v18647_v41, 0.0 }
0x1ce0   :  { %v18653_v15 = vpop.eup %13261  ;;  %10960 = vadd.xlane.f32.xlu1 %v10959_v5  ;;  %v10977_v0 = vsel %vm1514_vm2, %v18649_v13, 0.0 }
0x1ce1   :  { %10978 = vadd.xlane.f32.xlu0 %v10977_v0  ;;  %v10965_v44 = vsel %vm1514_vm2, %v18653_v15, 0.0 }
0x1ce2   :  { %10966 = vadd.xlane.f32.xlu2 %v10965_v44 }
0x1d41   :  { %v10970_v23 = vpop.xlane.xlu1 %10969 }
0x1d42   :  { %13263 = vrcp.f32 %v10970_v23 }
0x1d43   :  { %v10976_v25 = vpop.xlane.xlu2 %10975 }
0x1d44   :  { %13265 = vrcp.f32 %v10976_v25 }
0x1d48   :  { %v13264_v55 = vpop.eup %13263 }
0x1d49   :  { %v10992_v42 = vmul.f32 %v13264_v55, %v10970_v23  ;;  %v10973_v22 = vpop.xlane.xlu1 %10972 }
0x1d4a   :  { %v13266_v27 = vpop.eup %13265  ;;  %13267 = vrcp.f32 %v10973_v22 }
0x1d4b   :  { %v11000_v61 = vsub.f32 2.0, %v10992_v42  ;;  %v10994_v52 = vmul.f32 %v13266_v27, %v10976_v25  ;;  %v10958_v8 = vpop.xlane.xlu0 %10957 }
0x1d4c   :  { %13269 = vrcp.f32 %v10958_v8 }
0x1d4d   :  { %v11008_v60 = vmul.f32 %v13264_v55, %v11000_v61  ;;  %v11002_v51 = vsub.f32 2.0, %v10994_v52  ;;  %v10964_v31 = vpop.xlane.xlu2 %10963 }
0x1d4e   :  { %13271 = vrcp.f32 %v10964_v31 }
0x1d4f   :  { %v11016_v57 = vmul.f32 %v13248_v3, %v11008_v60  ;;  %v11010_v49 = vmul.f32 %v13266_v27, %v11002_v51  ;;  %v13476_v3 = vld [vmem:[%s18834_s4 + $0x38] sm:$0xff] }
0x1d50   :  { %v13268_v62 = vpop.eup %13267 }
0x1d51   :  { %v11018_v33 = vmul.f32 %v13250_v12, %v11010_v49  ;;  %v10993_v4 = vmul.f32 %v13268_v62, %v10973_v22  ;;  %12471 = vmatmul.msk.f32.vlgmr.msrb.gmra.mxu2 %vm1514_vm2, %v11016_v57 }
0x1d52   :  { %v13270_v46 = vpop.eup %13269  ;;  %11339 = vmatpush.msrb.mxu2 %v13475_v47 }
0x1d53   :  { %v11001_v5 = vsub.f32 2.0, %v10993_v4  ;;  %v10988_v0 = vmul.f32 %v13270_v46, %v10958_v8  ;;  %12473 = vmatmul.msk.f32.vlgmr.msrb.gmra.mxu3 %vm1514_vm2, %v11018_v33  ;;  %v10961_v44 = vpop.xlane.xlu1 %10960  ;;  %v19563_v4 = vld [vmem:[#allocation95_spill] sm:$0xff] }
0x1d54   :  { %v13272_v23 = vpop.eup %13271  ;;  %v10979_v25 = vpop.xlane.xlu0 %10978  ;;  %13273 = vrcp.f32 %v10961_v44  ;;  %11368 = vmatpush.msrb.mxu3 %v13476_v3 }
0x1d55   :  { %v11009_v12 = vmul.f32 %v13268_v62, %v11001_v5  ;;  %v10996_v55 = vsub.f32 2.0, %v10988_v0  ;;  %v10990_v42 = vmul.f32 %v13272_v23, %v10964_v31  ;;  %13275 = vrcp.f32 %v10979_v25  ;;  %v10967_v22 = vpop.xlane.xlu2 %10966 }
0x1d56   :  { %13277 = vrcp.f32 %v10967_v22 }
0x1d57   :  { %v11017_v27 = vmul.f32 %v18635_v14, %v11009_v12  ;;  %v11004_v61 = vmul.f32 %v13270_v46, %v10996_v55  ;;  %v10998_v52 = vsub.f32 2.0, %v10990_v42  ;;  %v13477_v14 = vld [vmem:[%s18834_s4 + $0x20] sm:$0xff]  ;;  %v19564_v46 = vld [vmem:[#allocation80_spill] sm:$0xff] }
0x1d59   :  { %v11012_v8 = vmul.f32 %v18639_v37, %v11004_v61  ;;  %v11006_v60 = vmul.f32 %v13272_v23, %v10998_v52  ;;  %12472 = vmatmul.msk.f32.gmra.mxu2 %vm1514_vm2, %v11017_v27  ;;  %v7758_v37 = vadd.f32 %v19564_v46, %v19563_v4  ;;  %v13479_v27 = vld [vmem:[%s18834_s4 + $0x50] sm:$0xff]  ;;  %v19566_v52 = vld [vmem:[#allocation9_spill] sm:$0xff]  ;;  %v19574_v4 = vld [vmem:[#allocation28_spill] sm:$0xff] }
0x1d5a   :  { %v13274_v51 = vpop.eup %13273  ;;  %v19575_v46 = vld [vmem:[#allocation48_spill] sm:$0xff] }
0x1d5b   :  { %v13276_v57 = vpop.eup %13275  ;;  %v11014_v49 = vmul.f32 %v18643_v45, %v11006_v60  ;;  %v10989_v33 = vmul.f32 %v13274_v51, %v10961_v44  ;;  %12467 = vmatmul.msk.f32.vlgmr.msrb.gmra.mxu0 %vm1514_vm2, %v11012_v8  ;;  %v13478_v45 = vld [vmem:[%s18834_s4 + $0x28] sm:$0xff]  ;;  %v19565_v44 = vld [vmem:[#allocation99_spill] sm:$0xff]  ;;  %v19567_v8 = vld [vmem:[#allocation24_spill] sm:$0xff] }
0x1d5c   :  { %v13278_v31 = vpop.eup %13277  ;;  %v10995_v62 = vmul.f32 %v13276_v57, %v10979_v25  ;;  %11281 = vmatpush.msrb.mxu0 %v13477_v14  ;;  %v8140_v23 = vadd.f32 %v19565_v44, %v7758_v37  ;;  %v7761_v60 = vadd.f32 %v19567_v8, %v19566_v52  ;;  %v19573_v14 = vld [vmem:[#allocation81_spill] sm:$0xff]  ;;  %v19583_v8 = vld [vmem:[#allocation34_spill] sm:$0xff] }
0x1d5d   :  { %v10997_v47 = vsub.f32 2.0, %v10989_v33  ;;  %v10991_v5 = vmul.f32 %v13278_v31, %v10967_v22  ;;  %12469 = vmatmul.msk.f32.vlgmr.msrb.gmra.mxu1 %vm1514_vm2, %v11014_v49  ;;  %v19571_v33 = vld [vmem:[#allocation91_spill] sm:$0xff]  ;;  %v13480_v44 = vld [vmem:[%s18834_s4 + $0x40] sm:$0xff] }
0x1d5e   :  { %v11003_v0 = vsub.f32 2.0, %v10995_v62  ;;  %11310 = vmatpush.msrb.mxu1 %v13478_v45 }
0x1d5f   :  { %v11005_v25 = vmul.f32 %v13274_v51, %v10997_v47  ;;  %v10999_v3 = vsub.f32 2.0, %v10991_v5  ;;  %v19569_v51 = vld [vmem:[#allocation86_spill] sm:$0xff]  ;;  %v19576_v47 = vld [vmem:[#allocation96_spill] sm:$0xff] }
0x1d60   :  { %v11011_v12 = vmul.f32 %v13276_v57, %v11003_v0  ;;  %v19577_v0 = vld [vmem:[#allocation97_spill] sm:$0xff] }
0x1d61   :  { %v11013_v55 = vmul.f32 %v18647_v41, %v11005_v25  ;;  %v11007_v42 = vmul.f32 %v13278_v31, %v10999_v3  ;;  %12479 = vmatmul.msk.f32.vlgmr.msra.gmra.mxu2 %vm1373_vm1, %v8140_v23  ;;  %v19568_v41 = vld [vmem:[#allocation25_spill] sm:$0xff]  ;;  %v19572_v31 = vld [vmem:[#allocation83_spill] sm:$0xff]  ;;  %v19578_v23 = vld [vmem:[#allocation102_spill] sm:$0xff] }
0x1d62   :  { %v11019_v22 = vmul.f32 %v18649_v13, %v11011_v12  ;;  %11455 = vmatpush.msra.mxu2 %v13479_v27  ;;  %v7700_v57 = vadd.f32 %v19569_v51, %v19568_v41  ;;  %v19570_v13 = vld [vmem:[#allocation100_spill] sm:$0xff]  ;;  %v7787_v62 = vadd.f32 %v19572_v31, %v19571_v33  ;;  %v19579_v25 = vld [vmem:[#allocation62_spill] sm:$0xff]  ;;  %v19588_v31 = vld [vmem:[#allocation35_spill] sm:$0xff] }
0x1d63   :  { %v11015_v61 = vmul.f32 %v18653_v15, %v11007_v42  ;;  %12468 = vmatmul.msk.f32.gmra.mxu0 %vm1514_vm2, %v11013_v55  ;;  %v8141_v49 = vadd.f32 %v19570_v13, %v7761_v60  ;;  %v7729_v15 = vadd.f32 %v19574_v4, %v19573_v14  ;;  %v8798_v3 = vadd.f32 %v19579_v25, %v19578_v23  ;;  %v13481_v12 = vld [vmem:[%s18834_s4 + $0x58] sm:$0xff]  ;;  %v13482_v55 = vld [vmem:[%s18834_s4 + $0x48] sm:$0xff]  ;;  %v19580_v42 = vld [vmem:[#allocation85_spill] sm:$0xff] }
0x1d64   :  { %12474 = vmatmul.msk.f32.gmra.mxu3 %vm1514_vm2, %v11019_v22  ;;  %v8136_v37 = vadd.f32 %v19575_v46, %v7700_v57  ;;  %v8142_v5 = vadd.f32 %v19576_v47, %v7787_v62  ;;  %v19581_v22 = vld [vmem:[#allocation87_spill] sm:$0xff]  ;;  %v19584_v60 = vld [vmem:[#allocation84_spill] sm:$0xff]  ;;  %v19585_v51 = vld [vmem:[#allocation82_spill] sm:$0xff] }
0x1d65   :  { %12470 = vmatmul.msk.f32.gmra.mxu1 %vm1514_vm2, %v11015_v61  ;;  %v8138_v45 = vadd.f32 %v19577_v0, %v7729_v15  ;;  %v7703_v27 = vadd.f32 %v19581_v22, %v19580_v42  ;;  %v19582_v61 = vld [vmem:[#allocation55_spill] sm:$0xff]  ;;  %v7790_v41 = vadd.f32 %v19584_v60, %v19583_v8  ;;  %v19586_v57 = vld [vmem:[#allocation29_spill] sm:$0xff]  ;;  %v19589_v4 = vld [vmem:[#allocation98_spill] sm:$0xff] }
0x1d66   :  { %v9156_v52 = vadd.f32 %v19582_v61, %v8798_v3  ;;  %v7732_v13 = vadd.f32 %v19586_v57, %v19585_v51  ;;  %v13483_v14 = vld [vmem:[%s18834_s4 + $0x70] sm:$0xff]  ;;  %v19590_v46 = vld [vmem:[#allocation52_spill] sm:$0xff]  ;;  %v19595_v25 = vld [vmem:[#allocation49_spill] sm:$0xff]  ;;  %v9790_v57 = vadd.f32 %v18243_v24, %v18219_v26 }
0x1d67   :  { %v8143_v62 = vadd.f32 %v19588_v31, %v7790_v41  ;;  %v19593_v0 = vld [vmem:[#allocation60_spill] sm:$0xff]  ;;  %v19596_v3 = vld [vmem:[#allocation63_spill] sm:$0xff]  ;;  %v19601_v60 = vld [vmem:[#allocation74_spill] sm:$0xff] }
0x1d68   :  { %v8139_v15 = vadd.f32 %v19589_v4, %v7732_v13  ;;  %v19598_v42 = vld [vmem:[#allocation51_spill] sm:$0xff]  ;;  %v13484_v51 = vld [vmem:[%s18834_s4 + $0x60] sm:$0xff]  ;;  %v13485_v13 = vld [vmem:[%s18834_s4 + $0x78] sm:$0xff] }
0x1d69   :  { %12480 = vmatmul.msk.f32.gmra.mxu2 %vm1373_vm1, %v8141_v49  ;;  %v19587_v49 = vld [vmem:[#allocation101_spill] sm:$0xff]  ;;  %v19603_v31 = vld [vmem:[#allocation47_spill] sm:$0xff] }
0x1d6a   :  { %v8137_v33 = vadd.f32 %v19587_v49, %v7703_v27  ;;  %v19599_v27 = vld [vmem:[#allocation44_spill] sm:$0xff]  ;;  %v13486_v49 = vld [vmem:[%s18834_s4 + $0x68] sm:$0xff]  ;;  %v19604_v4 = vld [vmem:[#allocation53_spill] sm:$0xff] }
0x1d6b   :  { %12475 = vmatmul.msk.f32.vlgmr.msra.gmra.mxu0 %vm1373_vm1, %v8136_v37  ;;  %v19591_v37 = vld [vmem:[#allocation14_spill] sm:$0xff]  ;;  %v19606_v24 = vld [vmem:[#allocation57_spill] sm:$0xff] }
0x1d6c   :  { %12481 = vmatmul.msk.f32.vlgmr.msra.gmra.mxu3 %vm1373_vm1, %v8142_v5  ;;  %11397 = vmatpush.msra.mxu0 %v13480_v44  ;;  %v8801_v47 = vadd.f32 %v19591_v37, %v19590_v46  ;;  %v19592_v5 = vld [vmem:[#allocation21_spill] sm:$0xff]  ;;  %v19594_v44 = vld [vmem:[#allocation68_spill] sm:$0xff]  ;;  %v19607_v46 = vld [vmem:[#allocation54_spill] sm:$0xff] }
0x1d6d   :  { %12477 = vmatmul.msk.f32.vlgmr.msra.gmra.mxu1 %vm1373_vm1, %v8138_v45  ;;  %11484 = vmatpush.msra.mxu3 %v13481_v12  ;;  %v8740_v45 = vadd.f32 %v19593_v0, %v19592_v5  ;;  %v8827_v12 = vadd.f32 %v19596_v3, %v19595_v25  ;;  %v8772_v37 = vadd.f32 %v19607_v46, %v19606_v24  ;;  %v19609_v0 = vld [vmem:[#allocation33_spill] sm:$0xff] }
0x1d6e   :  { %11426 = vmatpush.msra.mxu1 %v13482_v55  ;;  %v9157_v23 = vadd.f32 %v19594_v44, %v8801_v47  ;;  %v19597_v55 = vld [vmem:[#allocation22_spill] sm:$0xff]  ;;  %v19610_v44 = vld [vmem:[#allocation11_spill] sm:$0xff]  ;;  %v9732_v25 = vadd.f32 %v18263_v59, %v18255_v19 }
0x1d6f   :  { %v8769_v22 = vadd.f32 %v19598_v42, %v19597_v55  ;;  %v9152_v61 = vadd.f32 %v19599_v27, %v8740_v45  ;;  %v19608_v47 = vld [vmem:[#allocation78_spill] sm:$0xff]  ;;  %v9761_v55 = vadd.f32 %v18265_v18, %v18257_v48 }
0x1d70   :  { %v10144_v42 = vadd.f32 %v18397_v32, %v9732_v25  ;;  %v19611_v59 = vld [vmem:[#allocation42_spill] sm:$0xff]  ;;  %v10785_v32 = vadd.f32 %v18613_v38, %v18607_v1 }
0x1d71   :  { %12487 = vmatmul.msk.f32.vlgmr.msrb.gmra.mxu2 %vm1373_vm1, %v9156_v52  ;;  %v19600_v52 = vld [vmem:[#allocation37_spill] sm:$0xff]  ;;  %v9154_v41 = vadd.f32 %v19601_v60, %v8769_v22 }
0x1d72   :  { %11571 = vmatpush.msrb.mxu2 %v13483_v14  ;;  %v9158_v8 = vadd.f32 %v19600_v52, %v8827_v12  ;;  %v10148_v14 = vadd.f32 %v18367_v20, %v9790_v57  ;;  %v9793_v20 = vadd.f32 %v18247_v10, %v18231_v40  ;;  %v9819_v12 = vadd.f32 %v18245_v28, %v18227_v50 }
0x1d73   :  { %12476 = vmatmul.msk.f32.gmra.mxu0 %vm1373_vm1, %v8137_v33  ;;  %v19602_v33 = vld [vmem:[#allocation27_spill] sm:$0xff]  ;;  %v10146_v40 = vadd.f32 %v18399_v35, %v9761_v55  ;;  %v9735_v50 = vadd.f32 %v18267_v11, %v18259_v39  ;;  %v9822_v28 = vadd.f32 %v18249_v17, %v18239_v58  ;;  %v9764_v10 = vadd.f32 %v18269_v56, %v18261_v53 }
0x1d74   :  { %12482 = vmatmul.msk.f32.gmra.mxu3 %vm1373_vm1, %v8143_v62  ;;  %v8743_v62 = vadd.f32 %v19603_v31, %v19602_v33  ;;  %v10149_v3 = vadd.f32 %v18377_v30, %v9793_v20  ;;  %v10150_v22 = vadd.f32 %v18375_v2, %v9819_v12  ;;  %v10782_v39 = vadd.f32 %v18609_v29, %v18603_v16 }
0x1d75   :  { %12478 = vmatmul.msk.f32.gmra.mxu1 %vm1373_vm1, %v8139_v15  ;;  %v19605_v15 = vld [vmem:[#allocation16_spill] sm:$0xff]  ;;  %v10145_v19 = vadd.f32 %v18401_v63, %v9735_v50  ;;  %v10151_v48 = vadd.f32 %v18381_v7, %v9822_v28  ;;  %v10147_v18 = vadd.f32 %v19611_v59, %v9764_v10  ;;  %v10811_v58 = vadd.f32 %v18611_v54, %v18605_v9 }
0x1d76   :  { %v8830_v26 = vadd.f32 %v19605_v15, %v19604_v4  ;;  %v9153_v5 = vadd.f32 %v19608_v47, %v8743_v62 }
0x1d78   :  { %v9159_v45 = vadd.f32 %v19609_v0, %v8830_v26 }
0x1d79   :  { %12488 = vmatmul.msk.f32.gmra.mxu2 %vm1373_vm1, %v9157_v23  ;;  %v9155_v23 = vadd.f32 %v19610_v44, %v8772_v37 }
0x1d7b   :  { %12483 = vmatmul.msk.f32.vlgmr.msrb.gmra.mxu0 %vm1373_vm1, %v9152_v61 }
0x1d7c   :  { %12489 = vmatmul.msk.f32.vlgmr.msrb.gmra.mxu3 %vm1373_vm1, %v9158_v8  ;;  %11513 = vmatpush.msrb.mxu0 %v13484_v51 }
0x1d7d   :  { %12485 = vmatmul.msk.f32.vlgmr.msrb.gmra.mxu1 %vm1373_vm1, %v9154_v41  ;;  %11600 = vmatpush.msrb.mxu3 %v13485_v13 }
0x1d7e   :  { %11542 = vmatpush.msrb.mxu1 %v13486_v49 }
0x1d81   :  { %12495 = vmatmul.msk.f32.vlgmr.msra.gmra.mxu2 %vm1373_vm1, %v10148_v14 }
0x1d83   :  { %12484 = vmatmul.msk.f32.gmra.mxu0 %vm1373_vm1, %v9153_v5 }
0x1d84   :  { %12490 = vmatmul.msk.f32.gmra.mxu3 %vm1373_vm1, %v9159_v45 }
0x1d85   :  { %12486 = vmatmul.msk.f32.gmra.mxu1 %vm1373_vm1, %v9155_v23 }
0x1d89   :  { %12496 = vmatmul.msk.f32.gmra.mxu2 %vm1373_vm1, %v10149_v3 }
0x1d8b   :  { %12491 = vmatmul.msk.f32.vlgmr.msra.gmra.mxu0 %vm1373_vm1, %v10144_v42 }
0x1d8c   :  { %12497 = vmatmul.msk.f32.vlgmr.msra.gmra.mxu3 %vm1373_vm1, %v10150_v22 }
0x1d8d   :  { %12493 = vmatmul.msk.f32.vlgmr.msra.gmra.mxu1 %vm1373_vm1, %v10146_v40 }
0x1d93   :  { %12492 = vmatmul.msk.f32.gmra.mxu0 %vm1373_vm1, %v10145_v19 }
0x1d94   :  { %12498 = vmatmul.msk.f32.gmra.mxu3 %vm1373_vm1, %v10151_v48 }
0x1d95   :  { %12494 = vmatmul.msk.f32.gmra.mxu1 %vm1373_vm1, %v10147_v18 }
0x1dd4   :  { %v11101_v11 = vpop.f32.mrf.mxu2 }
0x1dd5   :  { %v11140_v17 = vadd.f32 %v11101_v11, %v10782_v39 }
0x1dd6   :  { %v11130_v53 = vpop.f32.mrf.mxu3 }
0x1dd7   :  { %v11142_v56 = vadd.f32 %v11130_v53, %v10811_v58  ;;  %12503 = vmatmul.msk.f32.vlgmr.msrb.gmra.mxu2 %vm1373_vm1, %v11140_v17 }
0x1dd8   :  { %v11043_v2 = vpop.f32.mrf.mxu0 }
0x1dd9   :  { %v11136_v30 = vadd.f32 %v11043_v2, %v18615_v43  ;;  %12505 = vmatmul.msk.f32.vlgmr.msrb.gmra.mxu3 %vm1373_vm1, %v11142_v56 }
0x1dda   :  { %v11072_v7 = vpop.f32.mrf.mxu1 }
0x1ddb   :  { %v11138_v35 = vadd.f32 %v11072_v7, %v18619_v36  ;;  %12499 = vmatmul.msk.f32.vlgmr.msrb.gmra.mxu0 %vm1373_vm1, %v11136_v30  ;;  %v13487_v7 = vld [vmem:[%s18835_s5] ss:$0 sm:$0xff]  ;;  %s13515_s5 = smov 128  }
0x1ddc   :  { %v11104_v63 = vpop.f32.mrf.mxu2 }
0x1ddd   :  { %v11141_v16 = vadd.f32 %v11104_v63, %v10785_v32  ;;  %12501 = vmatmul.msk.f32.vlgmr.msrb.gmra.mxu1 %vm1373_vm1, %v11138_v35 }
0x1ddf   :  { %12504 = vmatmul.msk.f32.gmra.mxu2 %vm1373_vm1, %v11141_v16 }
0x1de0   :  { %v11046_v9 = vpop.f32.mrf.mxu0 }
0x1de1   :  { %v11137_v29 = vadd.f32 %v11046_v9, %v18622_v21 }
0x1de2   :  { %v11075_v54 = vpop.f32.mrf.mxu1 }
0x1de3   :  { %v11139_v43 = vadd.f32 %v11075_v54, %v18625_v34  ;;  %12500 = vmatmul.msk.f32.gmra.mxu0 %vm1373_vm1, %v11137_v29 }
0x1de4   :  { %v11225_v61 = vpop.f32.mrf.mxu2 }
0x1de5   :  { %12502 = vmatmul.msk.f32.gmra.mxu1 %vm1373_vm1, %v11139_v43 }
0x1de7   :  { %v11133_v1 = vpop.f32.mrf.mxu3 }
0x1de8   :  { %v11143_v38 = vadd.f32 %v11133_v1, %v18617_v6  ;;  %v11167_v36 = vpop.f32.mrf.mxu0 }
0x1dea   :  { %12506 = vmatmul.msk.f32.gmra.mxu3 %vm1373_vm1, %v11143_v38  ;;  %v11196_v27 = vpop.f32.mrf.mxu1 }
0x1deb   :  { %v11608_v57 = vadd.f32 %v11196_v27, %v11167_v36 }
0x1dec   :  { %v11228_v41 = vpop.f32.mrf.mxu2 }
0x1ded   :  { %v11609_v49 = vadd.f32 %v11608_v57, %v11225_v61 }
0x1def   :  { %v11254_v52 = vpop.f32.mrf.mxu3 }
0x1df0   :  { %v11170_v8 = vpop.f32.mrf.mxu0  ;;  %v11610_v31 = vadd.f32 %v11609_v49, %v11254_v52 }
0x1df2   :  { %v11199_v60 = vpop.f32.mrf.mxu1 }
0x1df3   :  { %v11623_v6 = vadd.f32 %v11199_v60, %v11170_v8 }
0x1df4   :  { %v11341_v13 = vpop.f32.mrf.mxu2 }
0x1df5   :  { %v11624_v24 = vadd.f32 %v11623_v6, %v11228_v41 }
0x1df7   :  { %v11257_v21 = vpop.f32.mrf.mxu3 }
0x1df8   :  { %v11283_v51 = vpop.f32.mrf.mxu0  ;;  %v11625_v47 = vadd.f32 %v11624_v24, %v11257_v21 }
0x1df9   :  { %v11611_v14 = vadd.f32 %v11610_v31, %v11283_v51 }
0x1dfa   :  { %v11312_v34 = vpop.f32.mrf.mxu1 }
0x1dfb   :  { %v11612_v26 = vadd.f32 %v11611_v14, %v11312_v34 }
0x1dfc   :  { %v11344_v15 = vpop.f32.mrf.mxu2 }
0x1dfd   :  { %v11613_v37 = vadd.f32 %v11612_v26, %v11341_v13 }
0x1dff   :  { %v11370_v33 = vpop.f32.mrf.mxu3 }
0x1e00   :  { %v11286_v62 = vpop.f32.mrf.mxu0  ;;  %v11614_v44 = vadd.f32 %v11613_v37, %v11370_v33 }
0x1e01   :  { %v11626_v0 = vadd.f32 %v11625_v47, %v11286_v62 }
0x1e02   :  { %v11315_v4 = vpop.f32.mrf.mxu1 }
0x1e03   :  { %v11627_v25 = vadd.f32 %v11626_v0, %v11315_v4 }
0x1e04   :  { %v11457_v23 = vpop.f32.mrf.mxu2 }
0x1e05   :  { %v11628_v55 = vadd.f32 %v11627_v25, %v11344_v15 }
0x1e07   :  { %v11373_v46 = vpop.f32.mrf.mxu3 }
0x1e08   :  { %v11399_v5 = vpop.f32.mrf.mxu0  ;;  %v11629_v50 = vadd.f32 %v11628_v55, %v11373_v46 }
0x1e09   :  { %v11615_v20 = vadd.f32 %v11614_v44, %v11399_v5 }
0x1e0a   :  { %v11428_v45 = vpop.f32.mrf.mxu1 }
0x1e0b   :  { %v11616_v12 = vadd.f32 %v11615_v20, %v11428_v45 }
0x1e0c   :  { %v11460_v28 = vpop.f32.mrf.mxu2 }
0x1e0d   :  { %v11617_v40 = vadd.f32 %v11616_v12, %v11457_v23 }
0x1e0f   :  { %v11486_v3 = vpop.f32.mrf.mxu3 }
0x1e10   :  { %v11402_v42 = vpop.f32.mrf.mxu0  ;;  %v11618_v48 = vadd.f32 %v11617_v40, %v11486_v3 }
0x1e11   :  { %v11630_v10 = vadd.f32 %v11629_v50, %v11402_v42 }
0x1e12   :  { %v11431_v22 = vpop.f32.mrf.mxu1 }
0x1e13   :  { %v11631_v39 = vadd.f32 %v11630_v10, %v11431_v22 }
0x1e15   :  { %v11632_v56 = vadd.f32 %v11631_v39, %v11460_v28 }
0x1e17   :  { %v11489_v19 = vpop.f32.mrf.mxu3 }
0x1e18   :  { %v11633_v63 = vadd.f32 %v11632_v56, %v11489_v19 }
0x1e58   :  { %v11515_v59 = vpop.f32.mrf.mxu0 }
0x1e59   :  { %v11619_v18 = vadd.f32 %v11618_v48, %v11515_v59 }
0x1e5a   :  { %v11544_v11 = vpop.f32.mrf.mxu1  ;;  %v11573_v17 = vpop.f32.mrf.mxu2 }
0x1e5b   :  { %v11620_v58 = vadd.f32 %v11619_v18, %v11544_v11 }
0x1e5c   :  { %v11602_v2 = vpop.f32.mrf.mxu3 }
0x1e5d   :  { %v11621_v53 = vadd.f32 %v11620_v58, %v11573_v17 }
0x1e5f   :  { %v11622_v30 = vadd.f32 %v11621_v53, %v11602_v2 }
0x1e60   :  { %v11518_v35 = vpop.f32.mrf.mxu0 }
0x1e61   :  { %v11638_v32 = vadd.f32 %v13487_v7, %v11622_v30  ;;  %v11634_v16 = vadd.f32 %v11633_v63, %v11518_v35 }
0x1e62   :  { %v11547_v9 = vpop.f32.mrf.mxu1  ;;  %v11576_v54 = vpop.f32.mrf.mxu2 }
0x1e63   :  { %11641 = vst [vmem:[#allocation2 + $0x10] sm:$0xff] %v11638_v32  ;;  %v11635_v29 = vadd.f32 %v11634_v16, %v11547_v9 }
0x1e65   :  { %v11636_v43 = vadd.f32 %v11635_v29, %v11576_v54 }
0x1e6d   :  { %v11605_v1 = vpop.f32.mrf.mxu3 }
0x1e6e   :  { %v11637_v38 = vadd.f32 %v11636_v43, %v11605_v1 }
0x1e70   :  { %v11639_v36 = vadd.f32 %v13487_v7, %v11637_v38 }
0x1e72   :  { %11642 = vst [vmem:[#allocation2 + $0x18] sm:$0xff] %v11639_v36 }
0x1e73   :  { %11655 = dma.vmem_to_hbm [thread:$0]  %s11648_s10, 512, %s11650_s13, [#allocation3], %s13515_s5, %s13515_s5, %s13516_s14  }
0x1e74   :  { %13512 = dma.done.wait [#allocation3], 512  }
0x1e75   :  { %13513 = vsyncadd [#allocation3], 4294966784 }
0x1e76   :  { %11660 = vsyncpa [#allocation3], 1 }

</bundles_post_ra>
